<compile_context>
chip_gen: v5e
topology: v5e:2x2
jax: 0.10.0
libtpu: 0.0.40
codegen_flags: <defaults>
</compile_context>

<pallas_src>
import jax
import jax.numpy as jnp
import numpy as np
from jax.experimental import pallas as pl
from jax.experimental.pallas import tpu as pltpu


# ----------------------------------------------------------------------------
# Fused kernel: all bidirectional LSTM layers of the autoencoder in one call.
#
# Ref order (positional): x, [wih_f, whh_f, b_f, wih_r, whh_r, b_r] * n_layers,
#                         out, act_a, act_b, gx_f, gx_r
#   x:      (T, B, Din0)        input sequence (VMEM resident)
#   wih_*:  (Din_l, 4H_l)       input->gates weights per direction
#   whh_*:  (H_l, 4H_l)         hidden->gates weights per direction
#   b_*:    (1, 4H_l)           combined b_ih + b_hh per direction
#   out:    (T, B, 2H_last)     final layer output, fwd | rev on feature axis
#   act_a/b:(T, B, W_act)       ping-pong VMEM scratch for inter-layer activations
#   gx_f/r: (T, B, 4H_max)      hoisted x-projection gates per direction
# ----------------------------------------------------------------------------
def _make_fused_kernel(layer_dims, T, B, unroll):
    n_layers = len(layer_dims)

    def kernel(*refs):
        x_ref = refs[0]
        w_refs = refs[1:1 + 6 * n_layers]
        out_ref = refs[1 + 6 * n_layers]
        act_a, act_b, gx_f, gx_r = refs[2 + 6 * n_layers:]

        for l, (d_in, h) in enumerate(layer_dims):
            wih_f, whh_f, b_f, wih_r, whh_r, b_r = w_refs[6 * l:6 * l + 6]

            # --- layer input (x for layer 0, ping-pong scratch otherwise) ---
            if l == 0:
                x_in = x_ref[...]                      # (T, B, Din0)
            elif l % 2 == 1:
                x_in = act_a[:, :, :d_in]
            else:
                x_in = act_b[:, :, :d_in]

            last = (l == n_layers - 1)
            dst = out_ref if last else (act_a if l % 2 == 0 else act_b)

            # --- hoisted input projection: one big MXU matmul per direction ---
            # M = T*B rows instead of B on the serial path; bias folded in here.
            x2d = x_in.reshape(T * B, d_in)
            gf = jnp.dot(x2d, wih_f[...], preferred_element_type=jnp.float32) + b_f[...]
            gr = jnp.dot(x2d, wih_r[...], preferred_element_type=jnp.float32) + b_r[...]
            gx_f[:, :, :4 * h] = gf.reshape(T, B, 4 * h)
            gx_r[:, :, :4 * h] = gr.reshape(T, B, 4 * h)

            # Recurrent weights stay live in vregs across the whole time loop.
            whh_f_v = whh_f[...]
            whh_r_v = whh_r[...]

            def cell(gx_t, h_prev, c_prev, whh_v, h=h):
                # Only the small recurrent matmul is on the serial dependence chain.
                gates = gx_t + jnp.dot(h_prev, whh_v,
                                       preferred_element_type=jnp.float32)
                i_g = jax.nn.sigmoid(gates[:, 0 * h:1 * h])
                f_g = jax.nn.sigmoid(gates[:, 1 * h:2 * h])
                g_g = jnp.tanh(gates[:, 2 * h:3 * h])
                o_g = jax.nn.sigmoid(gates[:, 3 * h:4 * h])
                c_new = f_g * c_prev + i_g * g_g
                h_new = o_g * jnp.tanh(c_new)
                return h_new, c_new

            def body(t, carry, dst=dst, whh_f_v=whh_f_v, whh_r_v=whh_r_v, h=h):
                h_f, c_f, h_r, c_r = carry
                # forward direction consumes step t
                h_f, c_f = cell(gx_f[t, :, :4 * h], h_f, c_f, whh_f_v)
                dst[t, :, :h] = h_f
                # reverse direction consumes step T-1-t
                tr = T - 1 - t
                h_r, c_r = cell(gx_r[tr, :, :4 * h], h_r, c_r, whh_r_v)
                dst[tr, :, h:2 * h] = h_r
                return (h_f, c_f, h_r, c_r)

            zeros = jnp.zeros((B, h), jnp.float32)
            jax.lax.fori_loop(0, T, body, (zeros, zeros, zeros, zeros),
                              unroll=unroll)

    return kernel


# ----------------------------------------------------------------------------
# Full BdLSTMAE forward: x -> encoder (bi-LSTM stack) -> decoder (bi-LSTM stack)
# All layers run inside a single pallas_call.
# ----------------------------------------------------------------------------
@jax.jit
def bdlstm_ae_forward(x, enc_layers, dec_layers):
    layers = list(enc_layers) + list(dec_layers)
    # x: (B, T, input_size), batch_first -> internally time-major (T, B, D)
    x_tbd = jnp.transpose(x, (1, 0, 2)).astype(jnp.float32)
    T, B, _ = x_tbd.shape

    # (Din, H) per layer, all static (from weight shapes).
    layer_dims = [(wih_f.shape[0], whh_f.shape[0])
                  for (wih_f, whh_f, _, _, _, _) in layers]
    h_last = layer_dims[-1][1]
    h_max = max(h for _, h in layer_dims)
    inter_w = [2 * h for (_, h) in layer_dims[:-1]]
    act_w = max(inter_w) if inter_w else 1

    unroll = True if T <= 16 else 8
    kernel = _make_fused_kernel(layer_dims, T, B, unroll)

    flat_w = []
    for lw in layers:
        flat_w.extend(lw)

    out = pl.pallas_call(
        kernel,
        out_shape=jax.ShapeDtypeStruct((T, B, 2 * h_last), jnp.float32),
        in_specs=[pl.BlockSpec(memory_space=pltpu.MemorySpace.VMEM)]
                 * (1 + len(flat_w)),
        out_specs=pl.BlockSpec(memory_space=pltpu.MemorySpace.VMEM),
        scratch_shapes=[
            pltpu.VMEM((T, B, act_w), jnp.float32),      # inter-layer act ping
            pltpu.VMEM((T, B, act_w), jnp.float32),      # inter-layer act pong
            pltpu.VMEM((T, B, 4 * h_max), jnp.float32),  # hoisted fwd x-gates
            pltpu.VMEM((T, B, 4 * h_max), jnp.float32),  # hoisted rev x-gates
        ],
    )(x_tbd, *flat_w)

    return jnp.transpose(out, (1, 0, 2))                 # (B, T, 2*H_last)


# ----------------------------------------------------------------------------
# Parameter init (PyTorch nn.LSTM shapes / gate order, kernel-friendly layout)
# Per layer: (wih_f, whh_f, b_f, wih_r, whh_r, b_r) with
#   wih: (Din, 4H)   whh: (H, 4H)   b: (1, 4H) = b_ih + b_hh
# ----------------------------------------------------------------------------
def init_bilstm_params(key, input_size, hidden_size, num_layers):
    layers = []
    k = 1.0 / np.sqrt(hidden_size)
    for layer in range(num_layers):
        d_in = input_size if layer == 0 else 2 * hidden_size
        per_dir = []
        for _ in range(2):  # forward, reverse
            key, k1, k2, k3, k4 = jax.random.split(key, 5)
            w_ih = jax.random.uniform(k1, (4 * hidden_size, d_in), jnp.float32, -k, k)
            w_hh = jax.random.uniform(k2, (4 * hidden_size, hidden_size), jnp.float32, -k, k)
            b_ih = jax.random.uniform(k3, (4 * hidden_size,), jnp.float32, -k, k)
            b_hh = jax.random.uniform(k4, (4 * hidden_size,), jnp.float32, -k, k)
            per_dir.append((w_ih.T, w_hh.T, (b_ih + b_hh)[None, :]))
        (wih_f, whh_f, b_f), (wih_r, whh_r, b_r) = per_dir
        layers.append((wih_f, whh_f, b_f, wih_r, whh_r, b_r))
    return key, layers


# ----------------------------------------------------------------------------
# Pure-JAX reference (lax.scan) for correctness checking
# ----------------------------------------------------------------------------
def _ref_bilstm_dir(x_tbd, w_ih, w_hh, b):
    H = w_hh.shape[0]
    B = x_tbd.shape[1]

    def step(carry, x_t):
        h, c = carry
        gates = x_t @ w_ih + h @ w_hh + b[0]
        i = jax.nn.sigmoid(gates[:, 0 * H:1 * H])
        f = jax.nn.sigmoid(gates[:, 1 * H:2 * H])
        g = jnp.tanh(gates[:, 2 * H:3 * H])
        o = jax.nn.sigmoid(gates[:, 3 * H:4 * H])
        c = f * c + i * g
        h = o * jnp.tanh(c)
        return (h, c), h

    init = (jnp.zeros((B, H), jnp.float32), jnp.zeros((B, H), jnp.float32))
    _, hs = jax.lax.scan(step, init, x_tbd)
    return hs


def bdlstm_ae_reference(x, enc_layers, dec_layers):
    h = jnp.transpose(x, (1, 0, 2)).astype(jnp.float32)
    for (wih_f, whh_f, b_f, wih_r, whh_r, b_r) in list(enc_layers) + list(dec_layers):
        out_f = _ref_bilstm_dir(h, wih_f, whh_f, b_f)
        out_r = _ref_bilstm_dir(h[::-1], wih_r, whh_r, b_r)[::-1]
        h = jnp.concatenate([out_f, out_r], axis=-1)
    return jnp.transpose(h, (1, 0, 2))


# ----------------------------------------------------------------------------
if __name__ == "__main__":
    input_size = 32      # BdLSTMAE input feature size (even -> decoder per-dir H = 16)
    hidden_size = 32     # encoder per-direction hidden size
    num_layers = 2
    batch, seq = 2, 8

    key = jax.random.PRNGKey(0)
    key, kx = jax.random.split(key)
    x = jax.random.normal(kx, (batch, seq, input_size), jnp.float32)

    # Encoder: nn.LSTM(input_size, hidden_size, num_layers, bidirectional=True)
    key, enc_params = init_bilstm_params(key, input_size, hidden_size, num_layers)
    # Decoder: nn.LSTM(hidden_size*2, input_size//2, num_layers, bidirectional=True)
    key, dec_params = init_bilstm_params(key, hidden_size * 2, input_size // 2, num_layers)

    pred = jax.block_until_ready(bdlstm_ae_forward(x, enc_params, dec_params))
    assert pred.shape == (batch, seq, 2 * (input_size // 2)), pred.shape

    ref = jax.block_until_ready(bdlstm_ae_reference(x, enc_params, dec_params))
    np.testing.assert_allclose(np.asarray(pred), np.asarray(ref),
                               rtol=1e-3, atol=1e-3)

    print("KERNEL_OK")
</pallas_src>

<mosaic_0001>
module attributes {stable_mosaic.version = 11 : i64} {
  func.func @kernel(%arg0: memref<8x2x32xf32, #tpu.memory_space<vmem>>, %arg1: memref<32x128xf32, #tpu.memory_space<vmem>>, %arg2: memref<32x128xf32, #tpu.memory_space<vmem>>, %arg3: memref<1x128xf32, #tpu.memory_space<vmem>>, %arg4: memref<32x128xf32, #tpu.memory_space<vmem>>, %arg5: memref<32x128xf32, #tpu.memory_space<vmem>>, %arg6: memref<1x128xf32, #tpu.memory_space<vmem>>, %arg7: memref<64x128xf32, #tpu.memory_space<vmem>>, %arg8: memref<32x128xf32, #tpu.memory_space<vmem>>, %arg9: memref<1x128xf32, #tpu.memory_space<vmem>>, %arg10: memref<64x128xf32, #tpu.memory_space<vmem>>, %arg11: memref<32x128xf32, #tpu.memory_space<vmem>>, %arg12: memref<1x128xf32, #tpu.memory_space<vmem>>, %arg13: memref<64x64xf32, #tpu.memory_space<vmem>>, %arg14: memref<16x64xf32, #tpu.memory_space<vmem>>, %arg15: memref<1x64xf32, #tpu.memory_space<vmem>>, %arg16: memref<64x64xf32, #tpu.memory_space<vmem>>, %arg17: memref<16x64xf32, #tpu.memory_space<vmem>>, %arg18: memref<1x64xf32, #tpu.memory_space<vmem>>, %arg19: memref<32x64xf32, #tpu.memory_space<vmem>>, %arg20: memref<16x64xf32, #tpu.memory_space<vmem>>, %arg21: memref<1x64xf32, #tpu.memory_space<vmem>>, %arg22: memref<32x64xf32, #tpu.memory_space<vmem>>, %arg23: memref<16x64xf32, #tpu.memory_space<vmem>>, %arg24: memref<1x64xf32, #tpu.memory_space<vmem>>, %arg25: memref<8x2x32xf32, #tpu.memory_space<vmem>>, %arg26: memref<8x2x64xf32, #tpu.memory_space<vmem>>, %arg27: memref<8x2x64xf32, #tpu.memory_space<vmem>>, %arg28: memref<8x2x128xf32, #tpu.memory_space<vmem>>, %arg29: memref<8x2x128xf32, #tpu.memory_space<vmem>>) attributes {dimension_semantics = [], scalar_prefetch = 0 : i64, scratch_operands = 4 : i64, tpu.core_type = #tpu.core_type<tc>} {
    %c0 = arith.constant 0 : index
    %c0_0 = arith.constant 0 : index
    %c0_1 = arith.constant 0 : index
    %0 = vector.load %arg0[%c0, %c0_0, %c0_1] : memref<8x2x32xf32, #tpu.memory_space<vmem>>, vector<8x2x32xf32>
    %1 = vector.shape_cast %0 : vector<8x2x32xf32> to vector<16x32xf32>
    %c0_2 = arith.constant 0 : index
    %c0_3 = arith.constant 0 : index
    %2 = vector.load %arg1[%c0_2, %c0_3] : memref<32x128xf32, #tpu.memory_space<vmem>>, vector<32x128xf32>
    %cst = arith.constant dense<0.000000e+00> : vector<16x128xf32>
    %3 = tpu.matmul %1, %2, %cst {dimension_numbers = #tpu.dot_dimension_numbers<[1], [0], [0], [1], [0, 0, 1, 1], [], []>} : vector<16x32xf32>, vector<32x128xf32>, vector<16x128xf32> -> vector<16x128xf32>
    %c0_4 = arith.constant 0 : index
    %c0_5 = arith.constant 0 : index
    %4 = vector.load %arg3[%c0_4, %c0_5] : memref<1x128xf32, #tpu.memory_space<vmem>>, vector<1x128xf32>
    %5 = vector.broadcast %4 : vector<1x128xf32> to vector<16x128xf32>
    %6 = arith.addf %3, %5 : vector<16x128xf32>
    %c0_6 = arith.constant 0 : index
    %c0_7 = arith.constant 0 : index
    %7 = vector.load %arg4[%c0_6, %c0_7] : memref<32x128xf32, #tpu.memory_space<vmem>>, vector<32x128xf32>
    %cst_8 = arith.constant dense<0.000000e+00> : vector<16x128xf32>
    %8 = tpu.matmul %1, %7, %cst_8 {dimension_numbers = #tpu.dot_dimension_numbers<[1], [0], [0], [1], [0, 0, 1, 1], [], []>} : vector<16x32xf32>, vector<32x128xf32>, vector<16x128xf32> -> vector<16x128xf32>
    %c0_9 = arith.constant 0 : index
    %c0_10 = arith.constant 0 : index
    %9 = vector.load %arg6[%c0_9, %c0_10] : memref<1x128xf32, #tpu.memory_space<vmem>>, vector<1x128xf32>
    %10 = vector.broadcast %9 : vector<1x128xf32> to vector<16x128xf32>
    %11 = arith.addf %8, %10 : vector<16x128xf32>
    %12 = vector.shape_cast %6 : vector<16x128xf32> to vector<8x2x128xf32>
    %c0_11 = arith.constant 0 : index
    %c0_12 = arith.constant 0 : index
    %c0_13 = arith.constant 0 : index
    %13 = vector.load %arg28[%c0_11, %c0_12, %c0_13] : memref<8x2x128xf32, #tpu.memory_space<vmem>>, vector<8x2x128xf32>
    tpu.vector_store %arg28[%c0_11, %c0_12, %c0_13], %12 {strides = array<i32>} : memref<8x2x128xf32, #tpu.memory_space<vmem>>, vector<8x2x128xf32>,
    %14 = vector.shape_cast %11 : vector<16x128xf32> to vector<8x2x128xf32>
    %c0_14 = arith.constant 0 : index
    %c0_15 = arith.constant 0 : index
    %c0_16 = arith.constant 0 : index
    %15 = vector.load %arg29[%c0_14, %c0_15, %c0_16] : memref<8x2x128xf32, #tpu.memory_space<vmem>>, vector<8x2x128xf32>
    tpu.vector_store %arg29[%c0_14, %c0_15, %c0_16], %14 {strides = array<i32>} : memref<8x2x128xf32, #tpu.memory_space<vmem>>, vector<8x2x128xf32>,
    %c0_17 = arith.constant 0 : index
    %c0_18 = arith.constant 0 : index
    %16 = vector.load %arg2[%c0_17, %c0_18] : memref<32x128xf32, #tpu.memory_space<vmem>>, vector<32x128xf32>
    %c0_19 = arith.constant 0 : index
    %c0_20 = arith.constant 0 : index
    %17 = vector.load %arg5[%c0_19, %c0_20] : memref<32x128xf32, #tpu.memory_space<vmem>>, vector<32x128xf32>
    %cst_21 = arith.constant 0.000000e+00 : f32
    %18 = vector.broadcast %cst_21 : f32 to vector<2x32xf32>
    %c0_i32 = arith.constant 0 : i32
    %19 = arith.index_cast %c0_i32 : i32 to index
    %c0_22 = arith.constant 0 : index
    %c0_23 = arith.constant 0 : index
    %20 = vector.load %arg28[%19, %c0_22, %c0_23] : memref<8x2x128xf32, #tpu.memory_space<vmem>>, vector<1x2x128xf32>
    %21 = vector.shape_cast %20 : vector<1x2x128xf32> to vector<2x128xf32>
    %cst_24 = arith.constant dense<0.000000e+00> : vector<2x128xf32>
    %22 = tpu.matmul %18, %16, %cst_24 {dimension_numbers = #tpu.dot_dimension_numbers<[1], [0], [0], [1], [0, 0, 1, 1], [], []>} : vector<2x32xf32>, vector<32x128xf32>, vector<2x128xf32> -> vector<2x128xf32>
    %23 = arith.addf %21, %22 : vector<2x128xf32>
    %24 = vector.extract_strided_slice %23 {offsets = [0, 0], sizes = [2, 32], strides = [1, 1]} : vector<2x128xf32> to vector<2x32xf32>
    %25 = arith.negf %24 : vector<2x32xf32>
    %26 = math.exp %25 : vector<2x32xf32>
    %cst_25 = arith.constant 1.000000e+00 : f32
    %27 = vector.broadcast %cst_25 : f32 to vector<2x32xf32>
    %28 = arith.addf %27, %26 : vector<2x32xf32>
    %29 = arith.divf %27, %28 : vector<2x32xf32>
    %30 = vector.extract_strided_slice %23 {offsets = [0, 32], sizes = [2, 32], strides = [1, 1]} : vector<2x128xf32> to vector<2x32xf32>
    %31 = arith.negf %30 : vector<2x32xf32>
    %32 = math.exp %31 : vector<2x32xf32>
    %cst_26 = arith.constant 1.000000e+00 : f32
    %33 = vector.broadcast %cst_26 : f32 to vector<2x32xf32>
    %34 = arith.addf %33, %32 : vector<2x32xf32>
    %35 = arith.divf %33, %34 : vector<2x32xf32>
    %36 = vector.extract_strided_slice %23 {offsets = [0, 64], sizes = [2, 32], strides = [1, 1]} : vector<2x128xf32> to vector<2x32xf32>
    %37 = math.tanh %36 : vector<2x32xf32>
    %38 = vector.extract_strided_slice %23 {offsets = [0, 96], sizes = [2, 32], strides = [1, 1]} : vector<2x128xf32> to vector<2x32xf32>
    %39 = arith.negf %38 : vector<2x32xf32>
    %40 = math.exp %39 : vector<2x32xf32>
    %cst_27 = arith.constant 1.000000e+00 : f32
    %41 = vector.broadcast %cst_27 : f32 to vector<2x32xf32>
    %42 = arith.addf %41, %40 : vector<2x32xf32>
    %43 = arith.divf %41, %42 : vector<2x32xf32>
    %44 = arith.mulf %35, %18 : vector<2x32xf32>
    %45 = arith.mulf %29, %37 : vector<2x32xf32>
    %46 = arith.addf %44, %45 : vector<2x32xf32>
    %47 = math.tanh %46 : vector<2x32xf32>
    %48 = arith.mulf %43, %47 : vector<2x32xf32>
    %49 = arith.index_cast %c0_i32 : i32 to index
    %c0_28 = arith.constant 0 : index
    %c0_29 = arith.constant 0 : index
    %50 = vector.load %arg26[%49, %c0_28, %c0_29] : memref<8x2x64xf32, #tpu.memory_space<vmem>>, vector<1x2x32xf32>
    %51 = vector.shape_cast %50 : vector<1x2x32xf32> to vector<2x32xf32>
    %52 = vector.shape_cast %48 : vector<2x32xf32> to vector<1x2x32xf32>
    tpu.vector_store %arg26[%49, %c0_28, %c0_29], %52 {strides = array<i32>} : memref<8x2x64xf32, #tpu.memory_space<vmem>>, vector<1x2x32xf32>,
    %c7_i32 = arith.constant 7 : i32
    %53 = arith.subi %c7_i32, %c0_i32 : i32
    %54 = arith.index_cast %53 : i32 to index
    %c0_30 = arith.constant 0 : index
    %c0_31 = arith.constant 0 : index
    %55 = vector.load %arg29[%54, %c0_30, %c0_31] : memref<8x2x128xf32, #tpu.memory_space<vmem>>, vector<1x2x128xf32>
    %56 = vector.shape_cast %55 : vector<1x2x128xf32> to vector<2x128xf32>
    %cst_32 = arith.constant dense<0.000000e+00> : vector<2x128xf32>
    %57 = tpu.matmul %18, %17, %cst_32 {dimension_numbers = #tpu.dot_dimension_numbers<[1], [0], [0], [1], [0, 0, 1, 1], [], []>} : vector<2x32xf32>, vector<32x128xf32>, vector<2x128xf32> -> vector<2x128xf32>
    %58 = arith.addf %56, %57 : vector<2x128xf32>
    %59 = vector.extract_strided_slice %58 {offsets = [0, 0], sizes = [2, 32], strides = [1, 1]} : vector<2x128xf32> to vector<2x32xf32>
    %60 = arith.negf %59 : vector<2x32xf32>
    %61 = math.exp %60 : vector<2x32xf32>
    %cst_33 = arith.constant 1.000000e+00 : f32
    %62 = vector.broadcast %cst_33 : f32 to vector<2x32xf32>
    %63 = arith.addf %62, %61 : vector<2x32xf32>
    %64 = arith.divf %62, %63 : vector<2x32xf32>
    %65 = vector.extract_strided_slice %58 {offsets = [0, 32], sizes = [2, 32], strides = [1, 1]} : vector<2x128xf32> to vector<2x32xf32>
    %66 = arith.negf %65 : vector<2x32xf32>
    %67 = math.exp %66 : vector<2x32xf32>
    %cst_34 = arith.constant 1.000000e+00 : f32
    %68 = vector.broadcast %cst_34 : f32 to vector<2x32xf32>
    %69 = arith.addf %68, %67 : vector<2x32xf32>
    %70 = arith.divf %68, %69 : vector<2x32xf32>
    %71 = vector.extract_strided_slice %58 {offsets = [0, 64], sizes = [2, 32], strides = [1, 1]} : vector<2x128xf32> to vector<2x32xf32>
    %72 = math.tanh %71 : vector<2x32xf32>
    %73 = vector.extract_strided_slice %58 {offsets = [0, 96], sizes = [2, 32], strides = [1, 1]} : vector<2x128xf32> to vector<2x32xf32>
    %74 = arith.negf %73 : vector<2x32xf32>
    %75 = math.exp %74 : vector<2x32xf32>
    %cst_35 = arith.constant 1.000000e+00 : f32
    %76 = vector.broadcast %cst_35 : f32 to vector<2x32xf32>
    %77 = arith.addf %76, %75 : vector<2x32xf32>
    %78 = arith.divf %76, %77 : vector<2x32xf32>
    %79 = arith.mulf %70, %18 : vector<2x32xf32>
    %80 = arith.mulf %64, %72 : vector<2x32xf32>
    %81 = arith.addf %79, %80 : vector<2x32xf32>
    %82 = math.tanh %81 : vector<2x32xf32>
    %83 = arith.mulf %78, %82 : vector<2x32xf32>
    %84 = arith.index_cast %53 : i32 to index
    %c0_36 = arith.constant 0 : index
    %c32 = arith.constant 32 : index
    %85 = vector.load %arg26[%84, %c0_36, %c32] : memref<8x2x64xf32, #tpu.memory_space<vmem>>, vector<1x2x32xf32>
    %86 = vector.shape_cast %85 : vector<1x2x32xf32> to vector<2x32xf32>
    %87 = vector.shape_cast %83 : vector<2x32xf32> to vector<1x2x32xf32>
    tpu.vector_store %arg26[%84, %c0_36, %c32], %87 {strides = array<i32>} : memref<8x2x64xf32, #tpu.memory_space<vmem>>, vector<1x2x32xf32>,
    %c1_i32 = arith.constant 1 : i32
    %88 = arith.index_cast %c1_i32 : i32 to index
    %c0_37 = arith.constant 0 : index
    %c0_38 = arith.constant 0 : index
    %89 = vector.load %arg28[%88, %c0_37, %c0_38] : memref<8x2x128xf32, #tpu.memory_space<vmem>>, vector<1x2x128xf32>
    %90 = vector.shape_cast %89 : vector<1x2x128xf32> to vector<2x128xf32>
    %cst_39 = arith.constant dense<0.000000e+00> : vector<2x128xf32>
    %91 = tpu.matmul %48, %16, %cst_39 {dimension_numbers = #tpu.dot_dimension_numbers<[1], [0], [0], [1], [0, 0, 1, 1], [], []>} : vector<2x32xf32>, vector<32x128xf32>, vector<2x128xf32> -> vector<2x128xf32>
    %92 = arith.addf %90, %91 : vector<2x128xf32>
    %93 = vector.extract_strided_slice %92 {offsets = [0, 0], sizes = [2, 32], strides = [1, 1]} : vector<2x128xf32> to vector<2x32xf32>
    %94 = arith.negf %93 : vector<2x32xf32>
    %95 = math.exp %94 : vector<2x32xf32>
    %cst_40 = arith.constant 1.000000e+00 : f32
    %96 = vector.broadcast %cst_40 : f32 to vector<2x32xf32>
    %97 = arith.addf %96, %95 : vector<2x32xf32>
    %98 = arith.divf %96, %97 : vector<2x32xf32>
    %99 = vector.extract_strided_slice %92 {offsets = [0, 32], sizes = [2, 32], strides = [1, 1]} : vector<2x128xf32> to vector<2x32xf32>
    %100 = arith.negf %99 : vector<2x32xf32>
    %101 = math.exp %100 : vector<2x32xf32>
    %cst_41 = arith.constant 1.000000e+00 : f32
    %102 = vector.broadcast %cst_41 : f32 to vector<2x32xf32>
    %103 = arith.addf %102, %101 : vector<2x32xf32>
    %104 = arith.divf %102, %103 : vector<2x32xf32>
    %105 = vector.extract_strided_slice %92 {offsets = [0, 64], sizes = [2, 32], strides = [1, 1]} : vector<2x128xf32> to vector<2x32xf32>
    %106 = math.tanh %105 : vector<2x32xf32>
    %107 = vector.extract_strided_slice %92 {offsets = [0, 96], sizes = [2, 32], strides = [1, 1]} : vector<2x128xf32> to vector<2x32xf32>
    %108 = arith.negf %107 : vector<2x32xf32>
    %109 = math.exp %108 : vector<2x32xf32>
    %cst_42 = arith.constant 1.000000e+00 : f32
    %110 = vector.broadcast %cst_42 : f32 to vector<2x32xf32>
    %111 = arith.addf %110, %109 : vector<2x32xf32>
    %112 = arith.divf %110, %111 : vector<2x32xf32>
    %113 = arith.mulf %104, %46 : vector<2x32xf32>
    %114 = arith.mulf %98, %106 : vector<2x32xf32>
    %115 = arith.addf %113, %114 : vector<2x32xf32>
    %116 = math.tanh %115 : vector<2x32xf32>
    %117 = arith.mulf %112, %116 : vector<2x32xf32>
    %118 = arith.index_cast %c1_i32 : i32 to index
    %c0_43 = arith.constant 0 : index
    %c0_44 = arith.constant 0 : index
    %119 = vector.load %arg26[%118, %c0_43, %c0_44] : memref<8x2x64xf32, #tpu.memory_space<vmem>>, vector<1x2x32xf32>
    %120 = vector.shape_cast %119 : vector<1x2x32xf32> to vector<2x32xf32>
    %121 = vector.shape_cast %117 : vector<2x32xf32> to vector<1x2x32xf32>
    tpu.vector_store %arg26[%118, %c0_43, %c0_44], %121 {strides = array<i32>} : memref<8x2x64xf32, #tpu.memory_space<vmem>>, vector<1x2x32xf32>,
    %c7_i32_45 = arith.constant 7 : i32
    %122 = arith.subi %c7_i32_45, %c1_i32 : i32
    %123 = arith.index_cast %122 : i32 to index
    %c0_46 = arith.constant 0 : index
    %c0_47 = arith.constant 0 : index
    %124 = vector.load %arg29[%123, %c0_46, %c0_47] : memref<8x2x128xf32, #tpu.memory_space<vmem>>, vector<1x2x128xf32>
    %125 = vector.shape_cast %124 : vector<1x2x128xf32> to vector<2x128xf32>
    %cst_48 = arith.constant dense<0.000000e+00> : vector<2x128xf32>
    %126 = tpu.matmul %83, %17, %cst_48 {dimension_numbers = #tpu.dot_dimension_numbers<[1], [0], [0], [1], [0, 0, 1, 1], [], []>} : vector<2x32xf32>, vector<32x128xf32>, vector<2x128xf32> -> vector<2x128xf32>
    %127 = arith.addf %125, %126 : vector<2x128xf32>
    %128 = vector.extract_strided_slice %127 {offsets = [0, 0], sizes = [2, 32], strides = [1, 1]} : vector<2x128xf32> to vector<2x32xf32>
    %129 = arith.negf %128 : vector<2x32xf32>
    %130 = math.exp %129 : vector<2x32xf32>
    %cst_49 = arith.constant 1.000000e+00 : f32
    %131 = vector.broadcast %cst_49 : f32 to vector<2x32xf32>
    %132 = arith.addf %131, %130 : vector<2x32xf32>
    %133 = arith.divf %131, %132 : vector<2x32xf32>
    %134 = vector.extract_strided_slice %127 {offsets = [0, 32], sizes = [2, 32], strides = [1, 1]} : vector<2x128xf32> to vector<2x32xf32>
    %135 = arith.negf %134 : vector<2x32xf32>
    %136 = math.exp %135 : vector<2x32xf32>
    %cst_50 = arith.constant 1.000000e+00 : f32
    %137 = vector.broadcast %cst_50 : f32 to vector<2x32xf32>
    %138 = arith.addf %137, %136 : vector<2x32xf32>
    %139 = arith.divf %137, %138 : vector<2x32xf32>
    %140 = vector.extract_strided_slice %127 {offsets = [0, 64], sizes = [2, 32], strides = [1, 1]} : vector<2x128xf32> to vector<2x32xf32>
    %141 = math.tanh %140 : vector<2x32xf32>
    %142 = vector.extract_strided_slice %127 {offsets = [0, 96], sizes = [2, 32], strides = [1, 1]} : vector<2x128xf32> to vector<2x32xf32>
    %143 = arith.negf %142 : vector<2x32xf32>
    %144 = math.exp %143 : vector<2x32xf32>
    %cst_51 = arith.constant 1.000000e+00 : f32
    %145 = vector.broadcast %cst_51 : f32 to vector<2x32xf32>
    %146 = arith.addf %145, %144 : vector<2x32xf32>
    %147 = arith.divf %145, %146 : vector<2x32xf32>
    %148 = arith.mulf %139, %81 : vector<2x32xf32>
    %149 = arith.mulf %133, %141 : vector<2x32xf32>
    %150 = arith.addf %148, %149 : vector<2x32xf32>
    %151 = math.tanh %150 : vector<2x32xf32>
    %152 = arith.mulf %147, %151 : vector<2x32xf32>
    %153 = arith.index_cast %122 : i32 to index
    %c0_52 = arith.constant 0 : index
    %c32_53 = arith.constant 32 : index
    %154 = vector.load %arg26[%153, %c0_52, %c32_53] : memref<8x2x64xf32, #tpu.memory_space<vmem>>, vector<1x2x32xf32>
    %155 = vector.shape_cast %154 : vector<1x2x32xf32> to vector<2x32xf32>
    %156 = vector.shape_cast %152 : vector<2x32xf32> to vector<1x2x32xf32>
    tpu.vector_store %arg26[%153, %c0_52, %c32_53], %156 {strides = array<i32>} : memref<8x2x64xf32, #tpu.memory_space<vmem>>, vector<1x2x32xf32>,
    %c2_i32 = arith.constant 2 : i32
    %157 = arith.index_cast %c2_i32 : i32 to index
    %c0_54 = arith.constant 0 : index
    %c0_55 = arith.constant 0 : index
    %158 = vector.load %arg28[%157, %c0_54, %c0_55] : memref<8x2x128xf32, #tpu.memory_space<vmem>>, vector<1x2x128xf32>
    %159 = vector.shape_cast %158 : vector<1x2x128xf32> to vector<2x128xf32>
    %cst_56 = arith.constant dense<0.000000e+00> : vector<2x128xf32>
    %160 = tpu.matmul %117, %16, %cst_56 {dimension_numbers = #tpu.dot_dimension_numbers<[1], [0], [0], [1], [0, 0, 1, 1], [], []>} : vector<2x32xf32>, vector<32x128xf32>, vector<2x128xf32> -> vector<2x128xf32>
    %161 = arith.addf %159, %160 : vector<2x128xf32>
    %162 = vector.extract_strided_slice %161 {offsets = [0, 0], sizes = [2, 32], strides = [1, 1]} : vector<2x128xf32> to vector<2x32xf32>
    %163 = arith.negf %162 : vector<2x32xf32>
    %164 = math.exp %163 : vector<2x32xf32>
    %cst_57 = arith.constant 1.000000e+00 : f32
    %165 = vector.broadcast %cst_57 : f32 to vector<2x32xf32>
    %166 = arith.addf %165, %164 : vector<2x32xf32>
    %167 = arith.divf %165, %166 : vector<2x32xf32>
    %168 = vector.extract_strided_slice %161 {offsets = [0, 32], sizes = [2, 32], strides = [1, 1]} : vector<2x128xf32> to vector<2x32xf32>
    %169 = arith.negf %168 : vector<2x32xf32>
    %170 = math.exp %169 : vector<2x32xf32>
    %cst_58 = arith.constant 1.000000e+00 : f32
    %171 = vector.broadcast %cst_58 : f32 to vector<2x32xf32>
    %172 = arith.addf %171, %170 : vector<2x32xf32>
    %173 = arith.divf %171, %172 : vector<2x32xf32>
    %174 = vector.extract_strided_slice %161 {offsets = [0, 64], sizes = [2, 32], strides = [1, 1]} : vector<2x128xf32> to vector<2x32xf32>
    %175 = math.tanh %174 : vector<2x32xf32>
    %176 = vector.extract_strided_slice %161 {offsets = [0, 96], sizes = [2, 32], strides = [1, 1]} : vector<2x128xf32> to vector<2x32xf32>
    %177 = arith.negf %176 : vector<2x32xf32>
    %178 = math.exp %177 : vector<2x32xf32>
    %cst_59 = arith.constant 1.000000e+00 : f32
    %179 = vector.broadcast %cst_59 : f32 to vector<2x32xf32>
    %180 = arith.addf %179, %178 : vector<2x32xf32>
    %181 = arith.divf %179, %180 : vector<2x32xf32>
    %182 = arith.mulf %173, %115 : vector<2x32xf32>
    %183 = arith.mulf %167, %175 : vector<2x32xf32>
    %184 = arith.addf %182, %183 : vector<2x32xf32>
    %185 = math.tanh %184 : vector<2x32xf32>
    %186 = arith.mulf %181, %185 : vector<2x32xf32>
    %187 = arith.index_cast %c2_i32 : i32 to index
    %c0_60 = arith.constant 0 : index
    %c0_61 = arith.constant 0 : index
    %188 = vector.load %arg26[%187, %c0_60, %c0_61] : memref<8x2x64xf32, #tpu.memory_space<vmem>>, vector<1x2x32xf32>
    %189 = vector.shape_cast %188 : vector<1x2x32xf32> to vector<2x32xf32>
    %190 = vector.shape_cast %186 : vector<2x32xf32> to vector<1x2x32xf32>
    tpu.vector_store %arg26[%187, %c0_60, %c0_61], %190 {strides = array<i32>} : memref<8x2x64xf32, #tpu.memory_space<vmem>>, vector<1x2x32xf32>,
    %c7_i32_62 = arith.constant 7 : i32
    %191 = arith.subi %c7_i32_62, %c2_i32 : i32
    %192 = arith.index_cast %191 : i32 to index
    %c0_63 = arith.constant 0 : index
    %c0_64 = arith.constant 0 : index
    %193 = vector.load %arg29[%192, %c0_63, %c0_64] : memref<8x2x128xf32, #tpu.memory_space<vmem>>, vector<1x2x128xf32>
    %194 = vector.shape_cast %193 : vector<1x2x128xf32> to vector<2x128xf32>
    %cst_65 = arith.constant dense<0.000000e+00> : vector<2x128xf32>
    %195 = tpu.matmul %152, %17, %cst_65 {dimension_numbers = #tpu.dot_dimension_numbers<[1], [0], [0], [1], [0, 0, 1, 1], [], []>} : vector<2x32xf32>, vector<32x128xf32>, vector<2x128xf32> -> vector<2x128xf32>
    %196 = arith.addf %194, %195 : vector<2x128xf32>
    %197 = vector.extract_strided_slice %196 {offsets = [0, 0], sizes = [2, 32], strides = [1, 1]} : vector<2x128xf32> to vector<2x32xf32>
    %198 = arith.negf %197 : vector<2x32xf32>
    %199 = math.exp %198 : vector<2x32xf32>
    %cst_66 = arith.constant 1.000000e+00 : f32
    %200 = vector.broadcast %cst_66 : f32 to vector<2x32xf32>
    %201 = arith.addf %200, %199 : vector<2x32xf32>
    %202 = arith.divf %200, %201 : vector<2x32xf32>
    %203 = vector.extract_strided_slice %196 {offsets = [0, 32], sizes = [2, 32], strides = [1, 1]} : vector<2x128xf32> to vector<2x32xf32>
    %204 = arith.negf %203 : vector<2x32xf32>
    %205 = math.exp %204 : vector<2x32xf32>
    %cst_67 = arith.constant 1.000000e+00 : f32
    %206 = vector.broadcast %cst_67 : f32 to vector<2x32xf32>
    %207 = arith.addf %206, %205 : vector<2x32xf32>
    %208 = arith.divf %206, %207 : vector<2x32xf32>
    %209 = vector.extract_strided_slice %196 {offsets = [0, 64], sizes = [2, 32], strides = [1, 1]} : vector<2x128xf32> to vector<2x32xf32>
    %210 = math.tanh %209 : vector<2x32xf32>
    %211 = vector.extract_strided_slice %196 {offsets = [0, 96], sizes = [2, 32], strides = [1, 1]} : vector<2x128xf32> to vector<2x32xf32>
    %212 = arith.negf %211 : vector<2x32xf32>
    %213 = math.exp %212 : vector<2x32xf32>
    %cst_68 = arith.constant 1.000000e+00 : f32
    %214 = vector.broadcast %cst_68 : f32 to vector<2x32xf32>
    %215 = arith.addf %214, %213 : vector<2x32xf32>
    %216 = arith.divf %214, %215 : vector<2x32xf32>
    %217 = arith.mulf %208, %150 : vector<2x32xf32>
    %218 = arith.mulf %202, %210 : vector<2x32xf32>
    %219 = arith.addf %217, %218 : vector<2x32xf32>
    %220 = math.tanh %219 : vector<2x32xf32>
    %221 = arith.mulf %216, %220 : vector<2x32xf32>
    %222 = arith.index_cast %191 : i32 to index
    %c0_69 = arith.constant 0 : index
    %c32_70 = arith.constant 32 : index
    %223 = vector.load %arg26[%222, %c0_69, %c32_70] : memref<8x2x64xf32, #tpu.memory_space<vmem>>, vector<1x2x32xf32>
    %224 = vector.shape_cast %223 : vector<1x2x32xf32> to vector<2x32xf32>
    %225 = vector.shape_cast %221 : vector<2x32xf32> to vector<1x2x32xf32>
    tpu.vector_store %arg26[%222, %c0_69, %c32_70], %225 {strides = array<i32>} : memref<8x2x64xf32, #tpu.memory_space<vmem>>, vector<1x2x32xf32>,
    %c3_i32 = arith.constant 3 : i32
    %226 = arith.index_cast %c3_i32 : i32 to index
    %c0_71 = arith.constant 0 : index
    %c0_72 = arith.constant 0 : index
    %227 = vector.load %arg28[%226, %c0_71, %c0_72] : memref<8x2x128xf32, #tpu.memory_space<vmem>>, vector<1x2x128xf32>
    %228 = vector.shape_cast %227 : vector<1x2x128xf32> to vector<2x128xf32>
    %cst_73 = arith.constant dense<0.000000e+00> : vector<2x128xf32>
    %229 = tpu.matmul %186, %16, %cst_73 {dimension_numbers = #tpu.dot_dimension_numbers<[1], [0], [0], [1], [0, 0, 1, 1], [], []>} : vector<2x32xf32>, vector<32x128xf32>, vector<2x128xf32> -> vector<2x128xf32>
    %230 = arith.addf %228, %229 : vector<2x128xf32>
    %231 = vector.extract_strided_slice %230 {offsets = [0, 0], sizes = [2, 32], strides = [1, 1]} : vector<2x128xf32> to vector<2x32xf32>
    %232 = arith.negf %231 : vector<2x32xf32>
    %233 = math.exp %232 : vector<2x32xf32>
    %cst_74 = arith.constant 1.000000e+00 : f32
    %234 = vector.broadcast %cst_74 : f32 to vector<2x32xf32>
    %235 = arith.addf %234, %233 : vector<2x32xf32>
    %236 = arith.divf %234, %235 : vector<2x32xf32>
    %237 = vector.extract_strided_slice %230 {offsets = [0, 32], sizes = [2, 32], strides = [1, 1]} : vector<2x128xf32> to vector<2x32xf32>
    %238 = arith.negf %237 : vector<2x32xf32>
    %239 = math.exp %238 : vector<2x32xf32>
    %cst_75 = arith.constant 1.000000e+00 : f32
    %240 = vector.broadcast %cst_75 : f32 to vector<2x32xf32>
    %241 = arith.addf %240, %239 : vector<2x32xf32>
    %242 = arith.divf %240, %241 : vector<2x32xf32>
    %243 = vector.extract_strided_slice %230 {offsets = [0, 64], sizes = [2, 32], strides = [1, 1]} : vector<2x128xf32> to vector<2x32xf32>
    %244 = math.tanh %243 : vector<2x32xf32>
    %245 = vector.extract_strided_slice %230 {offsets = [0, 96], sizes = [2, 32], strides = [1, 1]} : vector<2x128xf32> to vector<2x32xf32>
    %246 = arith.negf %245 : vector<2x32xf32>
    %247 = math.exp %246 : vector<2x32xf32>
    %cst_76 = arith.constant 1.000000e+00 : f32
    %248 = vector.broadcast %cst_76 : f32 to vector<2x32xf32>
    %249 = arith.addf %248, %247 : vector<2x32xf32>
    %250 = arith.divf %248, %249 : vector<2x32xf32>
    %251 = arith.mulf %242, %184 : vector<2x32xf32>
    %252 = arith.mulf %236, %244 : vector<2x32xf32>
    %253 = arith.addf %251, %252 : vector<2x32xf32>
    %254 = math.tanh %253 : vector<2x32xf32>
    %255 = arith.mulf %250, %254 : vector<2x32xf32>
    %256 = arith.index_cast %c3_i32 : i32 to index
    %c0_77 = arith.constant 0 : index
    %c0_78 = arith.constant 0 : index
    %257 = vector.load %arg26[%256, %c0_77, %c0_78] : memref<8x2x64xf32, #tpu.memory_space<vmem>>, vector<1x2x32xf32>
    %258 = vector.shape_cast %257 : vector<1x2x32xf32> to vector<2x32xf32>
    %259 = vector.shape_cast %255 : vector<2x32xf32> to vector<1x2x32xf32>
    tpu.vector_store %arg26[%256, %c0_77, %c0_78], %259 {strides = array<i32>} : memref<8x2x64xf32, #tpu.memory_space<vmem>>, vector<1x2x32xf32>,
    %c7_i32_79 = arith.constant 7 : i32
    %260 = arith.subi %c7_i32_79, %c3_i32 : i32
    %261 = arith.index_cast %260 : i32 to index
    %c0_80 = arith.constant 0 : index
    %c0_81 = arith.constant 0 : index
    %262 = vector.load %arg29[%261, %c0_80, %c0_81] : memref<8x2x128xf32, #tpu.memory_space<vmem>>, vector<1x2x128xf32>
    %263 = vector.shape_cast %262 : vector<1x2x128xf32> to vector<2x128xf32>
    %cst_82 = arith.constant dense<0.000000e+00> : vector<2x128xf32>
    %264 = tpu.matmul %221, %17, %cst_82 {dimension_numbers = #tpu.dot_dimension_numbers<[1], [0], [0], [1], [0, 0, 1, 1], [], []>} : vector<2x32xf32>, vector<32x128xf32>, vector<2x128xf32> -> vector<2x128xf32>
    %265 = arith.addf %263, %264 : vector<2x128xf32>
    %266 = vector.extract_strided_slice %265 {offsets = [0, 0], sizes = [2, 32], strides = [1, 1]} : vector<2x128xf32> to vector<2x32xf32>
    %267 = arith.negf %266 : vector<2x32xf32>
    %268 = math.exp %267 : vector<2x32xf32>
    %cst_83 = arith.constant 1.000000e+00 : f32
    %269 = vector.broadcast %cst_83 : f32 to vector<2x32xf32>
    %270 = arith.addf %269, %268 : vector<2x32xf32>
    %271 = arith.divf %269, %270 : vector<2x32xf32>
    %272 = vector.extract_strided_slice %265 {offsets = [0, 32], sizes = [2, 32], strides = [1, 1]} : vector<2x128xf32> to vector<2x32xf32>
    %273 = arith.negf %272 : vector<2x32xf32>
    %274 = math.exp %273 : vector<2x32xf32>
    %cst_84 = arith.constant 1.000000e+00 : f32
    %275 = vector.broadcast %cst_84 : f32 to vector<2x32xf32>
    %276 = arith.addf %275, %274 : vector<2x32xf32>
    %277 = arith.divf %275, %276 : vector<2x32xf32>
    %278 = vector.extract_strided_slice %265 {offsets = [0, 64], sizes = [2, 32], strides = [1, 1]} : vector<2x128xf32> to vector<2x32xf32>
    %279 = math.tanh %278 : vector<2x32xf32>
    %280 = vector.extract_strided_slice %265 {offsets = [0, 96], sizes = [2, 32], strides = [1, 1]} : vector<2x128xf32> to vector<2x32xf32>
    %281 = arith.negf %280 : vector<2x32xf32>
    %282 = math.exp %281 : vector<2x32xf32>
    %cst_85 = arith.constant 1.000000e+00 : f32
    %283 = vector.broadcast %cst_85 : f32 to vector<2x32xf32>
    %284 = arith.addf %283, %282 : vector<2x32xf32>
    %285 = arith.divf %283, %284 : vector<2x32xf32>
    %286 = arith.mulf %277, %219 : vector<2x32xf32>
    %287 = arith.mulf %271, %279 : vector<2x32xf32>
    %288 = arith.addf %286, %287 : vector<2x32xf32>
    %289 = math.tanh %288 : vector<2x32xf32>
    %290 = arith.mulf %285, %289 : vector<2x32xf32>
    %291 = arith.index_cast %260 : i32 to index
    %c0_86 = arith.constant 0 : index
    %c32_87 = arith.constant 32 : index
    %292 = vector.load %arg26[%291, %c0_86, %c32_87] : memref<8x2x64xf32, #tpu.memory_space<vmem>>, vector<1x2x32xf32>
    %293 = vector.shape_cast %292 : vector<1x2x32xf32> to vector<2x32xf32>
    %294 = vector.shape_cast %290 : vector<2x32xf32> to vector<1x2x32xf32>
    tpu.vector_store %arg26[%291, %c0_86, %c32_87], %294 {strides = array<i32>} : memref<8x2x64xf32, #tpu.memory_space<vmem>>, vector<1x2x32xf32>,
    %c4_i32 = arith.constant 4 : i32
    %295 = arith.index_cast %c4_i32 : i32 to index
    %c0_88 = arith.constant 0 : index
    %c0_89 = arith.constant 0 : index
    %296 = vector.load %arg28[%295, %c0_88, %c0_89] : memref<8x2x128xf32, #tpu.memory_space<vmem>>, vector<1x2x128xf32>
    %297 = vector.shape_cast %296 : vector<1x2x128xf32> to vector<2x128xf32>
    %cst_90 = arith.constant dense<0.000000e+00> : vector<2x128xf32>
    %298 = tpu.matmul %255, %16, %cst_90 {dimension_numbers = #tpu.dot_dimension_numbers<[1], [0], [0], [1], [0, 0, 1, 1], [], []>} : vector<2x32xf32>, vector<32x128xf32>, vector<2x128xf32> -> vector<2x128xf32>
    %299 = arith.addf %297, %298 : vector<2x128xf32>
    %300 = vector.extract_strided_slice %299 {offsets = [0, 0], sizes = [2, 32], strides = [1, 1]} : vector<2x128xf32> to vector<2x32xf32>
    %301 = arith.negf %300 : vector<2x32xf32>
    %302 = math.exp %301 : vector<2x32xf32>
    %cst_91 = arith.constant 1.000000e+00 : f32
    %303 = vector.broadcast %cst_91 : f32 to vector<2x32xf32>
    %304 = arith.addf %303, %302 : vector<2x32xf32>
    %305 = arith.divf %303, %304 : vector<2x32xf32>
    %306 = vector.extract_strided_slice %299 {offsets = [0, 32], sizes = [2, 32], strides = [1, 1]} : vector<2x128xf32> to vector<2x32xf32>
    %307 = arith.negf %306 : vector<2x32xf32>
    %308 = math.exp %307 : vector<2x32xf32>
    %cst_92 = arith.constant 1.000000e+00 : f32
    %309 = vector.broadcast %cst_92 : f32 to vector<2x32xf32>
    %310 = arith.addf %309, %308 : vector<2x32xf32>
    %311 = arith.divf %309, %310 : vector<2x32xf32>
    %312 = vector.extract_strided_slice %299 {offsets = [0, 64], sizes = [2, 32], strides = [1, 1]} : vector<2x128xf32> to vector<2x32xf32>
    %313 = math.tanh %312 : vector<2x32xf32>
    %314 = vector.extract_strided_slice %299 {offsets = [0, 96], sizes = [2, 32], strides = [1, 1]} : vector<2x128xf32> to vector<2x32xf32>
    %315 = arith.negf %314 : vector<2x32xf32>
    %316 = math.exp %315 : vector<2x32xf32>
    %cst_93 = arith.constant 1.000000e+00 : f32
    %317 = vector.broadcast %cst_93 : f32 to vector<2x32xf32>
    %318 = arith.addf %317, %316 : vector<2x32xf32>
    %319 = arith.divf %317, %318 : vector<2x32xf32>
    %320 = arith.mulf %311, %253 : vector<2x32xf32>
    %321 = arith.mulf %305, %313 : vector<2x32xf32>
    %322 = arith.addf %320, %321 : vector<2x32xf32>
    %323 = math.tanh %322 : vector<2x32xf32>
    %324 = arith.mulf %319, %323 : vector<2x32xf32>
    %325 = arith.index_cast %c4_i32 : i32 to index
    %c0_94 = arith.constant 0 : index
    %c0_95 = arith.constant 0 : index
    %326 = vector.load %arg26[%325, %c0_94, %c0_95] : memref<8x2x64xf32, #tpu.memory_space<vmem>>, vector<1x2x32xf32>
    %327 = vector.shape_cast %326 : vector<1x2x32xf32> to vector<2x32xf32>
    %328 = vector.shape_cast %324 : vector<2x32xf32> to vector<1x2x32xf32>
    tpu.vector_store %arg26[%325, %c0_94, %c0_95], %328 {strides = array<i32>} : memref<8x2x64xf32, #tpu.memory_space<vmem>>, vector<1x2x32xf32>,
    %c7_i32_96 = arith.constant 7 : i32
    %329 = arith.subi %c7_i32_96, %c4_i32 : i32
    %330 = arith.index_cast %329 : i32 to index
    %c0_97 = arith.constant 0 : index
    %c0_98 = arith.constant 0 : index
    %331 = vector.load %arg29[%330, %c0_97, %c0_98] : memref<8x2x128xf32, #tpu.memory_space<vmem>>, vector<1x2x128xf32>
    %332 = vector.shape_cast %331 : vector<1x2x128xf32> to vector<2x128xf32>
    %cst_99 = arith.constant dense<0.000000e+00> : vector<2x128xf32>
    %333 = tpu.matmul %290, %17, %cst_99 {dimension_numbers = #tpu.dot_dimension_numbers<[1], [0], [0], [1], [0, 0, 1, 1], [], []>} : vector<2x32xf32>, vector<32x128xf32>, vector<2x128xf32> -> vector<2x128xf32>
    %334 = arith.addf %332, %333 : vector<2x128xf32>
    %335 = vector.extract_strided_slice %334 {offsets = [0, 0], sizes = [2, 32], strides = [1, 1]} : vector<2x128xf32> to vector<2x32xf32>
    %336 = arith.negf %335 : vector<2x32xf32>
    %337 = math.exp %336 : vector<2x32xf32>
    %cst_100 = arith.constant 1.000000e+00 : f32
    %338 = vector.broadcast %cst_100 : f32 to vector<2x32xf32>
    %339 = arith.addf %338, %337 : vector<2x32xf32>
    %340 = arith.divf %338, %339 : vector<2x32xf32>
    %341 = vector.extract_strided_slice %334 {offsets = [0, 32], sizes = [2, 32], strides = [1, 1]} : vector<2x128xf32> to vector<2x32xf32>
    %342 = arith.negf %341 : vector<2x32xf32>
    %343 = math.exp %342 : vector<2x32xf32>
    %cst_101 = arith.constant 1.000000e+00 : f32
    %344 = vector.broadcast %cst_101 : f32 to vector<2x32xf32>
    %345 = arith.addf %344, %343 : vector<2x32xf32>
    %346 = arith.divf %344, %345 : vector<2x32xf32>
    %347 = vector.extract_strided_slice %334 {offsets = [0, 64], sizes = [2, 32], strides = [1, 1]} : vector<2x128xf32> to vector<2x32xf32>
    %348 = math.tanh %347 : vector<2x32xf32>
    %349 = vector.extract_strided_slice %334 {offsets = [0, 96], sizes = [2, 32], strides = [1, 1]} : vector<2x128xf32> to vector<2x32xf32>
    %350 = arith.negf %349 : vector<2x32xf32>
    %351 = math.exp %350 : vector<2x32xf32>
    %cst_102 = arith.constant 1.000000e+00 : f32
    %352 = vector.broadcast %cst_102 : f32 to vector<2x32xf32>
    %353 = arith.addf %352, %351 : vector<2x32xf32>
    %354 = arith.divf %352, %353 : vector<2x32xf32>
    %355 = arith.mulf %346, %288 : vector<2x32xf32>
    %356 = arith.mulf %340, %348 : vector<2x32xf32>
    %357 = arith.addf %355, %356 : vector<2x32xf32>
    %358 = math.tanh %357 : vector<2x32xf32>
    %359 = arith.mulf %354, %358 : vector<2x32xf32>
    %360 = arith.index_cast %329 : i32 to index
    %c0_103 = arith.constant 0 : index
    %c32_104 = arith.constant 32 : index
    %361 = vector.load %arg26[%360, %c0_103, %c32_104] : memref<8x2x64xf32, #tpu.memory_space<vmem>>, vector<1x2x32xf32>
    %362 = vector.shape_cast %361 : vector<1x2x32xf32> to vector<2x32xf32>
    %363 = vector.shape_cast %359 : vector<2x32xf32> to vector<1x2x32xf32>
    tpu.vector_store %arg26[%360, %c0_103, %c32_104], %363 {strides = array<i32>} : memref<8x2x64xf32, #tpu.memory_space<vmem>>, vector<1x2x32xf32>,
    %c5_i32 = arith.constant 5 : i32
    %364 = arith.index_cast %c5_i32 : i32 to index
    %c0_105 = arith.constant 0 : index
    %c0_106 = arith.constant 0 : index
    %365 = vector.load %arg28[%364, %c0_105, %c0_106] : memref<8x2x128xf32, #tpu.memory_space<vmem>>, vector<1x2x128xf32>
    %366 = vector.shape_cast %365 : vector<1x2x128xf32> to vector<2x128xf32>
    %cst_107 = arith.constant dense<0.000000e+00> : vector<2x128xf32>
    %367 = tpu.matmul %324, %16, %cst_107 {dimension_numbers = #tpu.dot_dimension_numbers<[1], [0], [0], [1], [0, 0, 1, 1], [], []>} : vector<2x32xf32>, vector<32x128xf32>, vector<2x128xf32> -> vector<2x128xf32>
    %368 = arith.addf %366, %367 : vector<2x128xf32>
    %369 = vector.extract_strided_slice %368 {offsets = [0, 0], sizes = [2, 32], strides = [1, 1]} : vector<2x128xf32> to vector<2x32xf32>
    %370 = arith.negf %369 : vector<2x32xf32>
    %371 = math.exp %370 : vector<2x32xf32>
    %cst_108 = arith.constant 1.000000e+00 : f32
    %372 = vector.broadcast %cst_108 : f32 to vector<2x32xf32>
    %373 = arith.addf %372, %371 : vector<2x32xf32>
    %374 = arith.divf %372, %373 : vector<2x32xf32>
    %375 = vector.extract_strided_slice %368 {offsets = [0, 32], sizes = [2, 32], strides = [1, 1]} : vector<2x128xf32> to vector<2x32xf32>
    %376 = arith.negf %375 : vector<2x32xf32>
    %377 = math.exp %376 : vector<2x32xf32>
    %cst_109 = arith.constant 1.000000e+00 : f32
    %378 = vector.broadcast %cst_109 : f32 to vector<2x32xf32>
    %379 = arith.addf %378, %377 : vector<2x32xf32>
    %380 = arith.divf %378, %379 : vector<2x32xf32>
    %381 = vector.extract_strided_slice %368 {offsets = [0, 64], sizes = [2, 32], strides = [1, 1]} : vector<2x128xf32> to vector<2x32xf32>
    %382 = math.tanh %381 : vector<2x32xf32>
    %383 = vector.extract_strided_slice %368 {offsets = [0, 96], sizes = [2, 32], strides = [1, 1]} : vector<2x128xf32> to vector<2x32xf32>
    %384 = arith.negf %383 : vector<2x32xf32>
    %385 = math.exp %384 : vector<2x32xf32>
    %cst_110 = arith.constant 1.000000e+00 : f32
    %386 = vector.broadcast %cst_110 : f32 to vector<2x32xf32>
    %387 = arith.addf %386, %385 : vector<2x32xf32>
    %388 = arith.divf %386, %387 : vector<2x32xf32>
    %389 = arith.mulf %380, %322 : vector<2x32xf32>
    %390 = arith.mulf %374, %382 : vector<2x32xf32>
    %391 = arith.addf %389, %390 : vector<2x32xf32>
    %392 = math.tanh %391 : vector<2x32xf32>
    %393 = arith.mulf %388, %392 : vector<2x32xf32>
    %394 = arith.index_cast %c5_i32 : i32 to index
    %c0_111 = arith.constant 0 : index
    %c0_112 = arith.constant 0 : index
    %395 = vector.load %arg26[%394, %c0_111, %c0_112] : memref<8x2x64xf32, #tpu.memory_space<vmem>>, vector<1x2x32xf32>
    %396 = vector.shape_cast %395 : vector<1x2x32xf32> to vector<2x32xf32>
    %397 = vector.shape_cast %393 : vector<2x32xf32> to vector<1x2x32xf32>
    tpu.vector_store %arg26[%394, %c0_111, %c0_112], %397 {strides = array<i32>} : memref<8x2x64xf32, #tpu.memory_space<vmem>>, vector<1x2x32xf32>,
    %c7_i32_113 = arith.constant 7 : i32
    %398 = arith.subi %c7_i32_113, %c5_i32 : i32
    %399 = arith.index_cast %398 : i32 to index
    %c0_114 = arith.constant 0 : index
    %c0_115 = arith.constant 0 : index
    %400 = vector.load %arg29[%399, %c0_114, %c0_115] : memref<8x2x128xf32, #tpu.memory_space<vmem>>, vector<1x2x128xf32>
    %401 = vector.shape_cast %400 : vector<1x2x128xf32> to vector<2x128xf32>
    %cst_116 = arith.constant dense<0.000000e+00> : vector<2x128xf32>
    %402 = tpu.matmul %359, %17, %cst_116 {dimension_numbers = #tpu.dot_dimension_numbers<[1], [0], [0], [1], [0, 0, 1, 1], [], []>} : vector<2x32xf32>, vector<32x128xf32>, vector<2x128xf32> -> vector<2x128xf32>
    %403 = arith.addf %401, %402 : vector<2x128xf32>
    %404 = vector.extract_strided_slice %403 {offsets = [0, 0], sizes = [2, 32], strides = [1, 1]} : vector<2x128xf32> to vector<2x32xf32>
    %405 = arith.negf %404 : vector<2x32xf32>
    %406 = math.exp %405 : vector<2x32xf32>
    %cst_117 = arith.constant 1.000000e+00 : f32
    %407 = vector.broadcast %cst_117 : f32 to vector<2x32xf32>
    %408 = arith.addf %407, %406 : vector<2x32xf32>
    %409 = arith.divf %407, %408 : vector<2x32xf32>
    %410 = vector.extract_strided_slice %403 {offsets = [0, 32], sizes = [2, 32], strides = [1, 1]} : vector<2x128xf32> to vector<2x32xf32>
    %411 = arith.negf %410 : vector<2x32xf32>
    %412 = math.exp %411 : vector<2x32xf32>
    %cst_118 = arith.constant 1.000000e+00 : f32
    %413 = vector.broadcast %cst_118 : f32 to vector<2x32xf32>
    %414 = arith.addf %413, %412 : vector<2x32xf32>
    %415 = arith.divf %413, %414 : vector<2x32xf32>
    %416 = vector.extract_strided_slice %403 {offsets = [0, 64], sizes = [2, 32], strides = [1, 1]} : vector<2x128xf32> to vector<2x32xf32>
    %417 = math.tanh %416 : vector<2x32xf32>
    %418 = vector.extract_strided_slice %403 {offsets = [0, 96], sizes = [2, 32], strides = [1, 1]} : vector<2x128xf32> to vector<2x32xf32>
    %419 = arith.negf %418 : vector<2x32xf32>
    %420 = math.exp %419 : vector<2x32xf32>
    %cst_119 = arith.constant 1.000000e+00 : f32
    %421 = vector.broadcast %cst_119 : f32 to vector<2x32xf32>
    %422 = arith.addf %421, %420 : vector<2x32xf32>
    %423 = arith.divf %421, %422 : vector<2x32xf32>
    %424 = arith.mulf %415, %357 : vector<2x32xf32>
    %425 = arith.mulf %409, %417 : vector<2x32xf32>
    %426 = arith.addf %424, %425 : vector<2x32xf32>
    %427 = math.tanh %426 : vector<2x32xf32>
    %428 = arith.mulf %423, %427 : vector<2x32xf32>
    %429 = arith.index_cast %398 : i32 to index
    %c0_120 = arith.constant 0 : index
    %c32_121 = arith.constant 32 : index
    %430 = vector.load %arg26[%429, %c0_120, %c32_121] : memref<8x2x64xf32, #tpu.memory_space<vmem>>, vector<1x2x32xf32>
    %431 = vector.shape_cast %430 : vector<1x2x32xf32> to vector<2x32xf32>
    %432 = vector.shape_cast %428 : vector<2x32xf32> to vector<1x2x32xf32>
    tpu.vector_store %arg26[%429, %c0_120, %c32_121], %432 {strides = array<i32>} : memref<8x2x64xf32, #tpu.memory_space<vmem>>, vector<1x2x32xf32>,
    %c6_i32 = arith.constant 6 : i32
    %433 = arith.index_cast %c6_i32 : i32 to index
    %c0_122 = arith.constant 0 : index
    %c0_123 = arith.constant 0 : index
    %434 = vector.load %arg28[%433, %c0_122, %c0_123] : memref<8x2x128xf32, #tpu.memory_space<vmem>>, vector<1x2x128xf32>
    %435 = vector.shape_cast %434 : vector<1x2x128xf32> to vector<2x128xf32>
    %cst_124 = arith.constant dense<0.000000e+00> : vector<2x128xf32>
    %436 = tpu.matmul %393, %16, %cst_124 {dimension_numbers = #tpu.dot_dimension_numbers<[1], [0], [0], [1], [0, 0, 1, 1], [], []>} : vector<2x32xf32>, vector<32x128xf32>, vector<2x128xf32> -> vector<2x128xf32>
    %437 = arith.addf %435, %436 : vector<2x128xf32>
    %438 = vector.extract_strided_slice %437 {offsets = [0, 0], sizes = [2, 32], strides = [1, 1]} : vector<2x128xf32> to vector<2x32xf32>
    %439 = arith.negf %438 : vector<2x32xf32>
    %440 = math.exp %439 : vector<2x32xf32>
    %cst_125 = arith.constant 1.000000e+00 : f32
    %441 = vector.broadcast %cst_125 : f32 to vector<2x32xf32>
    %442 = arith.addf %441, %440 : vector<2x32xf32>
    %443 = arith.divf %441, %442 : vector<2x32xf32>
    %444 = vector.extract_strided_slice %437 {offsets = [0, 32], sizes = [2, 32], strides = [1, 1]} : vector<2x128xf32> to vector<2x32xf32>
    %445 = arith.negf %444 : vector<2x32xf32>
    %446 = math.exp %445 : vector<2x32xf32>
    %cst_126 = arith.constant 1.000000e+00 : f32
    %447 = vector.broadcast %cst_126 : f32 to vector<2x32xf32>
    %448 = arith.addf %447, %446 : vector<2x32xf32>
    %449 = arith.divf %447, %448 : vector<2x32xf32>
    %450 = vector.extract_strided_slice %437 {offsets = [0, 64], sizes = [2, 32], strides = [1, 1]} : vector<2x128xf32> to vector<2x32xf32>
    %451 = math.tanh %450 : vector<2x32xf32>
    %452 = vector.extract_strided_slice %437 {offsets = [0, 96], sizes = [2, 32], strides = [1, 1]} : vector<2x128xf32> to vector<2x32xf32>
    %453 = arith.negf %452 : vector<2x32xf32>
    %454 = math.exp %453 : vector<2x32xf32>
    %cst_127 = arith.constant 1.000000e+00 : f32
    %455 = vector.broadcast %cst_127 : f32 to vector<2x32xf32>
    %456 = arith.addf %455, %454 : vector<2x32xf32>
    %457 = arith.divf %455, %456 : vector<2x32xf32>
    %458 = arith.mulf %449, %391 : vector<2x32xf32>
    %459 = arith.mulf %443, %451 : vector<2x32xf32>
    %460 = arith.addf %458, %459 : vector<2x32xf32>
    %461 = math.tanh %460 : vector<2x32xf32>
    %462 = arith.mulf %457, %461 : vector<2x32xf32>
    %463 = arith.index_cast %c6_i32 : i32 to index
    %c0_128 = arith.constant 0 : index
    %c0_129 = arith.constant 0 : index
    %464 = vector.load %arg26[%463, %c0_128, %c0_129] : memref<8x2x64xf32, #tpu.memory_space<vmem>>, vector<1x2x32xf32>
    %465 = vector.shape_cast %464 : vector<1x2x32xf32> to vector<2x32xf32>
    %466 = vector.shape_cast %462 : vector<2x32xf32> to vector<1x2x32xf32>
    tpu.vector_store %arg26[%463, %c0_128, %c0_129], %466 {strides = array<i32>} : memref<8x2x64xf32, #tpu.memory_space<vmem>>, vector<1x2x32xf32>,
    %c7_i32_130 = arith.constant 7 : i32
    %467 = arith.subi %c7_i32_130, %c6_i32 : i32
    %468 = arith.index_cast %467 : i32 to index
    %c0_131 = arith.constant 0 : index
    %c0_132 = arith.constant 0 : index
    %469 = vector.load %arg29[%468, %c0_131, %c0_132] : memref<8x2x128xf32, #tpu.memory_space<vmem>>, vector<1x2x128xf32>
    %470 = vector.shape_cast %469 : vector<1x2x128xf32> to vector<2x128xf32>
    %cst_133 = arith.constant dense<0.000000e+00> : vector<2x128xf32>
    %471 = tpu.matmul %428, %17, %cst_133 {dimension_numbers = #tpu.dot_dimension_numbers<[1], [0], [0], [1], [0, 0, 1, 1], [], []>} : vector<2x32xf32>, vector<32x128xf32>, vector<2x128xf32> -> vector<2x128xf32>
    %472 = arith.addf %470, %471 : vector<2x128xf32>
    %473 = vector.extract_strided_slice %472 {offsets = [0, 0], sizes = [2, 32], strides = [1, 1]} : vector<2x128xf32> to vector<2x32xf32>
    %474 = arith.negf %473 : vector<2x32xf32>
    %475 = math.exp %474 : vector<2x32xf32>
    %cst_134 = arith.constant 1.000000e+00 : f32
    %476 = vector.broadcast %cst_134 : f32 to vector<2x32xf32>
    %477 = arith.addf %476, %475 : vector<2x32xf32>
    %478 = arith.divf %476, %477 : vector<2x32xf32>
    %479 = vector.extract_strided_slice %472 {offsets = [0, 32], sizes = [2, 32], strides = [1, 1]} : vector<2x128xf32> to vector<2x32xf32>
    %480 = arith.negf %479 : vector<2x32xf32>
    %481 = math.exp %480 : vector<2x32xf32>
    %cst_135 = arith.constant 1.000000e+00 : f32
    %482 = vector.broadcast %cst_135 : f32 to vector<2x32xf32>
    %483 = arith.addf %482, %481 : vector<2x32xf32>
    %484 = arith.divf %482, %483 : vector<2x32xf32>
    %485 = vector.extract_strided_slice %472 {offsets = [0, 64], sizes = [2, 32], strides = [1, 1]} : vector<2x128xf32> to vector<2x32xf32>
    %486 = math.tanh %485 : vector<2x32xf32>
    %487 = vector.extract_strided_slice %472 {offsets = [0, 96], sizes = [2, 32], strides = [1, 1]} : vector<2x128xf32> to vector<2x32xf32>
    %488 = arith.negf %487 : vector<2x32xf32>
    %489 = math.exp %488 : vector<2x32xf32>
    %cst_136 = arith.constant 1.000000e+00 : f32
    %490 = vector.broadcast %cst_136 : f32 to vector<2x32xf32>
    %491 = arith.addf %490, %489 : vector<2x32xf32>
    %492 = arith.divf %490, %491 : vector<2x32xf32>
    %493 = arith.mulf %484, %426 : vector<2x32xf32>
    %494 = arith.mulf %478, %486 : vector<2x32xf32>
    %495 = arith.addf %493, %494 : vector<2x32xf32>
    %496 = math.tanh %495 : vector<2x32xf32>
    %497 = arith.mulf %492, %496 : vector<2x32xf32>
    %498 = arith.index_cast %467 : i32 to index
    %c0_137 = arith.constant 0 : index
    %c32_138 = arith.constant 32 : index
    %499 = vector.load %arg26[%498, %c0_137, %c32_138] : memref<8x2x64xf32, #tpu.memory_space<vmem>>, vector<1x2x32xf32>
    %500 = vector.shape_cast %499 : vector<1x2x32xf32> to vector<2x32xf32>
    %501 = vector.shape_cast %497 : vector<2x32xf32> to vector<1x2x32xf32>
    tpu.vector_store %arg26[%498, %c0_137, %c32_138], %501 {strides = array<i32>} : memref<8x2x64xf32, #tpu.memory_space<vmem>>, vector<1x2x32xf32>,
    %c7_i32_139 = arith.constant 7 : i32
    %502 = arith.index_cast %c7_i32_139 : i32 to index
    %c0_140 = arith.constant 0 : index
    %c0_141 = arith.constant 0 : index
    %503 = vector.load %arg28[%502, %c0_140, %c0_141] : memref<8x2x128xf32, #tpu.memory_space<vmem>>, vector<1x2x128xf32>
    %504 = vector.shape_cast %503 : vector<1x2x128xf32> to vector<2x128xf32>
    %cst_142 = arith.constant dense<0.000000e+00> : vector<2x128xf32>
    %505 = tpu.matmul %462, %16, %cst_142 {dimension_numbers = #tpu.dot_dimension_numbers<[1], [0], [0], [1], [0, 0, 1, 1], [], []>} : vector<2x32xf32>, vector<32x128xf32>, vector<2x128xf32> -> vector<2x128xf32>
    %506 = arith.addf %504, %505 : vector<2x128xf32>
    %507 = vector.extract_strided_slice %506 {offsets = [0, 0], sizes = [2, 32], strides = [1, 1]} : vector<2x128xf32> to vector<2x32xf32>
    %508 = arith.negf %507 : vector<2x32xf32>
    %509 = math.exp %508 : vector<2x32xf32>
    %cst_143 = arith.constant 1.000000e+00 : f32
    %510 = vector.broadcast %cst_143 : f32 to vector<2x32xf32>
    %511 = arith.addf %510, %509 : vector<2x32xf32>
    %512 = arith.divf %510, %511 : vector<2x32xf32>
    %513 = vector.extract_strided_slice %506 {offsets = [0, 32], sizes = [2, 32], strides = [1, 1]} : vector<2x128xf32> to vector<2x32xf32>
    %514 = arith.negf %513 : vector<2x32xf32>
    %515 = math.exp %514 : vector<2x32xf32>
    %cst_144 = arith.constant 1.000000e+00 : f32
    %516 = vector.broadcast %cst_144 : f32 to vector<2x32xf32>
    %517 = arith.addf %516, %515 : vector<2x32xf32>
    %518 = arith.divf %516, %517 : vector<2x32xf32>
    %519 = vector.extract_strided_slice %506 {offsets = [0, 64], sizes = [2, 32], strides = [1, 1]} : vector<2x128xf32> to vector<2x32xf32>
    %520 = math.tanh %519 : vector<2x32xf32>
    %521 = vector.extract_strided_slice %506 {offsets = [0, 96], sizes = [2, 32], strides = [1, 1]} : vector<2x128xf32> to vector<2x32xf32>
    %522 = arith.negf %521 : vector<2x32xf32>
    %523 = math.exp %522 : vector<2x32xf32>
    %cst_145 = arith.constant 1.000000e+00 : f32
    %524 = vector.broadcast %cst_145 : f32 to vector<2x32xf32>
    %525 = arith.addf %524, %523 : vector<2x32xf32>
    %526 = arith.divf %524, %525 : vector<2x32xf32>
    %527 = arith.mulf %518, %460 : vector<2x32xf32>
    %528 = arith.mulf %512, %520 : vector<2x32xf32>
    %529 = arith.addf %527, %528 : vector<2x32xf32>
    %530 = math.tanh %529 : vector<2x32xf32>
    %531 = arith.mulf %526, %530 : vector<2x32xf32>
    %532 = arith.index_cast %c7_i32_139 : i32 to index
    %c0_146 = arith.constant 0 : index
    %c0_147 = arith.constant 0 : index
    %533 = vector.load %arg26[%532, %c0_146, %c0_147] : memref<8x2x64xf32, #tpu.memory_space<vmem>>, vector<1x2x32xf32>
    %534 = vector.shape_cast %533 : vector<1x2x32xf32> to vector<2x32xf32>
    %535 = vector.shape_cast %531 : vector<2x32xf32> to vector<1x2x32xf32>
    tpu.vector_store %arg26[%532, %c0_146, %c0_147], %535 {strides = array<i32>} : memref<8x2x64xf32, #tpu.memory_space<vmem>>, vector<1x2x32xf32>,
    %c7_i32_148 = arith.constant 7 : i32
    %536 = arith.subi %c7_i32_148, %c7_i32_139 : i32
    %537 = arith.index_cast %536 : i32 to index
    %c0_149 = arith.constant 0 : index
    %c0_150 = arith.constant 0 : index
    %538 = vector.load %arg29[%537, %c0_149, %c0_150] : memref<8x2x128xf32, #tpu.memory_space<vmem>>, vector<1x2x128xf32>
    %539 = vector.shape_cast %538 : vector<1x2x128xf32> to vector<2x128xf32>
    %cst_151 = arith.constant dense<0.000000e+00> : vector<2x128xf32>
    %540 = tpu.matmul %497, %17, %cst_151 {dimension_numbers = #tpu.dot_dimension_numbers<[1], [0], [0], [1], [0, 0, 1, 1], [], []>} : vector<2x32xf32>, vector<32x128xf32>, vector<2x128xf32> -> vector<2x128xf32>
    %541 = arith.addf %539, %540 : vector<2x128xf32>
    %542 = vector.extract_strided_slice %541 {offsets = [0, 0], sizes = [2, 32], strides = [1, 1]} : vector<2x128xf32> to vector<2x32xf32>
    %543 = arith.negf %542 : vector<2x32xf32>
    %544 = math.exp %543 : vector<2x32xf32>
    %cst_152 = arith.constant 1.000000e+00 : f32
    %545 = vector.broadcast %cst_152 : f32 to vector<2x32xf32>
    %546 = arith.addf %545, %544 : vector<2x32xf32>
    %547 = arith.divf %545, %546 : vector<2x32xf32>
    %548 = vector.extract_strided_slice %541 {offsets = [0, 32], sizes = [2, 32], strides = [1, 1]} : vector<2x128xf32> to vector<2x32xf32>
    %549 = arith.negf %548 : vector<2x32xf32>
    %550 = math.exp %549 : vector<2x32xf32>
    %cst_153 = arith.constant 1.000000e+00 : f32
    %551 = vector.broadcast %cst_153 : f32 to vector<2x32xf32>
    %552 = arith.addf %551, %550 : vector<2x32xf32>
    %553 = arith.divf %551, %552 : vector<2x32xf32>
    %554 = vector.extract_strided_slice %541 {offsets = [0, 64], sizes = [2, 32], strides = [1, 1]} : vector<2x128xf32> to vector<2x32xf32>
    %555 = math.tanh %554 : vector<2x32xf32>
    %556 = vector.extract_strided_slice %541 {offsets = [0, 96], sizes = [2, 32], strides = [1, 1]} : vector<2x128xf32> to vector<2x32xf32>
    %557 = arith.negf %556 : vector<2x32xf32>
    %558 = math.exp %557 : vector<2x32xf32>
    %cst_154 = arith.constant 1.000000e+00 : f32
    %559 = vector.broadcast %cst_154 : f32 to vector<2x32xf32>
    %560 = arith.addf %559, %558 : vector<2x32xf32>
    %561 = arith.divf %559, %560 : vector<2x32xf32>
    %562 = arith.mulf %553, %495 : vector<2x32xf32>
    %563 = arith.mulf %547, %555 : vector<2x32xf32>
    %564 = arith.addf %562, %563 : vector<2x32xf32>
    %565 = math.tanh %564 : vector<2x32xf32>
    %566 = arith.mulf %561, %565 : vector<2x32xf32>
    %567 = arith.index_cast %536 : i32 to index
    %c0_155 = arith.constant 0 : index
    %c32_156 = arith.constant 32 : index
    %568 = vector.load %arg26[%567, %c0_155, %c32_156] : memref<8x2x64xf32, #tpu.memory_space<vmem>>, vector<1x2x32xf32>
    %569 = vector.shape_cast %568 : vector<1x2x32xf32> to vector<2x32xf32>
    %570 = vector.shape_cast %566 : vector<2x32xf32> to vector<1x2x32xf32>
    tpu.vector_store %arg26[%567, %c0_155, %c32_156], %570 {strides = array<i32>} : memref<8x2x64xf32, #tpu.memory_space<vmem>>, vector<1x2x32xf32>,
    %c8_i32 = arith.constant 8 : i32
    %c0_157 = arith.constant 0 : index
    %c0_158 = arith.constant 0 : index
    %c0_159 = arith.constant 0 : index
    %571 = vector.load %arg26[%c0_157, %c0_158, %c0_159] : memref<8x2x64xf32, #tpu.memory_space<vmem>>, vector<8x2x64xf32>
    %572 = vector.shape_cast %571 : vector<8x2x64xf32> to vector<16x64xf32>
    %c0_160 = arith.constant 0 : index
    %c0_161 = arith.constant 0 : index
    %573 = vector.load %arg7[%c0_160, %c0_161] : memref<64x128xf32, #tpu.memory_space<vmem>>, vector<64x128xf32>
    %cst_162 = arith.constant dense<0.000000e+00> : vector<16x128xf32>
    %574 = tpu.matmul %572, %573, %cst_162 {dimension_numbers = #tpu.dot_dimension_numbers<[1], [0], [0], [1], [0, 0, 1, 1], [], []>} : vector<16x64xf32>, vector<64x128xf32>, vector<16x128xf32> -> vector<16x128xf32>
    %c0_163 = arith.constant 0 : index
    %c0_164 = arith.constant 0 : index
    %575 = vector.load %arg9[%c0_163, %c0_164] : memref<1x128xf32, #tpu.memory_space<vmem>>, vector<1x128xf32>
    %576 = vector.broadcast %575 : vector<1x128xf32> to vector<16x128xf32>
    %577 = arith.addf %574, %576 : vector<16x128xf32>
    %c0_165 = arith.constant 0 : index
    %c0_166 = arith.constant 0 : index
    %578 = vector.load %arg10[%c0_165, %c0_166] : memref<64x128xf32, #tpu.memory_space<vmem>>, vector<64x128xf32>
    %cst_167 = arith.constant dense<0.000000e+00> : vector<16x128xf32>
    %579 = tpu.matmul %572, %578, %cst_167 {dimension_numbers = #tpu.dot_dimension_numbers<[1], [0], [0], [1], [0, 0, 1, 1], [], []>} : vector<16x64xf32>, vector<64x128xf32>, vector<16x128xf32> -> vector<16x128xf32>
    %c0_168 = arith.constant 0 : index
    %c0_169 = arith.constant 0 : index
    %580 = vector.load %arg12[%c0_168, %c0_169] : memref<1x128xf32, #tpu.memory_space<vmem>>, vector<1x128xf32>
    %581 = vector.broadcast %580 : vector<1x128xf32> to vector<16x128xf32>
    %582 = arith.addf %579, %581 : vector<16x128xf32>
    %583 = vector.shape_cast %577 : vector<16x128xf32> to vector<8x2x128xf32>
    %c0_170 = arith.constant 0 : index
    %c0_171 = arith.constant 0 : index
    %c0_172 = arith.constant 0 : index
    %584 = vector.load %arg28[%c0_170, %c0_171, %c0_172] : memref<8x2x128xf32, #tpu.memory_space<vmem>>, vector<8x2x128xf32>
    tpu.vector_store %arg28[%c0_170, %c0_171, %c0_172], %583 {strides = array<i32>} : memref<8x2x128xf32, #tpu.memory_space<vmem>>, vector<8x2x128xf32>,
    %585 = vector.shape_cast %582 : vector<16x128xf32> to vector<8x2x128xf32>
    %c0_173 = arith.constant 0 : index
    %c0_174 = arith.constant 0 : index
    %c0_175 = arith.constant 0 : index
    %586 = vector.load %arg29[%c0_173, %c0_174, %c0_175] : memref<8x2x128xf32, #tpu.memory_space<vmem>>, vector<8x2x128xf32>
    tpu.vector_store %arg29[%c0_173, %c0_174, %c0_175], %585 {strides = array<i32>} : memref<8x2x128xf32, #tpu.memory_space<vmem>>, vector<8x2x128xf32>,
    %c0_176 = arith.constant 0 : index
    %c0_177 = arith.constant 0 : index
    %587 = vector.load %arg8[%c0_176, %c0_177] : memref<32x128xf32, #tpu.memory_space<vmem>>, vector<32x128xf32>
    %c0_178 = arith.constant 0 : index
    %c0_179 = arith.constant 0 : index
    %588 = vector.load %arg11[%c0_178, %c0_179] : memref<32x128xf32, #tpu.memory_space<vmem>>, vector<32x128xf32>
    %cst_180 = arith.constant 0.000000e+00 : f32
    %589 = vector.broadcast %cst_180 : f32 to vector<2x32xf32>
    %c0_i32_181 = arith.constant 0 : i32
    %590 = arith.index_cast %c0_i32_181 : i32 to index
    %c0_182 = arith.constant 0 : index
    %c0_183 = arith.constant 0 : index
    %591 = vector.load %arg28[%590, %c0_182, %c0_183] : memref<8x2x128xf32, #tpu.memory_space<vmem>>, vector<1x2x128xf32>
    %592 = vector.shape_cast %591 : vector<1x2x128xf32> to vector<2x128xf32>
    %cst_184 = arith.constant dense<0.000000e+00> : vector<2x128xf32>
    %593 = tpu.matmul %589, %587, %cst_184 {dimension_numbers = #tpu.dot_dimension_numbers<[1], [0], [0], [1], [0, 0, 1, 1], [], []>} : vector<2x32xf32>, vector<32x128xf32>, vector<2x128xf32> -> vector<2x128xf32>
    %594 = arith.addf %592, %593 : vector<2x128xf32>
    %595 = vector.extract_strided_slice %594 {offsets = [0, 0], sizes = [2, 32], strides = [1, 1]} : vector<2x128xf32> to vector<2x32xf32>
    %596 = arith.negf %595 : vector<2x32xf32>
    %597 = math.exp %596 : vector<2x32xf32>
    %cst_185 = arith.constant 1.000000e+00 : f32
    %598 = vector.broadcast %cst_185 : f32 to vector<2x32xf32>
    %599 = arith.addf %598, %597 : vector<2x32xf32>
    %600 = arith.divf %598, %599 : vector<2x32xf32>
    %601 = vector.extract_strided_slice %594 {offsets = [0, 32], sizes = [2, 32], strides = [1, 1]} : vector<2x128xf32> to vector<2x32xf32>
    %602 = arith.negf %601 : vector<2x32xf32>
    %603 = math.exp %602 : vector<2x32xf32>
    %cst_186 = arith.constant 1.000000e+00 : f32
    %604 = vector.broadcast %cst_186 : f32 to vector<2x32xf32>
    %605 = arith.addf %604, %603 : vector<2x32xf32>
    %606 = arith.divf %604, %605 : vector<2x32xf32>
    %607 = vector.extract_strided_slice %594 {offsets = [0, 64], sizes = [2, 32], strides = [1, 1]} : vector<2x128xf32> to vector<2x32xf32>
    %608 = math.tanh %607 : vector<2x32xf32>
    %609 = vector.extract_strided_slice %594 {offsets = [0, 96], sizes = [2, 32], strides = [1, 1]} : vector<2x128xf32> to vector<2x32xf32>
    %610 = arith.negf %609 : vector<2x32xf32>
    %611 = math.exp %610 : vector<2x32xf32>
    %cst_187 = arith.constant 1.000000e+00 : f32
    %612 = vector.broadcast %cst_187 : f32 to vector<2x32xf32>
    %613 = arith.addf %612, %611 : vector<2x32xf32>
    %614 = arith.divf %612, %613 : vector<2x32xf32>
    %615 = arith.mulf %606, %589 : vector<2x32xf32>
    %616 = arith.mulf %600, %608 : vector<2x32xf32>
    %617 = arith.addf %615, %616 : vector<2x32xf32>
    %618 = math.tanh %617 : vector<2x32xf32>
    %619 = arith.mulf %614, %618 : vector<2x32xf32>
    %620 = arith.index_cast %c0_i32_181 : i32 to index
    %c0_188 = arith.constant 0 : index
    %c0_189 = arith.constant 0 : index
    %621 = vector.load %arg27[%620, %c0_188, %c0_189] : memref<8x2x64xf32, #tpu.memory_space<vmem>>, vector<1x2x32xf32>
    %622 = vector.shape_cast %621 : vector<1x2x32xf32> to vector<2x32xf32>
    %623 = vector.shape_cast %619 : vector<2x32xf32> to vector<1x2x32xf32>
    tpu.vector_store %arg27[%620, %c0_188, %c0_189], %623 {strides = array<i32>} : memref<8x2x64xf32, #tpu.memory_space<vmem>>, vector<1x2x32xf32>,
    %c7_i32_190 = arith.constant 7 : i32
    %624 = arith.subi %c7_i32_190, %c0_i32_181 : i32
    %625 = arith.index_cast %624 : i32 to index
    %c0_191 = arith.constant 0 : index
    %c0_192 = arith.constant 0 : index
    %626 = vector.load %arg29[%625, %c0_191, %c0_192] : memref<8x2x128xf32, #tpu.memory_space<vmem>>, vector<1x2x128xf32>
    %627 = vector.shape_cast %626 : vector<1x2x128xf32> to vector<2x128xf32>
    %cst_193 = arith.constant dense<0.000000e+00> : vector<2x128xf32>
    %628 = tpu.matmul %589, %588, %cst_193 {dimension_numbers = #tpu.dot_dimension_numbers<[1], [0], [0], [1], [0, 0, 1, 1], [], []>} : vector<2x32xf32>, vector<32x128xf32>, vector<2x128xf32> -> vector<2x128xf32>
    %629 = arith.addf %627, %628 : vector<2x128xf32>
    %630 = vector.extract_strided_slice %629 {offsets = [0, 0], sizes = [2, 32], strides = [1, 1]} : vector<2x128xf32> to vector<2x32xf32>
    %631 = arith.negf %630 : vector<2x32xf32>
    %632 = math.exp %631 : vector<2x32xf32>
    %cst_194 = arith.constant 1.000000e+00 : f32
    %633 = vector.broadcast %cst_194 : f32 to vector<2x32xf32>
    %634 = arith.addf %633, %632 : vector<2x32xf32>
    %635 = arith.divf %633, %634 : vector<2x32xf32>
    %636 = vector.extract_strided_slice %629 {offsets = [0, 32], sizes = [2, 32], strides = [1, 1]} : vector<2x128xf32> to vector<2x32xf32>
    %637 = arith.negf %636 : vector<2x32xf32>
    %638 = math.exp %637 : vector<2x32xf32>
    %cst_195 = arith.constant 1.000000e+00 : f32
    %639 = vector.broadcast %cst_195 : f32 to vector<2x32xf32>
    %640 = arith.addf %639, %638 : vector<2x32xf32>
    %641 = arith.divf %639, %640 : vector<2x32xf32>
    %642 = vector.extract_strided_slice %629 {offsets = [0, 64], sizes = [2, 32], strides = [1, 1]} : vector<2x128xf32> to vector<2x32xf32>
    %643 = math.tanh %642 : vector<2x32xf32>
    %644 = vector.extract_strided_slice %629 {offsets = [0, 96], sizes = [2, 32], strides = [1, 1]} : vector<2x128xf32> to vector<2x32xf32>
    %645 = arith.negf %644 : vector<2x32xf32>
    %646 = math.exp %645 : vector<2x32xf32>
    %cst_196 = arith.constant 1.000000e+00 : f32
    %647 = vector.broadcast %cst_196 : f32 to vector<2x32xf32>
    %648 = arith.addf %647, %646 : vector<2x32xf32>
    %649 = arith.divf %647, %648 : vector<2x32xf32>
    %650 = arith.mulf %641, %589 : vector<2x32xf32>
    %651 = arith.mulf %635, %643 : vector<2x32xf32>
    %652 = arith.addf %650, %651 : vector<2x32xf32>
    %653 = math.tanh %652 : vector<2x32xf32>
    %654 = arith.mulf %649, %653 : vector<2x32xf32>
    %655 = arith.index_cast %624 : i32 to index
    %c0_197 = arith.constant 0 : index
    %c32_198 = arith.constant 32 : index
    %656 = vector.load %arg27[%655, %c0_197, %c32_198] : memref<8x2x64xf32, #tpu.memory_space<vmem>>, vector<1x2x32xf32>
    %657 = vector.shape_cast %656 : vector<1x2x32xf32> to vector<2x32xf32>
    %658 = vector.shape_cast %654 : vector<2x32xf32> to vector<1x2x32xf32>
    tpu.vector_store %arg27[%655, %c0_197, %c32_198], %658 {strides = array<i32>} : memref<8x2x64xf32, #tpu.memory_space<vmem>>, vector<1x2x32xf32>,
    %c1_i32_199 = arith.constant 1 : i32
    %659 = arith.index_cast %c1_i32_199 : i32 to index
    %c0_200 = arith.constant 0 : index
    %c0_201 = arith.constant 0 : index
    %660 = vector.load %arg28[%659, %c0_200, %c0_201] : memref<8x2x128xf32, #tpu.memory_space<vmem>>, vector<1x2x128xf32>
    %661 = vector.shape_cast %660 : vector<1x2x128xf32> to vector<2x128xf32>
    %cst_202 = arith.constant dense<0.000000e+00> : vector<2x128xf32>
    %662 = tpu.matmul %619, %587, %cst_202 {dimension_numbers = #tpu.dot_dimension_numbers<[1], [0], [0], [1], [0, 0, 1, 1], [], []>} : vector<2x32xf32>, vector<32x128xf32>, vector<2x128xf32> -> vector<2x128xf32>
    %663 = arith.addf %661, %662 : vector<2x128xf32>
    %664 = vector.extract_strided_slice %663 {offsets = [0, 0], sizes = [2, 32], strides = [1, 1]} : vector<2x128xf32> to vector<2x32xf32>
    %665 = arith.negf %664 : vector<2x32xf32>
    %666 = math.exp %665 : vector<2x32xf32>
    %cst_203 = arith.constant 1.000000e+00 : f32
    %667 = vector.broadcast %cst_203 : f32 to vector<2x32xf32>
    %668 = arith.addf %667, %666 : vector<2x32xf32>
    %669 = arith.divf %667, %668 : vector<2x32xf32>
    %670 = vector.extract_strided_slice %663 {offsets = [0, 32], sizes = [2, 32], strides = [1, 1]} : vector<2x128xf32> to vector<2x32xf32>
    %671 = arith.negf %670 : vector<2x32xf32>
    %672 = math.exp %671 : vector<2x32xf32>
    %cst_204 = arith.constant 1.000000e+00 : f32
    %673 = vector.broadcast %cst_204 : f32 to vector<2x32xf32>
    %674 = arith.addf %673, %672 : vector<2x32xf32>
    %675 = arith.divf %673, %674 : vector<2x32xf32>
    %676 = vector.extract_strided_slice %663 {offsets = [0, 64], sizes = [2, 32], strides = [1, 1]} : vector<2x128xf32> to vector<2x32xf32>
    %677 = math.tanh %676 : vector<2x32xf32>
    %678 = vector.extract_strided_slice %663 {offsets = [0, 96], sizes = [2, 32], strides = [1, 1]} : vector<2x128xf32> to vector<2x32xf32>
    %679 = arith.negf %678 : vector<2x32xf32>
    %680 = math.exp %679 : vector<2x32xf32>
    %cst_205 = arith.constant 1.000000e+00 : f32
    %681 = vector.broadcast %cst_205 : f32 to vector<2x32xf32>
    %682 = arith.addf %681, %680 : vector<2x32xf32>
    %683 = arith.divf %681, %682 : vector<2x32xf32>
    %684 = arith.mulf %675, %617 : vector<2x32xf32>
    %685 = arith.mulf %669, %677 : vector<2x32xf32>
    %686 = arith.addf %684, %685 : vector<2x32xf32>
    %687 = math.tanh %686 : vector<2x32xf32>
    %688 = arith.mulf %683, %687 : vector<2x32xf32>
    %689 = arith.index_cast %c1_i32_199 : i32 to index
    %c0_206 = arith.constant 0 : index
    %c0_207 = arith.constant 0 : index
    %690 = vector.load %arg27[%689, %c0_206, %c0_207] : memref<8x2x64xf32, #tpu.memory_space<vmem>>, vector<1x2x32xf32>
    %691 = vector.shape_cast %690 : vector<1x2x32xf32> to vector<2x32xf32>
    %692 = vector.shape_cast %688 : vector<2x32xf32> to vector<1x2x32xf32>
    tpu.vector_store %arg27[%689, %c0_206, %c0_207], %692 {strides = array<i32>} : memref<8x2x64xf32, #tpu.memory_space<vmem>>, vector<1x2x32xf32>,
    %c7_i32_208 = arith.constant 7 : i32
    %693 = arith.subi %c7_i32_208, %c1_i32_199 : i32
    %694 = arith.index_cast %693 : i32 to index
    %c0_209 = arith.constant 0 : index
    %c0_210 = arith.constant 0 : index
    %695 = vector.load %arg29[%694, %c0_209, %c0_210] : memref<8x2x128xf32, #tpu.memory_space<vmem>>, vector<1x2x128xf32>
    %696 = vector.shape_cast %695 : vector<1x2x128xf32> to vector<2x128xf32>
    %cst_211 = arith.constant dense<0.000000e+00> : vector<2x128xf32>
    %697 = tpu.matmul %654, %588, %cst_211 {dimension_numbers = #tpu.dot_dimension_numbers<[1], [0], [0], [1], [0, 0, 1, 1], [], []>} : vector<2x32xf32>, vector<32x128xf32>, vector<2x128xf32> -> vector<2x128xf32>
    %698 = arith.addf %696, %697 : vector<2x128xf32>
    %699 = vector.extract_strided_slice %698 {offsets = [0, 0], sizes = [2, 32], strides = [1, 1]} : vector<2x128xf32> to vector<2x32xf32>
    %700 = arith.negf %699 : vector<2x32xf32>
    %701 = math.exp %700 : vector<2x32xf32>
    %cst_212 = arith.constant 1.000000e+00 : f32
    %702 = vector.broadcast %cst_212 : f32 to vector<2x32xf32>
    %703 = arith.addf %702, %701 : vector<2x32xf32>
    %704 = arith.divf %702, %703 : vector<2x32xf32>
    %705 = vector.extract_strided_slice %698 {offsets = [0, 32], sizes = [2, 32], strides = [1, 1]} : vector<2x128xf32> to vector<2x32xf32>
    %706 = arith.negf %705 : vector<2x32xf32>
    %707 = math.exp %706 : vector<2x32xf32>
    %cst_213 = arith.constant 1.000000e+00 : f32
    %708 = vector.broadcast %cst_213 : f32 to vector<2x32xf32>
    %709 = arith.addf %708, %707 : vector<2x32xf32>
    %710 = arith.divf %708, %709 : vector<2x32xf32>
    %711 = vector.extract_strided_slice %698 {offsets = [0, 64], sizes = [2, 32], strides = [1, 1]} : vector<2x128xf32> to vector<2x32xf32>
    %712 = math.tanh %711 : vector<2x32xf32>
    %713 = vector.extract_strided_slice %698 {offsets = [0, 96], sizes = [2, 32], strides = [1, 1]} : vector<2x128xf32> to vector<2x32xf32>
    %714 = arith.negf %713 : vector<2x32xf32>
    %715 = math.exp %714 : vector<2x32xf32>
    %cst_214 = arith.constant 1.000000e+00 : f32
    %716 = vector.broadcast %cst_214 : f32 to vector<2x32xf32>
    %717 = arith.addf %716, %715 : vector<2x32xf32>
    %718 = arith.divf %716, %717 : vector<2x32xf32>
    %719 = arith.mulf %710, %652 : vector<2x32xf32>
    %720 = arith.mulf %704, %712 : vector<2x32xf32>
    %721 = arith.addf %719, %720 : vector<2x32xf32>
    %722 = math.tanh %721 : vector<2x32xf32>
    %723 = arith.mulf %718, %722 : vector<2x32xf32>
    %724 = arith.index_cast %693 : i32 to index
    %c0_215 = arith.constant 0 : index
    %c32_216 = arith.constant 32 : index
    %725 = vector.load %arg27[%724, %c0_215, %c32_216] : memref<8x2x64xf32, #tpu.memory_space<vmem>>, vector<1x2x32xf32>
    %726 = vector.shape_cast %725 : vector<1x2x32xf32> to vector<2x32xf32>
    %727 = vector.shape_cast %723 : vector<2x32xf32> to vector<1x2x32xf32>
    tpu.vector_store %arg27[%724, %c0_215, %c32_216], %727 {strides = array<i32>} : memref<8x2x64xf32, #tpu.memory_space<vmem>>, vector<1x2x32xf32>,
    %c2_i32_217 = arith.constant 2 : i32
    %728 = arith.index_cast %c2_i32_217 : i32 to index
    %c0_218 = arith.constant 0 : index
    %c0_219 = arith.constant 0 : index
    %729 = vector.load %arg28[%728, %c0_218, %c0_219] : memref<8x2x128xf32, #tpu.memory_space<vmem>>, vector<1x2x128xf32>
    %730 = vector.shape_cast %729 : vector<1x2x128xf32> to vector<2x128xf32>
    %cst_220 = arith.constant dense<0.000000e+00> : vector<2x128xf32>
    %731 = tpu.matmul %688, %587, %cst_220 {dimension_numbers = #tpu.dot_dimension_numbers<[1], [0], [0], [1], [0, 0, 1, 1], [], []>} : vector<2x32xf32>, vector<32x128xf32>, vector<2x128xf32> -> vector<2x128xf32>
    %732 = arith.addf %730, %731 : vector<2x128xf32>
    %733 = vector.extract_strided_slice %732 {offsets = [0, 0], sizes = [2, 32], strides = [1, 1]} : vector<2x128xf32> to vector<2x32xf32>
    %734 = arith.negf %733 : vector<2x32xf32>
    %735 = math.exp %734 : vector<2x32xf32>
    %cst_221 = arith.constant 1.000000e+00 : f32
    %736 = vector.broadcast %cst_221 : f32 to vector<2x32xf32>
    %737 = arith.addf %736, %735 : vector<2x32xf32>
    %738 = arith.divf %736, %737 : vector<2x32xf32>
    %739 = vector.extract_strided_slice %732 {offsets = [0, 32], sizes = [2, 32], strides = [1, 1]} : vector<2x128xf32> to vector<2x32xf32>
    %740 = arith.negf %739 : vector<2x32xf32>
    %741 = math.exp %740 : vector<2x32xf32>
    %cst_222 = arith.constant 1.000000e+00 : f32
    %742 = vector.broadcast %cst_222 : f32 to vector<2x32xf32>
    %743 = arith.addf %742, %741 : vector<2x32xf32>
    %744 = arith.divf %742, %743 : vector<2x32xf32>
    %745 = vector.extract_strided_slice %732 {offsets = [0, 64], sizes = [2, 32], strides = [1, 1]} : vector<2x128xf32> to vector<2x32xf32>
    %746 = math.tanh %745 : vector<2x32xf32>
    %747 = vector.extract_strided_slice %732 {offsets = [0, 96], sizes = [2, 32], strides = [1, 1]} : vector<2x128xf32> to vector<2x32xf32>
    %748 = arith.negf %747 : vector<2x32xf32>
    %749 = math.exp %748 : vector<2x32xf32>
    %cst_223 = arith.constant 1.000000e+00 : f32
    %750 = vector.broadcast %cst_223 : f32 to vector<2x32xf32>
    %751 = arith.addf %750, %749 : vector<2x32xf32>
    %752 = arith.divf %750, %751 : vector<2x32xf32>
    %753 = arith.mulf %744, %686 : vector<2x32xf32>
    %754 = arith.mulf %738, %746 : vector<2x32xf32>
    %755 = arith.addf %753, %754 : vector<2x32xf32>
    %756 = math.tanh %755 : vector<2x32xf32>
    %757 = arith.mulf %752, %756 : vector<2x32xf32>
    %758 = arith.index_cast %c2_i32_217 : i32 to index
    %c0_224 = arith.constant 0 : index
    %c0_225 = arith.constant 0 : index
    %759 = vector.load %arg27[%758, %c0_224, %c0_225] : memref<8x2x64xf32, #tpu.memory_space<vmem>>, vector<1x2x32xf32>
    %760 = vector.shape_cast %759 : vector<1x2x32xf32> to vector<2x32xf32>
    %761 = vector.shape_cast %757 : vector<2x32xf32> to vector<1x2x32xf32>
    tpu.vector_store %arg27[%758, %c0_224, %c0_225], %761 {strides = array<i32>} : memref<8x2x64xf32, #tpu.memory_space<vmem>>, vector<1x2x32xf32>,
    %c7_i32_226 = arith.constant 7 : i32
    %762 = arith.subi %c7_i32_226, %c2_i32_217 : i32
    %763 = arith.index_cast %762 : i32 to index
    %c0_227 = arith.constant 0 : index
    %c0_228 = arith.constant 0 : index
    %764 = vector.load %arg29[%763, %c0_227, %c0_228] : memref<8x2x128xf32, #tpu.memory_space<vmem>>, vector<1x2x128xf32>
    %765 = vector.shape_cast %764 : vector<1x2x128xf32> to vector<2x128xf32>
    %cst_229 = arith.constant dense<0.000000e+00> : vector<2x128xf32>
    %766 = tpu.matmul %723, %588, %cst_229 {dimension_numbers = #tpu.dot_dimension_numbers<[1], [0], [0], [1], [0, 0, 1, 1], [], []>} : vector<2x32xf32>, vector<32x128xf32>, vector<2x128xf32> -> vector<2x128xf32>
    %767 = arith.addf %765, %766 : vector<2x128xf32>
    %768 = vector.extract_strided_slice %767 {offsets = [0, 0], sizes = [2, 32], strides = [1, 1]} : vector<2x128xf32> to vector<2x32xf32>
    %769 = arith.negf %768 : vector<2x32xf32>
    %770 = math.exp %769 : vector<2x32xf32>
    %cst_230 = arith.constant 1.000000e+00 : f32
    %771 = vector.broadcast %cst_230 : f32 to vector<2x32xf32>
    %772 = arith.addf %771, %770 : vector<2x32xf32>
    %773 = arith.divf %771, %772 : vector<2x32xf32>
    %774 = vector.extract_strided_slice %767 {offsets = [0, 32], sizes = [2, 32], strides = [1, 1]} : vector<2x128xf32> to vector<2x32xf32>
    %775 = arith.negf %774 : vector<2x32xf32>
    %776 = math.exp %775 : vector<2x32xf32>
    %cst_231 = arith.constant 1.000000e+00 : f32
    %777 = vector.broadcast %cst_231 : f32 to vector<2x32xf32>
    %778 = arith.addf %777, %776 : vector<2x32xf32>
    %779 = arith.divf %777, %778 : vector<2x32xf32>
    %780 = vector.extract_strided_slice %767 {offsets = [0, 64], sizes = [2, 32], strides = [1, 1]} : vector<2x128xf32> to vector<2x32xf32>
    %781 = math.tanh %780 : vector<2x32xf32>
    %782 = vector.extract_strided_slice %767 {offsets = [0, 96], sizes = [2, 32], strides = [1, 1]} : vector<2x128xf32> to vector<2x32xf32>
    %783 = arith.negf %782 : vector<2x32xf32>
    %784 = math.exp %783 : vector<2x32xf32>
    %cst_232 = arith.constant 1.000000e+00 : f32
    %785 = vector.broadcast %cst_232 : f32 to vector<2x32xf32>
    %786 = arith.addf %785, %784 : vector<2x32xf32>
    %787 = arith.divf %785, %786 : vector<2x32xf32>
    %788 = arith.mulf %779, %721 : vector<2x32xf32>
    %789 = arith.mulf %773, %781 : vector<2x32xf32>
    %790 = arith.addf %788, %789 : vector<2x32xf32>
    %791 = math.tanh %790 : vector<2x32xf32>
    %792 = arith.mulf %787, %791 : vector<2x32xf32>
    %793 = arith.index_cast %762 : i32 to index
    %c0_233 = arith.constant 0 : index
    %c32_234 = arith.constant 32 : index
    %794 = vector.load %arg27[%793, %c0_233, %c32_234] : memref<8x2x64xf32, #tpu.memory_space<vmem>>, vector<1x2x32xf32>
    %795 = vector.shape_cast %794 : vector<1x2x32xf32> to vector<2x32xf32>
    %796 = vector.shape_cast %792 : vector<2x32xf32> to vector<1x2x32xf32>
    tpu.vector_store %arg27[%793, %c0_233, %c32_234], %796 {strides = array<i32>} : memref<8x2x64xf32, #tpu.memory_space<vmem>>, vector<1x2x32xf32>,
    %c3_i32_235 = arith.constant 3 : i32
    %797 = arith.index_cast %c3_i32_235 : i32 to index
    %c0_236 = arith.constant 0 : index
    %c0_237 = arith.constant 0 : index
    %798 = vector.load %arg28[%797, %c0_236, %c0_237] : memref<8x2x128xf32, #tpu.memory_space<vmem>>, vector<1x2x128xf32>
    %799 = vector.shape_cast %798 : vector<1x2x128xf32> to vector<2x128xf32>
    %cst_238 = arith.constant dense<0.000000e+00> : vector<2x128xf32>
    %800 = tpu.matmul %757, %587, %cst_238 {dimension_numbers = #tpu.dot_dimension_numbers<[1], [0], [0], [1], [0, 0, 1, 1], [], []>} : vector<2x32xf32>, vector<32x128xf32>, vector<2x128xf32> -> vector<2x128xf32>
    %801 = arith.addf %799, %800 : vector<2x128xf32>
    %802 = vector.extract_strided_slice %801 {offsets = [0, 0], sizes = [2, 32], strides = [1, 1]} : vector<2x128xf32> to vector<2x32xf32>
    %803 = arith.negf %802 : vector<2x32xf32>
    %804 = math.exp %803 : vector<2x32xf32>
    %cst_239 = arith.constant 1.000000e+00 : f32
    %805 = vector.broadcast %cst_239 : f32 to vector<2x32xf32>
    %806 = arith.addf %805, %804 : vector<2x32xf32>
    %807 = arith.divf %805, %806 : vector<2x32xf32>
    %808 = vector.extract_strided_slice %801 {offsets = [0, 32], sizes = [2, 32], strides = [1, 1]} : vector<2x128xf32> to vector<2x32xf32>
    %809 = arith.negf %808 : vector<2x32xf32>
    %810 = math.exp %809 : vector<2x32xf32>
    %cst_240 = arith.constant 1.000000e+00 : f32
    %811 = vector.broadcast %cst_240 : f32 to vector<2x32xf32>
    %812 = arith.addf %811, %810 : vector<2x32xf32>
    %813 = arith.divf %811, %812 : vector<2x32xf32>
    %814 = vector.extract_strided_slice %801 {offsets = [0, 64], sizes = [2, 32], strides = [1, 1]} : vector<2x128xf32> to vector<2x32xf32>
    %815 = math.tanh %814 : vector<2x32xf32>
    %816 = vector.extract_strided_slice %801 {offsets = [0, 96], sizes = [2, 32], strides = [1, 1]} : vector<2x128xf32> to vector<2x32xf32>
    %817 = arith.negf %816 : vector<2x32xf32>
    %818 = math.exp %817 : vector<2x32xf32>
    %cst_241 = arith.constant 1.000000e+00 : f32
    %819 = vector.broadcast %cst_241 : f32 to vector<2x32xf32>
    %820 = arith.addf %819, %818 : vector<2x32xf32>
    %821 = arith.divf %819, %820 : vector<2x32xf32>
    %822 = arith.mulf %813, %755 : vector<2x32xf32>
    %823 = arith.mulf %807, %815 : vector<2x32xf32>
    %824 = arith.addf %822, %823 : vector<2x32xf32>
    %825 = math.tanh %824 : vector<2x32xf32>
    %826 = arith.mulf %821, %825 : vector<2x32xf32>
    %827 = arith.index_cast %c3_i32_235 : i32 to index
    %c0_242 = arith.constant 0 : index
    %c0_243 = arith.constant 0 : index
    %828 = vector.load %arg27[%827, %c0_242, %c0_243] : memref<8x2x64xf32, #tpu.memory_space<vmem>>, vector<1x2x32xf32>
    %829 = vector.shape_cast %828 : vector<1x2x32xf32> to vector<2x32xf32>
    %830 = vector.shape_cast %826 : vector<2x32xf32> to vector<1x2x32xf32>
    tpu.vector_store %arg27[%827, %c0_242, %c0_243], %830 {strides = array<i32>} : memref<8x2x64xf32, #tpu.memory_space<vmem>>, vector<1x2x32xf32>,
    %c7_i32_244 = arith.constant 7 : i32
    %831 = arith.subi %c7_i32_244, %c3_i32_235 : i32
    %832 = arith.index_cast %831 : i32 to index
    %c0_245 = arith.constant 0 : index
    %c0_246 = arith.constant 0 : index
    %833 = vector.load %arg29[%832, %c0_245, %c0_246] : memref<8x2x128xf32, #tpu.memory_space<vmem>>, vector<1x2x128xf32>
    %834 = vector.shape_cast %833 : vector<1x2x128xf32> to vector<2x128xf32>
    %cst_247 = arith.constant dense<0.000000e+00> : vector<2x128xf32>
    %835 = tpu.matmul %792, %588, %cst_247 {dimension_numbers = #tpu.dot_dimension_numbers<[1], [0], [0], [1], [0, 0, 1, 1], [], []>} : vector<2x32xf32>, vector<32x128xf32>, vector<2x128xf32> -> vector<2x128xf32>
    %836 = arith.addf %834, %835 : vector<2x128xf32>
    %837 = vector.extract_strided_slice %836 {offsets = [0, 0], sizes = [2, 32], strides = [1, 1]} : vector<2x128xf32> to vector<2x32xf32>
    %838 = arith.negf %837 : vector<2x32xf32>
    %839 = math.exp %838 : vector<2x32xf32>
    %cst_248 = arith.constant 1.000000e+00 : f32
    %840 = vector.broadcast %cst_248 : f32 to vector<2x32xf32>
    %841 = arith.addf %840, %839 : vector<2x32xf32>
    %842 = arith.divf %840, %841 : vector<2x32xf32>
    %843 = vector.extract_strided_slice %836 {offsets = [0, 32], sizes = [2, 32], strides = [1, 1]} : vector<2x128xf32> to vector<2x32xf32>
    %844 = arith.negf %843 : vector<2x32xf32>
    %845 = math.exp %844 : vector<2x32xf32>
    %cst_249 = arith.constant 1.000000e+00 : f32
    %846 = vector.broadcast %cst_249 : f32 to vector<2x32xf32>
    %847 = arith.addf %846, %845 : vector<2x32xf32>
    %848 = arith.divf %846, %847 : vector<2x32xf32>
    %849 = vector.extract_strided_slice %836 {offsets = [0, 64], sizes = [2, 32], strides = [1, 1]} : vector<2x128xf32> to vector<2x32xf32>
    %850 = math.tanh %849 : vector<2x32xf32>
    %851 = vector.extract_strided_slice %836 {offsets = [0, 96], sizes = [2, 32], strides = [1, 1]} : vector<2x128xf32> to vector<2x32xf32>
    %852 = arith.negf %851 : vector<2x32xf32>
    %853 = math.exp %852 : vector<2x32xf32>
    %cst_250 = arith.constant 1.000000e+00 : f32
    %854 = vector.broadcast %cst_250 : f32 to vector<2x32xf32>
    %855 = arith.addf %854, %853 : vector<2x32xf32>
    %856 = arith.divf %854, %855 : vector<2x32xf32>
    %857 = arith.mulf %848, %790 : vector<2x32xf32>
    %858 = arith.mulf %842, %850 : vector<2x32xf32>
    %859 = arith.addf %857, %858 : vector<2x32xf32>
    %860 = math.tanh %859 : vector<2x32xf32>
    %861 = arith.mulf %856, %860 : vector<2x32xf32>
    %862 = arith.index_cast %831 : i32 to index
    %c0_251 = arith.constant 0 : index
    %c32_252 = arith.constant 32 : index
    %863 = vector.load %arg27[%862, %c0_251, %c32_252] : memref<8x2x64xf32, #tpu.memory_space<vmem>>, vector<1x2x32xf32>
    %864 = vector.shape_cast %863 : vector<1x2x32xf32> to vector<2x32xf32>
    %865 = vector.shape_cast %861 : vector<2x32xf32> to vector<1x2x32xf32>
    tpu.vector_store %arg27[%862, %c0_251, %c32_252], %865 {strides = array<i32>} : memref<8x2x64xf32, #tpu.memory_space<vmem>>, vector<1x2x32xf32>,
    %c4_i32_253 = arith.constant 4 : i32
    %866 = arith.index_cast %c4_i32_253 : i32 to index
    %c0_254 = arith.constant 0 : index
    %c0_255 = arith.constant 0 : index
    %867 = vector.load %arg28[%866, %c0_254, %c0_255] : memref<8x2x128xf32, #tpu.memory_space<vmem>>, vector<1x2x128xf32>
    %868 = vector.shape_cast %867 : vector<1x2x128xf32> to vector<2x128xf32>
    %cst_256 = arith.constant dense<0.000000e+00> : vector<2x128xf32>
    %869 = tpu.matmul %826, %587, %cst_256 {dimension_numbers = #tpu.dot_dimension_numbers<[1], [0], [0], [1], [0, 0, 1, 1], [], []>} : vector<2x32xf32>, vector<32x128xf32>, vector<2x128xf32> -> vector<2x128xf32>
    %870 = arith.addf %868, %869 : vector<2x128xf32>
    %871 = vector.extract_strided_slice %870 {offsets = [0, 0], sizes = [2, 32], strides = [1, 1]} : vector<2x128xf32> to vector<2x32xf32>
    %872 = arith.negf %871 : vector<2x32xf32>
    %873 = math.exp %872 : vector<2x32xf32>
    %cst_257 = arith.constant 1.000000e+00 : f32
    %874 = vector.broadcast %cst_257 : f32 to vector<2x32xf32>
    %875 = arith.addf %874, %873 : vector<2x32xf32>
    %876 = arith.divf %874, %875 : vector<2x32xf32>
    %877 = vector.extract_strided_slice %870 {offsets = [0, 32], sizes = [2, 32], strides = [1, 1]} : vector<2x128xf32> to vector<2x32xf32>
    %878 = arith.negf %877 : vector<2x32xf32>
    %879 = math.exp %878 : vector<2x32xf32>
    %cst_258 = arith.constant 1.000000e+00 : f32
    %880 = vector.broadcast %cst_258 : f32 to vector<2x32xf32>
    %881 = arith.addf %880, %879 : vector<2x32xf32>
    %882 = arith.divf %880, %881 : vector<2x32xf32>
    %883 = vector.extract_strided_slice %870 {offsets = [0, 64], sizes = [2, 32], strides = [1, 1]} : vector<2x128xf32> to vector<2x32xf32>
    %884 = math.tanh %883 : vector<2x32xf32>
    %885 = vector.extract_strided_slice %870 {offsets = [0, 96], sizes = [2, 32], strides = [1, 1]} : vector<2x128xf32> to vector<2x32xf32>
    %886 = arith.negf %885 : vector<2x32xf32>
    %887 = math.exp %886 : vector<2x32xf32>
    %cst_259 = arith.constant 1.000000e+00 : f32
    %888 = vector.broadcast %cst_259 : f32 to vector<2x32xf32>
    %889 = arith.addf %888, %887 : vector<2x32xf32>
    %890 = arith.divf %888, %889 : vector<2x32xf32>
    %891 = arith.mulf %882, %824 : vector<2x32xf32>
    %892 = arith.mulf %876, %884 : vector<2x32xf32>
    %893 = arith.addf %891, %892 : vector<2x32xf32>
    %894 = math.tanh %893 : vector<2x32xf32>
    %895 = arith.mulf %890, %894 : vector<2x32xf32>
    %896 = arith.index_cast %c4_i32_253 : i32 to index
    %c0_260 = arith.constant 0 : index
    %c0_261 = arith.constant 0 : index
    %897 = vector.load %arg27[%896, %c0_260, %c0_261] : memref<8x2x64xf32, #tpu.memory_space<vmem>>, vector<1x2x32xf32>
    %898 = vector.shape_cast %897 : vector<1x2x32xf32> to vector<2x32xf32>
    %899 = vector.shape_cast %895 : vector<2x32xf32> to vector<1x2x32xf32>
    tpu.vector_store %arg27[%896, %c0_260, %c0_261], %899 {strides = array<i32>} : memref<8x2x64xf32, #tpu.memory_space<vmem>>, vector<1x2x32xf32>,
    %c7_i32_262 = arith.constant 7 : i32
    %900 = arith.subi %c7_i32_262, %c4_i32_253 : i32
    %901 = arith.index_cast %900 : i32 to index
    %c0_263 = arith.constant 0 : index
    %c0_264 = arith.constant 0 : index
    %902 = vector.load %arg29[%901, %c0_263, %c0_264] : memref<8x2x128xf32, #tpu.memory_space<vmem>>, vector<1x2x128xf32>
    %903 = vector.shape_cast %902 : vector<1x2x128xf32> to vector<2x128xf32>
    %cst_265 = arith.constant dense<0.000000e+00> : vector<2x128xf32>
    %904 = tpu.matmul %861, %588, %cst_265 {dimension_numbers = #tpu.dot_dimension_numbers<[1], [0], [0], [1], [0, 0, 1, 1], [], []>} : vector<2x32xf32>, vector<32x128xf32>, vector<2x128xf32> -> vector<2x128xf32>
    %905 = arith.addf %903, %904 : vector<2x128xf32>
    %906 = vector.extract_strided_slice %905 {offsets = [0, 0], sizes = [2, 32], strides = [1, 1]} : vector<2x128xf32> to vector<2x32xf32>
    %907 = arith.negf %906 : vector<2x32xf32>
    %908 = math.exp %907 : vector<2x32xf32>
    %cst_266 = arith.constant 1.000000e+00 : f32
    %909 = vector.broadcast %cst_266 : f32 to vector<2x32xf32>
    %910 = arith.addf %909, %908 : vector<2x32xf32>
    %911 = arith.divf %909, %910 : vector<2x32xf32>
    %912 = vector.extract_strided_slice %905 {offsets = [0, 32], sizes = [2, 32], strides = [1, 1]} : vector<2x128xf32> to vector<2x32xf32>
    %913 = arith.negf %912 : vector<2x32xf32>
    %914 = math.exp %913 : vector<2x32xf32>
    %cst_267 = arith.constant 1.000000e+00 : f32
    %915 = vector.broadcast %cst_267 : f32 to vector<2x32xf32>
    %916 = arith.addf %915, %914 : vector<2x32xf32>
    %917 = arith.divf %915, %916 : vector<2x32xf32>
    %918 = vector.extract_strided_slice %905 {offsets = [0, 64], sizes = [2, 32], strides = [1, 1]} : vector<2x128xf32> to vector<2x32xf32>
    %919 = math.tanh %918 : vector<2x32xf32>
    %920 = vector.extract_strided_slice %905 {offsets = [0, 96], sizes = [2, 32], strides = [1, 1]} : vector<2x128xf32> to vector<2x32xf32>
    %921 = arith.negf %920 : vector<2x32xf32>
    %922 = math.exp %921 : vector<2x32xf32>
    %cst_268 = arith.constant 1.000000e+00 : f32
    %923 = vector.broadcast %cst_268 : f32 to vector<2x32xf32>
    %924 = arith.addf %923, %922 : vector<2x32xf32>
    %925 = arith.divf %923, %924 : vector<2x32xf32>
    %926 = arith.mulf %917, %859 : vector<2x32xf32>
    %927 = arith.mulf %911, %919 : vector<2x32xf32>
    %928 = arith.addf %926, %927 : vector<2x32xf32>
    %929 = math.tanh %928 : vector<2x32xf32>
    %930 = arith.mulf %925, %929 : vector<2x32xf32>
    %931 = arith.index_cast %900 : i32 to index
    %c0_269 = arith.constant 0 : index
    %c32_270 = arith.constant 32 : index
    %932 = vector.load %arg27[%931, %c0_269, %c32_270] : memref<8x2x64xf32, #tpu.memory_space<vmem>>, vector<1x2x32xf32>
    %933 = vector.shape_cast %932 : vector<1x2x32xf32> to vector<2x32xf32>
    %934 = vector.shape_cast %930 : vector<2x32xf32> to vector<1x2x32xf32>
    tpu.vector_store %arg27[%931, %c0_269, %c32_270], %934 {strides = array<i32>} : memref<8x2x64xf32, #tpu.memory_space<vmem>>, vector<1x2x32xf32>,
    %c5_i32_271 = arith.constant 5 : i32
    %935 = arith.index_cast %c5_i32_271 : i32 to index
    %c0_272 = arith.constant 0 : index
    %c0_273 = arith.constant 0 : index
    %936 = vector.load %arg28[%935, %c0_272, %c0_273] : memref<8x2x128xf32, #tpu.memory_space<vmem>>, vector<1x2x128xf32>
    %937 = vector.shape_cast %936 : vector<1x2x128xf32> to vector<2x128xf32>
    %cst_274 = arith.constant dense<0.000000e+00> : vector<2x128xf32>
    %938 = tpu.matmul %895, %587, %cst_274 {dimension_numbers = #tpu.dot_dimension_numbers<[1], [0], [0], [1], [0, 0, 1, 1], [], []>} : vector<2x32xf32>, vector<32x128xf32>, vector<2x128xf32> -> vector<2x128xf32>
    %939 = arith.addf %937, %938 : vector<2x128xf32>
    %940 = vector.extract_strided_slice %939 {offsets = [0, 0], sizes = [2, 32], strides = [1, 1]} : vector<2x128xf32> to vector<2x32xf32>
    %941 = arith.negf %940 : vector<2x32xf32>
    %942 = math.exp %941 : vector<2x32xf32>
    %cst_275 = arith.constant 1.000000e+00 : f32
    %943 = vector.broadcast %cst_275 : f32 to vector<2x32xf32>
    %944 = arith.addf %943, %942 : vector<2x32xf32>
    %945 = arith.divf %943, %944 : vector<2x32xf32>
    %946 = vector.extract_strided_slice %939 {offsets = [0, 32], sizes = [2, 32], strides = [1, 1]} : vector<2x128xf32> to vector<2x32xf32>
    %947 = arith.negf %946 : vector<2x32xf32>
    %948 = math.exp %947 : vector<2x32xf32>
    %cst_276 = arith.constant 1.000000e+00 : f32
    %949 = vector.broadcast %cst_276 : f32 to vector<2x32xf32>
    %950 = arith.addf %949, %948 : vector<2x32xf32>
    %951 = arith.divf %949, %950 : vector<2x32xf32>
    %952 = vector.extract_strided_slice %939 {offsets = [0, 64], sizes = [2, 32], strides = [1, 1]} : vector<2x128xf32> to vector<2x32xf32>
    %953 = math.tanh %952 : vector<2x32xf32>
    %954 = vector.extract_strided_slice %939 {offsets = [0, 96], sizes = [2, 32], strides = [1, 1]} : vector<2x128xf32> to vector<2x32xf32>
    %955 = arith.negf %954 : vector<2x32xf32>
    %956 = math.exp %955 : vector<2x32xf32>
    %cst_277 = arith.constant 1.000000e+00 : f32
    %957 = vector.broadcast %cst_277 : f32 to vector<2x32xf32>
    %958 = arith.addf %957, %956 : vector<2x32xf32>
    %959 = arith.divf %957, %958 : vector<2x32xf32>
    %960 = arith.mulf %951, %893 : vector<2x32xf32>
    %961 = arith.mulf %945, %953 : vector<2x32xf32>
    %962 = arith.addf %960, %961 : vector<2x32xf32>
    %963 = math.tanh %962 : vector<2x32xf32>
    %964 = arith.mulf %959, %963 : vector<2x32xf32>
    %965 = arith.index_cast %c5_i32_271 : i32 to index
    %c0_278 = arith.constant 0 : index
    %c0_279 = arith.constant 0 : index
    %966 = vector.load %arg27[%965, %c0_278, %c0_279] : memref<8x2x64xf32, #tpu.memory_space<vmem>>, vector<1x2x32xf32>
    %967 = vector.shape_cast %966 : vector<1x2x32xf32> to vector<2x32xf32>
    %968 = vector.shape_cast %964 : vector<2x32xf32> to vector<1x2x32xf32>
    tpu.vector_store %arg27[%965, %c0_278, %c0_279], %968 {strides = array<i32>} : memref<8x2x64xf32, #tpu.memory_space<vmem>>, vector<1x2x32xf32>,
    %c7_i32_280 = arith.constant 7 : i32
    %969 = arith.subi %c7_i32_280, %c5_i32_271 : i32
    %970 = arith.index_cast %969 : i32 to index
    %c0_281 = arith.constant 0 : index
    %c0_282 = arith.constant 0 : index
    %971 = vector.load %arg29[%970, %c0_281, %c0_282] : memref<8x2x128xf32, #tpu.memory_space<vmem>>, vector<1x2x128xf32>
    %972 = vector.shape_cast %971 : vector<1x2x128xf32> to vector<2x128xf32>
    %cst_283 = arith.constant dense<0.000000e+00> : vector<2x128xf32>
    %973 = tpu.matmul %930, %588, %cst_283 {dimension_numbers = #tpu.dot_dimension_numbers<[1], [0], [0], [1], [0, 0, 1, 1], [], []>} : vector<2x32xf32>, vector<32x128xf32>, vector<2x128xf32> -> vector<2x128xf32>
    %974 = arith.addf %972, %973 : vector<2x128xf32>
    %975 = vector.extract_strided_slice %974 {offsets = [0, 0], sizes = [2, 32], strides = [1, 1]} : vector<2x128xf32> to vector<2x32xf32>
    %976 = arith.negf %975 : vector<2x32xf32>
    %977 = math.exp %976 : vector<2x32xf32>
    %cst_284 = arith.constant 1.000000e+00 : f32
    %978 = vector.broadcast %cst_284 : f32 to vector<2x32xf32>
    %979 = arith.addf %978, %977 : vector<2x32xf32>
    %980 = arith.divf %978, %979 : vector<2x32xf32>
    %981 = vector.extract_strided_slice %974 {offsets = [0, 32], sizes = [2, 32], strides = [1, 1]} : vector<2x128xf32> to vector<2x32xf32>
    %982 = arith.negf %981 : vector<2x32xf32>
    %983 = math.exp %982 : vector<2x32xf32>
    %cst_285 = arith.constant 1.000000e+00 : f32
    %984 = vector.broadcast %cst_285 : f32 to vector<2x32xf32>
    %985 = arith.addf %984, %983 : vector<2x32xf32>
    %986 = arith.divf %984, %985 : vector<2x32xf32>
    %987 = vector.extract_strided_slice %974 {offsets = [0, 64], sizes = [2, 32], strides = [1, 1]} : vector<2x128xf32> to vector<2x32xf32>
    %988 = math.tanh %987 : vector<2x32xf32>
    %989 = vector.extract_strided_slice %974 {offsets = [0, 96], sizes = [2, 32], strides = [1, 1]} : vector<2x128xf32> to vector<2x32xf32>
    %990 = arith.negf %989 : vector<2x32xf32>
    %991 = math.exp %990 : vector<2x32xf32>
    %cst_286 = arith.constant 1.000000e+00 : f32
    %992 = vector.broadcast %cst_286 : f32 to vector<2x32xf32>
    %993 = arith.addf %992, %991 : vector<2x32xf32>
    %994 = arith.divf %992, %993 : vector<2x32xf32>
    %995 = arith.mulf %986, %928 : vector<2x32xf32>
    %996 = arith.mulf %980, %988 : vector<2x32xf32>
    %997 = arith.addf %995, %996 : vector<2x32xf32>
    %998 = math.tanh %997 : vector<2x32xf32>
    %999 = arith.mulf %994, %998 : vector<2x32xf32>
    %1000 = arith.index_cast %969 : i32 to index
    %c0_287 = arith.constant 0 : index
    %c32_288 = arith.constant 32 : index
    %1001 = vector.load %arg27[%1000, %c0_287, %c32_288] : memref<8x2x64xf32, #tpu.memory_space<vmem>>, vector<1x2x32xf32>
    %1002 = vector.shape_cast %1001 : vector<1x2x32xf32> to vector<2x32xf32>
    %1003 = vector.shape_cast %999 : vector<2x32xf32> to vector<1x2x32xf32>
    tpu.vector_store %arg27[%1000, %c0_287, %c32_288], %1003 {strides = array<i32>} : memref<8x2x64xf32, #tpu.memory_space<vmem>>, vector<1x2x32xf32>,
    %c6_i32_289 = arith.constant 6 : i32
    %1004 = arith.index_cast %c6_i32_289 : i32 to index
    %c0_290 = arith.constant 0 : index
    %c0_291 = arith.constant 0 : index
    %1005 = vector.load %arg28[%1004, %c0_290, %c0_291] : memref<8x2x128xf32, #tpu.memory_space<vmem>>, vector<1x2x128xf32>
    %1006 = vector.shape_cast %1005 : vector<1x2x128xf32> to vector<2x128xf32>
    %cst_292 = arith.constant dense<0.000000e+00> : vector<2x128xf32>
    %1007 = tpu.matmul %964, %587, %cst_292 {dimension_numbers = #tpu.dot_dimension_numbers<[1], [0], [0], [1], [0, 0, 1, 1], [], []>} : vector<2x32xf32>, vector<32x128xf32>, vector<2x128xf32> -> vector<2x128xf32>
    %1008 = arith.addf %1006, %1007 : vector<2x128xf32>
    %1009 = vector.extract_strided_slice %1008 {offsets = [0, 0], sizes = [2, 32], strides = [1, 1]} : vector<2x128xf32> to vector<2x32xf32>
    %1010 = arith.negf %1009 : vector<2x32xf32>
    %1011 = math.exp %1010 : vector<2x32xf32>
    %cst_293 = arith.constant 1.000000e+00 : f32
    %1012 = vector.broadcast %cst_293 : f32 to vector<2x32xf32>
    %1013 = arith.addf %1012, %1011 : vector<2x32xf32>
    %1014 = arith.divf %1012, %1013 : vector<2x32xf32>
    %1015 = vector.extract_strided_slice %1008 {offsets = [0, 32], sizes = [2, 32], strides = [1, 1]} : vector<2x128xf32> to vector<2x32xf32>
    %1016 = arith.negf %1015 : vector<2x32xf32>
    %1017 = math.exp %1016 : vector<2x32xf32>
    %cst_294 = arith.constant 1.000000e+00 : f32
    %1018 = vector.broadcast %cst_294 : f32 to vector<2x32xf32>
    %1019 = arith.addf %1018, %1017 : vector<2x32xf32>
    %1020 = arith.divf %1018, %1019 : vector<2x32xf32>
    %1021 = vector.extract_strided_slice %1008 {offsets = [0, 64], sizes = [2, 32], strides = [1, 1]} : vector<2x128xf32> to vector<2x32xf32>
    %1022 = math.tanh %1021 : vector<2x32xf32>
    %1023 = vector.extract_strided_slice %1008 {offsets = [0, 96], sizes = [2, 32], strides = [1, 1]} : vector<2x128xf32> to vector<2x32xf32>
    %1024 = arith.negf %1023 : vector<2x32xf32>
    %1025 = math.exp %1024 : vector<2x32xf32>
    %cst_295 = arith.constant 1.000000e+00 : f32
    %1026 = vector.broadcast %cst_295 : f32 to vector<2x32xf32>
    %1027 = arith.addf %1026, %1025 : vector<2x32xf32>
    %1028 = arith.divf %1026, %1027 : vector<2x32xf32>
    %1029 = arith.mulf %1020, %962 : vector<2x32xf32>
    %1030 = arith.mulf %1014, %1022 : vector<2x32xf32>
    %1031 = arith.addf %1029, %1030 : vector<2x32xf32>
    %1032 = math.tanh %1031 : vector<2x32xf32>
    %1033 = arith.mulf %1028, %1032 : vector<2x32xf32>
    %1034 = arith.index_cast %c6_i32_289 : i32 to index
    %c0_296 = arith.constant 0 : index
    %c0_297 = arith.constant 0 : index
    %1035 = vector.load %arg27[%1034, %c0_296, %c0_297] : memref<8x2x64xf32, #tpu.memory_space<vmem>>, vector<1x2x32xf32>
    %1036 = vector.shape_cast %1035 : vector<1x2x32xf32> to vector<2x32xf32>
    %1037 = vector.shape_cast %1033 : vector<2x32xf32> to vector<1x2x32xf32>
    tpu.vector_store %arg27[%1034, %c0_296, %c0_297], %1037 {strides = array<i32>} : memref<8x2x64xf32, #tpu.memory_space<vmem>>, vector<1x2x32xf32>,
    %c7_i32_298 = arith.constant 7 : i32
    %1038 = arith.subi %c7_i32_298, %c6_i32_289 : i32
    %1039 = arith.index_cast %1038 : i32 to index
    %c0_299 = arith.constant 0 : index
    %c0_300 = arith.constant 0 : index
    %1040 = vector.load %arg29[%1039, %c0_299, %c0_300] : memref<8x2x128xf32, #tpu.memory_space<vmem>>, vector<1x2x128xf32>
    %1041 = vector.shape_cast %1040 : vector<1x2x128xf32> to vector<2x128xf32>
    %cst_301 = arith.constant dense<0.000000e+00> : vector<2x128xf32>
    %1042 = tpu.matmul %999, %588, %cst_301 {dimension_numbers = #tpu.dot_dimension_numbers<[1], [0], [0], [1], [0, 0, 1, 1], [], []>} : vector<2x32xf32>, vector<32x128xf32>, vector<2x128xf32> -> vector<2x128xf32>
    %1043 = arith.addf %1041, %1042 : vector<2x128xf32>
    %1044 = vector.extract_strided_slice %1043 {offsets = [0, 0], sizes = [2, 32], strides = [1, 1]} : vector<2x128xf32> to vector<2x32xf32>
    %1045 = arith.negf %1044 : vector<2x32xf32>
    %1046 = math.exp %1045 : vector<2x32xf32>
    %cst_302 = arith.constant 1.000000e+00 : f32
    %1047 = vector.broadcast %cst_302 : f32 to vector<2x32xf32>
    %1048 = arith.addf %1047, %1046 : vector<2x32xf32>
    %1049 = arith.divf %1047, %1048 : vector<2x32xf32>
    %1050 = vector.extract_strided_slice %1043 {offsets = [0, 32], sizes = [2, 32], strides = [1, 1]} : vector<2x128xf32> to vector<2x32xf32>
    %1051 = arith.negf %1050 : vector<2x32xf32>
    %1052 = math.exp %1051 : vector<2x32xf32>
    %cst_303 = arith.constant 1.000000e+00 : f32
    %1053 = vector.broadcast %cst_303 : f32 to vector<2x32xf32>
    %1054 = arith.addf %1053, %1052 : vector<2x32xf32>
    %1055 = arith.divf %1053, %1054 : vector<2x32xf32>
    %1056 = vector.extract_strided_slice %1043 {offsets = [0, 64], sizes = [2, 32], strides = [1, 1]} : vector<2x128xf32> to vector<2x32xf32>
    %1057 = math.tanh %1056 : vector<2x32xf32>
    %1058 = vector.extract_strided_slice %1043 {offsets = [0, 96], sizes = [2, 32], strides = [1, 1]} : vector<2x128xf32> to vector<2x32xf32>
    %1059 = arith.negf %1058 : vector<2x32xf32>
    %1060 = math.exp %1059 : vector<2x32xf32>
    %cst_304 = arith.constant 1.000000e+00 : f32
    %1061 = vector.broadcast %cst_304 : f32 to vector<2x32xf32>
    %1062 = arith.addf %1061, %1060 : vector<2x32xf32>
    %1063 = arith.divf %1061, %1062 : vector<2x32xf32>
    %1064 = arith.mulf %1055, %997 : vector<2x32xf32>
    %1065 = arith.mulf %1049, %1057 : vector<2x32xf32>
    %1066 = arith.addf %1064, %1065 : vector<2x32xf32>
    %1067 = math.tanh %1066 : vector<2x32xf32>
    %1068 = arith.mulf %1063, %1067 : vector<2x32xf32>
    %1069 = arith.index_cast %1038 : i32 to index
    %c0_305 = arith.constant 0 : index
    %c32_306 = arith.constant 32 : index
    %1070 = vector.load %arg27[%1069, %c0_305, %c32_306] : memref<8x2x64xf32, #tpu.memory_space<vmem>>, vector<1x2x32xf32>
    %1071 = vector.shape_cast %1070 : vector<1x2x32xf32> to vector<2x32xf32>
    %1072 = vector.shape_cast %1068 : vector<2x32xf32> to vector<1x2x32xf32>
    tpu.vector_store %arg27[%1069, %c0_305, %c32_306], %1072 {strides = array<i32>} : memref<8x2x64xf32, #tpu.memory_space<vmem>>, vector<1x2x32xf32>,
    %c7_i32_307 = arith.constant 7 : i32
    %1073 = arith.index_cast %c7_i32_307 : i32 to index
    %c0_308 = arith.constant 0 : index
    %c0_309 = arith.constant 0 : index
    %1074 = vector.load %arg28[%1073, %c0_308, %c0_309] : memref<8x2x128xf32, #tpu.memory_space<vmem>>, vector<1x2x128xf32>
    %1075 = vector.shape_cast %1074 : vector<1x2x128xf32> to vector<2x128xf32>
    %cst_310 = arith.constant dense<0.000000e+00> : vector<2x128xf32>
    %1076 = tpu.matmul %1033, %587, %cst_310 {dimension_numbers = #tpu.dot_dimension_numbers<[1], [0], [0], [1], [0, 0, 1, 1], [], []>} : vector<2x32xf32>, vector<32x128xf32>, vector<2x128xf32> -> vector<2x128xf32>
    %1077 = arith.addf %1075, %1076 : vector<2x128xf32>
    %1078 = vector.extract_strided_slice %1077 {offsets = [0, 0], sizes = [2, 32], strides = [1, 1]} : vector<2x128xf32> to vector<2x32xf32>
    %1079 = arith.negf %1078 : vector<2x32xf32>
    %1080 = math.exp %1079 : vector<2x32xf32>
    %cst_311 = arith.constant 1.000000e+00 : f32
    %1081 = vector.broadcast %cst_311 : f32 to vector<2x32xf32>
    %1082 = arith.addf %1081, %1080 : vector<2x32xf32>
    %1083 = arith.divf %1081, %1082 : vector<2x32xf32>
    %1084 = vector.extract_strided_slice %1077 {offsets = [0, 32], sizes = [2, 32], strides = [1, 1]} : vector<2x128xf32> to vector<2x32xf32>
    %1085 = arith.negf %1084 : vector<2x32xf32>
    %1086 = math.exp %1085 : vector<2x32xf32>
    %cst_312 = arith.constant 1.000000e+00 : f32
    %1087 = vector.broadcast %cst_312 : f32 to vector<2x32xf32>
    %1088 = arith.addf %1087, %1086 : vector<2x32xf32>
    %1089 = arith.divf %1087, %1088 : vector<2x32xf32>
    %1090 = vector.extract_strided_slice %1077 {offsets = [0, 64], sizes = [2, 32], strides = [1, 1]} : vector<2x128xf32> to vector<2x32xf32>
    %1091 = math.tanh %1090 : vector<2x32xf32>
    %1092 = vector.extract_strided_slice %1077 {offsets = [0, 96], sizes = [2, 32], strides = [1, 1]} : vector<2x128xf32> to vector<2x32xf32>
    %1093 = arith.negf %1092 : vector<2x32xf32>
    %1094 = math.exp %1093 : vector<2x32xf32>
    %cst_313 = arith.constant 1.000000e+00 : f32
    %1095 = vector.broadcast %cst_313 : f32 to vector<2x32xf32>
    %1096 = arith.addf %1095, %1094 : vector<2x32xf32>
    %1097 = arith.divf %1095, %1096 : vector<2x32xf32>
    %1098 = arith.mulf %1089, %1031 : vector<2x32xf32>
    %1099 = arith.mulf %1083, %1091 : vector<2x32xf32>
    %1100 = arith.addf %1098, %1099 : vector<2x32xf32>
    %1101 = math.tanh %1100 : vector<2x32xf32>
    %1102 = arith.mulf %1097, %1101 : vector<2x32xf32>
    %1103 = arith.index_cast %c7_i32_307 : i32 to index
    %c0_314 = arith.constant 0 : index
    %c0_315 = arith.constant 0 : index
    %1104 = vector.load %arg27[%1103, %c0_314, %c0_315] : memref<8x2x64xf32, #tpu.memory_space<vmem>>, vector<1x2x32xf32>
    %1105 = vector.shape_cast %1104 : vector<1x2x32xf32> to vector<2x32xf32>
    %1106 = vector.shape_cast %1102 : vector<2x32xf32> to vector<1x2x32xf32>
    tpu.vector_store %arg27[%1103, %c0_314, %c0_315], %1106 {strides = array<i32>} : memref<8x2x64xf32, #tpu.memory_space<vmem>>, vector<1x2x32xf32>,
    %c7_i32_316 = arith.constant 7 : i32
    %1107 = arith.subi %c7_i32_316, %c7_i32_307 : i32
    %1108 = arith.index_cast %1107 : i32 to index
    %c0_317 = arith.constant 0 : index
    %c0_318 = arith.constant 0 : index
    %1109 = vector.load %arg29[%1108, %c0_317, %c0_318] : memref<8x2x128xf32, #tpu.memory_space<vmem>>, vector<1x2x128xf32>
    %1110 = vector.shape_cast %1109 : vector<1x2x128xf32> to vector<2x128xf32>
    %cst_319 = arith.constant dense<0.000000e+00> : vector<2x128xf32>
    %1111 = tpu.matmul %1068, %588, %cst_319 {dimension_numbers = #tpu.dot_dimension_numbers<[1], [0], [0], [1], [0, 0, 1, 1], [], []>} : vector<2x32xf32>, vector<32x128xf32>, vector<2x128xf32> -> vector<2x128xf32>
    %1112 = arith.addf %1110, %1111 : vector<2x128xf32>
    %1113 = vector.extract_strided_slice %1112 {offsets = [0, 0], sizes = [2, 32], strides = [1, 1]} : vector<2x128xf32> to vector<2x32xf32>
    %1114 = arith.negf %1113 : vector<2x32xf32>
    %1115 = math.exp %1114 : vector<2x32xf32>
    %cst_320 = arith.constant 1.000000e+00 : f32
    %1116 = vector.broadcast %cst_320 : f32 to vector<2x32xf32>
    %1117 = arith.addf %1116, %1115 : vector<2x32xf32>
    %1118 = arith.divf %1116, %1117 : vector<2x32xf32>
    %1119 = vector.extract_strided_slice %1112 {offsets = [0, 32], sizes = [2, 32], strides = [1, 1]} : vector<2x128xf32> to vector<2x32xf32>
    %1120 = arith.negf %1119 : vector<2x32xf32>
    %1121 = math.exp %1120 : vector<2x32xf32>
    %cst_321 = arith.constant 1.000000e+00 : f32
    %1122 = vector.broadcast %cst_321 : f32 to vector<2x32xf32>
    %1123 = arith.addf %1122, %1121 : vector<2x32xf32>
    %1124 = arith.divf %1122, %1123 : vector<2x32xf32>
    %1125 = vector.extract_strided_slice %1112 {offsets = [0, 64], sizes = [2, 32], strides = [1, 1]} : vector<2x128xf32> to vector<2x32xf32>
    %1126 = math.tanh %1125 : vector<2x32xf32>
    %1127 = vector.extract_strided_slice %1112 {offsets = [0, 96], sizes = [2, 32], strides = [1, 1]} : vector<2x128xf32> to vector<2x32xf32>
    %1128 = arith.negf %1127 : vector<2x32xf32>
    %1129 = math.exp %1128 : vector<2x32xf32>
    %cst_322 = arith.constant 1.000000e+00 : f32
    %1130 = vector.broadcast %cst_322 : f32 to vector<2x32xf32>
    %1131 = arith.addf %1130, %1129 : vector<2x32xf32>
    %1132 = arith.divf %1130, %1131 : vector<2x32xf32>
    %1133 = arith.mulf %1124, %1066 : vector<2x32xf32>
    %1134 = arith.mulf %1118, %1126 : vector<2x32xf32>
    %1135 = arith.addf %1133, %1134 : vector<2x32xf32>
    %1136 = math.tanh %1135 : vector<2x32xf32>
    %1137 = arith.mulf %1132, %1136 : vector<2x32xf32>
    %1138 = arith.index_cast %1107 : i32 to index
    %c0_323 = arith.constant 0 : index
    %c32_324 = arith.constant 32 : index
    %1139 = vector.load %arg27[%1138, %c0_323, %c32_324] : memref<8x2x64xf32, #tpu.memory_space<vmem>>, vector<1x2x32xf32>
    %1140 = vector.shape_cast %1139 : vector<1x2x32xf32> to vector<2x32xf32>
    %1141 = vector.shape_cast %1137 : vector<2x32xf32> to vector<1x2x32xf32>
    tpu.vector_store %arg27[%1138, %c0_323, %c32_324], %1141 {strides = array<i32>} : memref<8x2x64xf32, #tpu.memory_space<vmem>>, vector<1x2x32xf32>,
    %c8_i32_325 = arith.constant 8 : i32
    %c0_326 = arith.constant 0 : index
    %c0_327 = arith.constant 0 : index
    %c0_328 = arith.constant 0 : index
    %1142 = vector.load %arg27[%c0_326, %c0_327, %c0_328] : memref<8x2x64xf32, #tpu.memory_space<vmem>>, vector<8x2x64xf32>
    %1143 = vector.shape_cast %1142 : vector<8x2x64xf32> to vector<16x64xf32>
    %c0_329 = arith.constant 0 : index
    %c0_330 = arith.constant 0 : index
    %1144 = vector.load %arg13[%c0_329, %c0_330] : memref<64x64xf32, #tpu.memory_space<vmem>>, vector<64x64xf32>
    %cst_331 = arith.constant dense<0.000000e+00> : vector<16x64xf32>
    %1145 = tpu.matmul %1143, %1144, %cst_331 {dimension_numbers = #tpu.dot_dimension_numbers<[1], [0], [0], [1], [0, 0, 1, 1], [], []>} : vector<16x64xf32>, vector<64x64xf32>, vector<16x64xf32> -> vector<16x64xf32>
    %c0_332 = arith.constant 0 : index
    %c0_333 = arith.constant 0 : index
    %1146 = vector.load %arg15[%c0_332, %c0_333] : memref<1x64xf32, #tpu.memory_space<vmem>>, vector<1x64xf32>
    %1147 = vector.broadcast %1146 : vector<1x64xf32> to vector<16x64xf32>
    %1148 = arith.addf %1145, %1147 : vector<16x64xf32>
    %c0_334 = arith.constant 0 : index
    %c0_335 = arith.constant 0 : index
    %1149 = vector.load %arg16[%c0_334, %c0_335] : memref<64x64xf32, #tpu.memory_space<vmem>>, vector<64x64xf32>
    %cst_336 = arith.constant dense<0.000000e+00> : vector<16x64xf32>
    %1150 = tpu.matmul %1143, %1149, %cst_336 {dimension_numbers = #tpu.dot_dimension_numbers<[1], [0], [0], [1], [0, 0, 1, 1], [], []>} : vector<16x64xf32>, vector<64x64xf32>, vector<16x64xf32> -> vector<16x64xf32>
    %c0_337 = arith.constant 0 : index
    %c0_338 = arith.constant 0 : index
    %1151 = vector.load %arg18[%c0_337, %c0_338] : memref<1x64xf32, #tpu.memory_space<vmem>>, vector<1x64xf32>
    %1152 = vector.broadcast %1151 : vector<1x64xf32> to vector<16x64xf32>
    %1153 = arith.addf %1150, %1152 : vector<16x64xf32>
    %1154 = vector.shape_cast %1148 : vector<16x64xf32> to vector<8x2x64xf32>
    %c0_339 = arith.constant 0 : index
    %c0_340 = arith.constant 0 : index
    %c0_341 = arith.constant 0 : index
    %1155 = vector.load %arg28[%c0_339, %c0_340, %c0_341] : memref<8x2x128xf32, #tpu.memory_space<vmem>>, vector<8x2x64xf32>
    tpu.vector_store %arg28[%c0_339, %c0_340, %c0_341], %1154 {strides = array<i32>} : memref<8x2x128xf32, #tpu.memory_space<vmem>>, vector<8x2x64xf32>,
    %1156 = vector.shape_cast %1153 : vector<16x64xf32> to vector<8x2x64xf32>
    %c0_342 = arith.constant 0 : index
    %c0_343 = arith.constant 0 : index
    %c0_344 = arith.constant 0 : index
    %1157 = vector.load %arg29[%c0_342, %c0_343, %c0_344] : memref<8x2x128xf32, #tpu.memory_space<vmem>>, vector<8x2x64xf32>
    tpu.vector_store %arg29[%c0_342, %c0_343, %c0_344], %1156 {strides = array<i32>} : memref<8x2x128xf32, #tpu.memory_space<vmem>>, vector<8x2x64xf32>,
    %c0_345 = arith.constant 0 : index
    %c0_346 = arith.constant 0 : index
    %1158 = vector.load %arg14[%c0_345, %c0_346] : memref<16x64xf32, #tpu.memory_space<vmem>>, vector<16x64xf32>
    %c0_347 = arith.constant 0 : index
    %c0_348 = arith.constant 0 : index
    %1159 = vector.load %arg17[%c0_347, %c0_348] : memref<16x64xf32, #tpu.memory_space<vmem>>, vector<16x64xf32>
    %cst_349 = arith.constant 0.000000e+00 : f32
    %1160 = vector.broadcast %cst_349 : f32 to vector<2x16xf32>
    %c0_i32_350 = arith.constant 0 : i32
    %1161 = arith.index_cast %c0_i32_350 : i32 to index
    %c0_351 = arith.constant 0 : index
    %c0_352 = arith.constant 0 : index
    %1162 = vector.load %arg28[%1161, %c0_351, %c0_352] : memref<8x2x128xf32, #tpu.memory_space<vmem>>, vector<1x2x64xf32>
    %1163 = vector.shape_cast %1162 : vector<1x2x64xf32> to vector<2x64xf32>
    %cst_353 = arith.constant dense<0.000000e+00> : vector<2x64xf32>
    %1164 = tpu.matmul %1160, %1158, %cst_353 {dimension_numbers = #tpu.dot_dimension_numbers<[1], [0], [0], [1], [0, 0, 1, 1], [], []>} : vector<2x16xf32>, vector<16x64xf32>, vector<2x64xf32> -> vector<2x64xf32>
    %1165 = arith.addf %1163, %1164 : vector<2x64xf32>
    %1166 = vector.extract_strided_slice %1165 {offsets = [0, 0], sizes = [2, 16], strides = [1, 1]} : vector<2x64xf32> to vector<2x16xf32>
    %1167 = arith.negf %1166 : vector<2x16xf32>
    %1168 = math.exp %1167 : vector<2x16xf32>
    %cst_354 = arith.constant 1.000000e+00 : f32
    %1169 = vector.broadcast %cst_354 : f32 to vector<2x16xf32>
    %1170 = arith.addf %1169, %1168 : vector<2x16xf32>
    %1171 = arith.divf %1169, %1170 : vector<2x16xf32>
    %1172 = vector.extract_strided_slice %1165 {offsets = [0, 16], sizes = [2, 16], strides = [1, 1]} : vector<2x64xf32> to vector<2x16xf32>
    %1173 = arith.negf %1172 : vector<2x16xf32>
    %1174 = math.exp %1173 : vector<2x16xf32>
    %cst_355 = arith.constant 1.000000e+00 : f32
    %1175 = vector.broadcast %cst_355 : f32 to vector<2x16xf32>
    %1176 = arith.addf %1175, %1174 : vector<2x16xf32>
    %1177 = arith.divf %1175, %1176 : vector<2x16xf32>
    %1178 = vector.extract_strided_slice %1165 {offsets = [0, 32], sizes = [2, 16], strides = [1, 1]} : vector<2x64xf32> to vector<2x16xf32>
    %1179 = math.tanh %1178 : vector<2x16xf32>
    %1180 = vector.extract_strided_slice %1165 {offsets = [0, 48], sizes = [2, 16], strides = [1, 1]} : vector<2x64xf32> to vector<2x16xf32>
    %1181 = arith.negf %1180 : vector<2x16xf32>
    %1182 = math.exp %1181 : vector<2x16xf32>
    %cst_356 = arith.constant 1.000000e+00 : f32
    %1183 = vector.broadcast %cst_356 : f32 to vector<2x16xf32>
    %1184 = arith.addf %1183, %1182 : vector<2x16xf32>
    %1185 = arith.divf %1183, %1184 : vector<2x16xf32>
    %1186 = arith.mulf %1177, %1160 : vector<2x16xf32>
    %1187 = arith.mulf %1171, %1179 : vector<2x16xf32>
    %1188 = arith.addf %1186, %1187 : vector<2x16xf32>
    %1189 = math.tanh %1188 : vector<2x16xf32>
    %1190 = arith.mulf %1185, %1189 : vector<2x16xf32>
    %1191 = arith.index_cast %c0_i32_350 : i32 to index
    %c0_357 = arith.constant 0 : index
    %c0_358 = arith.constant 0 : index
    %1192 = vector.load %arg26[%1191, %c0_357, %c0_358] : memref<8x2x64xf32, #tpu.memory_space<vmem>>, vector<1x2x16xf32>
    %1193 = vector.shape_cast %1192 : vector<1x2x16xf32> to vector<2x16xf32>
    %1194 = vector.shape_cast %1190 : vector<2x16xf32> to vector<1x2x16xf32>
    tpu.vector_store %arg26[%1191, %c0_357, %c0_358], %1194 {strides = array<i32>} : memref<8x2x64xf32, #tpu.memory_space<vmem>>, vector<1x2x16xf32>,
    %c7_i32_359 = arith.constant 7 : i32
    %1195 = arith.subi %c7_i32_359, %c0_i32_350 : i32
    %1196 = arith.index_cast %1195 : i32 to index
    %c0_360 = arith.constant 0 : index
    %c0_361 = arith.constant 0 : index
    %1197 = vector.load %arg29[%1196, %c0_360, %c0_361] : memref<8x2x128xf32, #tpu.memory_space<vmem>>, vector<1x2x64xf32>
    %1198 = vector.shape_cast %1197 : vector<1x2x64xf32> to vector<2x64xf32>
    %cst_362 = arith.constant dense<0.000000e+00> : vector<2x64xf32>
    %1199 = tpu.matmul %1160, %1159, %cst_362 {dimension_numbers = #tpu.dot_dimension_numbers<[1], [0], [0], [1], [0, 0, 1, 1], [], []>} : vector<2x16xf32>, vector<16x64xf32>, vector<2x64xf32> -> vector<2x64xf32>
    %1200 = arith.addf %1198, %1199 : vector<2x64xf32>
    %1201 = vector.extract_strided_slice %1200 {offsets = [0, 0], sizes = [2, 16], strides = [1, 1]} : vector<2x64xf32> to vector<2x16xf32>
    %1202 = arith.negf %1201 : vector<2x16xf32>
    %1203 = math.exp %1202 : vector<2x16xf32>
    %cst_363 = arith.constant 1.000000e+00 : f32
    %1204 = vector.broadcast %cst_363 : f32 to vector<2x16xf32>
    %1205 = arith.addf %1204, %1203 : vector<2x16xf32>
    %1206 = arith.divf %1204, %1205 : vector<2x16xf32>
    %1207 = vector.extract_strided_slice %1200 {offsets = [0, 16], sizes = [2, 16], strides = [1, 1]} : vector<2x64xf32> to vector<2x16xf32>
    %1208 = arith.negf %1207 : vector<2x16xf32>
    %1209 = math.exp %1208 : vector<2x16xf32>
    %cst_364 = arith.constant 1.000000e+00 : f32
    %1210 = vector.broadcast %cst_364 : f32 to vector<2x16xf32>
    %1211 = arith.addf %1210, %1209 : vector<2x16xf32>
    %1212 = arith.divf %1210, %1211 : vector<2x16xf32>
    %1213 = vector.extract_strided_slice %1200 {offsets = [0, 32], sizes = [2, 16], strides = [1, 1]} : vector<2x64xf32> to vector<2x16xf32>
    %1214 = math.tanh %1213 : vector<2x16xf32>
    %1215 = vector.extract_strided_slice %1200 {offsets = [0, 48], sizes = [2, 16], strides = [1, 1]} : vector<2x64xf32> to vector<2x16xf32>
    %1216 = arith.negf %1215 : vector<2x16xf32>
    %1217 = math.exp %1216 : vector<2x16xf32>
    %cst_365 = arith.constant 1.000000e+00 : f32
    %1218 = vector.broadcast %cst_365 : f32 to vector<2x16xf32>
    %1219 = arith.addf %1218, %1217 : vector<2x16xf32>
    %1220 = arith.divf %1218, %1219 : vector<2x16xf32>
    %1221 = arith.mulf %1212, %1160 : vector<2x16xf32>
    %1222 = arith.mulf %1206, %1214 : vector<2x16xf32>
    %1223 = arith.addf %1221, %1222 : vector<2x16xf32>
    %1224 = math.tanh %1223 : vector<2x16xf32>
    %1225 = arith.mulf %1220, %1224 : vector<2x16xf32>
    %1226 = arith.index_cast %1195 : i32 to index
    %c0_366 = arith.constant 0 : index
    %c16 = arith.constant 16 : index
    %1227 = vector.load %arg26[%1226, %c0_366, %c16] : memref<8x2x64xf32, #tpu.memory_space<vmem>>, vector<1x2x16xf32>
    %1228 = vector.shape_cast %1227 : vector<1x2x16xf32> to vector<2x16xf32>
    %1229 = vector.shape_cast %1225 : vector<2x16xf32> to vector<1x2x16xf32>
    tpu.vector_store %arg26[%1226, %c0_366, %c16], %1229 {strides = array<i32>} : memref<8x2x64xf32, #tpu.memory_space<vmem>>, vector<1x2x16xf32>,
    %c1_i32_367 = arith.constant 1 : i32
    %1230 = arith.index_cast %c1_i32_367 : i32 to index
    %c0_368 = arith.constant 0 : index
    %c0_369 = arith.constant 0 : index
    %1231 = vector.load %arg28[%1230, %c0_368, %c0_369] : memref<8x2x128xf32, #tpu.memory_space<vmem>>, vector<1x2x64xf32>
    %1232 = vector.shape_cast %1231 : vector<1x2x64xf32> to vector<2x64xf32>
    %cst_370 = arith.constant dense<0.000000e+00> : vector<2x64xf32>
    %1233 = tpu.matmul %1190, %1158, %cst_370 {dimension_numbers = #tpu.dot_dimension_numbers<[1], [0], [0], [1], [0, 0, 1, 1], [], []>} : vector<2x16xf32>, vector<16x64xf32>, vector<2x64xf32> -> vector<2x64xf32>
    %1234 = arith.addf %1232, %1233 : vector<2x64xf32>
    %1235 = vector.extract_strided_slice %1234 {offsets = [0, 0], sizes = [2, 16], strides = [1, 1]} : vector<2x64xf32> to vector<2x16xf32>
    %1236 = arith.negf %1235 : vector<2x16xf32>
    %1237 = math.exp %1236 : vector<2x16xf32>
    %cst_371 = arith.constant 1.000000e+00 : f32
    %1238 = vector.broadcast %cst_371 : f32 to vector<2x16xf32>
    %1239 = arith.addf %1238, %1237 : vector<2x16xf32>
    %1240 = arith.divf %1238, %1239 : vector<2x16xf32>
    %1241 = vector.extract_strided_slice %1234 {offsets = [0, 16], sizes = [2, 16], strides = [1, 1]} : vector<2x64xf32> to vector<2x16xf32>
    %1242 = arith.negf %1241 : vector<2x16xf32>
    %1243 = math.exp %1242 : vector<2x16xf32>
    %cst_372 = arith.constant 1.000000e+00 : f32
    %1244 = vector.broadcast %cst_372 : f32 to vector<2x16xf32>
    %1245 = arith.addf %1244, %1243 : vector<2x16xf32>
    %1246 = arith.divf %1244, %1245 : vector<2x16xf32>
    %1247 = vector.extract_strided_slice %1234 {offsets = [0, 32], sizes = [2, 16], strides = [1, 1]} : vector<2x64xf32> to vector<2x16xf32>
    %1248 = math.tanh %1247 : vector<2x16xf32>
    %1249 = vector.extract_strided_slice %1234 {offsets = [0, 48], sizes = [2, 16], strides = [1, 1]} : vector<2x64xf32> to vector<2x16xf32>
    %1250 = arith.negf %1249 : vector<2x16xf32>
    %1251 = math.exp %1250 : vector<2x16xf32>
    %cst_373 = arith.constant 1.000000e+00 : f32
    %1252 = vector.broadcast %cst_373 : f32 to vector<2x16xf32>
    %1253 = arith.addf %1252, %1251 : vector<2x16xf32>
    %1254 = arith.divf %1252, %1253 : vector<2x16xf32>
    %1255 = arith.mulf %1246, %1188 : vector<2x16xf32>
    %1256 = arith.mulf %1240, %1248 : vector<2x16xf32>
    %1257 = arith.addf %1255, %1256 : vector<2x16xf32>
    %1258 = math.tanh %1257 : vector<2x16xf32>
    %1259 = arith.mulf %1254, %1258 : vector<2x16xf32>
    %1260 = arith.index_cast %c1_i32_367 : i32 to index
    %c0_374 = arith.constant 0 : index
    %c0_375 = arith.constant 0 : index
    %1261 = vector.load %arg26[%1260, %c0_374, %c0_375] : memref<8x2x64xf32, #tpu.memory_space<vmem>>, vector<1x2x16xf32>
    %1262 = vector.shape_cast %1261 : vector<1x2x16xf32> to vector<2x16xf32>
    %1263 = vector.shape_cast %1259 : vector<2x16xf32> to vector<1x2x16xf32>
    tpu.vector_store %arg26[%1260, %c0_374, %c0_375], %1263 {strides = array<i32>} : memref<8x2x64xf32, #tpu.memory_space<vmem>>, vector<1x2x16xf32>,
    %c7_i32_376 = arith.constant 7 : i32
    %1264 = arith.subi %c7_i32_376, %c1_i32_367 : i32
    %1265 = arith.index_cast %1264 : i32 to index
    %c0_377 = arith.constant 0 : index
    %c0_378 = arith.constant 0 : index
    %1266 = vector.load %arg29[%1265, %c0_377, %c0_378] : memref<8x2x128xf32, #tpu.memory_space<vmem>>, vector<1x2x64xf32>
    %1267 = vector.shape_cast %1266 : vector<1x2x64xf32> to vector<2x64xf32>
    %cst_379 = arith.constant dense<0.000000e+00> : vector<2x64xf32>
    %1268 = tpu.matmul %1225, %1159, %cst_379 {dimension_numbers = #tpu.dot_dimension_numbers<[1], [0], [0], [1], [0, 0, 1, 1], [], []>} : vector<2x16xf32>, vector<16x64xf32>, vector<2x64xf32> -> vector<2x64xf32>
    %1269 = arith.addf %1267, %1268 : vector<2x64xf32>
    %1270 = vector.extract_strided_slice %1269 {offsets = [0, 0], sizes = [2, 16], strides = [1, 1]} : vector<2x64xf32> to vector<2x16xf32>
    %1271 = arith.negf %1270 : vector<2x16xf32>
    %1272 = math.exp %1271 : vector<2x16xf32>
    %cst_380 = arith.constant 1.000000e+00 : f32
    %1273 = vector.broadcast %cst_380 : f32 to vector<2x16xf32>
    %1274 = arith.addf %1273, %1272 : vector<2x16xf32>
    %1275 = arith.divf %1273, %1274 : vector<2x16xf32>
    %1276 = vector.extract_strided_slice %1269 {offsets = [0, 16], sizes = [2, 16], strides = [1, 1]} : vector<2x64xf32> to vector<2x16xf32>
    %1277 = arith.negf %1276 : vector<2x16xf32>
    %1278 = math.exp %1277 : vector<2x16xf32>
    %cst_381 = arith.constant 1.000000e+00 : f32
    %1279 = vector.broadcast %cst_381 : f32 to vector<2x16xf32>
    %1280 = arith.addf %1279, %1278 : vector<2x16xf32>
    %1281 = arith.divf %1279, %1280 : vector<2x16xf32>
    %1282 = vector.extract_strided_slice %1269 {offsets = [0, 32], sizes = [2, 16], strides = [1, 1]} : vector<2x64xf32> to vector<2x16xf32>
    %1283 = math.tanh %1282 : vector<2x16xf32>
    %1284 = vector.extract_strided_slice %1269 {offsets = [0, 48], sizes = [2, 16], strides = [1, 1]} : vector<2x64xf32> to vector<2x16xf32>
    %1285 = arith.negf %1284 : vector<2x16xf32>
    %1286 = math.exp %1285 : vector<2x16xf32>
    %cst_382 = arith.constant 1.000000e+00 : f32
    %1287 = vector.broadcast %cst_382 : f32 to vector<2x16xf32>
    %1288 = arith.addf %1287, %1286 : vector<2x16xf32>
    %1289 = arith.divf %1287, %1288 : vector<2x16xf32>
    %1290 = arith.mulf %1281, %1223 : vector<2x16xf32>
    %1291 = arith.mulf %1275, %1283 : vector<2x16xf32>
    %1292 = arith.addf %1290, %1291 : vector<2x16xf32>
    %1293 = math.tanh %1292 : vector<2x16xf32>
    %1294 = arith.mulf %1289, %1293 : vector<2x16xf32>
    %1295 = arith.index_cast %1264 : i32 to index
    %c0_383 = arith.constant 0 : index
    %c16_384 = arith.constant 16 : index
    %1296 = vector.load %arg26[%1295, %c0_383, %c16_384] : memref<8x2x64xf32, #tpu.memory_space<vmem>>, vector<1x2x16xf32>
    %1297 = vector.shape_cast %1296 : vector<1x2x16xf32> to vector<2x16xf32>
    %1298 = vector.shape_cast %1294 : vector<2x16xf32> to vector<1x2x16xf32>
    tpu.vector_store %arg26[%1295, %c0_383, %c16_384], %1298 {strides = array<i32>} : memref<8x2x64xf32, #tpu.memory_space<vmem>>, vector<1x2x16xf32>,
    %c2_i32_385 = arith.constant 2 : i32
    %1299 = arith.index_cast %c2_i32_385 : i32 to index
    %c0_386 = arith.constant 0 : index
    %c0_387 = arith.constant 0 : index
    %1300 = vector.load %arg28[%1299, %c0_386, %c0_387] : memref<8x2x128xf32, #tpu.memory_space<vmem>>, vector<1x2x64xf32>
    %1301 = vector.shape_cast %1300 : vector<1x2x64xf32> to vector<2x64xf32>
    %cst_388 = arith.constant dense<0.000000e+00> : vector<2x64xf32>
    %1302 = tpu.matmul %1259, %1158, %cst_388 {dimension_numbers = #tpu.dot_dimension_numbers<[1], [0], [0], [1], [0, 0, 1, 1], [], []>} : vector<2x16xf32>, vector<16x64xf32>, vector<2x64xf32> -> vector<2x64xf32>
    %1303 = arith.addf %1301, %1302 : vector<2x64xf32>
    %1304 = vector.extract_strided_slice %1303 {offsets = [0, 0], sizes = [2, 16], strides = [1, 1]} : vector<2x64xf32> to vector<2x16xf32>
    %1305 = arith.negf %1304 : vector<2x16xf32>
    %1306 = math.exp %1305 : vector<2x16xf32>
    %cst_389 = arith.constant 1.000000e+00 : f32
    %1307 = vector.broadcast %cst_389 : f32 to vector<2x16xf32>
    %1308 = arith.addf %1307, %1306 : vector<2x16xf32>
    %1309 = arith.divf %1307, %1308 : vector<2x16xf32>
    %1310 = vector.extract_strided_slice %1303 {offsets = [0, 16], sizes = [2, 16], strides = [1, 1]} : vector<2x64xf32> to vector<2x16xf32>
    %1311 = arith.negf %1310 : vector<2x16xf32>
    %1312 = math.exp %1311 : vector<2x16xf32>
    %cst_390 = arith.constant 1.000000e+00 : f32
    %1313 = vector.broadcast %cst_390 : f32 to vector<2x16xf32>
    %1314 = arith.addf %1313, %1312 : vector<2x16xf32>
    %1315 = arith.divf %1313, %1314 : vector<2x16xf32>
    %1316 = vector.extract_strided_slice %1303 {offsets = [0, 32], sizes = [2, 16], strides = [1, 1]} : vector<2x64xf32> to vector<2x16xf32>
    %1317 = math.tanh %1316 : vector<2x16xf32>
    %1318 = vector.extract_strided_slice %1303 {offsets = [0, 48], sizes = [2, 16], strides = [1, 1]} : vector<2x64xf32> to vector<2x16xf32>
    %1319 = arith.negf %1318 : vector<2x16xf32>
    %1320 = math.exp %1319 : vector<2x16xf32>
    %cst_391 = arith.constant 1.000000e+00 : f32
    %1321 = vector.broadcast %cst_391 : f32 to vector<2x16xf32>
    %1322 = arith.addf %1321, %1320 : vector<2x16xf32>
    %1323 = arith.divf %1321, %1322 : vector<2x16xf32>
    %1324 = arith.mulf %1315, %1257 : vector<2x16xf32>
    %1325 = arith.mulf %1309, %1317 : vector<2x16xf32>
    %1326 = arith.addf %1324, %1325 : vector<2x16xf32>
    %1327 = math.tanh %1326 : vector<2x16xf32>
    %1328 = arith.mulf %1323, %1327 : vector<2x16xf32>
    %1329 = arith.index_cast %c2_i32_385 : i32 to index
    %c0_392 = arith.constant 0 : index
    %c0_393 = arith.constant 0 : index
    %1330 = vector.load %arg26[%1329, %c0_392, %c0_393] : memref<8x2x64xf32, #tpu.memory_space<vmem>>, vector<1x2x16xf32>
    %1331 = vector.shape_cast %1330 : vector<1x2x16xf32> to vector<2x16xf32>
    %1332 = vector.shape_cast %1328 : vector<2x16xf32> to vector<1x2x16xf32>
    tpu.vector_store %arg26[%1329, %c0_392, %c0_393], %1332 {strides = array<i32>} : memref<8x2x64xf32, #tpu.memory_space<vmem>>, vector<1x2x16xf32>,
    %c7_i32_394 = arith.constant 7 : i32
    %1333 = arith.subi %c7_i32_394, %c2_i32_385 : i32
    %1334 = arith.index_cast %1333 : i32 to index
    %c0_395 = arith.constant 0 : index
    %c0_396 = arith.constant 0 : index
    %1335 = vector.load %arg29[%1334, %c0_395, %c0_396] : memref<8x2x128xf32, #tpu.memory_space<vmem>>, vector<1x2x64xf32>
    %1336 = vector.shape_cast %1335 : vector<1x2x64xf32> to vector<2x64xf32>
    %cst_397 = arith.constant dense<0.000000e+00> : vector<2x64xf32>
    %1337 = tpu.matmul %1294, %1159, %cst_397 {dimension_numbers = #tpu.dot_dimension_numbers<[1], [0], [0], [1], [0, 0, 1, 1], [], []>} : vector<2x16xf32>, vector<16x64xf32>, vector<2x64xf32> -> vector<2x64xf32>
    %1338 = arith.addf %1336, %1337 : vector<2x64xf32>
    %1339 = vector.extract_strided_slice %1338 {offsets = [0, 0], sizes = [2, 16], strides = [1, 1]} : vector<2x64xf32> to vector<2x16xf32>
    %1340 = arith.negf %1339 : vector<2x16xf32>
    %1341 = math.exp %1340 : vector<2x16xf32>
    %cst_398 = arith.constant 1.000000e+00 : f32
    %1342 = vector.broadcast %cst_398 : f32 to vector<2x16xf32>
    %1343 = arith.addf %1342, %1341 : vector<2x16xf32>
    %1344 = arith.divf %1342, %1343 : vector<2x16xf32>
    %1345 = vector.extract_strided_slice %1338 {offsets = [0, 16], sizes = [2, 16], strides = [1, 1]} : vector<2x64xf32> to vector<2x16xf32>
    %1346 = arith.negf %1345 : vector<2x16xf32>
    %1347 = math.exp %1346 : vector<2x16xf32>
    %cst_399 = arith.constant 1.000000e+00 : f32
    %1348 = vector.broadcast %cst_399 : f32 to vector<2x16xf32>
    %1349 = arith.addf %1348, %1347 : vector<2x16xf32>
    %1350 = arith.divf %1348, %1349 : vector<2x16xf32>
    %1351 = vector.extract_strided_slice %1338 {offsets = [0, 32], sizes = [2, 16], strides = [1, 1]} : vector<2x64xf32> to vector<2x16xf32>
    %1352 = math.tanh %1351 : vector<2x16xf32>
    %1353 = vector.extract_strided_slice %1338 {offsets = [0, 48], sizes = [2, 16], strides = [1, 1]} : vector<2x64xf32> to vector<2x16xf32>
    %1354 = arith.negf %1353 : vector<2x16xf32>
    %1355 = math.exp %1354 : vector<2x16xf32>
    %cst_400 = arith.constant 1.000000e+00 : f32
    %1356 = vector.broadcast %cst_400 : f32 to vector<2x16xf32>
    %1357 = arith.addf %1356, %1355 : vector<2x16xf32>
    %1358 = arith.divf %1356, %1357 : vector<2x16xf32>
    %1359 = arith.mulf %1350, %1292 : vector<2x16xf32>
    %1360 = arith.mulf %1344, %1352 : vector<2x16xf32>
    %1361 = arith.addf %1359, %1360 : vector<2x16xf32>
    %1362 = math.tanh %1361 : vector<2x16xf32>
    %1363 = arith.mulf %1358, %1362 : vector<2x16xf32>
    %1364 = arith.index_cast %1333 : i32 to index
    %c0_401 = arith.constant 0 : index
    %c16_402 = arith.constant 16 : index
    %1365 = vector.load %arg26[%1364, %c0_401, %c16_402] : memref<8x2x64xf32, #tpu.memory_space<vmem>>, vector<1x2x16xf32>
    %1366 = vector.shape_cast %1365 : vector<1x2x16xf32> to vector<2x16xf32>
    %1367 = vector.shape_cast %1363 : vector<2x16xf32> to vector<1x2x16xf32>
    tpu.vector_store %arg26[%1364, %c0_401, %c16_402], %1367 {strides = array<i32>} : memref<8x2x64xf32, #tpu.memory_space<vmem>>, vector<1x2x16xf32>,
    %c3_i32_403 = arith.constant 3 : i32
    %1368 = arith.index_cast %c3_i32_403 : i32 to index
    %c0_404 = arith.constant 0 : index
    %c0_405 = arith.constant 0 : index
    %1369 = vector.load %arg28[%1368, %c0_404, %c0_405] : memref<8x2x128xf32, #tpu.memory_space<vmem>>, vector<1x2x64xf32>
    %1370 = vector.shape_cast %1369 : vector<1x2x64xf32> to vector<2x64xf32>
    %cst_406 = arith.constant dense<0.000000e+00> : vector<2x64xf32>
    %1371 = tpu.matmul %1328, %1158, %cst_406 {dimension_numbers = #tpu.dot_dimension_numbers<[1], [0], [0], [1], [0, 0, 1, 1], [], []>} : vector<2x16xf32>, vector<16x64xf32>, vector<2x64xf32> -> vector<2x64xf32>
    %1372 = arith.addf %1370, %1371 : vector<2x64xf32>
    %1373 = vector.extract_strided_slice %1372 {offsets = [0, 0], sizes = [2, 16], strides = [1, 1]} : vector<2x64xf32> to vector<2x16xf32>
    %1374 = arith.negf %1373 : vector<2x16xf32>
    %1375 = math.exp %1374 : vector<2x16xf32>
    %cst_407 = arith.constant 1.000000e+00 : f32
    %1376 = vector.broadcast %cst_407 : f32 to vector<2x16xf32>
    %1377 = arith.addf %1376, %1375 : vector<2x16xf32>
    %1378 = arith.divf %1376, %1377 : vector<2x16xf32>
    %1379 = vector.extract_strided_slice %1372 {offsets = [0, 16], sizes = [2, 16], strides = [1, 1]} : vector<2x64xf32> to vector<2x16xf32>
    %1380 = arith.negf %1379 : vector<2x16xf32>
    %1381 = math.exp %1380 : vector<2x16xf32>
    %cst_408 = arith.constant 1.000000e+00 : f32
    %1382 = vector.broadcast %cst_408 : f32 to vector<2x16xf32>
    %1383 = arith.addf %1382, %1381 : vector<2x16xf32>
    %1384 = arith.divf %1382, %1383 : vector<2x16xf32>
    %1385 = vector.extract_strided_slice %1372 {offsets = [0, 32], sizes = [2, 16], strides = [1, 1]} : vector<2x64xf32> to vector<2x16xf32>
    %1386 = math.tanh %1385 : vector<2x16xf32>
    %1387 = vector.extract_strided_slice %1372 {offsets = [0, 48], sizes = [2, 16], strides = [1, 1]} : vector<2x64xf32> to vector<2x16xf32>
    %1388 = arith.negf %1387 : vector<2x16xf32>
    %1389 = math.exp %1388 : vector<2x16xf32>
    %cst_409 = arith.constant 1.000000e+00 : f32
    %1390 = vector.broadcast %cst_409 : f32 to vector<2x16xf32>
    %1391 = arith.addf %1390, %1389 : vector<2x16xf32>
    %1392 = arith.divf %1390, %1391 : vector<2x16xf32>
    %1393 = arith.mulf %1384, %1326 : vector<2x16xf32>
    %1394 = arith.mulf %1378, %1386 : vector<2x16xf32>
    %1395 = arith.addf %1393, %1394 : vector<2x16xf32>
    %1396 = math.tanh %1395 : vector<2x16xf32>
    %1397 = arith.mulf %1392, %1396 : vector<2x16xf32>
    %1398 = arith.index_cast %c3_i32_403 : i32 to index
    %c0_410 = arith.constant 0 : index
    %c0_411 = arith.constant 0 : index
    %1399 = vector.load %arg26[%1398, %c0_410, %c0_411] : memref<8x2x64xf32, #tpu.memory_space<vmem>>, vector<1x2x16xf32>
    %1400 = vector.shape_cast %1399 : vector<1x2x16xf32> to vector<2x16xf32>
    %1401 = vector.shape_cast %1397 : vector<2x16xf32> to vector<1x2x16xf32>
    tpu.vector_store %arg26[%1398, %c0_410, %c0_411], %1401 {strides = array<i32>} : memref<8x2x64xf32, #tpu.memory_space<vmem>>, vector<1x2x16xf32>,
    %c7_i32_412 = arith.constant 7 : i32
    %1402 = arith.subi %c7_i32_412, %c3_i32_403 : i32
    %1403 = arith.index_cast %1402 : i32 to index
    %c0_413 = arith.constant 0 : index
    %c0_414 = arith.constant 0 : index
    %1404 = vector.load %arg29[%1403, %c0_413, %c0_414] : memref<8x2x128xf32, #tpu.memory_space<vmem>>, vector<1x2x64xf32>
    %1405 = vector.shape_cast %1404 : vector<1x2x64xf32> to vector<2x64xf32>
    %cst_415 = arith.constant dense<0.000000e+00> : vector<2x64xf32>
    %1406 = tpu.matmul %1363, %1159, %cst_415 {dimension_numbers = #tpu.dot_dimension_numbers<[1], [0], [0], [1], [0, 0, 1, 1], [], []>} : vector<2x16xf32>, vector<16x64xf32>, vector<2x64xf32> -> vector<2x64xf32>
    %1407 = arith.addf %1405, %1406 : vector<2x64xf32>
    %1408 = vector.extract_strided_slice %1407 {offsets = [0, 0], sizes = [2, 16], strides = [1, 1]} : vector<2x64xf32> to vector<2x16xf32>
    %1409 = arith.negf %1408 : vector<2x16xf32>
    %1410 = math.exp %1409 : vector<2x16xf32>
    %cst_416 = arith.constant 1.000000e+00 : f32
    %1411 = vector.broadcast %cst_416 : f32 to vector<2x16xf32>
    %1412 = arith.addf %1411, %1410 : vector<2x16xf32>
    %1413 = arith.divf %1411, %1412 : vector<2x16xf32>
    %1414 = vector.extract_strided_slice %1407 {offsets = [0, 16], sizes = [2, 16], strides = [1, 1]} : vector<2x64xf32> to vector<2x16xf32>
    %1415 = arith.negf %1414 : vector<2x16xf32>
    %1416 = math.exp %1415 : vector<2x16xf32>
    %cst_417 = arith.constant 1.000000e+00 : f32
    %1417 = vector.broadcast %cst_417 : f32 to vector<2x16xf32>
    %1418 = arith.addf %1417, %1416 : vector<2x16xf32>
    %1419 = arith.divf %1417, %1418 : vector<2x16xf32>
    %1420 = vector.extract_strided_slice %1407 {offsets = [0, 32], sizes = [2, 16], strides = [1, 1]} : vector<2x64xf32> to vector<2x16xf32>
    %1421 = math.tanh %1420 : vector<2x16xf32>
    %1422 = vector.extract_strided_slice %1407 {offsets = [0, 48], sizes = [2, 16], strides = [1, 1]} : vector<2x64xf32> to vector<2x16xf32>
    %1423 = arith.negf %1422 : vector<2x16xf32>
    %1424 = math.exp %1423 : vector<2x16xf32>
    %cst_418 = arith.constant 1.000000e+00 : f32
    %1425 = vector.broadcast %cst_418 : f32 to vector<2x16xf32>
    %1426 = arith.addf %1425, %1424 : vector<2x16xf32>
    %1427 = arith.divf %1425, %1426 : vector<2x16xf32>
    %1428 = arith.mulf %1419, %1361 : vector<2x16xf32>
    %1429 = arith.mulf %1413, %1421 : vector<2x16xf32>
    %1430 = arith.addf %1428, %1429 : vector<2x16xf32>
    %1431 = math.tanh %1430 : vector<2x16xf32>
    %1432 = arith.mulf %1427, %1431 : vector<2x16xf32>
    %1433 = arith.index_cast %1402 : i32 to index
    %c0_419 = arith.constant 0 : index
    %c16_420 = arith.constant 16 : index
    %1434 = vector.load %arg26[%1433, %c0_419, %c16_420] : memref<8x2x64xf32, #tpu.memory_space<vmem>>, vector<1x2x16xf32>
    %1435 = vector.shape_cast %1434 : vector<1x2x16xf32> to vector<2x16xf32>
    %1436 = vector.shape_cast %1432 : vector<2x16xf32> to vector<1x2x16xf32>
    tpu.vector_store %arg26[%1433, %c0_419, %c16_420], %1436 {strides = array<i32>} : memref<8x2x64xf32, #tpu.memory_space<vmem>>, vector<1x2x16xf32>,
    %c4_i32_421 = arith.constant 4 : i32
    %1437 = arith.index_cast %c4_i32_421 : i32 to index
    %c0_422 = arith.constant 0 : index
    %c0_423 = arith.constant 0 : index
    %1438 = vector.load %arg28[%1437, %c0_422, %c0_423] : memref<8x2x128xf32, #tpu.memory_space<vmem>>, vector<1x2x64xf32>
    %1439 = vector.shape_cast %1438 : vector<1x2x64xf32> to vector<2x64xf32>
    %cst_424 = arith.constant dense<0.000000e+00> : vector<2x64xf32>
    %1440 = tpu.matmul %1397, %1158, %cst_424 {dimension_numbers = #tpu.dot_dimension_numbers<[1], [0], [0], [1], [0, 0, 1, 1], [], []>} : vector<2x16xf32>, vector<16x64xf32>, vector<2x64xf32> -> vector<2x64xf32>
    %1441 = arith.addf %1439, %1440 : vector<2x64xf32>
    %1442 = vector.extract_strided_slice %1441 {offsets = [0, 0], sizes = [2, 16], strides = [1, 1]} : vector<2x64xf32> to vector<2x16xf32>
    %1443 = arith.negf %1442 : vector<2x16xf32>
    %1444 = math.exp %1443 : vector<2x16xf32>
    %cst_425 = arith.constant 1.000000e+00 : f32
    %1445 = vector.broadcast %cst_425 : f32 to vector<2x16xf32>
    %1446 = arith.addf %1445, %1444 : vector<2x16xf32>
    %1447 = arith.divf %1445, %1446 : vector<2x16xf32>
    %1448 = vector.extract_strided_slice %1441 {offsets = [0, 16], sizes = [2, 16], strides = [1, 1]} : vector<2x64xf32> to vector<2x16xf32>
    %1449 = arith.negf %1448 : vector<2x16xf32>
    %1450 = math.exp %1449 : vector<2x16xf32>
    %cst_426 = arith.constant 1.000000e+00 : f32
    %1451 = vector.broadcast %cst_426 : f32 to vector<2x16xf32>
    %1452 = arith.addf %1451, %1450 : vector<2x16xf32>
    %1453 = arith.divf %1451, %1452 : vector<2x16xf32>
    %1454 = vector.extract_strided_slice %1441 {offsets = [0, 32], sizes = [2, 16], strides = [1, 1]} : vector<2x64xf32> to vector<2x16xf32>
    %1455 = math.tanh %1454 : vector<2x16xf32>
    %1456 = vector.extract_strided_slice %1441 {offsets = [0, 48], sizes = [2, 16], strides = [1, 1]} : vector<2x64xf32> to vector<2x16xf32>
    %1457 = arith.negf %1456 : vector<2x16xf32>
    %1458 = math.exp %1457 : vector<2x16xf32>
    %cst_427 = arith.constant 1.000000e+00 : f32
    %1459 = vector.broadcast %cst_427 : f32 to vector<2x16xf32>
    %1460 = arith.addf %1459, %1458 : vector<2x16xf32>
    %1461 = arith.divf %1459, %1460 : vector<2x16xf32>
    %1462 = arith.mulf %1453, %1395 : vector<2x16xf32>
    %1463 = arith.mulf %1447, %1455 : vector<2x16xf32>
    %1464 = arith.addf %1462, %1463 : vector<2x16xf32>
    %1465 = math.tanh %1464 : vector<2x16xf32>
    %1466 = arith.mulf %1461, %1465 : vector<2x16xf32>
    %1467 = arith.index_cast %c4_i32_421 : i32 to index
    %c0_428 = arith.constant 0 : index
    %c0_429 = arith.constant 0 : index
    %1468 = vector.load %arg26[%1467, %c0_428, %c0_429] : memref<8x2x64xf32, #tpu.memory_space<vmem>>, vector<1x2x16xf32>
    %1469 = vector.shape_cast %1468 : vector<1x2x16xf32> to vector<2x16xf32>
    %1470 = vector.shape_cast %1466 : vector<2x16xf32> to vector<1x2x16xf32>
    tpu.vector_store %arg26[%1467, %c0_428, %c0_429], %1470 {strides = array<i32>} : memref<8x2x64xf32, #tpu.memory_space<vmem>>, vector<1x2x16xf32>,
    %c7_i32_430 = arith.constant 7 : i32
    %1471 = arith.subi %c7_i32_430, %c4_i32_421 : i32
    %1472 = arith.index_cast %1471 : i32 to index
    %c0_431 = arith.constant 0 : index
    %c0_432 = arith.constant 0 : index
    %1473 = vector.load %arg29[%1472, %c0_431, %c0_432] : memref<8x2x128xf32, #tpu.memory_space<vmem>>, vector<1x2x64xf32>
    %1474 = vector.shape_cast %1473 : vector<1x2x64xf32> to vector<2x64xf32>
    %cst_433 = arith.constant dense<0.000000e+00> : vector<2x64xf32>
    %1475 = tpu.matmul %1432, %1159, %cst_433 {dimension_numbers = #tpu.dot_dimension_numbers<[1], [0], [0], [1], [0, 0, 1, 1], [], []>} : vector<2x16xf32>, vector<16x64xf32>, vector<2x64xf32> -> vector<2x64xf32>
    %1476 = arith.addf %1474, %1475 : vector<2x64xf32>
    %1477 = vector.extract_strided_slice %1476 {offsets = [0, 0], sizes = [2, 16], strides = [1, 1]} : vector<2x64xf32> to vector<2x16xf32>
    %1478 = arith.negf %1477 : vector<2x16xf32>
    %1479 = math.exp %1478 : vector<2x16xf32>
    %cst_434 = arith.constant 1.000000e+00 : f32
    %1480 = vector.broadcast %cst_434 : f32 to vector<2x16xf32>
    %1481 = arith.addf %1480, %1479 : vector<2x16xf32>
    %1482 = arith.divf %1480, %1481 : vector<2x16xf32>
    %1483 = vector.extract_strided_slice %1476 {offsets = [0, 16], sizes = [2, 16], strides = [1, 1]} : vector<2x64xf32> to vector<2x16xf32>
    %1484 = arith.negf %1483 : vector<2x16xf32>
    %1485 = math.exp %1484 : vector<2x16xf32>
    %cst_435 = arith.constant 1.000000e+00 : f32
    %1486 = vector.broadcast %cst_435 : f32 to vector<2x16xf32>
    %1487 = arith.addf %1486, %1485 : vector<2x16xf32>
    %1488 = arith.divf %1486, %1487 : vector<2x16xf32>
    %1489 = vector.extract_strided_slice %1476 {offsets = [0, 32], sizes = [2, 16], strides = [1, 1]} : vector<2x64xf32> to vector<2x16xf32>
    %1490 = math.tanh %1489 : vector<2x16xf32>
    %1491 = vector.extract_strided_slice %1476 {offsets = [0, 48], sizes = [2, 16], strides = [1, 1]} : vector<2x64xf32> to vector<2x16xf32>
    %1492 = arith.negf %1491 : vector<2x16xf32>
    %1493 = math.exp %1492 : vector<2x16xf32>
    %cst_436 = arith.constant 1.000000e+00 : f32
    %1494 = vector.broadcast %cst_436 : f32 to vector<2x16xf32>
    %1495 = arith.addf %1494, %1493 : vector<2x16xf32>
    %1496 = arith.divf %1494, %1495 : vector<2x16xf32>
    %1497 = arith.mulf %1488, %1430 : vector<2x16xf32>
    %1498 = arith.mulf %1482, %1490 : vector<2x16xf32>
    %1499 = arith.addf %1497, %1498 : vector<2x16xf32>
    %1500 = math.tanh %1499 : vector<2x16xf32>
    %1501 = arith.mulf %1496, %1500 : vector<2x16xf32>
    %1502 = arith.index_cast %1471 : i32 to index
    %c0_437 = arith.constant 0 : index
    %c16_438 = arith.constant 16 : index
    %1503 = vector.load %arg26[%1502, %c0_437, %c16_438] : memref<8x2x64xf32, #tpu.memory_space<vmem>>, vector<1x2x16xf32>
    %1504 = vector.shape_cast %1503 : vector<1x2x16xf32> to vector<2x16xf32>
    %1505 = vector.shape_cast %1501 : vector<2x16xf32> to vector<1x2x16xf32>
    tpu.vector_store %arg26[%1502, %c0_437, %c16_438], %1505 {strides = array<i32>} : memref<8x2x64xf32, #tpu.memory_space<vmem>>, vector<1x2x16xf32>,
    %c5_i32_439 = arith.constant 5 : i32
    %1506 = arith.index_cast %c5_i32_439 : i32 to index
    %c0_440 = arith.constant 0 : index
    %c0_441 = arith.constant 0 : index
    %1507 = vector.load %arg28[%1506, %c0_440, %c0_441] : memref<8x2x128xf32, #tpu.memory_space<vmem>>, vector<1x2x64xf32>
    %1508 = vector.shape_cast %1507 : vector<1x2x64xf32> to vector<2x64xf32>
    %cst_442 = arith.constant dense<0.000000e+00> : vector<2x64xf32>
    %1509 = tpu.matmul %1466, %1158, %cst_442 {dimension_numbers = #tpu.dot_dimension_numbers<[1], [0], [0], [1], [0, 0, 1, 1], [], []>} : vector<2x16xf32>, vector<16x64xf32>, vector<2x64xf32> -> vector<2x64xf32>
    %1510 = arith.addf %1508, %1509 : vector<2x64xf32>
    %1511 = vector.extract_strided_slice %1510 {offsets = [0, 0], sizes = [2, 16], strides = [1, 1]} : vector<2x64xf32> to vector<2x16xf32>
    %1512 = arith.negf %1511 : vector<2x16xf32>
    %1513 = math.exp %1512 : vector<2x16xf32>
    %cst_443 = arith.constant 1.000000e+00 : f32
    %1514 = vector.broadcast %cst_443 : f32 to vector<2x16xf32>
    %1515 = arith.addf %1514, %1513 : vector<2x16xf32>
    %1516 = arith.divf %1514, %1515 : vector<2x16xf32>
    %1517 = vector.extract_strided_slice %1510 {offsets = [0, 16], sizes = [2, 16], strides = [1, 1]} : vector<2x64xf32> to vector<2x16xf32>
    %1518 = arith.negf %1517 : vector<2x16xf32>
    %1519 = math.exp %1518 : vector<2x16xf32>
    %cst_444 = arith.constant 1.000000e+00 : f32
    %1520 = vector.broadcast %cst_444 : f32 to vector<2x16xf32>
    %1521 = arith.addf %1520, %1519 : vector<2x16xf32>
    %1522 = arith.divf %1520, %1521 : vector<2x16xf32>
    %1523 = vector.extract_strided_slice %1510 {offsets = [0, 32], sizes = [2, 16], strides = [1, 1]} : vector<2x64xf32> to vector<2x16xf32>
    %1524 = math.tanh %1523 : vector<2x16xf32>
    %1525 = vector.extract_strided_slice %1510 {offsets = [0, 48], sizes = [2, 16], strides = [1, 1]} : vector<2x64xf32> to vector<2x16xf32>
    %1526 = arith.negf %1525 : vector<2x16xf32>
    %1527 = math.exp %1526 : vector<2x16xf32>
    %cst_445 = arith.constant 1.000000e+00 : f32
    %1528 = vector.broadcast %cst_445 : f32 to vector<2x16xf32>
    %1529 = arith.addf %1528, %1527 : vector<2x16xf32>
    %1530 = arith.divf %1528, %1529 : vector<2x16xf32>
    %1531 = arith.mulf %1522, %1464 : vector<2x16xf32>
    %1532 = arith.mulf %1516, %1524 : vector<2x16xf32>
    %1533 = arith.addf %1531, %1532 : vector<2x16xf32>
    %1534 = math.tanh %1533 : vector<2x16xf32>
    %1535 = arith.mulf %1530, %1534 : vector<2x16xf32>
    %1536 = arith.index_cast %c5_i32_439 : i32 to index
    %c0_446 = arith.constant 0 : index
    %c0_447 = arith.constant 0 : index
    %1537 = vector.load %arg26[%1536, %c0_446, %c0_447] : memref<8x2x64xf32, #tpu.memory_space<vmem>>, vector<1x2x16xf32>
    %1538 = vector.shape_cast %1537 : vector<1x2x16xf32> to vector<2x16xf32>
    %1539 = vector.shape_cast %1535 : vector<2x16xf32> to vector<1x2x16xf32>
    tpu.vector_store %arg26[%1536, %c0_446, %c0_447], %1539 {strides = array<i32>} : memref<8x2x64xf32, #tpu.memory_space<vmem>>, vector<1x2x16xf32>,
    %c7_i32_448 = arith.constant 7 : i32
    %1540 = arith.subi %c7_i32_448, %c5_i32_439 : i32
    %1541 = arith.index_cast %1540 : i32 to index
    %c0_449 = arith.constant 0 : index
    %c0_450 = arith.constant 0 : index
    %1542 = vector.load %arg29[%1541, %c0_449, %c0_450] : memref<8x2x128xf32, #tpu.memory_space<vmem>>, vector<1x2x64xf32>
    %1543 = vector.shape_cast %1542 : vector<1x2x64xf32> to vector<2x64xf32>
    %cst_451 = arith.constant dense<0.000000e+00> : vector<2x64xf32>
    %1544 = tpu.matmul %1501, %1159, %cst_451 {dimension_numbers = #tpu.dot_dimension_numbers<[1], [0], [0], [1], [0, 0, 1, 1], [], []>} : vector<2x16xf32>, vector<16x64xf32>, vector<2x64xf32> -> vector<2x64xf32>
    %1545 = arith.addf %1543, %1544 : vector<2x64xf32>
    %1546 = vector.extract_strided_slice %1545 {offsets = [0, 0], sizes = [2, 16], strides = [1, 1]} : vector<2x64xf32> to vector<2x16xf32>
    %1547 = arith.negf %1546 : vector<2x16xf32>
    %1548 = math.exp %1547 : vector<2x16xf32>
    %cst_452 = arith.constant 1.000000e+00 : f32
    %1549 = vector.broadcast %cst_452 : f32 to vector<2x16xf32>
    %1550 = arith.addf %1549, %1548 : vector<2x16xf32>
    %1551 = arith.divf %1549, %1550 : vector<2x16xf32>
    %1552 = vector.extract_strided_slice %1545 {offsets = [0, 16], sizes = [2, 16], strides = [1, 1]} : vector<2x64xf32> to vector<2x16xf32>
    %1553 = arith.negf %1552 : vector<2x16xf32>
    %1554 = math.exp %1553 : vector<2x16xf32>
    %cst_453 = arith.constant 1.000000e+00 : f32
    %1555 = vector.broadcast %cst_453 : f32 to vector<2x16xf32>
    %1556 = arith.addf %1555, %1554 : vector<2x16xf32>
    %1557 = arith.divf %1555, %1556 : vector<2x16xf32>
    %1558 = vector.extract_strided_slice %1545 {offsets = [0, 32], sizes = [2, 16], strides = [1, 1]} : vector<2x64xf32> to vector<2x16xf32>
    %1559 = math.tanh %1558 : vector<2x16xf32>
    %1560 = vector.extract_strided_slice %1545 {offsets = [0, 48], sizes = [2, 16], strides = [1, 1]} : vector<2x64xf32> to vector<2x16xf32>
    %1561 = arith.negf %1560 : vector<2x16xf32>
    %1562 = math.exp %1561 : vector<2x16xf32>
    %cst_454 = arith.constant 1.000000e+00 : f32
    %1563 = vector.broadcast %cst_454 : f32 to vector<2x16xf32>
    %1564 = arith.addf %1563, %1562 : vector<2x16xf32>
    %1565 = arith.divf %1563, %1564 : vector<2x16xf32>
    %1566 = arith.mulf %1557, %1499 : vector<2x16xf32>
    %1567 = arith.mulf %1551, %1559 : vector<2x16xf32>
    %1568 = arith.addf %1566, %1567 : vector<2x16xf32>
    %1569 = math.tanh %1568 : vector<2x16xf32>
    %1570 = arith.mulf %1565, %1569 : vector<2x16xf32>
    %1571 = arith.index_cast %1540 : i32 to index
    %c0_455 = arith.constant 0 : index
    %c16_456 = arith.constant 16 : index
    %1572 = vector.load %arg26[%1571, %c0_455, %c16_456] : memref<8x2x64xf32, #tpu.memory_space<vmem>>, vector<1x2x16xf32>
    %1573 = vector.shape_cast %1572 : vector<1x2x16xf32> to vector<2x16xf32>
    %1574 = vector.shape_cast %1570 : vector<2x16xf32> to vector<1x2x16xf32>
    tpu.vector_store %arg26[%1571, %c0_455, %c16_456], %1574 {strides = array<i32>} : memref<8x2x64xf32, #tpu.memory_space<vmem>>, vector<1x2x16xf32>,
    %c6_i32_457 = arith.constant 6 : i32
    %1575 = arith.index_cast %c6_i32_457 : i32 to index
    %c0_458 = arith.constant 0 : index
    %c0_459 = arith.constant 0 : index
    %1576 = vector.load %arg28[%1575, %c0_458, %c0_459] : memref<8x2x128xf32, #tpu.memory_space<vmem>>, vector<1x2x64xf32>
    %1577 = vector.shape_cast %1576 : vector<1x2x64xf32> to vector<2x64xf32>
    %cst_460 = arith.constant dense<0.000000e+00> : vector<2x64xf32>
    %1578 = tpu.matmul %1535, %1158, %cst_460 {dimension_numbers = #tpu.dot_dimension_numbers<[1], [0], [0], [1], [0, 0, 1, 1], [], []>} : vector<2x16xf32>, vector<16x64xf32>, vector<2x64xf32> -> vector<2x64xf32>
    %1579 = arith.addf %1577, %1578 : vector<2x64xf32>
    %1580 = vector.extract_strided_slice %1579 {offsets = [0, 0], sizes = [2, 16], strides = [1, 1]} : vector<2x64xf32> to vector<2x16xf32>
    %1581 = arith.negf %1580 : vector<2x16xf32>
    %1582 = math.exp %1581 : vector<2x16xf32>
    %cst_461 = arith.constant 1.000000e+00 : f32
    %1583 = vector.broadcast %cst_461 : f32 to vector<2x16xf32>
    %1584 = arith.addf %1583, %1582 : vector<2x16xf32>
    %1585 = arith.divf %1583, %1584 : vector<2x16xf32>
    %1586 = vector.extract_strided_slice %1579 {offsets = [0, 16], sizes = [2, 16], strides = [1, 1]} : vector<2x64xf32> to vector<2x16xf32>
    %1587 = arith.negf %1586 : vector<2x16xf32>
    %1588 = math.exp %1587 : vector<2x16xf32>
    %cst_462 = arith.constant 1.000000e+00 : f32
    %1589 = vector.broadcast %cst_462 : f32 to vector<2x16xf32>
    %1590 = arith.addf %1589, %1588 : vector<2x16xf32>
    %1591 = arith.divf %1589, %1590 : vector<2x16xf32>
    %1592 = vector.extract_strided_slice %1579 {offsets = [0, 32], sizes = [2, 16], strides = [1, 1]} : vector<2x64xf32> to vector<2x16xf32>
    %1593 = math.tanh %1592 : vector<2x16xf32>
    %1594 = vector.extract_strided_slice %1579 {offsets = [0, 48], sizes = [2, 16], strides = [1, 1]} : vector<2x64xf32> to vector<2x16xf32>
    %1595 = arith.negf %1594 : vector<2x16xf32>
    %1596 = math.exp %1595 : vector<2x16xf32>
    %cst_463 = arith.constant 1.000000e+00 : f32
    %1597 = vector.broadcast %cst_463 : f32 to vector<2x16xf32>
    %1598 = arith.addf %1597, %1596 : vector<2x16xf32>
    %1599 = arith.divf %1597, %1598 : vector<2x16xf32>
    %1600 = arith.mulf %1591, %1533 : vector<2x16xf32>
    %1601 = arith.mulf %1585, %1593 : vector<2x16xf32>
    %1602 = arith.addf %1600, %1601 : vector<2x16xf32>
    %1603 = math.tanh %1602 : vector<2x16xf32>
    %1604 = arith.mulf %1599, %1603 : vector<2x16xf32>
    %1605 = arith.index_cast %c6_i32_457 : i32 to index
    %c0_464 = arith.constant 0 : index
    %c0_465 = arith.constant 0 : index
    %1606 = vector.load %arg26[%1605, %c0_464, %c0_465] : memref<8x2x64xf32, #tpu.memory_space<vmem>>, vector<1x2x16xf32>
    %1607 = vector.shape_cast %1606 : vector<1x2x16xf32> to vector<2x16xf32>
    %1608 = vector.shape_cast %1604 : vector<2x16xf32> to vector<1x2x16xf32>
    tpu.vector_store %arg26[%1605, %c0_464, %c0_465], %1608 {strides = array<i32>} : memref<8x2x64xf32, #tpu.memory_space<vmem>>, vector<1x2x16xf32>,
    %c7_i32_466 = arith.constant 7 : i32
    %1609 = arith.subi %c7_i32_466, %c6_i32_457 : i32
    %1610 = arith.index_cast %1609 : i32 to index
    %c0_467 = arith.constant 0 : index
    %c0_468 = arith.constant 0 : index
    %1611 = vector.load %arg29[%1610, %c0_467, %c0_468] : memref<8x2x128xf32, #tpu.memory_space<vmem>>, vector<1x2x64xf32>
    %1612 = vector.shape_cast %1611 : vector<1x2x64xf32> to vector<2x64xf32>
    %cst_469 = arith.constant dense<0.000000e+00> : vector<2x64xf32>
    %1613 = tpu.matmul %1570, %1159, %cst_469 {dimension_numbers = #tpu.dot_dimension_numbers<[1], [0], [0], [1], [0, 0, 1, 1], [], []>} : vector<2x16xf32>, vector<16x64xf32>, vector<2x64xf32> -> vector<2x64xf32>
    %1614 = arith.addf %1612, %1613 : vector<2x64xf32>
    %1615 = vector.extract_strided_slice %1614 {offsets = [0, 0], sizes = [2, 16], strides = [1, 1]} : vector<2x64xf32> to vector<2x16xf32>
    %1616 = arith.negf %1615 : vector<2x16xf32>
    %1617 = math.exp %1616 : vector<2x16xf32>
    %cst_470 = arith.constant 1.000000e+00 : f32
    %1618 = vector.broadcast %cst_470 : f32 to vector<2x16xf32>
    %1619 = arith.addf %1618, %1617 : vector<2x16xf32>
    %1620 = arith.divf %1618, %1619 : vector<2x16xf32>
    %1621 = vector.extract_strided_slice %1614 {offsets = [0, 16], sizes = [2, 16], strides = [1, 1]} : vector<2x64xf32> to vector<2x16xf32>
    %1622 = arith.negf %1621 : vector<2x16xf32>
    %1623 = math.exp %1622 : vector<2x16xf32>
    %cst_471 = arith.constant 1.000000e+00 : f32
    %1624 = vector.broadcast %cst_471 : f32 to vector<2x16xf32>
    %1625 = arith.addf %1624, %1623 : vector<2x16xf32>
    %1626 = arith.divf %1624, %1625 : vector<2x16xf32>
    %1627 = vector.extract_strided_slice %1614 {offsets = [0, 32], sizes = [2, 16], strides = [1, 1]} : vector<2x64xf32> to vector<2x16xf32>
    %1628 = math.tanh %1627 : vector<2x16xf32>
    %1629 = vector.extract_strided_slice %1614 {offsets = [0, 48], sizes = [2, 16], strides = [1, 1]} : vector<2x64xf32> to vector<2x16xf32>
    %1630 = arith.negf %1629 : vector<2x16xf32>
    %1631 = math.exp %1630 : vector<2x16xf32>
    %cst_472 = arith.constant 1.000000e+00 : f32
    %1632 = vector.broadcast %cst_472 : f32 to vector<2x16xf32>
    %1633 = arith.addf %1632, %1631 : vector<2x16xf32>
    %1634 = arith.divf %1632, %1633 : vector<2x16xf32>
    %1635 = arith.mulf %1626, %1568 : vector<2x16xf32>
    %1636 = arith.mulf %1620, %1628 : vector<2x16xf32>
    %1637 = arith.addf %1635, %1636 : vector<2x16xf32>
    %1638 = math.tanh %1637 : vector<2x16xf32>
    %1639 = arith.mulf %1634, %1638 : vector<2x16xf32>
    %1640 = arith.index_cast %1609 : i32 to index
    %c0_473 = arith.constant 0 : index
    %c16_474 = arith.constant 16 : index
    %1641 = vector.load %arg26[%1640, %c0_473, %c16_474] : memref<8x2x64xf32, #tpu.memory_space<vmem>>, vector<1x2x16xf32>
    %1642 = vector.shape_cast %1641 : vector<1x2x16xf32> to vector<2x16xf32>
    %1643 = vector.shape_cast %1639 : vector<2x16xf32> to vector<1x2x16xf32>
    tpu.vector_store %arg26[%1640, %c0_473, %c16_474], %1643 {strides = array<i32>} : memref<8x2x64xf32, #tpu.memory_space<vmem>>, vector<1x2x16xf32>,
    %c7_i32_475 = arith.constant 7 : i32
    %1644 = arith.index_cast %c7_i32_475 : i32 to index
    %c0_476 = arith.constant 0 : index
    %c0_477 = arith.constant 0 : index
    %1645 = vector.load %arg28[%1644, %c0_476, %c0_477] : memref<8x2x128xf32, #tpu.memory_space<vmem>>, vector<1x2x64xf32>
    %1646 = vector.shape_cast %1645 : vector<1x2x64xf32> to vector<2x64xf32>
    %cst_478 = arith.constant dense<0.000000e+00> : vector<2x64xf32>
    %1647 = tpu.matmul %1604, %1158, %cst_478 {dimension_numbers = #tpu.dot_dimension_numbers<[1], [0], [0], [1], [0, 0, 1, 1], [], []>} : vector<2x16xf32>, vector<16x64xf32>, vector<2x64xf32> -> vector<2x64xf32>
    %1648 = arith.addf %1646, %1647 : vector<2x64xf32>
    %1649 = vector.extract_strided_slice %1648 {offsets = [0, 0], sizes = [2, 16], strides = [1, 1]} : vector<2x64xf32> to vector<2x16xf32>
    %1650 = arith.negf %1649 : vector<2x16xf32>
    %1651 = math.exp %1650 : vector<2x16xf32>
    %cst_479 = arith.constant 1.000000e+00 : f32
    %1652 = vector.broadcast %cst_479 : f32 to vector<2x16xf32>
    %1653 = arith.addf %1652, %1651 : vector<2x16xf32>
    %1654 = arith.divf %1652, %1653 : vector<2x16xf32>
    %1655 = vector.extract_strided_slice %1648 {offsets = [0, 16], sizes = [2, 16], strides = [1, 1]} : vector<2x64xf32> to vector<2x16xf32>
    %1656 = arith.negf %1655 : vector<2x16xf32>
    %1657 = math.exp %1656 : vector<2x16xf32>
    %cst_480 = arith.constant 1.000000e+00 : f32
    %1658 = vector.broadcast %cst_480 : f32 to vector<2x16xf32>
    %1659 = arith.addf %1658, %1657 : vector<2x16xf32>
    %1660 = arith.divf %1658, %1659 : vector<2x16xf32>
    %1661 = vector.extract_strided_slice %1648 {offsets = [0, 32], sizes = [2, 16], strides = [1, 1]} : vector<2x64xf32> to vector<2x16xf32>
    %1662 = math.tanh %1661 : vector<2x16xf32>
    %1663 = vector.extract_strided_slice %1648 {offsets = [0, 48], sizes = [2, 16], strides = [1, 1]} : vector<2x64xf32> to vector<2x16xf32>
    %1664 = arith.negf %1663 : vector<2x16xf32>
    %1665 = math.exp %1664 : vector<2x16xf32>
    %cst_481 = arith.constant 1.000000e+00 : f32
    %1666 = vector.broadcast %cst_481 : f32 to vector<2x16xf32>
    %1667 = arith.addf %1666, %1665 : vector<2x16xf32>
    %1668 = arith.divf %1666, %1667 : vector<2x16xf32>
    %1669 = arith.mulf %1660, %1602 : vector<2x16xf32>
    %1670 = arith.mulf %1654, %1662 : vector<2x16xf32>
    %1671 = arith.addf %1669, %1670 : vector<2x16xf32>
    %1672 = math.tanh %1671 : vector<2x16xf32>
    %1673 = arith.mulf %1668, %1672 : vector<2x16xf32>
    %1674 = arith.index_cast %c7_i32_475 : i32 to index
    %c0_482 = arith.constant 0 : index
    %c0_483 = arith.constant 0 : index
    %1675 = vector.load %arg26[%1674, %c0_482, %c0_483] : memref<8x2x64xf32, #tpu.memory_space<vmem>>, vector<1x2x16xf32>
    %1676 = vector.shape_cast %1675 : vector<1x2x16xf32> to vector<2x16xf32>
    %1677 = vector.shape_cast %1673 : vector<2x16xf32> to vector<1x2x16xf32>
    tpu.vector_store %arg26[%1674, %c0_482, %c0_483], %1677 {strides = array<i32>} : memref<8x2x64xf32, #tpu.memory_space<vmem>>, vector<1x2x16xf32>,
    %c7_i32_484 = arith.constant 7 : i32
    %1678 = arith.subi %c7_i32_484, %c7_i32_475 : i32
    %1679 = arith.index_cast %1678 : i32 to index
    %c0_485 = arith.constant 0 : index
    %c0_486 = arith.constant 0 : index
    %1680 = vector.load %arg29[%1679, %c0_485, %c0_486] : memref<8x2x128xf32, #tpu.memory_space<vmem>>, vector<1x2x64xf32>
    %1681 = vector.shape_cast %1680 : vector<1x2x64xf32> to vector<2x64xf32>
    %cst_487 = arith.constant dense<0.000000e+00> : vector<2x64xf32>
    %1682 = tpu.matmul %1639, %1159, %cst_487 {dimension_numbers = #tpu.dot_dimension_numbers<[1], [0], [0], [1], [0, 0, 1, 1], [], []>} : vector<2x16xf32>, vector<16x64xf32>, vector<2x64xf32> -> vector<2x64xf32>
    %1683 = arith.addf %1681, %1682 : vector<2x64xf32>
    %1684 = vector.extract_strided_slice %1683 {offsets = [0, 0], sizes = [2, 16], strides = [1, 1]} : vector<2x64xf32> to vector<2x16xf32>
    %1685 = arith.negf %1684 : vector<2x16xf32>
    %1686 = math.exp %1685 : vector<2x16xf32>
    %cst_488 = arith.constant 1.000000e+00 : f32
    %1687 = vector.broadcast %cst_488 : f32 to vector<2x16xf32>
    %1688 = arith.addf %1687, %1686 : vector<2x16xf32>
    %1689 = arith.divf %1687, %1688 : vector<2x16xf32>
    %1690 = vector.extract_strided_slice %1683 {offsets = [0, 16], sizes = [2, 16], strides = [1, 1]} : vector<2x64xf32> to vector<2x16xf32>
    %1691 = arith.negf %1690 : vector<2x16xf32>
    %1692 = math.exp %1691 : vector<2x16xf32>
    %cst_489 = arith.constant 1.000000e+00 : f32
    %1693 = vector.broadcast %cst_489 : f32 to vector<2x16xf32>
    %1694 = arith.addf %1693, %1692 : vector<2x16xf32>
    %1695 = arith.divf %1693, %1694 : vector<2x16xf32>
    %1696 = vector.extract_strided_slice %1683 {offsets = [0, 32], sizes = [2, 16], strides = [1, 1]} : vector<2x64xf32> to vector<2x16xf32>
    %1697 = math.tanh %1696 : vector<2x16xf32>
    %1698 = vector.extract_strided_slice %1683 {offsets = [0, 48], sizes = [2, 16], strides = [1, 1]} : vector<2x64xf32> to vector<2x16xf32>
    %1699 = arith.negf %1698 : vector<2x16xf32>
    %1700 = math.exp %1699 : vector<2x16xf32>
    %cst_490 = arith.constant 1.000000e+00 : f32
    %1701 = vector.broadcast %cst_490 : f32 to vector<2x16xf32>
    %1702 = arith.addf %1701, %1700 : vector<2x16xf32>
    %1703 = arith.divf %1701, %1702 : vector<2x16xf32>
    %1704 = arith.mulf %1695, %1637 : vector<2x16xf32>
    %1705 = arith.mulf %1689, %1697 : vector<2x16xf32>
    %1706 = arith.addf %1704, %1705 : vector<2x16xf32>
    %1707 = math.tanh %1706 : vector<2x16xf32>
    %1708 = arith.mulf %1703, %1707 : vector<2x16xf32>
    %1709 = arith.index_cast %1678 : i32 to index
    %c0_491 = arith.constant 0 : index
    %c16_492 = arith.constant 16 : index
    %1710 = vector.load %arg26[%1709, %c0_491, %c16_492] : memref<8x2x64xf32, #tpu.memory_space<vmem>>, vector<1x2x16xf32>
    %1711 = vector.shape_cast %1710 : vector<1x2x16xf32> to vector<2x16xf32>
    %1712 = vector.shape_cast %1708 : vector<2x16xf32> to vector<1x2x16xf32>
    tpu.vector_store %arg26[%1709, %c0_491, %c16_492], %1712 {strides = array<i32>} : memref<8x2x64xf32, #tpu.memory_space<vmem>>, vector<1x2x16xf32>,
    %c8_i32_493 = arith.constant 8 : i32
    %c0_494 = arith.constant 0 : index
    %c0_495 = arith.constant 0 : index
    %c0_496 = arith.constant 0 : index
    %1713 = vector.load %arg26[%c0_494, %c0_495, %c0_496] : memref<8x2x64xf32, #tpu.memory_space<vmem>>, vector<8x2x32xf32>
    %1714 = vector.shape_cast %1713 : vector<8x2x32xf32> to vector<16x32xf32>
    %c0_497 = arith.constant 0 : index
    %c0_498 = arith.constant 0 : index
    %1715 = vector.load %arg19[%c0_497, %c0_498] : memref<32x64xf32, #tpu.memory_space<vmem>>, vector<32x64xf32>
    %cst_499 = arith.constant dense<0.000000e+00> : vector<16x64xf32>
    %1716 = tpu.matmul %1714, %1715, %cst_499 {dimension_numbers = #tpu.dot_dimension_numbers<[1], [0], [0], [1], [0, 0, 1, 1], [], []>} : vector<16x32xf32>, vector<32x64xf32>, vector<16x64xf32> -> vector<16x64xf32>
    %c0_500 = arith.constant 0 : index
    %c0_501 = arith.constant 0 : index
    %1717 = vector.load %arg21[%c0_500, %c0_501] : memref<1x64xf32, #tpu.memory_space<vmem>>, vector<1x64xf32>
    %1718 = vector.broadcast %1717 : vector<1x64xf32> to vector<16x64xf32>
    %1719 = arith.addf %1716, %1718 : vector<16x64xf32>
    %c0_502 = arith.constant 0 : index
    %c0_503 = arith.constant 0 : index
    %1720 = vector.load %arg22[%c0_502, %c0_503] : memref<32x64xf32, #tpu.memory_space<vmem>>, vector<32x64xf32>
    %cst_504 = arith.constant dense<0.000000e+00> : vector<16x64xf32>
    %1721 = tpu.matmul %1714, %1720, %cst_504 {dimension_numbers = #tpu.dot_dimension_numbers<[1], [0], [0], [1], [0, 0, 1, 1], [], []>} : vector<16x32xf32>, vector<32x64xf32>, vector<16x64xf32> -> vector<16x64xf32>
    %c0_505 = arith.constant 0 : index
    %c0_506 = arith.constant 0 : index
    %1722 = vector.load %arg24[%c0_505, %c0_506] : memref<1x64xf32, #tpu.memory_space<vmem>>, vector<1x64xf32>
    %1723 = vector.broadcast %1722 : vector<1x64xf32> to vector<16x64xf32>
    %1724 = arith.addf %1721, %1723 : vector<16x64xf32>
    %1725 = vector.shape_cast %1719 : vector<16x64xf32> to vector<8x2x64xf32>
    %c0_507 = arith.constant 0 : index
    %c0_508 = arith.constant 0 : index
    %c0_509 = arith.constant 0 : index
    %1726 = vector.load %arg28[%c0_507, %c0_508, %c0_509] : memref<8x2x128xf32, #tpu.memory_space<vmem>>, vector<8x2x64xf32>
    tpu.vector_store %arg28[%c0_507, %c0_508, %c0_509], %1725 {strides = array<i32>} : memref<8x2x128xf32, #tpu.memory_space<vmem>>, vector<8x2x64xf32>,
    %1727 = vector.shape_cast %1724 : vector<16x64xf32> to vector<8x2x64xf32>
    %c0_510 = arith.constant 0 : index
    %c0_511 = arith.constant 0 : index
    %c0_512 = arith.constant 0 : index
    %1728 = vector.load %arg29[%c0_510, %c0_511, %c0_512] : memref<8x2x128xf32, #tpu.memory_space<vmem>>, vector<8x2x64xf32>
    tpu.vector_store %arg29[%c0_510, %c0_511, %c0_512], %1727 {strides = array<i32>} : memref<8x2x128xf32, #tpu.memory_space<vmem>>, vector<8x2x64xf32>,
    %c0_513 = arith.constant 0 : index
    %c0_514 = arith.constant 0 : index
    %1729 = vector.load %arg20[%c0_513, %c0_514] : memref<16x64xf32, #tpu.memory_space<vmem>>, vector<16x64xf32>
    %c0_515 = arith.constant 0 : index
    %c0_516 = arith.constant 0 : index
    %1730 = vector.load %arg23[%c0_515, %c0_516] : memref<16x64xf32, #tpu.memory_space<vmem>>, vector<16x64xf32>
    %cst_517 = arith.constant 0.000000e+00 : f32
    %1731 = vector.broadcast %cst_517 : f32 to vector<2x16xf32>
    %c0_i32_518 = arith.constant 0 : i32
    %1732 = arith.index_cast %c0_i32_518 : i32 to index
    %c0_519 = arith.constant 0 : index
    %c0_520 = arith.constant 0 : index
    %1733 = vector.load %arg28[%1732, %c0_519, %c0_520] : memref<8x2x128xf32, #tpu.memory_space<vmem>>, vector<1x2x64xf32>
    %1734 = vector.shape_cast %1733 : vector<1x2x64xf32> to vector<2x64xf32>
    %cst_521 = arith.constant dense<0.000000e+00> : vector<2x64xf32>
    %1735 = tpu.matmul %1731, %1729, %cst_521 {dimension_numbers = #tpu.dot_dimension_numbers<[1], [0], [0], [1], [0, 0, 1, 1], [], []>} : vector<2x16xf32>, vector<16x64xf32>, vector<2x64xf32> -> vector<2x64xf32>
    %1736 = arith.addf %1734, %1735 : vector<2x64xf32>
    %1737 = vector.extract_strided_slice %1736 {offsets = [0, 0], sizes = [2, 16], strides = [1, 1]} : vector<2x64xf32> to vector<2x16xf32>
    %1738 = arith.negf %1737 : vector<2x16xf32>
    %1739 = math.exp %1738 : vector<2x16xf32>
    %cst_522 = arith.constant 1.000000e+00 : f32
    %1740 = vector.broadcast %cst_522 : f32 to vector<2x16xf32>
    %1741 = arith.addf %1740, %1739 : vector<2x16xf32>
    %1742 = arith.divf %1740, %1741 : vector<2x16xf32>
    %1743 = vector.extract_strided_slice %1736 {offsets = [0, 16], sizes = [2, 16], strides = [1, 1]} : vector<2x64xf32> to vector<2x16xf32>
    %1744 = arith.negf %1743 : vector<2x16xf32>
    %1745 = math.exp %1744 : vector<2x16xf32>
    %cst_523 = arith.constant 1.000000e+00 : f32
    %1746 = vector.broadcast %cst_523 : f32 to vector<2x16xf32>
    %1747 = arith.addf %1746, %1745 : vector<2x16xf32>
    %1748 = arith.divf %1746, %1747 : vector<2x16xf32>
    %1749 = vector.extract_strided_slice %1736 {offsets = [0, 32], sizes = [2, 16], strides = [1, 1]} : vector<2x64xf32> to vector<2x16xf32>
    %1750 = math.tanh %1749 : vector<2x16xf32>
    %1751 = vector.extract_strided_slice %1736 {offsets = [0, 48], sizes = [2, 16], strides = [1, 1]} : vector<2x64xf32> to vector<2x16xf32>
    %1752 = arith.negf %1751 : vector<2x16xf32>
    %1753 = math.exp %1752 : vector<2x16xf32>
    %cst_524 = arith.constant 1.000000e+00 : f32
    %1754 = vector.broadcast %cst_524 : f32 to vector<2x16xf32>
    %1755 = arith.addf %1754, %1753 : vector<2x16xf32>
    %1756 = arith.divf %1754, %1755 : vector<2x16xf32>
    %1757 = arith.mulf %1748, %1731 : vector<2x16xf32>
    %1758 = arith.mulf %1742, %1750 : vector<2x16xf32>
    %1759 = arith.addf %1757, %1758 : vector<2x16xf32>
    %1760 = math.tanh %1759 : vector<2x16xf32>
    %1761 = arith.mulf %1756, %1760 : vector<2x16xf32>
    %1762 = arith.index_cast %c0_i32_518 : i32 to index
    %c0_525 = arith.constant 0 : index
    %c0_526 = arith.constant 0 : index
    %1763 = vector.load %arg25[%1762, %c0_525, %c0_526] : memref<8x2x32xf32, #tpu.memory_space<vmem>>, vector<1x2x16xf32>
    %1764 = vector.shape_cast %1763 : vector<1x2x16xf32> to vector<2x16xf32>
    %1765 = vector.shape_cast %1761 : vector<2x16xf32> to vector<1x2x16xf32>
    tpu.vector_store %arg25[%1762, %c0_525, %c0_526], %1765 {strides = array<i32>} : memref<8x2x32xf32, #tpu.memory_space<vmem>>, vector<1x2x16xf32>,
    %c7_i32_527 = arith.constant 7 : i32
    %1766 = arith.subi %c7_i32_527, %c0_i32_518 : i32
    %1767 = arith.index_cast %1766 : i32 to index
    %c0_528 = arith.constant 0 : index
    %c0_529 = arith.constant 0 : index
    %1768 = vector.load %arg29[%1767, %c0_528, %c0_529] : memref<8x2x128xf32, #tpu.memory_space<vmem>>, vector<1x2x64xf32>
    %1769 = vector.shape_cast %1768 : vector<1x2x64xf32> to vector<2x64xf32>
    %cst_530 = arith.constant dense<0.000000e+00> : vector<2x64xf32>
    %1770 = tpu.matmul %1731, %1730, %cst_530 {dimension_numbers = #tpu.dot_dimension_numbers<[1], [0], [0], [1], [0, 0, 1, 1], [], []>} : vector<2x16xf32>, vector<16x64xf32>, vector<2x64xf32> -> vector<2x64xf32>
    %1771 = arith.addf %1769, %1770 : vector<2x64xf32>
    %1772 = vector.extract_strided_slice %1771 {offsets = [0, 0], sizes = [2, 16], strides = [1, 1]} : vector<2x64xf32> to vector<2x16xf32>
    %1773 = arith.negf %1772 : vector<2x16xf32>
    %1774 = math.exp %1773 : vector<2x16xf32>
    %cst_531 = arith.constant 1.000000e+00 : f32
    %1775 = vector.broadcast %cst_531 : f32 to vector<2x16xf32>
    %1776 = arith.addf %1775, %1774 : vector<2x16xf32>
    %1777 = arith.divf %1775, %1776 : vector<2x16xf32>
    %1778 = vector.extract_strided_slice %1771 {offsets = [0, 16], sizes = [2, 16], strides = [1, 1]} : vector<2x64xf32> to vector<2x16xf32>
    %1779 = arith.negf %1778 : vector<2x16xf32>
    %1780 = math.exp %1779 : vector<2x16xf32>
    %cst_532 = arith.constant 1.000000e+00 : f32
    %1781 = vector.broadcast %cst_532 : f32 to vector<2x16xf32>
    %1782 = arith.addf %1781, %1780 : vector<2x16xf32>
    %1783 = arith.divf %1781, %1782 : vector<2x16xf32>
    %1784 = vector.extract_strided_slice %1771 {offsets = [0, 32], sizes = [2, 16], strides = [1, 1]} : vector<2x64xf32> to vector<2x16xf32>
    %1785 = math.tanh %1784 : vector<2x16xf32>
    %1786 = vector.extract_strided_slice %1771 {offsets = [0, 48], sizes = [2, 16], strides = [1, 1]} : vector<2x64xf32> to vector<2x16xf32>
    %1787 = arith.negf %1786 : vector<2x16xf32>
    %1788 = math.exp %1787 : vector<2x16xf32>
    %cst_533 = arith.constant 1.000000e+00 : f32
    %1789 = vector.broadcast %cst_533 : f32 to vector<2x16xf32>
    %1790 = arith.addf %1789, %1788 : vector<2x16xf32>
    %1791 = arith.divf %1789, %1790 : vector<2x16xf32>
    %1792 = arith.mulf %1783, %1731 : vector<2x16xf32>
    %1793 = arith.mulf %1777, %1785 : vector<2x16xf32>
    %1794 = arith.addf %1792, %1793 : vector<2x16xf32>
    %1795 = math.tanh %1794 : vector<2x16xf32>
    %1796 = arith.mulf %1791, %1795 : vector<2x16xf32>
    %1797 = arith.index_cast %1766 : i32 to index
    %c0_534 = arith.constant 0 : index
    %c16_535 = arith.constant 16 : index
    %1798 = vector.load %arg25[%1797, %c0_534, %c16_535] : memref<8x2x32xf32, #tpu.memory_space<vmem>>, vector<1x2x16xf32>
    %1799 = vector.shape_cast %1798 : vector<1x2x16xf32> to vector<2x16xf32>
    %1800 = vector.shape_cast %1796 : vector<2x16xf32> to vector<1x2x16xf32>
    tpu.vector_store %arg25[%1797, %c0_534, %c16_535], %1800 {strides = array<i32>} : memref<8x2x32xf32, #tpu.memory_space<vmem>>, vector<1x2x16xf32>,
    %c1_i32_536 = arith.constant 1 : i32
    %1801 = arith.index_cast %c1_i32_536 : i32 to index
    %c0_537 = arith.constant 0 : index
    %c0_538 = arith.constant 0 : index
    %1802 = vector.load %arg28[%1801, %c0_537, %c0_538] : memref<8x2x128xf32, #tpu.memory_space<vmem>>, vector<1x2x64xf32>
    %1803 = vector.shape_cast %1802 : vector<1x2x64xf32> to vector<2x64xf32>
    %cst_539 = arith.constant dense<0.000000e+00> : vector<2x64xf32>
    %1804 = tpu.matmul %1761, %1729, %cst_539 {dimension_numbers = #tpu.dot_dimension_numbers<[1], [0], [0], [1], [0, 0, 1, 1], [], []>} : vector<2x16xf32>, vector<16x64xf32>, vector<2x64xf32> -> vector<2x64xf32>
    %1805 = arith.addf %1803, %1804 : vector<2x64xf32>
    %1806 = vector.extract_strided_slice %1805 {offsets = [0, 0], sizes = [2, 16], strides = [1, 1]} : vector<2x64xf32> to vector<2x16xf32>
    %1807 = arith.negf %1806 : vector<2x16xf32>
    %1808 = math.exp %1807 : vector<2x16xf32>
    %cst_540 = arith.constant 1.000000e+00 : f32
    %1809 = vector.broadcast %cst_540 : f32 to vector<2x16xf32>
    %1810 = arith.addf %1809, %1808 : vector<2x16xf32>
    %1811 = arith.divf %1809, %1810 : vector<2x16xf32>
    %1812 = vector.extract_strided_slice %1805 {offsets = [0, 16], sizes = [2, 16], strides = [1, 1]} : vector<2x64xf32> to vector<2x16xf32>
    %1813 = arith.negf %1812 : vector<2x16xf32>
    %1814 = math.exp %1813 : vector<2x16xf32>
    %cst_541 = arith.constant 1.000000e+00 : f32
    %1815 = vector.broadcast %cst_541 : f32 to vector<2x16xf32>
    %1816 = arith.addf %1815, %1814 : vector<2x16xf32>
    %1817 = arith.divf %1815, %1816 : vector<2x16xf32>
    %1818 = vector.extract_strided_slice %1805 {offsets = [0, 32], sizes = [2, 16], strides = [1, 1]} : vector<2x64xf32> to vector<2x16xf32>
    %1819 = math.tanh %1818 : vector<2x16xf32>
    %1820 = vector.extract_strided_slice %1805 {offsets = [0, 48], sizes = [2, 16], strides = [1, 1]} : vector<2x64xf32> to vector<2x16xf32>
    %1821 = arith.negf %1820 : vector<2x16xf32>
    %1822 = math.exp %1821 : vector<2x16xf32>
    %cst_542 = arith.constant 1.000000e+00 : f32
    %1823 = vector.broadcast %cst_542 : f32 to vector<2x16xf32>
    %1824 = arith.addf %1823, %1822 : vector<2x16xf32>
    %1825 = arith.divf %1823, %1824 : vector<2x16xf32>
    %1826 = arith.mulf %1817, %1759 : vector<2x16xf32>
    %1827 = arith.mulf %1811, %1819 : vector<2x16xf32>
    %1828 = arith.addf %1826, %1827 : vector<2x16xf32>
    %1829 = math.tanh %1828 : vector<2x16xf32>
    %1830 = arith.mulf %1825, %1829 : vector<2x16xf32>
    %1831 = arith.index_cast %c1_i32_536 : i32 to index
    %c0_543 = arith.constant 0 : index
    %c0_544 = arith.constant 0 : index
    %1832 = vector.load %arg25[%1831, %c0_543, %c0_544] : memref<8x2x32xf32, #tpu.memory_space<vmem>>, vector<1x2x16xf32>
    %1833 = vector.shape_cast %1832 : vector<1x2x16xf32> to vector<2x16xf32>
    %1834 = vector.shape_cast %1830 : vector<2x16xf32> to vector<1x2x16xf32>
    tpu.vector_store %arg25[%1831, %c0_543, %c0_544], %1834 {strides = array<i32>} : memref<8x2x32xf32, #tpu.memory_space<vmem>>, vector<1x2x16xf32>,
    %c7_i32_545 = arith.constant 7 : i32
    %1835 = arith.subi %c7_i32_545, %c1_i32_536 : i32
    %1836 = arith.index_cast %1835 : i32 to index
    %c0_546 = arith.constant 0 : index
    %c0_547 = arith.constant 0 : index
    %1837 = vector.load %arg29[%1836, %c0_546, %c0_547] : memref<8x2x128xf32, #tpu.memory_space<vmem>>, vector<1x2x64xf32>
    %1838 = vector.shape_cast %1837 : vector<1x2x64xf32> to vector<2x64xf32>
    %cst_548 = arith.constant dense<0.000000e+00> : vector<2x64xf32>
    %1839 = tpu.matmul %1796, %1730, %cst_548 {dimension_numbers = #tpu.dot_dimension_numbers<[1], [0], [0], [1], [0, 0, 1, 1], [], []>} : vector<2x16xf32>, vector<16x64xf32>, vector<2x64xf32> -> vector<2x64xf32>
    %1840 = arith.addf %1838, %1839 : vector<2x64xf32>
    %1841 = vector.extract_strided_slice %1840 {offsets = [0, 0], sizes = [2, 16], strides = [1, 1]} : vector<2x64xf32> to vector<2x16xf32>
    %1842 = arith.negf %1841 : vector<2x16xf32>
    %1843 = math.exp %1842 : vector<2x16xf32>
    %cst_549 = arith.constant 1.000000e+00 : f32
    %1844 = vector.broadcast %cst_549 : f32 to vector<2x16xf32>
    %1845 = arith.addf %1844, %1843 : vector<2x16xf32>
    %1846 = arith.divf %1844, %1845 : vector<2x16xf32>
    %1847 = vector.extract_strided_slice %1840 {offsets = [0, 16], sizes = [2, 16], strides = [1, 1]} : vector<2x64xf32> to vector<2x16xf32>
    %1848 = arith.negf %1847 : vector<2x16xf32>
    %1849 = math.exp %1848 : vector<2x16xf32>
    %cst_550 = arith.constant 1.000000e+00 : f32
    %1850 = vector.broadcast %cst_550 : f32 to vector<2x16xf32>
    %1851 = arith.addf %1850, %1849 : vector<2x16xf32>
    %1852 = arith.divf %1850, %1851 : vector<2x16xf32>
    %1853 = vector.extract_strided_slice %1840 {offsets = [0, 32], sizes = [2, 16], strides = [1, 1]} : vector<2x64xf32> to vector<2x16xf32>
    %1854 = math.tanh %1853 : vector<2x16xf32>
    %1855 = vector.extract_strided_slice %1840 {offsets = [0, 48], sizes = [2, 16], strides = [1, 1]} : vector<2x64xf32> to vector<2x16xf32>
    %1856 = arith.negf %1855 : vector<2x16xf32>
    %1857 = math.exp %1856 : vector<2x16xf32>
    %cst_551 = arith.constant 1.000000e+00 : f32
    %1858 = vector.broadcast %cst_551 : f32 to vector<2x16xf32>
    %1859 = arith.addf %1858, %1857 : vector<2x16xf32>
    %1860 = arith.divf %1858, %1859 : vector<2x16xf32>
    %1861 = arith.mulf %1852, %1794 : vector<2x16xf32>
    %1862 = arith.mulf %1846, %1854 : vector<2x16xf32>
    %1863 = arith.addf %1861, %1862 : vector<2x16xf32>
    %1864 = math.tanh %1863 : vector<2x16xf32>
    %1865 = arith.mulf %1860, %1864 : vector<2x16xf32>
    %1866 = arith.index_cast %1835 : i32 to index
    %c0_552 = arith.constant 0 : index
    %c16_553 = arith.constant 16 : index
    %1867 = vector.load %arg25[%1866, %c0_552, %c16_553] : memref<8x2x32xf32, #tpu.memory_space<vmem>>, vector<1x2x16xf32>
    %1868 = vector.shape_cast %1867 : vector<1x2x16xf32> to vector<2x16xf32>
    %1869 = vector.shape_cast %1865 : vector<2x16xf32> to vector<1x2x16xf32>
    tpu.vector_store %arg25[%1866, %c0_552, %c16_553], %1869 {strides = array<i32>} : memref<8x2x32xf32, #tpu.memory_space<vmem>>, vector<1x2x16xf32>,
    %c2_i32_554 = arith.constant 2 : i32
    %1870 = arith.index_cast %c2_i32_554 : i32 to index
    %c0_555 = arith.constant 0 : index
    %c0_556 = arith.constant 0 : index
    %1871 = vector.load %arg28[%1870, %c0_555, %c0_556] : memref<8x2x128xf32, #tpu.memory_space<vmem>>, vector<1x2x64xf32>
    %1872 = vector.shape_cast %1871 : vector<1x2x64xf32> to vector<2x64xf32>
    %cst_557 = arith.constant dense<0.000000e+00> : vector<2x64xf32>
    %1873 = tpu.matmul %1830, %1729, %cst_557 {dimension_numbers = #tpu.dot_dimension_numbers<[1], [0], [0], [1], [0, 0, 1, 1], [], []>} : vector<2x16xf32>, vector<16x64xf32>, vector<2x64xf32> -> vector<2x64xf32>
    %1874 = arith.addf %1872, %1873 : vector<2x64xf32>
    %1875 = vector.extract_strided_slice %1874 {offsets = [0, 0], sizes = [2, 16], strides = [1, 1]} : vector<2x64xf32> to vector<2x16xf32>
    %1876 = arith.negf %1875 : vector<2x16xf32>
    %1877 = math.exp %1876 : vector<2x16xf32>
    %cst_558 = arith.constant 1.000000e+00 : f32
    %1878 = vector.broadcast %cst_558 : f32 to vector<2x16xf32>
    %1879 = arith.addf %1878, %1877 : vector<2x16xf32>
    %1880 = arith.divf %1878, %1879 : vector<2x16xf32>
    %1881 = vector.extract_strided_slice %1874 {offsets = [0, 16], sizes = [2, 16], strides = [1, 1]} : vector<2x64xf32> to vector<2x16xf32>
    %1882 = arith.negf %1881 : vector<2x16xf32>
    %1883 = math.exp %1882 : vector<2x16xf32>
    %cst_559 = arith.constant 1.000000e+00 : f32
    %1884 = vector.broadcast %cst_559 : f32 to vector<2x16xf32>
    %1885 = arith.addf %1884, %1883 : vector<2x16xf32>
    %1886 = arith.divf %1884, %1885 : vector<2x16xf32>
    %1887 = vector.extract_strided_slice %1874 {offsets = [0, 32], sizes = [2, 16], strides = [1, 1]} : vector<2x64xf32> to vector<2x16xf32>
    %1888 = math.tanh %1887 : vector<2x16xf32>
    %1889 = vector.extract_strided_slice %1874 {offsets = [0, 48], sizes = [2, 16], strides = [1, 1]} : vector<2x64xf32> to vector<2x16xf32>
    %1890 = arith.negf %1889 : vector<2x16xf32>
    %1891 = math.exp %1890 : vector<2x16xf32>
    %cst_560 = arith.constant 1.000000e+00 : f32
    %1892 = vector.broadcast %cst_560 : f32 to vector<2x16xf32>
    %1893 = arith.addf %1892, %1891 : vector<2x16xf32>
    %1894 = arith.divf %1892, %1893 : vector<2x16xf32>
    %1895 = arith.mulf %1886, %1828 : vector<2x16xf32>
    %1896 = arith.mulf %1880, %1888 : vector<2x16xf32>
    %1897 = arith.addf %1895, %1896 : vector<2x16xf32>
    %1898 = math.tanh %1897 : vector<2x16xf32>
    %1899 = arith.mulf %1894, %1898 : vector<2x16xf32>
    %1900 = arith.index_cast %c2_i32_554 : i32 to index
    %c0_561 = arith.constant 0 : index
    %c0_562 = arith.constant 0 : index
    %1901 = vector.load %arg25[%1900, %c0_561, %c0_562] : memref<8x2x32xf32, #tpu.memory_space<vmem>>, vector<1x2x16xf32>
    %1902 = vector.shape_cast %1901 : vector<1x2x16xf32> to vector<2x16xf32>
    %1903 = vector.shape_cast %1899 : vector<2x16xf32> to vector<1x2x16xf32>
    tpu.vector_store %arg25[%1900, %c0_561, %c0_562], %1903 {strides = array<i32>} : memref<8x2x32xf32, #tpu.memory_space<vmem>>, vector<1x2x16xf32>,
    %c7_i32_563 = arith.constant 7 : i32
    %1904 = arith.subi %c7_i32_563, %c2_i32_554 : i32
    %1905 = arith.index_cast %1904 : i32 to index
    %c0_564 = arith.constant 0 : index
    %c0_565 = arith.constant 0 : index
    %1906 = vector.load %arg29[%1905, %c0_564, %c0_565] : memref<8x2x128xf32, #tpu.memory_space<vmem>>, vector<1x2x64xf32>
    %1907 = vector.shape_cast %1906 : vector<1x2x64xf32> to vector<2x64xf32>
    %cst_566 = arith.constant dense<0.000000e+00> : vector<2x64xf32>
    %1908 = tpu.matmul %1865, %1730, %cst_566 {dimension_numbers = #tpu.dot_dimension_numbers<[1], [0], [0], [1], [0, 0, 1, 1], [], []>} : vector<2x16xf32>, vector<16x64xf32>, vector<2x64xf32> -> vector<2x64xf32>
    %1909 = arith.addf %1907, %1908 : vector<2x64xf32>
    %1910 = vector.extract_strided_slice %1909 {offsets = [0, 0], sizes = [2, 16], strides = [1, 1]} : vector<2x64xf32> to vector<2x16xf32>
    %1911 = arith.negf %1910 : vector<2x16xf32>
    %1912 = math.exp %1911 : vector<2x16xf32>
    %cst_567 = arith.constant 1.000000e+00 : f32
    %1913 = vector.broadcast %cst_567 : f32 to vector<2x16xf32>
    %1914 = arith.addf %1913, %1912 : vector<2x16xf32>
    %1915 = arith.divf %1913, %1914 : vector<2x16xf32>
    %1916 = vector.extract_strided_slice %1909 {offsets = [0, 16], sizes = [2, 16], strides = [1, 1]} : vector<2x64xf32> to vector<2x16xf32>
    %1917 = arith.negf %1916 : vector<2x16xf32>
    %1918 = math.exp %1917 : vector<2x16xf32>
    %cst_568 = arith.constant 1.000000e+00 : f32
    %1919 = vector.broadcast %cst_568 : f32 to vector<2x16xf32>
    %1920 = arith.addf %1919, %1918 : vector<2x16xf32>
    %1921 = arith.divf %1919, %1920 : vector<2x16xf32>
    %1922 = vector.extract_strided_slice %1909 {offsets = [0, 32], sizes = [2, 16], strides = [1, 1]} : vector<2x64xf32> to vector<2x16xf32>
    %1923 = math.tanh %1922 : vector<2x16xf32>
    %1924 = vector.extract_strided_slice %1909 {offsets = [0, 48], sizes = [2, 16], strides = [1, 1]} : vector<2x64xf32> to vector<2x16xf32>
    %1925 = arith.negf %1924 : vector<2x16xf32>
    %1926 = math.exp %1925 : vector<2x16xf32>
    %cst_569 = arith.constant 1.000000e+00 : f32
    %1927 = vector.broadcast %cst_569 : f32 to vector<2x16xf32>
    %1928 = arith.addf %1927, %1926 : vector<2x16xf32>
    %1929 = arith.divf %1927, %1928 : vector<2x16xf32>
    %1930 = arith.mulf %1921, %1863 : vector<2x16xf32>
    %1931 = arith.mulf %1915, %1923 : vector<2x16xf32>
    %1932 = arith.addf %1930, %1931 : vector<2x16xf32>
    %1933 = math.tanh %1932 : vector<2x16xf32>
    %1934 = arith.mulf %1929, %1933 : vector<2x16xf32>
    %1935 = arith.index_cast %1904 : i32 to index
    %c0_570 = arith.constant 0 : index
    %c16_571 = arith.constant 16 : index
    %1936 = vector.load %arg25[%1935, %c0_570, %c16_571] : memref<8x2x32xf32, #tpu.memory_space<vmem>>, vector<1x2x16xf32>
    %1937 = vector.shape_cast %1936 : vector<1x2x16xf32> to vector<2x16xf32>
    %1938 = vector.shape_cast %1934 : vector<2x16xf32> to vector<1x2x16xf32>
    tpu.vector_store %arg25[%1935, %c0_570, %c16_571], %1938 {strides = array<i32>} : memref<8x2x32xf32, #tpu.memory_space<vmem>>, vector<1x2x16xf32>,
    %c3_i32_572 = arith.constant 3 : i32
    %1939 = arith.index_cast %c3_i32_572 : i32 to index
    %c0_573 = arith.constant 0 : index
    %c0_574 = arith.constant 0 : index
    %1940 = vector.load %arg28[%1939, %c0_573, %c0_574] : memref<8x2x128xf32, #tpu.memory_space<vmem>>, vector<1x2x64xf32>
    %1941 = vector.shape_cast %1940 : vector<1x2x64xf32> to vector<2x64xf32>
    %cst_575 = arith.constant dense<0.000000e+00> : vector<2x64xf32>
    %1942 = tpu.matmul %1899, %1729, %cst_575 {dimension_numbers = #tpu.dot_dimension_numbers<[1], [0], [0], [1], [0, 0, 1, 1], [], []>} : vector<2x16xf32>, vector<16x64xf32>, vector<2x64xf32> -> vector<2x64xf32>
    %1943 = arith.addf %1941, %1942 : vector<2x64xf32>
    %1944 = vector.extract_strided_slice %1943 {offsets = [0, 0], sizes = [2, 16], strides = [1, 1]} : vector<2x64xf32> to vector<2x16xf32>
    %1945 = arith.negf %1944 : vector<2x16xf32>
    %1946 = math.exp %1945 : vector<2x16xf32>
    %cst_576 = arith.constant 1.000000e+00 : f32
    %1947 = vector.broadcast %cst_576 : f32 to vector<2x16xf32>
    %1948 = arith.addf %1947, %1946 : vector<2x16xf32>
    %1949 = arith.divf %1947, %1948 : vector<2x16xf32>
    %1950 = vector.extract_strided_slice %1943 {offsets = [0, 16], sizes = [2, 16], strides = [1, 1]} : vector<2x64xf32> to vector<2x16xf32>
    %1951 = arith.negf %1950 : vector<2x16xf32>
    %1952 = math.exp %1951 : vector<2x16xf32>
    %cst_577 = arith.constant 1.000000e+00 : f32
    %1953 = vector.broadcast %cst_577 : f32 to vector<2x16xf32>
    %1954 = arith.addf %1953, %1952 : vector<2x16xf32>
    %1955 = arith.divf %1953, %1954 : vector<2x16xf32>
    %1956 = vector.extract_strided_slice %1943 {offsets = [0, 32], sizes = [2, 16], strides = [1, 1]} : vector<2x64xf32> to vector<2x16xf32>
    %1957 = math.tanh %1956 : vector<2x16xf32>
    %1958 = vector.extract_strided_slice %1943 {offsets = [0, 48], sizes = [2, 16], strides = [1, 1]} : vector<2x64xf32> to vector<2x16xf32>
    %1959 = arith.negf %1958 : vector<2x16xf32>
    %1960 = math.exp %1959 : vector<2x16xf32>
    %cst_578 = arith.constant 1.000000e+00 : f32
    %1961 = vector.broadcast %cst_578 : f32 to vector<2x16xf32>
    %1962 = arith.addf %1961, %1960 : vector<2x16xf32>
    %1963 = arith.divf %1961, %1962 : vector<2x16xf32>
    %1964 = arith.mulf %1955, %1897 : vector<2x16xf32>
    %1965 = arith.mulf %1949, %1957 : vector<2x16xf32>
    %1966 = arith.addf %1964, %1965 : vector<2x16xf32>
    %1967 = math.tanh %1966 : vector<2x16xf32>
    %1968 = arith.mulf %1963, %1967 : vector<2x16xf32>
    %1969 = arith.index_cast %c3_i32_572 : i32 to index
    %c0_579 = arith.constant 0 : index
    %c0_580 = arith.constant 0 : index
    %1970 = vector.load %arg25[%1969, %c0_579, %c0_580] : memref<8x2x32xf32, #tpu.memory_space<vmem>>, vector<1x2x16xf32>
    %1971 = vector.shape_cast %1970 : vector<1x2x16xf32> to vector<2x16xf32>
    %1972 = vector.shape_cast %1968 : vector<2x16xf32> to vector<1x2x16xf32>
    tpu.vector_store %arg25[%1969, %c0_579, %c0_580], %1972 {strides = array<i32>} : memref<8x2x32xf32, #tpu.memory_space<vmem>>, vector<1x2x16xf32>,
    %c7_i32_581 = arith.constant 7 : i32
    %1973 = arith.subi %c7_i32_581, %c3_i32_572 : i32
    %1974 = arith.index_cast %1973 : i32 to index
    %c0_582 = arith.constant 0 : index
    %c0_583 = arith.constant 0 : index
    %1975 = vector.load %arg29[%1974, %c0_582, %c0_583] : memref<8x2x128xf32, #tpu.memory_space<vmem>>, vector<1x2x64xf32>
    %1976 = vector.shape_cast %1975 : vector<1x2x64xf32> to vector<2x64xf32>
    %cst_584 = arith.constant dense<0.000000e+00> : vector<2x64xf32>
    %1977 = tpu.matmul %1934, %1730, %cst_584 {dimension_numbers = #tpu.dot_dimension_numbers<[1], [0], [0], [1], [0, 0, 1, 1], [], []>} : vector<2x16xf32>, vector<16x64xf32>, vector<2x64xf32> -> vector<2x64xf32>
    %1978 = arith.addf %1976, %1977 : vector<2x64xf32>
    %1979 = vector.extract_strided_slice %1978 {offsets = [0, 0], sizes = [2, 16], strides = [1, 1]} : vector<2x64xf32> to vector<2x16xf32>
    %1980 = arith.negf %1979 : vector<2x16xf32>
    %1981 = math.exp %1980 : vector<2x16xf32>
    %cst_585 = arith.constant 1.000000e+00 : f32
    %1982 = vector.broadcast %cst_585 : f32 to vector<2x16xf32>
    %1983 = arith.addf %1982, %1981 : vector<2x16xf32>
    %1984 = arith.divf %1982, %1983 : vector<2x16xf32>
    %1985 = vector.extract_strided_slice %1978 {offsets = [0, 16], sizes = [2, 16], strides = [1, 1]} : vector<2x64xf32> to vector<2x16xf32>
    %1986 = arith.negf %1985 : vector<2x16xf32>
    %1987 = math.exp %1986 : vector<2x16xf32>
    %cst_586 = arith.constant 1.000000e+00 : f32
    %1988 = vector.broadcast %cst_586 : f32 to vector<2x16xf32>
    %1989 = arith.addf %1988, %1987 : vector<2x16xf32>
    %1990 = arith.divf %1988, %1989 : vector<2x16xf32>
    %1991 = vector.extract_strided_slice %1978 {offsets = [0, 32], sizes = [2, 16], strides = [1, 1]} : vector<2x64xf32> to vector<2x16xf32>
    %1992 = math.tanh %1991 : vector<2x16xf32>
    %1993 = vector.extract_strided_slice %1978 {offsets = [0, 48], sizes = [2, 16], strides = [1, 1]} : vector<2x64xf32> to vector<2x16xf32>
    %1994 = arith.negf %1993 : vector<2x16xf32>
    %1995 = math.exp %1994 : vector<2x16xf32>
    %cst_587 = arith.constant 1.000000e+00 : f32
    %1996 = vector.broadcast %cst_587 : f32 to vector<2x16xf32>
    %1997 = arith.addf %1996, %1995 : vector<2x16xf32>
    %1998 = arith.divf %1996, %1997 : vector<2x16xf32>
    %1999 = arith.mulf %1990, %1932 : vector<2x16xf32>
    %2000 = arith.mulf %1984, %1992 : vector<2x16xf32>
    %2001 = arith.addf %1999, %2000 : vector<2x16xf32>
    %2002 = math.tanh %2001 : vector<2x16xf32>
    %2003 = arith.mulf %1998, %2002 : vector<2x16xf32>
    %2004 = arith.index_cast %1973 : i32 to index
    %c0_588 = arith.constant 0 : index
    %c16_589 = arith.constant 16 : index
    %2005 = vector.load %arg25[%2004, %c0_588, %c16_589] : memref<8x2x32xf32, #tpu.memory_space<vmem>>, vector<1x2x16xf32>
    %2006 = vector.shape_cast %2005 : vector<1x2x16xf32> to vector<2x16xf32>
    %2007 = vector.shape_cast %2003 : vector<2x16xf32> to vector<1x2x16xf32>
    tpu.vector_store %arg25[%2004, %c0_588, %c16_589], %2007 {strides = array<i32>} : memref<8x2x32xf32, #tpu.memory_space<vmem>>, vector<1x2x16xf32>,
    %c4_i32_590 = arith.constant 4 : i32
    %2008 = arith.index_cast %c4_i32_590 : i32 to index
    %c0_591 = arith.constant 0 : index
    %c0_592 = arith.constant 0 : index
    %2009 = vector.load %arg28[%2008, %c0_591, %c0_592] : memref<8x2x128xf32, #tpu.memory_space<vmem>>, vector<1x2x64xf32>
    %2010 = vector.shape_cast %2009 : vector<1x2x64xf32> to vector<2x64xf32>
    %cst_593 = arith.constant dense<0.000000e+00> : vector<2x64xf32>
    %2011 = tpu.matmul %1968, %1729, %cst_593 {dimension_numbers = #tpu.dot_dimension_numbers<[1], [0], [0], [1], [0, 0, 1, 1], [], []>} : vector<2x16xf32>, vector<16x64xf32>, vector<2x64xf32> -> vector<2x64xf32>
    %2012 = arith.addf %2010, %2011 : vector<2x64xf32>
    %2013 = vector.extract_strided_slice %2012 {offsets = [0, 0], sizes = [2, 16], strides = [1, 1]} : vector<2x64xf32> to vector<2x16xf32>
    %2014 = arith.negf %2013 : vector<2x16xf32>
    %2015 = math.exp %2014 : vector<2x16xf32>
    %cst_594 = arith.constant 1.000000e+00 : f32
    %2016 = vector.broadcast %cst_594 : f32 to vector<2x16xf32>
    %2017 = arith.addf %2016, %2015 : vector<2x16xf32>
    %2018 = arith.divf %2016, %2017 : vector<2x16xf32>
    %2019 = vector.extract_strided_slice %2012 {offsets = [0, 16], sizes = [2, 16], strides = [1, 1]} : vector<2x64xf32> to vector<2x16xf32>
    %2020 = arith.negf %2019 : vector<2x16xf32>
    %2021 = math.exp %2020 : vector<2x16xf32>
    %cst_595 = arith.constant 1.000000e+00 : f32
    %2022 = vector.broadcast %cst_595 : f32 to vector<2x16xf32>
    %2023 = arith.addf %2022, %2021 : vector<2x16xf32>
    %2024 = arith.divf %2022, %2023 : vector<2x16xf32>
    %2025 = vector.extract_strided_slice %2012 {offsets = [0, 32], sizes = [2, 16], strides = [1, 1]} : vector<2x64xf32> to vector<2x16xf32>
    %2026 = math.tanh %2025 : vector<2x16xf32>
    %2027 = vector.extract_strided_slice %2012 {offsets = [0, 48], sizes = [2, 16], strides = [1, 1]} : vector<2x64xf32> to vector<2x16xf32>
    %2028 = arith.negf %2027 : vector<2x16xf32>
    %2029 = math.exp %2028 : vector<2x16xf32>
    %cst_596 = arith.constant 1.000000e+00 : f32
    %2030 = vector.broadcast %cst_596 : f32 to vector<2x16xf32>
    %2031 = arith.addf %2030, %2029 : vector<2x16xf32>
    %2032 = arith.divf %2030, %2031 : vector<2x16xf32>
    %2033 = arith.mulf %2024, %1966 : vector<2x16xf32>
    %2034 = arith.mulf %2018, %2026 : vector<2x16xf32>
    %2035 = arith.addf %2033, %2034 : vector<2x16xf32>
    %2036 = math.tanh %2035 : vector<2x16xf32>
    %2037 = arith.mulf %2032, %2036 : vector<2x16xf32>
    %2038 = arith.index_cast %c4_i32_590 : i32 to index
    %c0_597 = arith.constant 0 : index
    %c0_598 = arith.constant 0 : index
    %2039 = vector.load %arg25[%2038, %c0_597, %c0_598] : memref<8x2x32xf32, #tpu.memory_space<vmem>>, vector<1x2x16xf32>
    %2040 = vector.shape_cast %2039 : vector<1x2x16xf32> to vector<2x16xf32>
    %2041 = vector.shape_cast %2037 : vector<2x16xf32> to vector<1x2x16xf32>
    tpu.vector_store %arg25[%2038, %c0_597, %c0_598], %2041 {strides = array<i32>} : memref<8x2x32xf32, #tpu.memory_space<vmem>>, vector<1x2x16xf32>,
    %c7_i32_599 = arith.constant 7 : i32
    %2042 = arith.subi %c7_i32_599, %c4_i32_590 : i32
    %2043 = arith.index_cast %2042 : i32 to index
    %c0_600 = arith.constant 0 : index
    %c0_601 = arith.constant 0 : index
    %2044 = vector.load %arg29[%2043, %c0_600, %c0_601] : memref<8x2x128xf32, #tpu.memory_space<vmem>>, vector<1x2x64xf32>
    %2045 = vector.shape_cast %2044 : vector<1x2x64xf32> to vector<2x64xf32>
    %cst_602 = arith.constant dense<0.000000e+00> : vector<2x64xf32>
    %2046 = tpu.matmul %2003, %1730, %cst_602 {dimension_numbers = #tpu.dot_dimension_numbers<[1], [0], [0], [1], [0, 0, 1, 1], [], []>} : vector<2x16xf32>, vector<16x64xf32>, vector<2x64xf32> -> vector<2x64xf32>
    %2047 = arith.addf %2045, %2046 : vector<2x64xf32>
    %2048 = vector.extract_strided_slice %2047 {offsets = [0, 0], sizes = [2, 16], strides = [1, 1]} : vector<2x64xf32> to vector<2x16xf32>
    %2049 = arith.negf %2048 : vector<2x16xf32>
    %2050 = math.exp %2049 : vector<2x16xf32>
    %cst_603 = arith.constant 1.000000e+00 : f32
    %2051 = vector.broadcast %cst_603 : f32 to vector<2x16xf32>
    %2052 = arith.addf %2051, %2050 : vector<2x16xf32>
    %2053 = arith.divf %2051, %2052 : vector<2x16xf32>
    %2054 = vector.extract_strided_slice %2047 {offsets = [0, 16], sizes = [2, 16], strides = [1, 1]} : vector<2x64xf32> to vector<2x16xf32>
    %2055 = arith.negf %2054 : vector<2x16xf32>
    %2056 = math.exp %2055 : vector<2x16xf32>
    %cst_604 = arith.constant 1.000000e+00 : f32
    %2057 = vector.broadcast %cst_604 : f32 to vector<2x16xf32>
    %2058 = arith.addf %2057, %2056 : vector<2x16xf32>
    %2059 = arith.divf %2057, %2058 : vector<2x16xf32>
    %2060 = vector.extract_strided_slice %2047 {offsets = [0, 32], sizes = [2, 16], strides = [1, 1]} : vector<2x64xf32> to vector<2x16xf32>
    %2061 = math.tanh %2060 : vector<2x16xf32>
    %2062 = vector.extract_strided_slice %2047 {offsets = [0, 48], sizes = [2, 16], strides = [1, 1]} : vector<2x64xf32> to vector<2x16xf32>
    %2063 = arith.negf %2062 : vector<2x16xf32>
    %2064 = math.exp %2063 : vector<2x16xf32>
    %cst_605 = arith.constant 1.000000e+00 : f32
    %2065 = vector.broadcast %cst_605 : f32 to vector<2x16xf32>
    %2066 = arith.addf %2065, %2064 : vector<2x16xf32>
    %2067 = arith.divf %2065, %2066 : vector<2x16xf32>
    %2068 = arith.mulf %2059, %2001 : vector<2x16xf32>
    %2069 = arith.mulf %2053, %2061 : vector<2x16xf32>
    %2070 = arith.addf %2068, %2069 : vector<2x16xf32>
    %2071 = math.tanh %2070 : vector<2x16xf32>
    %2072 = arith.mulf %2067, %2071 : vector<2x16xf32>
    %2073 = arith.index_cast %2042 : i32 to index
    %c0_606 = arith.constant 0 : index
    %c16_607 = arith.constant 16 : index
    %2074 = vector.load %arg25[%2073, %c0_606, %c16_607] : memref<8x2x32xf32, #tpu.memory_space<vmem>>, vector<1x2x16xf32>
    %2075 = vector.shape_cast %2074 : vector<1x2x16xf32> to vector<2x16xf32>
    %2076 = vector.shape_cast %2072 : vector<2x16xf32> to vector<1x2x16xf32>
    tpu.vector_store %arg25[%2073, %c0_606, %c16_607], %2076 {strides = array<i32>} : memref<8x2x32xf32, #tpu.memory_space<vmem>>, vector<1x2x16xf32>,
    %c5_i32_608 = arith.constant 5 : i32
    %2077 = arith.index_cast %c5_i32_608 : i32 to index
    %c0_609 = arith.constant 0 : index
    %c0_610 = arith.constant 0 : index
    %2078 = vector.load %arg28[%2077, %c0_609, %c0_610] : memref<8x2x128xf32, #tpu.memory_space<vmem>>, vector<1x2x64xf32>
    %2079 = vector.shape_cast %2078 : vector<1x2x64xf32> to vector<2x64xf32>
    %cst_611 = arith.constant dense<0.000000e+00> : vector<2x64xf32>
    %2080 = tpu.matmul %2037, %1729, %cst_611 {dimension_numbers = #tpu.dot_dimension_numbers<[1], [0], [0], [1], [0, 0, 1, 1], [], []>} : vector<2x16xf32>, vector<16x64xf32>, vector<2x64xf32> -> vector<2x64xf32>
    %2081 = arith.addf %2079, %2080 : vector<2x64xf32>
    %2082 = vector.extract_strided_slice %2081 {offsets = [0, 0], sizes = [2, 16], strides = [1, 1]} : vector<2x64xf32> to vector<2x16xf32>
    %2083 = arith.negf %2082 : vector<2x16xf32>
    %2084 = math.exp %2083 : vector<2x16xf32>
    %cst_612 = arith.constant 1.000000e+00 : f32
    %2085 = vector.broadcast %cst_612 : f32 to vector<2x16xf32>
    %2086 = arith.addf %2085, %2084 : vector<2x16xf32>
    %2087 = arith.divf %2085, %2086 : vector<2x16xf32>
    %2088 = vector.extract_strided_slice %2081 {offsets = [0, 16], sizes = [2, 16], strides = [1, 1]} : vector<2x64xf32> to vector<2x16xf32>
    %2089 = arith.negf %2088 : vector<2x16xf32>
    %2090 = math.exp %2089 : vector<2x16xf32>
    %cst_613 = arith.constant 1.000000e+00 : f32
    %2091 = vector.broadcast %cst_613 : f32 to vector<2x16xf32>
    %2092 = arith.addf %2091, %2090 : vector<2x16xf32>
    %2093 = arith.divf %2091, %2092 : vector<2x16xf32>
    %2094 = vector.extract_strided_slice %2081 {offsets = [0, 32], sizes = [2, 16], strides = [1, 1]} : vector<2x64xf32> to vector<2x16xf32>
    %2095 = math.tanh %2094 : vector<2x16xf32>
    %2096 = vector.extract_strided_slice %2081 {offsets = [0, 48], sizes = [2, 16], strides = [1, 1]} : vector<2x64xf32> to vector<2x16xf32>
    %2097 = arith.negf %2096 : vector<2x16xf32>
    %2098 = math.exp %2097 : vector<2x16xf32>
    %cst_614 = arith.constant 1.000000e+00 : f32
    %2099 = vector.broadcast %cst_614 : f32 to vector<2x16xf32>
    %2100 = arith.addf %2099, %2098 : vector<2x16xf32>
    %2101 = arith.divf %2099, %2100 : vector<2x16xf32>
    %2102 = arith.mulf %2093, %2035 : vector<2x16xf32>
    %2103 = arith.mulf %2087, %2095 : vector<2x16xf32>
    %2104 = arith.addf %2102, %2103 : vector<2x16xf32>
    %2105 = math.tanh %2104 : vector<2x16xf32>
    %2106 = arith.mulf %2101, %2105 : vector<2x16xf32>
    %2107 = arith.index_cast %c5_i32_608 : i32 to index
    %c0_615 = arith.constant 0 : index
    %c0_616 = arith.constant 0 : index
    %2108 = vector.load %arg25[%2107, %c0_615, %c0_616] : memref<8x2x32xf32, #tpu.memory_space<vmem>>, vector<1x2x16xf32>
    %2109 = vector.shape_cast %2108 : vector<1x2x16xf32> to vector<2x16xf32>
    %2110 = vector.shape_cast %2106 : vector<2x16xf32> to vector<1x2x16xf32>
    tpu.vector_store %arg25[%2107, %c0_615, %c0_616], %2110 {strides = array<i32>} : memref<8x2x32xf32, #tpu.memory_space<vmem>>, vector<1x2x16xf32>,
    %c7_i32_617 = arith.constant 7 : i32
    %2111 = arith.subi %c7_i32_617, %c5_i32_608 : i32
    %2112 = arith.index_cast %2111 : i32 to index
    %c0_618 = arith.constant 0 : index
    %c0_619 = arith.constant 0 : index
    %2113 = vector.load %arg29[%2112, %c0_618, %c0_619] : memref<8x2x128xf32, #tpu.memory_space<vmem>>, vector<1x2x64xf32>
    %2114 = vector.shape_cast %2113 : vector<1x2x64xf32> to vector<2x64xf32>
    %cst_620 = arith.constant dense<0.000000e+00> : vector<2x64xf32>
    %2115 = tpu.matmul %2072, %1730, %cst_620 {dimension_numbers = #tpu.dot_dimension_numbers<[1], [0], [0], [1], [0, 0, 1, 1], [], []>} : vector<2x16xf32>, vector<16x64xf32>, vector<2x64xf32> -> vector<2x64xf32>
    %2116 = arith.addf %2114, %2115 : vector<2x64xf32>
    %2117 = vector.extract_strided_slice %2116 {offsets = [0, 0], sizes = [2, 16], strides = [1, 1]} : vector<2x64xf32> to vector<2x16xf32>
    %2118 = arith.negf %2117 : vector<2x16xf32>
    %2119 = math.exp %2118 : vector<2x16xf32>
    %cst_621 = arith.constant 1.000000e+00 : f32
    %2120 = vector.broadcast %cst_621 : f32 to vector<2x16xf32>
    %2121 = arith.addf %2120, %2119 : vector<2x16xf32>
    %2122 = arith.divf %2120, %2121 : vector<2x16xf32>
    %2123 = vector.extract_strided_slice %2116 {offsets = [0, 16], sizes = [2, 16], strides = [1, 1]} : vector<2x64xf32> to vector<2x16xf32>
    %2124 = arith.negf %2123 : vector<2x16xf32>
    %2125 = math.exp %2124 : vector<2x16xf32>
    %cst_622 = arith.constant 1.000000e+00 : f32
    %2126 = vector.broadcast %cst_622 : f32 to vector<2x16xf32>
    %2127 = arith.addf %2126, %2125 : vector<2x16xf32>
    %2128 = arith.divf %2126, %2127 : vector<2x16xf32>
    %2129 = vector.extract_strided_slice %2116 {offsets = [0, 32], sizes = [2, 16], strides = [1, 1]} : vector<2x64xf32> to vector<2x16xf32>
    %2130 = math.tanh %2129 : vector<2x16xf32>
    %2131 = vector.extract_strided_slice %2116 {offsets = [0, 48], sizes = [2, 16], strides = [1, 1]} : vector<2x64xf32> to vector<2x16xf32>
    %2132 = arith.negf %2131 : vector<2x16xf32>
    %2133 = math.exp %2132 : vector<2x16xf32>
    %cst_623 = arith.constant 1.000000e+00 : f32
    %2134 = vector.broadcast %cst_623 : f32 to vector<2x16xf32>
    %2135 = arith.addf %2134, %2133 : vector<2x16xf32>
    %2136 = arith.divf %2134, %2135 : vector<2x16xf32>
    %2137 = arith.mulf %2128, %2070 : vector<2x16xf32>
    %2138 = arith.mulf %2122, %2130 : vector<2x16xf32>
    %2139 = arith.addf %2137, %2138 : vector<2x16xf32>
    %2140 = math.tanh %2139 : vector<2x16xf32>
    %2141 = arith.mulf %2136, %2140 : vector<2x16xf32>
    %2142 = arith.index_cast %2111 : i32 to index
    %c0_624 = arith.constant 0 : index
    %c16_625 = arith.constant 16 : index
    %2143 = vector.load %arg25[%2142, %c0_624, %c16_625] : memref<8x2x32xf32, #tpu.memory_space<vmem>>, vector<1x2x16xf32>
    %2144 = vector.shape_cast %2143 : vector<1x2x16xf32> to vector<2x16xf32>
    %2145 = vector.shape_cast %2141 : vector<2x16xf32> to vector<1x2x16xf32>
    tpu.vector_store %arg25[%2142, %c0_624, %c16_625], %2145 {strides = array<i32>} : memref<8x2x32xf32, #tpu.memory_space<vmem>>, vector<1x2x16xf32>,
    %c6_i32_626 = arith.constant 6 : i32
    %2146 = arith.index_cast %c6_i32_626 : i32 to index
    %c0_627 = arith.constant 0 : index
    %c0_628 = arith.constant 0 : index
    %2147 = vector.load %arg28[%2146, %c0_627, %c0_628] : memref<8x2x128xf32, #tpu.memory_space<vmem>>, vector<1x2x64xf32>
    %2148 = vector.shape_cast %2147 : vector<1x2x64xf32> to vector<2x64xf32>
    %cst_629 = arith.constant dense<0.000000e+00> : vector<2x64xf32>
    %2149 = tpu.matmul %2106, %1729, %cst_629 {dimension_numbers = #tpu.dot_dimension_numbers<[1], [0], [0], [1], [0, 0, 1, 1], [], []>} : vector<2x16xf32>, vector<16x64xf32>, vector<2x64xf32> -> vector<2x64xf32>
    %2150 = arith.addf %2148, %2149 : vector<2x64xf32>
    %2151 = vector.extract_strided_slice %2150 {offsets = [0, 0], sizes = [2, 16], strides = [1, 1]} : vector<2x64xf32> to vector<2x16xf32>
    %2152 = arith.negf %2151 : vector<2x16xf32>
    %2153 = math.exp %2152 : vector<2x16xf32>
    %cst_630 = arith.constant 1.000000e+00 : f32
    %2154 = vector.broadcast %cst_630 : f32 to vector<2x16xf32>
    %2155 = arith.addf %2154, %2153 : vector<2x16xf32>
    %2156 = arith.divf %2154, %2155 : vector<2x16xf32>
    %2157 = vector.extract_strided_slice %2150 {offsets = [0, 16], sizes = [2, 16], strides = [1, 1]} : vector<2x64xf32> to vector<2x16xf32>
    %2158 = arith.negf %2157 : vector<2x16xf32>
    %2159 = math.exp %2158 : vector<2x16xf32>
    %cst_631 = arith.constant 1.000000e+00 : f32
    %2160 = vector.broadcast %cst_631 : f32 to vector<2x16xf32>
    %2161 = arith.addf %2160, %2159 : vector<2x16xf32>
    %2162 = arith.divf %2160, %2161 : vector<2x16xf32>
    %2163 = vector.extract_strided_slice %2150 {offsets = [0, 32], sizes = [2, 16], strides = [1, 1]} : vector<2x64xf32> to vector<2x16xf32>
    %2164 = math.tanh %2163 : vector<2x16xf32>
    %2165 = vector.extract_strided_slice %2150 {offsets = [0, 48], sizes = [2, 16], strides = [1, 1]} : vector<2x64xf32> to vector<2x16xf32>
    %2166 = arith.negf %2165 : vector<2x16xf32>
    %2167 = math.exp %2166 : vector<2x16xf32>
    %cst_632 = arith.constant 1.000000e+00 : f32
    %2168 = vector.broadcast %cst_632 : f32 to vector<2x16xf32>
    %2169 = arith.addf %2168, %2167 : vector<2x16xf32>
    %2170 = arith.divf %2168, %2169 : vector<2x16xf32>
    %2171 = arith.mulf %2162, %2104 : vector<2x16xf32>
    %2172 = arith.mulf %2156, %2164 : vector<2x16xf32>
    %2173 = arith.addf %2171, %2172 : vector<2x16xf32>
    %2174 = math.tanh %2173 : vector<2x16xf32>
    %2175 = arith.mulf %2170, %2174 : vector<2x16xf32>
    %2176 = arith.index_cast %c6_i32_626 : i32 to index
    %c0_633 = arith.constant 0 : index
    %c0_634 = arith.constant 0 : index
    %2177 = vector.load %arg25[%2176, %c0_633, %c0_634] : memref<8x2x32xf32, #tpu.memory_space<vmem>>, vector<1x2x16xf32>
    %2178 = vector.shape_cast %2177 : vector<1x2x16xf32> to vector<2x16xf32>
    %2179 = vector.shape_cast %2175 : vector<2x16xf32> to vector<1x2x16xf32>
    tpu.vector_store %arg25[%2176, %c0_633, %c0_634], %2179 {strides = array<i32>} : memref<8x2x32xf32, #tpu.memory_space<vmem>>, vector<1x2x16xf32>,
    %c7_i32_635 = arith.constant 7 : i32
    %2180 = arith.subi %c7_i32_635, %c6_i32_626 : i32
    %2181 = arith.index_cast %2180 : i32 to index
    %c0_636 = arith.constant 0 : index
    %c0_637 = arith.constant 0 : index
    %2182 = vector.load %arg29[%2181, %c0_636, %c0_637] : memref<8x2x128xf32, #tpu.memory_space<vmem>>, vector<1x2x64xf32>
    %2183 = vector.shape_cast %2182 : vector<1x2x64xf32> to vector<2x64xf32>
    %cst_638 = arith.constant dense<0.000000e+00> : vector<2x64xf32>
    %2184 = tpu.matmul %2141, %1730, %cst_638 {dimension_numbers = #tpu.dot_dimension_numbers<[1], [0], [0], [1], [0, 0, 1, 1], [], []>} : vector<2x16xf32>, vector<16x64xf32>, vector<2x64xf32> -> vector<2x64xf32>
    %2185 = arith.addf %2183, %2184 : vector<2x64xf32>
    %2186 = vector.extract_strided_slice %2185 {offsets = [0, 0], sizes = [2, 16], strides = [1, 1]} : vector<2x64xf32> to vector<2x16xf32>
    %2187 = arith.negf %2186 : vector<2x16xf32>
    %2188 = math.exp %2187 : vector<2x16xf32>
    %cst_639 = arith.constant 1.000000e+00 : f32
    %2189 = vector.broadcast %cst_639 : f32 to vector<2x16xf32>
    %2190 = arith.addf %2189, %2188 : vector<2x16xf32>
    %2191 = arith.divf %2189, %2190 : vector<2x16xf32>
    %2192 = vector.extract_strided_slice %2185 {offsets = [0, 16], sizes = [2, 16], strides = [1, 1]} : vector<2x64xf32> to vector<2x16xf32>
    %2193 = arith.negf %2192 : vector<2x16xf32>
    %2194 = math.exp %2193 : vector<2x16xf32>
    %cst_640 = arith.constant 1.000000e+00 : f32
    %2195 = vector.broadcast %cst_640 : f32 to vector<2x16xf32>
    %2196 = arith.addf %2195, %2194 : vector<2x16xf32>
    %2197 = arith.divf %2195, %2196 : vector<2x16xf32>
    %2198 = vector.extract_strided_slice %2185 {offsets = [0, 32], sizes = [2, 16], strides = [1, 1]} : vector<2x64xf32> to vector<2x16xf32>
    %2199 = math.tanh %2198 : vector<2x16xf32>
    %2200 = vector.extract_strided_slice %2185 {offsets = [0, 48], sizes = [2, 16], strides = [1, 1]} : vector<2x64xf32> to vector<2x16xf32>
    %2201 = arith.negf %2200 : vector<2x16xf32>
    %2202 = math.exp %2201 : vector<2x16xf32>
    %cst_641 = arith.constant 1.000000e+00 : f32
    %2203 = vector.broadcast %cst_641 : f32 to vector<2x16xf32>
    %2204 = arith.addf %2203, %2202 : vector<2x16xf32>
    %2205 = arith.divf %2203, %2204 : vector<2x16xf32>
    %2206 = arith.mulf %2197, %2139 : vector<2x16xf32>
    %2207 = arith.mulf %2191, %2199 : vector<2x16xf32>
    %2208 = arith.addf %2206, %2207 : vector<2x16xf32>
    %2209 = math.tanh %2208 : vector<2x16xf32>
    %2210 = arith.mulf %2205, %2209 : vector<2x16xf32>
    %2211 = arith.index_cast %2180 : i32 to index
    %c0_642 = arith.constant 0 : index
    %c16_643 = arith.constant 16 : index
    %2212 = vector.load %arg25[%2211, %c0_642, %c16_643] : memref<8x2x32xf32, #tpu.memory_space<vmem>>, vector<1x2x16xf32>
    %2213 = vector.shape_cast %2212 : vector<1x2x16xf32> to vector<2x16xf32>
    %2214 = vector.shape_cast %2210 : vector<2x16xf32> to vector<1x2x16xf32>
    tpu.vector_store %arg25[%2211, %c0_642, %c16_643], %2214 {strides = array<i32>} : memref<8x2x32xf32, #tpu.memory_space<vmem>>, vector<1x2x16xf32>,
    %c7_i32_644 = arith.constant 7 : i32
    %2215 = arith.index_cast %c7_i32_644 : i32 to index
    %c0_645 = arith.constant 0 : index
    %c0_646 = arith.constant 0 : index
    %2216 = vector.load %arg28[%2215, %c0_645, %c0_646] : memref<8x2x128xf32, #tpu.memory_space<vmem>>, vector<1x2x64xf32>
    %2217 = vector.shape_cast %2216 : vector<1x2x64xf32> to vector<2x64xf32>
    %cst_647 = arith.constant dense<0.000000e+00> : vector<2x64xf32>
    %2218 = tpu.matmul %2175, %1729, %cst_647 {dimension_numbers = #tpu.dot_dimension_numbers<[1], [0], [0], [1], [0, 0, 1, 1], [], []>} : vector<2x16xf32>, vector<16x64xf32>, vector<2x64xf32> -> vector<2x64xf32>
    %2219 = arith.addf %2217, %2218 : vector<2x64xf32>
    %2220 = vector.extract_strided_slice %2219 {offsets = [0, 0], sizes = [2, 16], strides = [1, 1]} : vector<2x64xf32> to vector<2x16xf32>
    %2221 = arith.negf %2220 : vector<2x16xf32>
    %2222 = math.exp %2221 : vector<2x16xf32>
    %cst_648 = arith.constant 1.000000e+00 : f32
    %2223 = vector.broadcast %cst_648 : f32 to vector<2x16xf32>
    %2224 = arith.addf %2223, %2222 : vector<2x16xf32>
    %2225 = arith.divf %2223, %2224 : vector<2x16xf32>
    %2226 = vector.extract_strided_slice %2219 {offsets = [0, 16], sizes = [2, 16], strides = [1, 1]} : vector<2x64xf32> to vector<2x16xf32>
    %2227 = arith.negf %2226 : vector<2x16xf32>
    %2228 = math.exp %2227 : vector<2x16xf32>
    %cst_649 = arith.constant 1.000000e+00 : f32
    %2229 = vector.broadcast %cst_649 : f32 to vector<2x16xf32>
    %2230 = arith.addf %2229, %2228 : vector<2x16xf32>
    %2231 = arith.divf %2229, %2230 : vector<2x16xf32>
    %2232 = vector.extract_strided_slice %2219 {offsets = [0, 32], sizes = [2, 16], strides = [1, 1]} : vector<2x64xf32> to vector<2x16xf32>
    %2233 = math.tanh %2232 : vector<2x16xf32>
    %2234 = vector.extract_strided_slice %2219 {offsets = [0, 48], sizes = [2, 16], strides = [1, 1]} : vector<2x64xf32> to vector<2x16xf32>
    %2235 = arith.negf %2234 : vector<2x16xf32>
    %2236 = math.exp %2235 : vector<2x16xf32>
    %cst_650 = arith.constant 1.000000e+00 : f32
    %2237 = vector.broadcast %cst_650 : f32 to vector<2x16xf32>
    %2238 = arith.addf %2237, %2236 : vector<2x16xf32>
    %2239 = arith.divf %2237, %2238 : vector<2x16xf32>
    %2240 = arith.mulf %2231, %2173 : vector<2x16xf32>
    %2241 = arith.mulf %2225, %2233 : vector<2x16xf32>
    %2242 = arith.addf %2240, %2241 : vector<2x16xf32>
    %2243 = math.tanh %2242 : vector<2x16xf32>
    %2244 = arith.mulf %2239, %2243 : vector<2x16xf32>
    %2245 = arith.index_cast %c7_i32_644 : i32 to index
    %c0_651 = arith.constant 0 : index
    %c0_652 = arith.constant 0 : index
    %2246 = vector.load %arg25[%2245, %c0_651, %c0_652] : memref<8x2x32xf32, #tpu.memory_space<vmem>>, vector<1x2x16xf32>
    %2247 = vector.shape_cast %2246 : vector<1x2x16xf32> to vector<2x16xf32>
    %2248 = vector.shape_cast %2244 : vector<2x16xf32> to vector<1x2x16xf32>
    tpu.vector_store %arg25[%2245, %c0_651, %c0_652], %2248 {strides = array<i32>} : memref<8x2x32xf32, #tpu.memory_space<vmem>>, vector<1x2x16xf32>,
    %c7_i32_653 = arith.constant 7 : i32
    %2249 = arith.subi %c7_i32_653, %c7_i32_644 : i32
    %2250 = arith.index_cast %2249 : i32 to index
    %c0_654 = arith.constant 0 : index
    %c0_655 = arith.constant 0 : index
    %2251 = vector.load %arg29[%2250, %c0_654, %c0_655] : memref<8x2x128xf32, #tpu.memory_space<vmem>>, vector<1x2x64xf32>
    %2252 = vector.shape_cast %2251 : vector<1x2x64xf32> to vector<2x64xf32>
    %cst_656 = arith.constant dense<0.000000e+00> : vector<2x64xf32>
    %2253 = tpu.matmul %2210, %1730, %cst_656 {dimension_numbers = #tpu.dot_dimension_numbers<[1], [0], [0], [1], [0, 0, 1, 1], [], []>} : vector<2x16xf32>, vector<16x64xf32>, vector<2x64xf32> -> vector<2x64xf32>
    %2254 = arith.addf %2252, %2253 : vector<2x64xf32>
    %2255 = vector.extract_strided_slice %2254 {offsets = [0, 0], sizes = [2, 16], strides = [1, 1]} : vector<2x64xf32> to vector<2x16xf32>
    %2256 = arith.negf %2255 : vector<2x16xf32>
    %2257 = math.exp %2256 : vector<2x16xf32>
    %cst_657 = arith.constant 1.000000e+00 : f32
    %2258 = vector.broadcast %cst_657 : f32 to vector<2x16xf32>
    %2259 = arith.addf %2258, %2257 : vector<2x16xf32>
    %2260 = arith.divf %2258, %2259 : vector<2x16xf32>
    %2261 = vector.extract_strided_slice %2254 {offsets = [0, 16], sizes = [2, 16], strides = [1, 1]} : vector<2x64xf32> to vector<2x16xf32>
    %2262 = arith.negf %2261 : vector<2x16xf32>
    %2263 = math.exp %2262 : vector<2x16xf32>
    %cst_658 = arith.constant 1.000000e+00 : f32
    %2264 = vector.broadcast %cst_658 : f32 to vector<2x16xf32>
    %2265 = arith.addf %2264, %2263 : vector<2x16xf32>
    %2266 = arith.divf %2264, %2265 : vector<2x16xf32>
    %2267 = vector.extract_strided_slice %2254 {offsets = [0, 32], sizes = [2, 16], strides = [1, 1]} : vector<2x64xf32> to vector<2x16xf32>
    %2268 = math.tanh %2267 : vector<2x16xf32>
    %2269 = vector.extract_strided_slice %2254 {offsets = [0, 48], sizes = [2, 16], strides = [1, 1]} : vector<2x64xf32> to vector<2x16xf32>
    %2270 = arith.negf %2269 : vector<2x16xf32>
    %2271 = math.exp %2270 : vector<2x16xf32>
    %cst_659 = arith.constant 1.000000e+00 : f32
    %2272 = vector.broadcast %cst_659 : f32 to vector<2x16xf32>
    %2273 = arith.addf %2272, %2271 : vector<2x16xf32>
    %2274 = arith.divf %2272, %2273 : vector<2x16xf32>
    %2275 = arith.mulf %2266, %2208 : vector<2x16xf32>
    %2276 = arith.mulf %2260, %2268 : vector<2x16xf32>
    %2277 = arith.addf %2275, %2276 : vector<2x16xf32>
    %2278 = math.tanh %2277 : vector<2x16xf32>
    %2279 = arith.mulf %2274, %2278 : vector<2x16xf32>
    %2280 = arith.index_cast %2249 : i32 to index
    %c0_660 = arith.constant 0 : index
    %c16_661 = arith.constant 16 : index
    %2281 = vector.load %arg25[%2280, %c0_660, %c16_661] : memref<8x2x32xf32, #tpu.memory_space<vmem>>, vector<1x2x16xf32>
    %2282 = vector.shape_cast %2281 : vector<1x2x16xf32> to vector<2x16xf32>
    %2283 = vector.shape_cast %2279 : vector<2x16xf32> to vector<1x2x16xf32>
    tpu.vector_store %arg25[%2280, %c0_660, %c16_661], %2283 {strides = array<i32>} : memref<8x2x32xf32, #tpu.memory_space<vmem>>, vector<1x2x16xf32>,
    %c8_i32_662 = arith.constant 8 : i32
    return
  }
}

</mosaic_0001>

<bundles_post_ra>
// kernel: bdlstm_ae_forward.1
= control target key start
LH: loop header
LB: loop body
LE: loop exit
PB: predicated region body
PF: predicated region fallthrough
CT: control target
= control target key end

     0   :  { %s8067_s0 = inlined_call_operand.vmem [shape: f32[8,2,32], index: 0, kind: input, shape index: {}]   ;;  %s8068_s1 = inlined_call_operand.vmem [shape: f32[32,128], index: 1, kind: input, shape index: {}]   ;;  %s8069_s2 = inlined_call_operand.hbm [shape: f32[32,128], index: 2, kind: input, shape index: {}]   ;;  %s8070_s3 = inlined_call_operand.hbm [shape: f32[1,128], index: 3, kind: input, shape index: {}]   ;;  %s8071_s4 = inlined_call_operand.hbm [shape: f32[32,128], index: 4, kind: input, shape index: {}]   ;;  %s8072_s5 = inlined_call_operand.hbm [shape: f32[32,128], index: 5, kind: input, shape index: {}]   ;;  %s8073_s6 = inlined_call_operand.hbm [shape: f32[1,128], index: 6, kind: input, shape index: {}]   ;;  %s8074_s7 = inlined_call_operand.hbm [shape: f32[64,128], index: 7, kind: input, shape index: {}]   ;;  %s8075_s8 = inlined_call_operand.hbm [shape: f32[32,128], index: 8, kind: input, shape index: {}]   ;;  %s8076_s9 = inlined_call_operand.hbm [shape: f32[1,128], index: 9, kind: input, shape index: {}]   ;;  %s8077_s10 = inlined_call_operand.hbm [shape: f32[64,128], index: 10, kind: input, shape index: {}]   ;;  %s8078_s11 = inlined_call_operand.hbm [shape: f32[32,128], index: 11, kind: input, shape index: {}]   ;;  %s8079_s12 = inlined_call_operand.hbm [shape: f32[1,128], index: 12, kind: input, shape index: {}]   ;;  %s8080_s13 = inlined_call_operand.hbm [shape: f32[64,64], index: 13, kind: input, shape index: {}]   ;;  %s8081_s14 = inlined_call_operand.hbm [shape: f32[16,64], index: 14, kind: input, shape index: {}]   ;;  %s8082_s15 = inlined_call_operand.hbm [shape: f32[1,64], index: 15, kind: input, shape index: {}]   ;;  %s8083_s16 = inlined_call_operand.hbm [shape: f32[64,64], index: 16, kind: input, shape index: {}]   ;;  %s8084_s17 = inlined_call_operand.vmem [shape: f32[16,64], index: 17, kind: input, shape index: {}]   ;;  %s8085_s18 = inlined_call_operand.vmem [shape: f32[1,64], index: 18, kind: input, shape index: {}]   ;;  %s8086_s19 = inlined_call_operand.hbm [shape: f32[32,64], index: 19, kind: input, shape index: {}]   ;;  %s8087_s20 = inlined_call_operand.hbm [shape: f32[16,64], index: 20, kind: input, shape index: {}]   ;;  %s8088_s21 = inlined_call_operand.vmem [shape: f32[1,64], index: 21, kind: input, shape index: {}]   ;;  %s8089_s22 = inlined_call_operand.hbm [shape: f32[32,64], index: 22, kind: input, shape index: {}]   ;;  %s8090_s23 = inlined_call_operand.hbm [shape: f32[16,64], index: 23, kind: input, shape index: {}]   ;;  %s8091_s24 = inlined_call_operand.vmem [shape: f32[1,64], index: 24, kind: input, shape index: {}]   ;;  %s8092_s25 = inlined_call_operand.vmem [shape: f32[8,2,32], index: 25, kind: output, shape index: {}]  }
   0x1   :  { %8096 = sst [smem:[#allocation45_spill]] %s8067_s0 }
   0x2   :  { %8097 = sst [smem:[#allocation46_spill]] %s8068_s1 }
   0x3   :  { %8098 = sst [smem:[#allocation47_spill]] %s8069_s2 }
   0x4   :  { %8099 = sst [smem:[#allocation48_spill]] %s8070_s3 }
   0x5   :  { %8100 = sst [smem:[#allocation49_spill]] %s8071_s4 }
   0x6   :  { %8101 = sst [smem:[#allocation50_spill]] %s8072_s5 }
   0x7   :  { %8102 = sst [smem:[#allocation51_spill]] %s8073_s6 }
   0x8   :  { %8103 = sst [smem:[#allocation52_spill]] %s8074_s7 }
   0x9   :  { %8104 = sst [smem:[#allocation53_spill]] %s8075_s8 }
   0xa   :  { %8105 = sst [smem:[#allocation54_spill]] %s8076_s9 }
   0xb   :  { %8106 = sst [smem:[#allocation55_spill]] %s8092_s25 }
   0xc   :  { %30 = vsyncpa [#allocation7], 0 }
   0xd   :  { %31 = vsyncpa [#allocation9], 0 }
   0xe   :  { %32 = vsyncpa [#allocation12], 0 }
   0xf   :  { %33 = vsyncpa [#allocation15], 0 }
  0x10   :  { %34 = vsyncpa [#allocation18], 0 }
  0x11   :  { %35 = vsyncpa [#allocation21], 0 }
  0x12   :  { %36 = vsyncpa [#allocation24], 0 }
  0x13   :  { %37 = vsyncpa [#allocation27], 0 }
  0x14   :  { %38 = vsyncpa [#allocation30], 0  ;;  %s8107_s6 = sld [smem:[#allocation48_spill]] }
  0x1a   :  { %s62_s30 = sshll.u32 %s8107_s6, 4  ;;  %s63_s30 = int_to_ptr.hbm [resolvable:$true] %s62_s30 }
  0x1b   :  { %39 = vsyncpa [#allocation33], 0  ;;  %s6560_s7 = smov [#allocation8]   ;;  %s8108_s8 = sld [smem:[#allocation50_spill]] }
  0x1c   :  { %s64_s3 = sshll.u32 %s6560_s7, 4  ;;  %s6561_s4 = smov [#allocation11]   ;;  %s65_s3 = int_to_ptr.vmem [resolvable:$true] %s64_s3 }
  0x1d   :  { %67 = dma.hbm_to_vmem [thread:$0]  %s63_s30, 16, %s65_s3, [#allocation9]  }
  0x1e   :  { %s87_s28 = sshll.u32 %s6561_s4, 4  ;;  %s8109_s0 = sld [smem:[#allocation52_spill]]  ;;  %s88_s28 = int_to_ptr.vmem [resolvable:$true] %s87_s28 }
  0x1f   :  { %s6562_s29 = smov 128   ;;  %s6563_s2 = smov 8  }
  0x20   :  { %s8110_s7 = sld [smem:[#allocation54_spill]]  ;;  %s6564_s26 = smov [#allocation14]  }
  0x21   :  { %s85_s27 = sshll.u32 %s8108_s8, 4  ;;  %s111_s1 = sshll.u32 %s6564_s26, 4  ;;  %s86_s27 = int_to_ptr.hbm [resolvable:$true] %s85_s27  ;;  %s112_s1 = int_to_ptr.vmem [resolvable:$true] %s111_s1 }
  0x22   :  { %93 = dma.hbm_to_vmem [thread:$0]  %s86_s27, 512, %s88_s28, [#allocation12], %s6562_s29, %s6562_s29, %s6563_s2  }
  0x23   :  { %s6565_s8 = smov [#allocation17]   ;;  %s183_s6 = sshll.u32 %s8080_s13, 4  ;;  %s184_s6 = int_to_ptr.hbm [resolvable:$true] %s183_s6 }
  0x24   :  { %s109_s25 = sshll.u32 %s8109_s0, 4  ;;  %s138_s4 = sshll.u32 %s6565_s8, 4  ;;  %s110_s25 = int_to_ptr.hbm [resolvable:$true] %s109_s25  ;;  %s139_s4 = int_to_ptr.vmem [resolvable:$true] %s138_s4 }
  0x25   :  { %117 = dma.hbm_to_vmem [thread:$0]  %s110_s25, 1024, %s112_s1, [#allocation15], %s6562_s29, %s6562_s29, %s6563_s2  }
  0x26   :  { %s136_s3 = sshll.u32 %s8110_s7, 4  ;;  %s159_s0 = sshll.u32 %s8078_s11, 4  ;;  %s137_s3 = int_to_ptr.hbm [resolvable:$true] %s136_s3  ;;  %s160_s0 = int_to_ptr.hbm [resolvable:$true] %s159_s0 }
  0x27   :  { %141 = dma.hbm_to_vmem [thread:$0]  %s137_s3, 16, %s139_s4, [#allocation18]  }
  0x28   :  { %s6566_s30 = smov [#allocation20]   ;;  %s6567_s25 = smov [#allocation23]  }
  0x29   :  { %s161_s7 = sshll.u32 %s6566_s30, 4  ;;  %s185_s26 = sshll.u32 %s6567_s25, 4  ;;  %s162_s7 = int_to_ptr.vmem [resolvable:$true] %s161_s7  ;;  %s186_s26 = int_to_ptr.vmem [resolvable:$true] %s185_s26 }
  0x2a   :  { %167 = dma.hbm_to_vmem [thread:$0]  %s160_s0, 512, %s162_s7, [#allocation21], %s6562_s29, %s6562_s29, %s6563_s2  }
  0x2b   :  { %s210_s11 = sshll.u32 %s8082_s15, 4  ;;  %s237_s4 = sshll.u32 %s8086_s19, 4  ;;  %s211_s11 = int_to_ptr.hbm [resolvable:$true] %s210_s11  ;;  %s238_s4 = int_to_ptr.hbm [resolvable:$true] %s237_s4 }
  0x2c   :  { %191 = dma.hbm_to_vmem [thread:$0]  %s184_s6, 1024, %s186_s26, [#allocation24], %s6562_s29, %s6562_s29, %s6563_s2  }
  0x2d   :  { %s6568_s9 = smov [#allocation26]   ;;  %s6569_s0 = smov [#allocation29]  }
  0x2e   :  { %s212_s5 = sshll.u32 %s6568_s9, 4  ;;  %s239_s27 = sshll.u32 %s6569_s0, 4  ;;  %s213_s5 = int_to_ptr.vmem [resolvable:$true] %s212_s5  ;;  %s240_s27 = int_to_ptr.vmem [resolvable:$true] %s239_s27 }
  0x2f   :  { %215 = dma.hbm_to_vmem [thread:$0]  %s211_s11, 16, %s213_s5, [#allocation27]  }
  0x30   :  { %s265_s15 = sshll.u32 %s8089_s22, 4  ;;  %s8111_s19 = sld [smem:[#allocation47_spill]]  ;;  %s266_s15 = int_to_ptr.hbm [resolvable:$true] %s265_s15 }
  0x31   :  { %245 = dma.hbm_to_vmem [thread:$0]  %s238_s4, 512, %s240_s27, [#allocation30], %s6562_s29, %s6562_s29, %s6563_s2  }
  0x32   :  { %s6570_s26 = smov [#allocation32]   ;;  %s6571_s8 = smov [#allocation6]  }
  0x33   :  { %s267_s1 = sshll.u32 %s6570_s26, 4  ;;  %s50_s22 = sshll.u32 %s6571_s8, 4  ;;  %s268_s1 = int_to_ptr.vmem [resolvable:$true] %s267_s1  ;;  %s51_s22 = int_to_ptr.vmem [resolvable:$true] %s50_s22 }
  0x34   :  { %273 = dma.hbm_to_vmem [thread:$0]  %s266_s15, 512, %s268_s1, [#allocation33], %s6562_s29, %s6562_s29, %s6563_s2  }
  0x35   :  { %s8112_s3 = sld [smem:[#allocation49_spill]]  ;;  %s6572_s28 = smov [#allocation10]  }
  0x36   :  { %s48_s25 = sshll.u32 %s8111_s19, 4  ;;  %s8113_s0 = sld [smem:[#allocation51_spill]]  ;;  %s49_s25 = int_to_ptr.hbm [resolvable:$true] %s48_s25 }
  0x37   :  { %56 = dma.hbm_to_vmem [thread:$0]  %s49_s25, 512, %s51_s22, [#allocation7], %s6562_s29, %s6562_s29, %s6563_s2  }
  0x38   :  { %s74_s30 = sshll.u32 %s6572_s28, 4  ;;  %s6573_s15 = smov [#allocation13]   ;;  %s75_s30 = int_to_ptr.vmem [resolvable:$true] %s74_s30 }
  0x39   :  { %s101_s6 = sshll.u32 %s6573_s15, 4  ;;  %s8114_s26 = sld [smem:[#allocation53_spill]]  ;;  %s102_s6 = int_to_ptr.vmem [resolvable:$true] %s101_s6 }
  0x3a   :  { %s146_s22 = sshll.u32 %s8077_s10, 4  ;;  %s6574_s11 = smov [#allocation16]   ;;  %s147_s22 = int_to_ptr.hbm [resolvable:$true] %s146_s22 }
  0x3b   :  { %s72_s9 = sshll.u32 %s8112_s3, 4  ;;  %s124_s13 = sshll.u32 %s6574_s11, 4  ;;  %s73_s9 = int_to_ptr.hbm [resolvable:$true] %s72_s9  ;;  %s125_s13 = int_to_ptr.vmem [resolvable:$true] %s124_s13 }
  0x3c   :  { %s99_s27 = sshll.u32 %s8113_s0, 4  ;;  %s6575_s3 = smov [#allocation19]   ;;  %s100_s27 = int_to_ptr.hbm [resolvable:$true] %s99_s27 }
  0x3d   :  { %80 = dma.hbm_to_vmem [thread:$0]  %s73_s9, 512, %s75_s30, [#allocation9], %s6562_s29, %s6562_s29, %s6563_s2  }
  0x3e   :  { %104 = dma.hbm_to_vmem [thread:$0]  %s100_s27, 16, %s102_s6, [#allocation12]  }
  0x3f   :  { %s122_s1 = sshll.u32 %s8114_s26, 4  ;;  %s148_s9 = sshll.u32 %s6575_s3, 4  ;;  %s123_s1 = int_to_ptr.hbm [resolvable:$true] %s122_s1  ;;  %s149_s9 = int_to_ptr.vmem [resolvable:$true] %s148_s9 }
  0x40   :  { %130 = dma.hbm_to_vmem [thread:$0]  %s123_s1, 512, %s125_s13, [#allocation15], %s6562_s29, %s6562_s29, %s6563_s2  }
  0x41   :  { %s173_s0 = sshll.u32 %s8079_s12, 4  ;;  %s196_s28 = sshll.u32 %s8081_s14, 4  ;;  %s174_s0 = int_to_ptr.hbm [resolvable:$true] %s173_s0  ;;  %s197_s28 = int_to_ptr.hbm [resolvable:$true] %s196_s28 }
  0x42   :  { %154 = dma.hbm_to_vmem [thread:$0]  %s147_s22, 1024, %s149_s9, [#allocation18], %s6562_s29, %s6562_s29, %s6563_s2  }
  0x43   :  { %s6576_s30 = smov [#allocation22]   ;;  %s6577_s6 = smov [#allocation25]  }
  0x44   :  { %s175_s15 = sshll.u32 %s6576_s30, 4  ;;  %s198_s7 = sshll.u32 %s6577_s6, 4  ;;  %s176_s15 = int_to_ptr.vmem [resolvable:$true] %s175_s15  ;;  %s199_s7 = int_to_ptr.vmem [resolvable:$true] %s198_s7 }
  0x45   :  { %178 = dma.hbm_to_vmem [thread:$0]  %s174_s0, 16, %s176_s15, [#allocation21]  }
  0x46   :  { %s220_s12 = sshll.u32 %s8083_s16, 4  ;;  %s250_s14 = sshll.u32 %s8087_s20, 4  ;;  %s221_s12 = int_to_ptr.hbm [resolvable:$true] %s220_s12  ;;  %s251_s14 = int_to_ptr.hbm [resolvable:$true] %s250_s14 }
  0x47   :  { %204 = dma.hbm_to_vmem [thread:$0]  %s197_s28, 256, %s199_s7, [#allocation24], %s6562_s29, %s6562_s29, %s6563_s2  }
  0x48   :  { %s6578_s8 = smov [#allocation28]   ;;  %s6579_s11 = smov [#allocation31]  }
  0x49   :  { %s222_s22 = sshll.u32 %s6578_s8, 4  ;;  %s252_s16 = sshll.u32 %s6579_s11, 4  ;;  %s223_s22 = int_to_ptr.vmem [resolvable:$true] %s222_s22  ;;  %s253_s16 = int_to_ptr.vmem [resolvable:$true] %s252_s16 }
  0x4a   :  { %228 = dma.hbm_to_vmem [thread:$0]  %s221_s12, 1024, %s223_s22, [#allocation27], %s6562_s29, %s6562_s29, %s6563_s2  }
  0x4b   :  { %s278_s9 = sshll.u32 %s8090_s23, 4  ;;  %s6580_s20 = smov [#allocation34]   ;;  %s279_s9 = int_to_ptr.hbm [resolvable:$true] %s278_s9 }
  0x4c   :  { %258 = dma.hbm_to_vmem [thread:$0]  %s251_s14, 256, %s253_s16, [#allocation30], %s6562_s29, %s6562_s29, %s6563_s2  }
  0x4d   :  { %s280_s4 = sshll.u32 %s6580_s20, 4  ;;  %s281_s4 = int_to_ptr.vmem [resolvable:$true] %s280_s4 }
  0x4e   :  { %286 = dma.hbm_to_vmem [thread:$0]  %s279_s9, 256, %s281_s4, [#allocation33], %s6562_s29, %s6562_s29, %s6563_s2  }
  0x4f   :  { %6540 = dma.done.wait [#allocation7], 512  }
  0x50   :  { %6541 = vsyncadd [#allocation7], 4294966784 }
  0x51   :  { %6542 = dma.done.wait [#allocation9], 528  }
  0x52   :  { %6543 = vsyncadd [#allocation9], 4294966768 }
  0x53   :  { %6544 = dma.done.wait [#allocation12], 528  }
  0x54   :  { %6545 = vsyncadd [#allocation12], 4294966768 }
  0x55   :  { %6546 = dma.done.wait [#allocation15], 1536  }
  0x56   :  { %6547 = vsyncadd [#allocation15], 4294965760 }
  0x57   :  { %6548 = dma.done.wait [#allocation18], 1040  }
  0x58   :  { %6549 = vsyncadd [#allocation18], 4294966256 }
  0x59   :  { %6550 = dma.done.wait [#allocation21], 528  }
  0x5a   :  { %6551 = vsyncadd [#allocation21], 4294966768 }
  0x5b   :  { %6552 = dma.done.wait [#allocation24], 1280  }
  0x5c   :  { %6553 = vsyncadd [#allocation24], 4294966016 }
  0x5d   :  { %6554 = dma.done.wait [#allocation27], 1040  }
  0x5e   :  { %6555 = vsyncadd [#allocation27], 4294966256 }
  0x5f   :  { %6556 = dma.done.wait [#allocation30], 768  }
  0x60   :  { %6557 = vsyncadd [#allocation30], 4294966528 }
  0x61   :  { %6558 = dma.done.wait [#allocation33], 768  }
  0x62   :  { %6559 = vsyncadd [#allocation33], 4294966528  ;;  %v437_v0 = vld [vmem:[#allocation10 + $0x18] sm:$0xff]  ;;  %v436_v1 = vld [vmem:[#allocation10 + $0x10] sm:$0xff]  ;;  %s8115_s2 = sld [smem:[#allocation46_spill]]  ;;  %v6581_v24 = vmov 0.0  }
  0x63   :  { %475 = vmatpush.msra.mxu1 %v437_v0  ;;  %v435_v2 = vld [vmem:[#allocation10 + $0x8] sm:$0xff]  ;;  %s8116_s28 = sld [smem:[#allocation45_spill]]  ;;  %v6837_v10 = vld [vmem:[#allocation6 + $0x18] sm:$0xff]  ;;  %v434_v11 = vld [vmem:[#allocation10] sm:$0xff]  ;;  %vm406_vm0 = vcmask 261120   ;;  %s6582_s4 = smov 64  }
  0x64   :  { %554 = vmatpush.msra.mxu2 %v6837_v10  ;;  %v6843_v13 = vld [vmem:[#allocation6 + $0x10] sm:$0xff]  ;;  %v6845_v14 = vld [vmem:[#allocation6 + $0x8] sm:$0xff]  ;;  %v6847_v15 = vld [vmem:[#allocation11 + $0x18] sm:$0xff]  ;;  %s6583_s23 = smov 32   ;;  %vm604_vm9 = vcmask 254976   ;;  %s6585_s27 = smov 16  }
  0x65   :  { %476 = vmatpush.msra.mxu1 %v436_v1  ;;  %620 = vmatpush.msra.mxu3 %v6847_v15  ;;  %v6863_v20 = vld [vmem:[#allocation6] sm:$0xff]  ;;  %v6865_v21 = vld [vmem:[#allocation11 + $0x10] sm:$0xff]  ;;  %v6868_v22 = vld [vmem:[#allocation11 + $0x8] sm:$0xff]  ;;  %s8117_s19 = sld [smem:[#allocation55_spill]] }
  0x66   :  { %555 = vmatpush.msra.mxu2 %v6843_v13  ;;  %v6871_v23 = vld [vmem:[#allocation11] sm:$0xff]  ;;  %v6914_v29 = vld [vmem:[#allocation8] ss:$0 sm:$0xff] }
  0x67   :  { %477 = vmatpush.msra.mxu1 %v435_v2  ;;  %621 = vmatpush.msra.mxu3 %v6865_v21  ;;  %v5564_v35 = vld [vmem:[#allocation13] ss:$0 sm:$0xff] }
  0x68   :  { %v376_v3 = vld [vmem:[%s8115_s2 + $0x18] sm:$0xff]  ;;  %v375_v4 = vld [vmem:[%s8115_s2 + $0x10] sm:$0xff]  ;;  %v374_v9 = vld [vmem:[%s8115_s2 + $0x8] sm:$0xff]  ;;  %556 = vmatpush.msra.mxu2 %v6845_v14 }
  0x69   :  { %423 = vmatpush.msra.mxu0 %v376_v3  ;;  %v365_v5 = vld [vmem:[%s8116_s28] sm:$0x3]  ;;  %v366_v6 = vld [vmem:[%s8116_s28 + $0x2] sm:$0x3]  ;;  %v367_v7 = vld [vmem:[%s8116_s28 + $0x4] sm:$0x3]  ;;  %478 = vmatpush.msra.mxu1 %v434_v11 }
  0x6a   :  { %v368_v8 = vld [vmem:[%s8116_s28 + $0x6] sm:$0x3]  ;;  %389 = vst [vmem:[#allocation1] ss:$4 sm:$0xff] %v365_v5  ;;  %v369_v16 = vld [vmem:[%s8116_s28 + $0x8] sm:$0x3]  ;;  %557 = vmatpush.msra.mxu2 %v6863_v20  ;;  %622 = vmatpush.msra.mxu3 %v6868_v22 }
  0x6b   :  { %424 = vmatpush.msra.mxu0 %v375_v4  ;;  %391 = vst [vmem:[#allocation1 + $0x1] ss:$4 sm:$0xff] %v366_v6  ;;  %v373_v12 = vld [vmem:[%s8115_s2] sm:$0xff]  ;;  %v370_v17 = vld [vmem:[%s8116_s28 + $0xa] sm:$0x3]  ;;  %897 = vmatpush.msrb.mxu1 %v6847_v15 }
  0x6c   :  { %393 = vst [vmem:[#allocation1 + $0x2] ss:$4 sm:$0xff] %v367_v7  ;;  %v371_v18 = vld [vmem:[%s8116_s28 + $0xc] sm:$0x3]  ;;  %v372_v19 = vld [vmem:[%s8116_s28 + $0xe] sm:$0x3]  ;;  %558 = vmatmul.f32.vlgmr.msra.gmra.mxu2 %v6581_v24  ;;  %623 = vmatpush.msra.mxu3 %v6871_v23 }
  0x6d   :  { %395 = vst [vmem:[#allocation1 + $0x3] ss:$4 sm:$0xff] %v368_v8  ;;  %425 = vmatpush.msra.mxu0 %v374_v9  ;;  %689 = vmatpush.msrb.mxu2 %v6837_v10  ;;  %s6586_s28 = smov 80  }
  0x6e   :  { %397 = vst [vmem:[#allocation1 + $0x20] ss:$4 sm:$0xff] %v369_v16  ;;  %898 = vmatpush.msrb.mxu1 %v6865_v21  ;;  %624 = vmatmul.f32.vlgmr.msra.gmra.mxu3 %v6581_v24 }
  0x6f   :  { %426 = vmatpush.msra.mxu0 %v373_v12  ;;  %399 = vst [vmem:[#allocation1 + $0x21] ss:$4 sm:$0xff] %v370_v17  ;;  %759 = vmatpush.msrb.mxu3 %v6847_v15 }
  0x70   :  { %401 = vst [vmem:[#allocation1 + $0x22] ss:$4 sm:$0xff] %v371_v18  ;;  %690 = vmatpush.msrb.mxu2 %v6843_v13  ;;  %899 = vmatpush.msrb.mxu1 %v6868_v22 }
  0x71   :  { %403 = vst [vmem:[#allocation1 + $0x23] ss:$4 sm:$0xff] %v372_v19  ;;  %827 = vmatpush.msrb.mxu0 %v6837_v10  ;;  %760 = vmatpush.msrb.mxu3 %v6865_v21 }
  0x72   :  { %691 = vmatpush.msrb.mxu2 %v6845_v14  ;;  %900 = vmatpush.msrb.mxu1 %v6871_v23 }
  0x73   :  { %828 = vmatpush.msrb.mxu0 %v6843_v13  ;;  %761 = vmatpush.msrb.mxu3 %v6868_v22 }
  0x74   :  { %v404_v25 = vld.sshfl [vmem:[#allocation1] sm:$0xff pattern:$0x73625140]  ;;  %692 = vmatpush.msrb.mxu2 %v6863_v20 }
  0x75   :  { %442 = vst [vmem:[#allocation1] ss:$4 sm:$0xff] %v365_v5  ;;  %5387 = vmatmul.msk.f32.vlgmr.msra.gmra.mxu0 %vm406_vm0, %v404_v25  ;;  %762 = vmatpush.msrb.mxu3 %v6871_v23 }
  0x76   :  { %444 = vst [vmem:[#allocation1 + $0x1] ss:$4 sm:$0xff] %v366_v6  ;;  %829 = vmatpush.msrb.mxu0 %v6845_v14  ;;  %965 = vmatpush.msra.mxu2 %v6837_v10 }
  0x77   :  { %446 = vst [vmem:[#allocation1 + $0x2] ss:$4 sm:$0xff] %v367_v7  ;;  %1035 = vmatpush.msra.mxu3 %v6847_v15 }
  0x78   :  { %448 = vst [vmem:[#allocation1 + $0x3] ss:$4 sm:$0xff] %v368_v8  ;;  %v405_v26 = vld.sshfl [vmem:[#allocation1 + $0x20] sm:$0xff pattern:$0x73625140]  ;;  %830 = vmatpush.msrb.mxu0 %v6863_v20  ;;  %966 = vmatpush.msra.mxu2 %v6843_v13 }
  0x79   :  { %450 = vst [vmem:[#allocation1 + $0x20] ss:$4 sm:$0xff] %v369_v16  ;;  %1036 = vmatpush.msra.mxu3 %v6865_v21 }
  0x7a   :  { %452 = vst [vmem:[#allocation1 + $0x21] ss:$4 sm:$0xff] %v370_v17  ;;  %1103 = vmatpush.msra.mxu0 %v6837_v10  ;;  %967 = vmatpush.msra.mxu2 %v6845_v14 }
  0x7b   :  { %454 = vst [vmem:[#allocation1 + $0x22] ss:$4 sm:$0xff] %v371_v18  ;;  %1037 = vmatpush.msra.mxu3 %v6868_v22 }
  0x7c   :  { %456 = vst [vmem:[#allocation1 + $0x23] ss:$4 sm:$0xff] %v372_v19  ;;  %1104 = vmatpush.msra.mxu0 %v6843_v13  ;;  %968 = vmatpush.msra.mxu2 %v6863_v20 }
  0x7d   :  { %5388 = vmatmul.msk.f32.gmra.mxu0 %vm406_vm0, %v405_v26  ;;  %1038 = vmatpush.msra.mxu3 %v6871_v23 }
  0x7e   :  { %1105 = vmatpush.msra.mxu0 %v6845_v14 }
  0x7f   :  { %v457_v27 = vld.sshfl [vmem:[#allocation1] sm:$0xff pattern:$0x73625140] }
  0x80   :  { %5389 = vmatmul.msk.f32.vlgmr.msra.gmra.mxu1 %vm406_vm0, %v457_v27  ;;  %1106 = vmatpush.msra.mxu0 %v6863_v20 }
  0x81   :  { %1172 = vmatpush.msra.mxu1 %v6847_v15 }
  0x83   :  { %1173 = vmatpush.msra.mxu1 %v6865_v21  ;;  %v458_v28 = vld.sshfl [vmem:[#allocation1 + $0x20] sm:$0xff pattern:$0x73625140] }
  0x85   :  { %1174 = vmatpush.msra.mxu1 %v6868_v22 }
  0x87   :  { %1175 = vmatpush.msra.mxu1 %v6871_v23 }
  0x88   :  { %5390 = vmatmul.msk.f32.gmra.mxu1 %vm406_vm0, %v458_v28 }
  0xef   :  { %v559_v50 = vpop.f32.mrf.mxu2 }
  0xf1   :  { %v625_v46 = vpop.f32.mrf.mxu3 }
  0xf2   :  { %v428_v30 = vpop.f32.mrf.mxu0 }
  0xf3   :  { %v429_v31 = vadd.f32 %v6914_v29, %v428_v30 }
  0xf5   :  { %v488_v32 = vrot.slane %v429_v31, 2  ;;  %v489_v33 = vrot.slane %v429_v31, 4  ;;  %v490_v34 = vrot.slane %v429_v31, 6  ;;  %500 = vst [vmem:[#allocation4] sm:$0x3] %v429_v31 }
  0xf7   :  { %501 = vst [vmem:[#allocation4 + $0x2] sm:$0x3] %v488_v32 }
  0xf8   :  { %502 = vst [vmem:[#allocation4 + $0x4] sm:$0x3] %v489_v33 }
  0xf9   :  { %503 = vst [vmem:[#allocation4 + $0x6] sm:$0x3] %v490_v34 }
  0xfc   :  { %v538_v49 = vld [vmem:[#allocation4] sm:$0x3] }
  0xfd   :  { %v480_v36 = vpop.f32.mrf.mxu1  ;;  %v562_v51 = vadd.f32 %v559_v50, %v538_v49 }
  0xfe   :  { %v481_v37 = vadd.f32 %v5564_v35, %v480_v36 }
  0xff   :  { %v5391_v55 = vmul.f32 -1.442695, %v562_v51 }
 0x100   :  { %v510_v38 = vrot.slane %v481_v37, 2  ;;  %v511_v39 = vrot.slane %v481_v37, 4  ;;  %v512_v40 = vrot.slane %v481_v37, 6  ;;  %522 = vst [vmem:[#allocation5] sm:$0x3] %v481_v37 }
 0x102   :  { %523 = vst [vmem:[#allocation5 + $0x2] sm:$0x3] %v510_v38 }
 0x103   :  { %524 = vst [vmem:[#allocation5 + $0x4] sm:$0x3] %v511_v39 }
 0x104   :  { %525 = vst [vmem:[#allocation5 + $0x6] sm:$0x3] %v512_v40 }
 0x105   :  { %v483_v41 = vpop.f32.mrf.mxu1 }
 0x106   :  { %v484_v42 = vadd.f32 %v5564_v35, %v483_v41 }
 0x108   :  { %v513_v43 = vrot.slane %v484_v42, 2  ;;  %v514_v44 = vrot.slane %v484_v42, 4  ;;  %v515_v45 = vrot.slane %v484_v42, 6  ;;  %526 = vst [vmem:[#allocation5 + $0x8] sm:$0x3] %v484_v42 }
 0x10a   :  { %527 = vst [vmem:[#allocation5 + $0xa] sm:$0x3] %v513_v43 }
 0x10b   :  { %528 = vst [vmem:[#allocation5 + $0xc] sm:$0x3] %v514_v44 }
 0x10c   :  { %529 = vst [vmem:[#allocation5 + $0xe] sm:$0x3] %v515_v45 }
 0x112   :  { %v742_v44 = vld [vmem:[#allocation5 + $0xc] sm:$0x3] }
 0x113   :  { %v607_v47 = vld [vmem:[#allocation5 + $0xe] sm:$0x3] }
 0x114   :  { %v628_v48 = vadd.f32 %v625_v46, %v607_v47  ;;  %v674_v47 = vld [vmem:[#allocation4 + $0x2] sm:$0x3] }
 0x116   :  { %5572 = vtanh.f32 %v628_v48  ;;  %v5392_v54 = vmul.f32 -1.442695, %v628_v48 }
 0x117   :  { %5574 = vtanh.f32 %v562_v51 }
 0x118   :  { %5576 = vpow2.f32 %v5392_v54 }
 0x119   :  { %5578 = vpow2.f32 %v5391_v55 }
 0x11c   :  { %v5573_v52 = vpop.eup %5572 }
 0x11d   :  { %651 = vrot.lane.b32.xlu0 %v5573_v52, %s6582_s4  ;;  %v5575_v53 = vpop.eup %5574 }
 0x11e   :  { %v5577_v56 = vpop.eup %5576 }
 0x11f   :  { %v632_v57 = vadd.f32 1.0, %v5577_v56  ;;  %v5579_v58 = vpop.eup %5578 }
 0x120   :  { %v566_v59 = vadd.f32 1.0, %v5579_v58 }
 0x121   :  { %5580 = vrcp.f32 %v632_v57  ;;  %v644_v4 = vand.u32 2147483648, %v632_v57  ;;  %vm638_vm2 = vweird.f32 %v632_v57  ;;  %v642_v5 = vand.u32 2147483647, %v632_v57 }
 0x122   :  { %5582 = vrcp.f32 %v566_v59  ;;  %vm572_vm5 = vweird.f32 %v566_v59  ;;  %v578_v12 = vand.u32 2147483648, %v566_v59  ;;  %v576_v18 = vand.u32 2147483647, %v566_v59 }
 0x123   :  { %v645_v8 = vor.u32 1.1754944e-38, %v644_v4  ;;  %vm643_vm4 = vcmp.eq.f32.partialorder %v642_v5, 8.507059e+37 }
 0x124   :  { %v579_v19 = vor.u32 1.1754944e-38, %v578_v12  ;;  %vm577_vm8 = vcmp.eq.f32.partialorder %v576_v18, 8.507059e+37 }
 0x125   :  { %585 = vrot.lane.b32.xlu0 %v5575_v53, %s6582_s4 }
 0x127   :  { %v5581_v60 = vpop.eup %5580 }
 0x128   :  { %v634_v61 = vmul.f32 %v5581_v60, %v632_v57  ;;  %v5583_v63 = vpop.eup %5582  ;;  %vm639_vm1 = vweird.f32 %v5581_v60 }
 0x129   :  { %v568_v1 = vmul.f32 %v5583_v63, %v566_v59  ;;  %vm640_vm3 = vmor %vm638_vm2, %vm639_vm1  ;;  %vm573_vm6 = vweird.f32 %v5583_v63 }
 0x12a   :  { %v635_v62 = vsub.f32 1.0, %v634_v61  ;;  %vm574_vm7 = vmor %vm572_vm5, %vm573_vm6 }
 0x12b   :  { %v569_v3 = vsub.f32 1.0, %v568_v1 }
 0x12c   :  { %v636_v0 = vmul.f32 %v5581_v60, %v635_v62 }
 0x12d   :  { %v570_v7 = vmul.f32 %v5583_v63, %v569_v3 }
 0x12e   :  { %v637_v2 = vadd.f32 %v5581_v60, %v636_v0 }
 0x12f   :  { %v571_v17 = vadd.f32 %v5583_v63, %v570_v7 }
 0x130   :  { %v641_v6 = vsel %vm640_vm3, %v5581_v60, %v637_v2 }
 0x131   :  { %v646_v11 = vsel %vm643_vm4, %v645_v8, %v641_v6  ;;  %v575_v25 = vsel %vm574_vm7, %v5583_v63, %v571_v17 }
 0x132   :  { %v580_v27 = vsel %vm577_vm8, %v579_v19, %v575_v25  ;;  %v649_v30 = vmul.f32 0.0, %v646_v11 }
 0x133   :  { %v583_v33 = vmul.f32 0.0, %v580_v27 }
 0x18f   :  { %v652_v9 = vpop.permute.xlu0 %651 }
 0x190   :  { %v654_v16 = vmul.f32 %v652_v9, %v646_v11 }
 0x192   :  { %656 = vrot.lane.b32.xlu1 %v654_v16, %s6583_s23 }
 0x197   :  { %v586_v26 = vpop.permute.xlu0 %585 }
 0x198   :  { %v588_v28 = vmul.f32 %v586_v26, %v580_v27 }
 0x19a   :  { %590 = vrot.lane.b32.xlu1 %v588_v28, %s6583_s23 }
 0x204   :  { %v657_v31 = vpop.permute.xlu1 %656 }
 0x205   :  { %v6921_v32 = vadd.f32 %v657_v31, %v649_v30 }
 0x207   :  { %5584 = vtanh.f32 %v6921_v32 }
 0x20c   :  { %v591_v34 = vpop.permute.xlu1 %590 }
 0x20d   :  { %v5585_v35 = vpop.eup %5584  ;;  %v6924_v36 = vadd.f32 %v591_v34, %v583_v33 }
 0x20e   :  { %662 = vrot.lane.b32.xlu2 %v5585_v35, %s6582_s4 }
 0x20f   :  { %5586 = vtanh.f32 %v6924_v36 }
 0x215   :  { %v5587_v37 = vpop.eup %5586 }
 0x216   :  { %596 = vrot.lane.b32.xlu2 %v5587_v37, %s6582_s4 }
 0x268   :  { %v663_v38 = vpop.permute.xlu2 %662 }
 0x269   :  { %v6929_v39 = vmul.f32 %v663_v38, %v646_v11 }
 0x26b   :  { %743 = vrot.lane.b32.xlu0 %v6929_v39, %s6583_s23 }
 0x270   :  { %v597_v40 = vpop.permute.xlu2 %596 }
 0x271   :  { %v599_v41 = vmul.f32 %v597_v40, %v580_v27 }
 0x273   :  { %601 = vrot.lane.b32.xlu1 %v599_v41, %s6583_s23 }
 0x2dd   :  { %v744_v42 = vpop.permute.xlu0 %743 }
 0x2de   :  { %5395 = vmatmul.msk.f32.vlgmr.msrb.gmra.mxu3 %vm406_vm0, %v744_v42 }
 0x2df   :  { %1308 = vmatpush.msrb.mxu3 %v6847_v15 }
 0x2e1   :  { %1309 = vmatpush.msrb.mxu3 %v6865_v21 }
 0x2e3   :  { %1310 = vmatpush.msrb.mxu3 %v6868_v22 }
 0x2e5   :  { %v602_v43 = vpop.permute.xlu1 %601  ;;  %1311 = vmatpush.msrb.mxu3 %v6871_v23 }
 0x2e6   :  { %605 = vst.msk [vmem:[#allocation2] sm:$0x3] %vm604_vm9, %v602_v43  ;;  %5393 = vmatmul.msk.f32.vlgmr.msrb.gmra.mxu2 %vm406_vm0, %v602_v43  ;;  %v431_v43 = vpop.f32.mrf.mxu0 }
 0x2e7   :  { %1239 = vmatpush.msrb.mxu2 %v6837_v10 }
 0x2e9   :  { %1240 = vmatpush.msrb.mxu2 %v6843_v13 }
 0x2eb   :  { %1241 = vmatpush.msrb.mxu2 %v6845_v14 }
 0x2ed   :  { %1242 = vmatpush.msrb.mxu2 %v6863_v20 }
 0x361   :  { %v764_v45 = vpop.f32.mrf.mxu3 }
 0x362   :  { %v767_v46 = vadd.f32 %v764_v45, %v742_v44  ;;  %v432_v44 = vadd.f32 %v6914_v29, %v431_v43 }
 0x364   :  { %5588 = vtanh.f32 %v767_v46  ;;  %v5396_v52 = vmul.f32 -1.442695, %v767_v46  ;;  %v491_v45 = vrot.slane %v432_v44, 2  ;;  %v492_v46 = vrot.slane %v432_v44, 4  ;;  %504 = vst [vmem:[#allocation4 + $0x8] sm:$0x3] %v432_v44 }
 0x366   :  { %505 = vst [vmem:[#allocation4 + $0xa] sm:$0x3] %v491_v45 }
 0x367   :  { %506 = vst [vmem:[#allocation4 + $0xc] sm:$0x3] %v492_v46 }
 0x369   :  { %v694_v48 = vpop.f32.mrf.mxu2 }
 0x36a   :  { %v5589_v49 = vpop.eup %5588  ;;  %v697_v50 = vadd.f32 %v694_v48, %v674_v47  ;;  %v493_v47 = vrot.slane %v432_v44, 6  ;;  %v880_v48 = vld [vmem:[#allocation5 + $0xa] sm:$0x3] }
 0x36b   :  { %790 = vrot.lane.b32.xlu2 %v5589_v49, %s6582_s4 }
 0x36c   :  { %5590 = vtanh.f32 %v697_v50  ;;  %v5394_v58 = vmul.f32 -1.442695, %v697_v50  ;;  %507 = vst [vmem:[#allocation4 + $0xe] sm:$0x3] %v493_v47 }
 0x36d   :  { %5592 = vpow2.f32 %v5396_v52  ;;  %v812_v52 = vld [vmem:[#allocation4 + $0x4] sm:$0x3] }
 0x372   :  { %v5591_v51 = vpop.eup %5590 }
 0x373   :  { %720 = vrot.lane.b32.xlu0 %v5591_v51, %s6582_s4  ;;  %v5593_v53 = vpop.eup %5592 }
 0x374   :  { %v771_v54 = vadd.f32 1.0, %v5593_v53 }
 0x376   :  { %5594 = vrcp.f32 %v771_v54  ;;  %v783_v61 = vand.u32 2147483648, %v771_v54  ;;  %vm777_vm11 = vweird.f32 %v771_v54  ;;  %v781_v62 = vand.u32 2147483647, %v771_v54 }
 0x377   :  { %5596 = vpow2.f32 %v5394_v58 }
 0x378   :  { %v784_v1 = vor.u32 1.1754944e-38, %v783_v61  ;;  %vm782_vm13 = vcmp.eq.f32.partialorder %v781_v62, 8.507059e+37 }
 0x37c   :  { %v5595_v55 = vpop.eup %5594 }
 0x37d   :  { %v773_v56 = vmul.f32 %v5595_v55, %v771_v54  ;;  %vm778_vm10 = vweird.f32 %v5595_v55  ;;  %v5597_v63 = vpop.eup %5596 }
 0x37e   :  { %vm779_vm12 = vmor %vm777_vm11, %vm778_vm10  ;;  %v701_v2 = vadd.f32 1.0, %v5597_v63 }
 0x37f   :  { %v774_v57 = vsub.f32 1.0, %v773_v56 }
 0x380   :  { %5598 = vrcp.f32 %v701_v2  ;;  %v713_v12 = vand.u32 2147483648, %v701_v2  ;;  %vm707_vm15 = vweird.f32 %v701_v2  ;;  %v711_v16 = vand.u32 2147483647, %v701_v2 }
 0x381   :  { %v775_v59 = vmul.f32 %v5595_v55, %v774_v57 }
 0x382   :  { %v714_v18 = vor.u32 1.1754944e-38, %v713_v12  ;;  %vm712_vm2 = vcmp.eq.f32.partialorder %v711_v16, 8.507059e+37 }
 0x383   :  { %v776_v60 = vadd.f32 %v5595_v55, %v775_v59 }
 0x385   :  { %v780_v0 = vsel %vm779_vm12, %v5595_v55, %v776_v60 }
 0x386   :  { %v785_v3 = vsel %vm782_vm13, %v784_v1, %v780_v0  ;;  %v5599_v6 = vpop.eup %5598 }
 0x387   :  { %v703_v7 = vmul.f32 %v5599_v6, %v701_v2  ;;  %vm708_vm14 = vweird.f32 %v5599_v6  ;;  %v788_v27 = vmul.f32 %v785_v3, %v6921_v32 }
 0x388   :  { %vm709_vm1 = vmor %vm707_vm15, %vm708_vm14 }
 0x389   :  { %v704_v8 = vsub.f32 1.0, %v703_v7 }
 0x38b   :  { %v705_v9 = vmul.f32 %v5599_v6, %v704_v8 }
 0x38d   :  { %v706_v11 = vadd.f32 %v5599_v6, %v705_v9 }
 0x38f   :  { %v710_v17 = vsel %vm709_vm1, %v5599_v6, %v706_v11 }
 0x390   :  { %v715_v25 = vsel %vm712_vm2, %v714_v18, %v710_v17 }
 0x391   :  { %v718_v31 = vmul.f32 %v715_v25, %v6924_v36 }
 0x3c5   :  { %v791_v4 = vpop.permute.xlu2 %790 }
 0x3c6   :  { %v793_v5 = vmul.f32 %v791_v4, %v785_v3 }
 0x3c8   :  { %795 = vrot.lane.b32.xlu1 %v793_v5, %s6583_s23 }
 0x3e5   :  { %v721_v19 = vpop.permute.xlu0 %720 }
 0x3e6   :  { %v723_v26 = vmul.f32 %v721_v19, %v715_v25 }
 0x3e8   :  { %725 = vrot.lane.b32.xlu2 %v723_v26, %s6583_s23 }
 0x43a   :  { %v796_v28 = vpop.permute.xlu1 %795 }
 0x43b   :  { %v6950_v30 = vadd.f32 %v796_v28, %v788_v27 }
 0x43d   :  { %5600 = vtanh.f32 %v6950_v30 }
 0x442   :  { %v726_v33 = vpop.permute.xlu2 %725 }
 0x443   :  { %v5601_v34 = vpop.eup %5600  ;;  %v6954_v35 = vadd.f32 %v726_v33, %v718_v31 }
 0x444   :  { %801 = vrot.lane.b32.xlu0 %v5601_v34, %s6582_s4 }
 0x445   :  { %5602 = vtanh.f32 %v6954_v35 }
 0x44b   :  { %v5603_v37 = vpop.eup %5602 }
 0x44c   :  { %731 = vrot.lane.b32.xlu1 %v5603_v37, %s6582_s4 }
 0x4b6   :  { %v802_v38 = vpop.permute.xlu0 %801 }
 0x4b7   :  { %v6959_v32 = vmul.f32 %v802_v38, %v785_v3 }
 0x4b9   :  { %881 = vrot.lane.b32.xlu2 %v6959_v32, %s6583_s23 }
 0x4be   :  { %v732_v40 = vpop.permute.xlu1 %731 }
 0x4bf   :  { %v734_v41 = vmul.f32 %v732_v40, %v715_v25 }
 0x4c1   :  { %736 = vrot.lane.b32.xlu0 %v734_v41, %s6583_s23 }
 0x513   :  { %v882_v36 = vpop.permute.xlu2 %881 }
 0x514   :  { %5399 = vmatmul.msk.f32.vlgmr.msrb.gmra.mxu1 %vm406_vm0, %v882_v36 }
 0x515   :  { %1444 = vmatpush.msrb.mxu1 %v6847_v15 }
 0x517   :  { %1445 = vmatpush.msrb.mxu1 %v6865_v21 }
 0x519   :  { %1446 = vmatpush.msrb.mxu1 %v6868_v22 }
 0x51b   :  { %1447 = vmatpush.msrb.mxu1 %v6871_v23 }
 0x533   :  { %v737_v42 = vpop.permute.xlu0 %736 }
 0x534   :  { %740 = vst.msk [vmem:[#allocation2 + $0x2] sm:$0x3] %vm604_vm9, %v737_v42  ;;  %5397 = vmatmul.msk.f32.vlgmr.msrb.gmra.mxu0 %vm406_vm0, %v737_v42 }
 0x535   :  { %1375 = vmatpush.msrb.mxu0 %v6837_v10 }
 0x537   :  { %1376 = vmatpush.msrb.mxu0 %v6843_v13 }
 0x539   :  { %1377 = vmatpush.msrb.mxu0 %v6845_v14 }
 0x53b   :  { %1378 = vmatpush.msrb.mxu0 %v6863_v20 }
 0x591   :  { %v902_v49 = vpop.f32.mrf.mxu1 }
 0x592   :  { %v905_v50 = vadd.f32 %v902_v49, %v880_v48 }
 0x594   :  { %5604 = vtanh.f32 %v905_v50  ;;  %v5400_v29 = vmul.f32 -1.442695, %v905_v50 }
 0x59a   :  { %v5605_v51 = vpop.eup %5604 }
 0x59b   :  { %928 = vrot.lane.b32.xlu1 %v5605_v51, %s6582_s4 }
 0x5b1   :  { %v832_v53 = vpop.f32.mrf.mxu0 }
 0x5b2   :  { %v835_v54 = vadd.f32 %v832_v53, %v812_v52 }
 0x5b4   :  { %5606 = vtanh.f32 %v835_v54  ;;  %v5398_v56 = vmul.f32 -1.442695, %v835_v54 }
 0x5b5   :  { %5608 = vpow2.f32 %v5400_v29 }
 0x5b6   :  { %5610 = vpow2.f32 %v5398_v56 }
 0x5ba   :  { %v5607_v55 = vpop.eup %5606 }
 0x5bb   :  { %858 = vrot.lane.b32.xlu2 %v5607_v55, %s6582_s4  ;;  %v5609_v57 = vpop.eup %5608 }
 0x5bc   :  { %v909_v58 = vadd.f32 1.0, %v5609_v57  ;;  %v5611_v59 = vpop.eup %5610 }
 0x5bd   :  { %v839_v60 = vadd.f32 1.0, %v5611_v59 }
 0x5be   :  { %5612 = vrcp.f32 %v909_v58  ;;  %v921_v5 = vand.u32 2147483648, %v909_v58  ;;  %vm915_vm4 = vweird.f32 %v909_v58  ;;  %v919_v6 = vand.u32 2147483647, %v909_v58 }
 0x5bf   :  { %5614 = vrcp.f32 %v839_v60  ;;  %v851_v18 = vand.u32 2147483648, %v839_v60  ;;  %vm845_vm8 = vweird.f32 %v839_v60  ;;  %v849_v19 = vand.u32 2147483647, %v839_v60 }
 0x5c0   :  { %v922_v9 = vor.u32 1.1754944e-38, %v921_v5  ;;  %vm920_vm6 = vcmp.eq.f32.partialorder %v919_v6, 8.507059e+37 }
 0x5c1   :  { %v852_v26 = vor.u32 1.1754944e-38, %v851_v18  ;;  %vm850_vm11 = vcmp.eq.f32.partialorder %v849_v19, 8.507059e+37 }
 0x5c4   :  { %v5613_v61 = vpop.eup %5612 }
 0x5c5   :  { %v911_v62 = vmul.f32 %v5613_v61, %v909_v58  ;;  %v5615_v0 = vpop.eup %5614  ;;  %vm916_vm3 = vweird.f32 %v5613_v61 }
 0x5c6   :  { %v841_v2 = vmul.f32 %v5615_v0, %v839_v60  ;;  %vm917_vm5 = vmor %vm915_vm4, %vm916_vm3  ;;  %vm846_vm7 = vweird.f32 %v5615_v0 }
 0x5c7   :  { %v912_v63 = vsub.f32 1.0, %v911_v62  ;;  %vm847_vm10 = vmor %vm845_vm8, %vm846_vm7 }
 0x5c8   :  { %v842_v4 = vsub.f32 1.0, %v841_v2 }
 0x5c9   :  { %v913_v1 = vmul.f32 %v5613_v61, %v912_v63 }
 0x5ca   :  { %v843_v8 = vmul.f32 %v5615_v0, %v842_v4 }
 0x5cb   :  { %v914_v3 = vadd.f32 %v5613_v61, %v913_v1 }
 0x5cc   :  { %v844_v17 = vadd.f32 %v5615_v0, %v843_v8 }
 0x5cd   :  { %v918_v7 = vsel %vm917_vm5, %v5613_v61, %v914_v3 }
 0x5ce   :  { %v923_v11 = vsel %vm920_vm6, %v922_v9, %v918_v7  ;;  %v848_v25 = vsel %vm847_vm10, %v5615_v0, %v844_v17 }
 0x5cf   :  { %v853_v28 = vsel %vm850_vm11, %v852_v26, %v848_v25  ;;  %v926_v33 = vmul.f32 %v923_v11, %v6950_v30 }
 0x5d0   :  { %v856_v38 = vmul.f32 %v853_v28, %v6954_v35 }
 0x60d   :  { %v929_v12 = vpop.permute.xlu1 %928 }
 0x60e   :  { %v931_v16 = vmul.f32 %v929_v12, %v923_v11 }
 0x610   :  { %933 = vrot.lane.b32.xlu0 %v931_v16, %s6583_s23 }
 0x615   :  { %v859_v27 = vpop.permute.xlu2 %858 }
 0x616   :  { %v861_v31 = vmul.f32 %v859_v27, %v853_v28 }
 0x618   :  { %863 = vrot.lane.b32.xlu1 %v861_v31, %s6583_s23 }
 0x682   :  { %v934_v34 = vpop.permute.xlu0 %933 }
 0x683   :  { %v6981_v37 = vadd.f32 %v934_v34, %v926_v33 }
 0x685   :  { %5616 = vtanh.f32 %v6981_v37 }
 0x68a   :  { %v864_v40 = vpop.permute.xlu1 %863 }
 0x68b   :  { %v5617_v41 = vpop.eup %5616  ;;  %v6985_v36 = vadd.f32 %v864_v40, %v856_v38 }
 0x68c   :  { %939 = vrot.lane.b32.xlu2 %v5617_v41, %s6582_s4  ;;  %v1155_v41 = vld [vmem:[#allocation5 + $0x6] sm:$0x3] }
 0x68d   :  { %5618 = vtanh.f32 %v6985_v36 }
 0x693   :  { %v5619_v42 = vpop.eup %5618 }
 0x694   :  { %869 = vrot.lane.b32.xlu0 %v5619_v42, %s6582_s4 }
 0x6e6   :  { %v940_v43 = vpop.permute.xlu2 %939 }
 0x6e7   :  { %v6990_v30 = vmul.f32 %v940_v43, %v923_v11  ;;  %v1088_v43 = vld [vmem:[#allocation4 + $0x8] sm:$0x3] }
 0x6e9   :  { %1019 = vrot.lane.b32.xlu1 %v6990_v30, %s6583_s23 }
 0x706   :  { %v870_v44 = vpop.permute.xlu0 %869 }
 0x707   :  { %v872_v45 = vmul.f32 %v870_v44, %v853_v28 }
 0x709   :  { %874 = vrot.lane.b32.xlu2 %v872_v45, %s6583_s23 }
 0x75b   :  { %v1020_v35 = vpop.permute.xlu1 %1019 }
 0x75c   :  { %5403 = vmatmul.msk.f32.vlgmr.msra.gmra.mxu3 %vm406_vm0, %v1020_v35 }
 0x75d   :  { %1579 = vmatpush.msra.mxu3 %v6847_v15  ;;  %v1018_v15 = vld [vmem:[#allocation5 + $0x8] sm:$0x3] }
 0x75f   :  { %1580 = vmatpush.msra.mxu3 %v6865_v21 }
 0x761   :  { %1581 = vmatpush.msra.mxu3 %v6868_v22  ;;  %v950_v22 = vld [vmem:[#allocation4 + $0x6] sm:$0x3] }
 0x763   :  { %v875_v46 = vpop.permute.xlu2 %874  ;;  %1582 = vmatpush.msra.mxu3 %v6871_v23 }
 0x764   :  { %878 = vst.msk [vmem:[#allocation2 + $0x4] sm:$0x3] %vm604_vm9, %v875_v46  ;;  %5401 = vmatmul.msk.f32.vlgmr.msra.gmra.mxu2 %vm406_vm0, %v875_v46 }
 0x765   :  { %1511 = vmatpush.msra.mxu2 %v6837_v10 }
 0x767   :  { %1512 = vmatpush.msra.mxu2 %v6843_v13 }
 0x769   :  { %1513 = vmatpush.msra.mxu2 %v6845_v14 }
 0x76b   :  { %1514 = vmatpush.msra.mxu2 %v6863_v20 }
 0x7df   :  { %v1040_v47 = vpop.f32.mrf.mxu3 }
 0x7e0   :  { %v1043_v21 = vadd.f32 %v1040_v47, %v1018_v15 }
 0x7e2   :  { %5620 = vtanh.f32 %v1043_v21  ;;  %v5404_v10 = vmul.f32 -1.442695, %v1043_v21 }
 0x7e7   :  { %v970_v48 = vpop.f32.mrf.mxu2 }
 0x7e8   :  { %v5621_v49 = vpop.eup %5620  ;;  %v973_v23 = vadd.f32 %v970_v48, %v950_v22 }
 0x7e9   :  { %1066 = vrot.lane.b32.xlu0 %v5621_v49, %s6582_s4 }
 0x7ea   :  { %5622 = vtanh.f32 %v973_v23  ;;  %v5402_v13 = vmul.f32 -1.442695, %v973_v23 }
 0x7eb   :  { %5624 = vpow2.f32 %v5404_v10 }
 0x7ec   :  { %5626 = vpow2.f32 %v5402_v13 }
 0x7f0   :  { %v5623_v50 = vpop.eup %5622 }
 0x7f1   :  { %996 = vrot.lane.b32.xlu1 %v5623_v50, %s6582_s4  ;;  %v5625_v14 = vpop.eup %5624 }
 0x7f2   :  { %v1047_v20 = vadd.f32 1.0, %v5625_v14  ;;  %v5627_v51 = vpop.eup %5626 }
 0x7f3   :  { %v977_v52 = vadd.f32 1.0, %v5627_v51 }
 0x7f4   :  { %5628 = vrcp.f32 %v1047_v20  ;;  %v1059_v60 = vand.u32 2147483648, %v1047_v20  ;;  %vm1053_vm13 = vweird.f32 %v1047_v20  ;;  %v1057_v61 = vand.u32 2147483647, %v1047_v20 }
 0x7f5   :  { %5630 = vrcp.f32 %v977_v52  ;;  %v989_v5 = vand.u32 2147483648, %v977_v52  ;;  %vm983_vm2 = vweird.f32 %v977_v52  ;;  %v987_v6 = vand.u32 2147483647, %v977_v52 }
 0x7f6   :  { %v1060_v0 = vor.u32 1.1754944e-38, %v1059_v60  ;;  %vm1058_vm15 = vcmp.eq.f32.partialorder %v1057_v61, 8.507059e+37 }
 0x7f7   :  { %v990_v8 = vor.u32 1.1754944e-38, %v989_v5  ;;  %vm988_vm4 = vcmp.eq.f32.partialorder %v987_v6, 8.507059e+37 }
 0x7fa   :  { %v5629_v53 = vpop.eup %5628 }
 0x7fb   :  { %v1049_v54 = vmul.f32 %v5629_v53, %v1047_v20  ;;  %v5631_v29 = vpop.eup %5630  ;;  %vm1054_vm12 = vweird.f32 %v5629_v53 }
 0x7fc   :  { %v979_v57 = vmul.f32 %v5631_v29, %v977_v52  ;;  %vm1055_vm14 = vmor %vm1053_vm13, %vm1054_vm12  ;;  %vm984_vm1 = vweird.f32 %v5631_v29 }
 0x7fd   :  { %v1050_v55 = vsub.f32 1.0, %v1049_v54  ;;  %vm985_vm3 = vmor %vm983_vm2, %vm984_vm1 }
 0x7fe   :  { %v980_v59 = vsub.f32 1.0, %v979_v57 }
 0x7ff   :  { %v1051_v56 = vmul.f32 %v5629_v53, %v1050_v55 }
 0x800   :  { %v981_v63 = vmul.f32 %v5631_v29, %v980_v59 }
 0x801   :  { %v1052_v58 = vadd.f32 %v5629_v53, %v1051_v56 }
 0x802   :  { %v982_v4 = vadd.f32 %v5631_v29, %v981_v63 }
 0x803   :  { %v1056_v62 = vsel %vm1055_vm14, %v5629_v53, %v1052_v58 }
 0x804   :  { %v1061_v2 = vsel %vm1058_vm15, %v1060_v0, %v1056_v62  ;;  %v986_v7 = vsel %vm985_vm3, %v5631_v29, %v982_v4 }
 0x805   :  { %v991_v9 = vsel %vm988_vm4, %v990_v8, %v986_v7  ;;  %v1064_v16 = vmul.f32 %v1061_v2, %v6981_v37 }
 0x806   :  { %v994_v25 = vmul.f32 %v991_v9, %v6985_v36 }
 0x85b   :  { %v1067_v1 = vpop.permute.xlu0 %1066 }
 0x85c   :  { %v1069_v3 = vmul.f32 %v1067_v1, %v1061_v2 }
 0x85e   :  { %1071 = vrot.lane.b32.xlu2 %v1069_v3, %s6583_s23 }
 0x863   :  { %v997_v11 = vpop.permute.xlu1 %996 }
 0x864   :  { %v999_v12 = vmul.f32 %v997_v11, %v991_v9 }
 0x866   :  { %1001 = vrot.lane.b32.xlu0 %v999_v12, %s6583_s23 }
 0x8b8   :  { %v1072_v17 = vpop.permute.xlu2 %1071 }
 0x8b9   :  { %v7011_v18 = vadd.f32 %v1072_v17, %v1064_v16 }
 0x8bb   :  { %5632 = vtanh.f32 %v7011_v18 }
 0x8c1   :  { %v5633_v19 = vpop.eup %5632 }
 0x8c2   :  { %1077 = vrot.lane.b32.xlu1 %v5633_v19, %s6582_s4 }
 0x8d8   :  { %v1002_v26 = vpop.permute.xlu0 %1001 }
 0x8d9   :  { %v7016_v27 = vadd.f32 %v1002_v26, %v994_v25 }
 0x8db   :  { %5634 = vtanh.f32 %v7016_v27 }
 0x8e1   :  { %v5635_v28 = vpop.eup %5634 }
 0x8e2   :  { %1007 = vrot.lane.b32.xlu2 %v5635_v28, %s6582_s4 }
 0x934   :  { %v1078_v31 = vpop.permute.xlu1 %1077 }
 0x935   :  { %v7020_v33 = vmul.f32 %v1078_v31, %v1061_v2 }
 0x937   :  { %1156 = vrot.lane.b32.xlu0 %v7020_v33, %s6583_s23 }
 0x93c   :  { %v1008_v34 = vpop.permute.xlu2 %1007 }
 0x93d   :  { %v1010_v37 = vmul.f32 %v1008_v34, %v991_v9 }
 0x93f   :  { %1012 = vrot.lane.b32.xlu1 %v1010_v37, %s6583_s23  ;;  %v1224_v37 = vld [vmem:[#allocation4 + $0xa] sm:$0x3] }
 0x9a9   :  { %v1157_v38 = vpop.permute.xlu0 %1156 }
 0x9aa   :  { %5407 = vmatmul.msk.f32.vlgmr.msra.gmra.mxu1 %vm406_vm0, %v1157_v38 }
 0x9b1   :  { %v1013_v40 = vpop.permute.xlu1 %1012 }
 0x9b2   :  { %1016 = vst.msk [vmem:[#allocation2 + $0x6] sm:$0x3] %vm604_vm9, %v1013_v40  ;;  %5405 = vmatmul.msk.f32.vlgmr.msra.gmra.mxu0 %vm406_vm0, %v1013_v40 }
 0xa27   :  { %v1177_v36 = vpop.f32.mrf.mxu1 }
 0xa28   :  { %v1180_v42 = vadd.f32 %v1177_v36, %v1155_v41 }
 0xa2a   :  { %5636 = vtanh.f32 %v1180_v42  ;;  %v5408_v15 = vmul.f32 -1.442695, %v1180_v42 }
 0xa2f   :  { %v1108_v44 = vpop.f32.mrf.mxu0 }
 0xa30   :  { %v5637_v45 = vpop.eup %5636  ;;  %v1111_v35 = vadd.f32 %v1108_v44, %v1088_v43 }
 0xa31   :  { %1203 = vrot.lane.b32.xlu2 %v5637_v45, %s6582_s4 }
 0xa32   :  { %5638 = vtanh.f32 %v1111_v35  ;;  %v5406_v23 = vmul.f32 -1.442695, %v1111_v35 }
 0xa33   :  { %5640 = vpow2.f32 %v5408_v15 }
 0xa38   :  { %v5639_v46 = vpop.eup %5638 }
 0xa39   :  { %1134 = vrot.lane.b32.xlu0 %v5639_v46, %s6582_s4  ;;  %v5641_v47 = vpop.eup %5640 }
 0xa3a   :  { %v1184_v21 = vadd.f32 1.0, %v5641_v47 }
 0xa3c   :  { %5642 = vrcp.f32 %v1184_v21  ;;  %v1196_v13 = vand.u32 2147483648, %v1184_v21  ;;  %vm1190_vm6 = vweird.f32 %v1184_v21  ;;  %v1194_v14 = vand.u32 2147483647, %v1184_v21 }
 0xa3d   :  { %5644 = vpow2.f32 %v5406_v23 }
 0xa3e   :  { %v1197_v52 = vor.u32 1.1754944e-38, %v1196_v13  ;;  %vm1195_vm8 = vcmp.eq.f32.partialorder %v1194_v14, 8.507059e+37 }
 0xa42   :  { %v5643_v22 = vpop.eup %5642 }
 0xa43   :  { %v1186_v48 = vmul.f32 %v5643_v22, %v1184_v21  ;;  %vm1191_vm5 = vweird.f32 %v5643_v22  ;;  %v5645_v20 = vpop.eup %5644 }
 0xa44   :  { %vm1192_vm7 = vmor %vm1190_vm6, %vm1191_vm5  ;;  %v1115_v53 = vadd.f32 1.0, %v5645_v20 }
 0xa45   :  { %v1187_v49 = vsub.f32 1.0, %v1186_v48 }
 0xa46   :  { %5646 = vrcp.f32 %v1115_v53  ;;  %v1127_v61 = vand.u32 2147483648, %v1115_v53  ;;  %vm1121_vm11 = vweird.f32 %v1115_v53  ;;  %v1125_v62 = vand.u32 2147483647, %v1115_v53 }
 0xa47   :  { %v1188_v50 = vmul.f32 %v5643_v22, %v1187_v49 }
 0xa48   :  { %v1128_v0 = vor.u32 1.1754944e-38, %v1127_v61  ;;  %vm1126_vm13 = vcmp.eq.f32.partialorder %v1125_v62, 8.507059e+37 }
 0xa49   :  { %v1189_v10 = vadd.f32 %v5643_v22, %v1188_v50 }
 0xa4b   :  { %v1193_v51 = vsel %vm1192_vm7, %v5643_v22, %v1189_v10 }
 0xa4c   :  { %v1198_v55 = vsel %vm1195_vm8, %v1197_v52, %v1193_v51  ;;  %v5647_v56 = vpop.eup %5646 }
 0xa4d   :  { %v1117_v57 = vmul.f32 %v5647_v56, %v1115_v53  ;;  %vm1122_vm10 = vweird.f32 %v5647_v56  ;;  %v1201_v4 = vmul.f32 %v1198_v55, %v7011_v18 }
 0xa4e   :  { %vm1123_vm12 = vmor %vm1121_vm11, %vm1122_vm10 }
 0xa4f   :  { %v1118_v58 = vsub.f32 1.0, %v1117_v57 }
 0xa51   :  { %v1119_v59 = vmul.f32 %v5647_v56, %v1118_v58 }
 0xa53   :  { %v1120_v60 = vadd.f32 %v5647_v56, %v1119_v59 }
 0xa55   :  { %v1124_v63 = vsel %vm1123_vm12, %v5647_v56, %v1120_v60 }
 0xa56   :  { %v1129_v2 = vsel %vm1126_vm13, %v1128_v0, %v1124_v63 }
 0xa57   :  { %v1132_v7 = vmul.f32 %v1129_v2, %v7016_v27  ;;  %v1291_v27 = vld [vmem:[#allocation5 + $0x4] sm:$0x3] }
 0xa8b   :  { %v1204_v54 = vpop.permute.xlu2 %1203 }
 0xa8c   :  { %v1206_v29 = vmul.f32 %v1204_v54, %v1198_v55 }
 0xa8e   :  { %1208 = vrot.lane.b32.xlu1 %v1206_v29, %s6583_s23 }
 0xaab   :  { %v1135_v1 = vpop.permute.xlu0 %1134 }
 0xaac   :  { %v1137_v3 = vmul.f32 %v1135_v1, %v1129_v2 }
 0xaae   :  { %1139 = vrot.lane.b32.xlu2 %v1137_v3, %s6583_s23 }
 0xb00   :  { %v1209_v5 = vpop.permute.xlu1 %1208 }
 0xb01   :  { %v7033_v6 = vadd.f32 %v1209_v5, %v1201_v4 }
 0xb03   :  { %5648 = vtanh.f32 %v7033_v6 }
 0xb08   :  { %v1140_v8 = vpop.permute.xlu2 %1139 }
 0xb09   :  { %v5649_v9 = vpop.eup %5648  ;;  %v7037_v11 = vadd.f32 %v1140_v8, %v1132_v7 }
 0xb0a   :  { %1214 = vrot.lane.b32.xlu0 %v5649_v9, %s6582_s4 }
 0xb0b   :  { %5650 = vtanh.f32 %v7037_v11 }
 0xb11   :  { %v5651_v12 = vpop.eup %5650 }
 0xb12   :  { %1145 = vrot.lane.b32.xlu1 %v5651_v12, %s6582_s4  ;;  %v1427_v12 = vld [vmem:[#allocation5 + $0x2] sm:$0x3] }
 0xb7c   :  { %v1215_v16 = vpop.permute.xlu0 %1214 }
 0xb7d   :  { %v7042_v17 = vmul.f32 %v1215_v16, %v1198_v55 }
 0xb7f   :  { %1292 = vrot.lane.b32.xlu2 %v7042_v17, %s6583_s23 }
 0xb84   :  { %v1146_v18 = vpop.permute.xlu1 %1145 }
 0xb85   :  { %v1148_v19 = vmul.f32 %v1146_v18, %v1129_v2 }
 0xb87   :  { %1150 = vrot.lane.b32.xlu0 %v1148_v19, %s6583_s23  ;;  %v1360_v19 = vld [vmem:[#allocation4 + $0xc] sm:$0x3] }
 0xbd9   :  { %v1293_v25 = vpop.permute.xlu2 %1292 }
 0xbda   :  { %5411 = vmatmul.msk.f32.vlgmr.msrb.gmra.mxu3 %vm406_vm0, %v1293_v25 }
 0xbf9   :  { %v7048_v26 = vpop.permute.xlu0 %1150 }
 0xbfa   :  { %5409 = vmatmul.msk.f32.vlgmr.msrb.gmra.mxu2 %vm406_vm0, %v7048_v26 }
 0xc5d   :  { %v1313_v28 = vpop.f32.mrf.mxu3 }
 0xc5e   :  { %v1316_v31 = vadd.f32 %v1313_v28, %v1291_v27 }
 0xc60   :  { %5652 = vtanh.f32 %v1316_v31  ;;  %v5412_v36 = vmul.f32 -1.442695, %v1316_v31 }
 0xc66   :  { %v5653_v34 = vpop.eup %5652 }
 0xc67   :  { %1339 = vrot.lane.b32.xlu1 %v5653_v34, %s6582_s4 }
 0xc7d   :  { %v1244_v38 = vpop.f32.mrf.mxu2 }
 0xc7e   :  { %v1247_v40 = vadd.f32 %v1244_v38, %v1224_v37 }
 0xc80   :  { %5654 = vtanh.f32 %v1247_v40  ;;  %v5410_v42 = vmul.f32 -1.442695, %v1247_v40 }
 0xc81   :  { %5656 = vpow2.f32 %v5412_v36 }
 0xc82   :  { %5658 = vpow2.f32 %v5410_v42 }
 0xc86   :  { %v5655_v41 = vpop.eup %5654 }
 0xc87   :  { %1270 = vrot.lane.b32.xlu2 %v5655_v41, %s6582_s4  ;;  %v5657_v43 = vpop.eup %5656 }
 0xc88   :  { %v1320_v44 = vadd.f32 1.0, %v5657_v43  ;;  %v5659_v45 = vpop.eup %5658 }
 0xc89   :  { %v1251_v35 = vadd.f32 1.0, %v5659_v45 }
 0xc8a   :  { %5660 = vrcp.f32 %v1320_v44  ;;  %v1332_v50 = vand.u32 2147483648, %v1320_v44  ;;  %vm1326_vm15 = vweird.f32 %v1320_v44  ;;  %v1330_v10 = vand.u32 2147483647, %v1320_v44 }
 0xc8b   :  { %5662 = vrcp.f32 %v1251_v35  ;;  %v1263_v55 = vand.u32 2147483648, %v1251_v35  ;;  %vm1257_vm4 = vweird.f32 %v1251_v35  ;;  %v1261_v29 = vand.u32 2147483647, %v1251_v35 }
 0xc8c   :  { %v1333_v20 = vor.u32 1.1754944e-38, %v1332_v50  ;;  %vm1331_vm2 = vcmp.eq.f32.partialorder %v1330_v10, 8.507059e+37 }
 0xc8d   :  { %v1264_v57 = vor.u32 1.1754944e-38, %v1263_v55  ;;  %vm1262_vm6 = vcmp.eq.f32.partialorder %v1261_v29, 8.507059e+37 }
 0xc90   :  { %v5661_v46 = vpop.eup %5660 }
 0xc91   :  { %v1322_v15 = vmul.f32 %v5661_v46, %v1320_v44  ;;  %v5663_v21 = vpop.eup %5662  ;;  %vm1327_vm14 = vweird.f32 %v5661_v46 }
 0xc92   :  { %v1253_v48 = vmul.f32 %v5663_v21, %v1251_v35  ;;  %vm1328_vm1 = vmor %vm1326_vm15, %vm1327_vm14  ;;  %vm1258_vm3 = vweird.f32 %v5663_v21 }
 0xc93   :  { %v1323_v47 = vsub.f32 1.0, %v1322_v15  ;;  %vm1259_vm5 = vmor %vm1257_vm4, %vm1258_vm3 }
 0xc94   :  { %v1254_v23 = vsub.f32 1.0, %v1253_v48 }
 0xc95   :  { %v1324_v22 = vmul.f32 %v5661_v46, %v1323_v47 }
 0xc96   :  { %v1255_v14 = vmul.f32 %v5663_v21, %v1254_v23 }
 0xc97   :  { %v1325_v49 = vadd.f32 %v5661_v46, %v1324_v22 }
 0xc98   :  { %v1256_v54 = vadd.f32 %v5663_v21, %v1255_v14 }
 0xc99   :  { %v1329_v13 = vsel %vm1328_vm1, %v5661_v46, %v1325_v49 }
 0xc9a   :  { %v1334_v51 = vsel %vm1331_vm2, %v1333_v20, %v1329_v13  ;;  %v1260_v56 = vsel %vm1259_vm5, %v5663_v21, %v1256_v54 }
 0xc9b   :  { %v1265_v59 = vsel %vm1262_vm6, %v1264_v57, %v1260_v56  ;;  %v1337_v61 = vmul.f32 %v1334_v51, %v7033_v6 }
 0xc9c   :  { %v1268_v0 = vmul.f32 %v1265_v59, %v7037_v11 }
 0xcd9   :  { %v1340_v52 = vpop.permute.xlu1 %1339 }
 0xcda   :  { %v1342_v53 = vmul.f32 %v1340_v52, %v1334_v51 }
 0xcdc   :  { %1344 = vrot.lane.b32.xlu0 %v1342_v53, %s6583_s23 }
 0xce1   :  { %v1271_v58 = vpop.permute.xlu2 %1270 }
 0xce2   :  { %v1273_v60 = vmul.f32 %v1271_v58, %v1265_v59 }
 0xce4   :  { %1275 = vrot.lane.b32.xlu1 %v1273_v60, %s6583_s23 }
 0xd4e   :  { %v1345_v62 = vpop.permute.xlu0 %1344 }
 0xd4f   :  { %v7057_v63 = vadd.f32 %v1345_v62, %v1337_v61 }
 0xd51   :  { %5664 = vtanh.f32 %v7057_v63 }
 0xd56   :  { %v1276_v1 = vpop.permute.xlu1 %1275 }
 0xd57   :  { %v5665_v2 = vpop.eup %5664  ;;  %v7061_v3 = vadd.f32 %v1276_v1, %v1268_v0 }
 0xd58   :  { %1350 = vrot.lane.b32.xlu2 %v5665_v2, %s6582_s4 }
 0xd59   :  { %5666 = vtanh.f32 %v7061_v3 }
 0xd5f   :  { %v5667_v4 = vpop.eup %5666 }
 0xd60   :  { %1281 = vrot.lane.b32.xlu0 %v5667_v4, %s6582_s4 }
 0xdb2   :  { %v1351_v5 = vpop.permute.xlu2 %1350 }
 0xdb3   :  { %v7066_v6 = vmul.f32 %v1351_v5, %v1334_v51 }
 0xdb5   :  { %1428 = vrot.lane.b32.xlu1 %v7066_v6, %s6583_s23 }
 0xdd2   :  { %v1282_v7 = vpop.permute.xlu0 %1281 }
 0xdd3   :  { %v1284_v8 = vmul.f32 %v1282_v7, %v1265_v59  ;;  %v1562_v7 = vld [vmem:[#allocation5] sm:$0x3] }
 0xdd5   :  { %1286 = vrot.lane.b32.xlu2 %v1284_v8, %s6583_s23 }
 0xe27   :  { %v1429_v9 = vpop.permute.xlu1 %1428 }
 0xe28   :  { %5415 = vmatmul.msk.f32.vlgmr.msrb.gmra.mxu1 %vm406_vm0, %v1429_v9 }
 0xe2f   :  { %v7072_v11 = vpop.permute.xlu2 %1286 }
 0xe30   :  { %5413 = vmatmul.msk.f32.vlgmr.msrb.gmra.mxu0 %vm406_vm0, %v7072_v11 }
 0xea5   :  { %v1449_v16 = vpop.f32.mrf.mxu1 }
 0xea6   :  { %v1452_v18 = vadd.f32 %v1449_v16, %v1427_v12  ;;  %v1496_v12 = vld [vmem:[#allocation4 + $0xe] sm:$0x3] }
 0xea8   :  { %5668 = vtanh.f32 %v1452_v18  ;;  %v5416_v34 = vmul.f32 -1.442695, %v1452_v18 }
 0xead   :  { %v1380_v25 = vpop.f32.mrf.mxu0 }
 0xeae   :  { %v5669_v27 = vpop.eup %5668  ;;  %v1383_v28 = vadd.f32 %v1380_v25, %v1360_v19 }
 0xeaf   :  { %1475 = vrot.lane.b32.xlu0 %v5669_v27, %s6582_s4 }
 0xeb0   :  { %5670 = vtanh.f32 %v1383_v28  ;;  %v5414_v37 = vmul.f32 -1.442695, %v1383_v28 }
 0xeb1   :  { %5672 = vpow2.f32 %v5416_v34 }
 0xeb2   :  { %5674 = vpow2.f32 %v5414_v37 }
 0xeb6   :  { %v5671_v31 = vpop.eup %5670 }
 0xeb7   :  { %1406 = vrot.lane.b32.xlu1 %v5671_v31, %s6582_s4  ;;  %v5673_v38 = vpop.eup %5672 }
 0xeb8   :  { %v1456_v40 = vadd.f32 1.0, %v5673_v38  ;;  %v5675_v41 = vpop.eup %5674 }
 0xeb9   :  { %v1387_v36 = vadd.f32 1.0, %v5675_v41 }
 0xeba   :  { %5676 = vrcp.f32 %v1456_v40  ;;  %v1468_v21 = vand.u32 2147483648, %v1456_v40  ;;  %vm1462_vm8 = vweird.f32 %v1456_v40  ;;  %v1466_v22 = vand.u32 2147483647, %v1456_v40 }
 0xebb   :  { %5678 = vrcp.f32 %v1387_v36  ;;  %v1399_v20 = vand.u32 2147483648, %v1387_v36  ;;  %vm1393_vm13 = vweird.f32 %v1387_v36  ;;  %v1397_v51 = vand.u32 2147483647, %v1387_v36 }
 0xebc   :  { %v1469_v23 = vor.u32 1.1754944e-38, %v1468_v21  ;;  %vm1467_vm11 = vcmp.eq.f32.partialorder %v1466_v22, 8.507059e+37 }
 0xebd   :  { %v1400_v53 = vor.u32 1.1754944e-38, %v1399_v20  ;;  %vm1398_vm15 = vcmp.eq.f32.partialorder %v1397_v51, 8.507059e+37 }
 0xec0   :  { %v5677_v42 = vpop.eup %5676 }
 0xec1   :  { %v1458_v43 = vmul.f32 %v5677_v42, %v1456_v40  ;;  %v5679_v45 = vpop.eup %5678  ;;  %vm1463_vm7 = vweird.f32 %v5677_v42 }
 0xec2   :  { %v1389_v46 = vmul.f32 %v5679_v45, %v1387_v36  ;;  %vm1464_vm10 = vmor %vm1462_vm8, %vm1463_vm7  ;;  %vm1394_vm12 = vweird.f32 %v5679_v45 }
 0xec3   :  { %v1459_v44 = vsub.f32 1.0, %v1458_v43  ;;  %vm1395_vm14 = vmor %vm1393_vm13, %vm1394_vm12 }
 0xec4   :  { %v1390_v47 = vsub.f32 1.0, %v1389_v46 }
 0xec5   :  { %v1460_v35 = vmul.f32 %v5677_v42, %v1459_v44 }
 0xec6   :  { %v1391_v49 = vmul.f32 %v5679_v45, %v1390_v47 }
 0xec7   :  { %v1461_v15 = vadd.f32 %v5677_v42, %v1460_v35 }
 0xec8   :  { %v1392_v14 = vadd.f32 %v5679_v45, %v1391_v49 }
 0xec9   :  { %v1465_v48 = vsel %vm1464_vm10, %v5677_v42, %v1461_v15  ;;  %vm671_vm10 = vcmask 517376  }
 0xeca   :  { %v1470_v10 = vsel %vm1467_vm11, %v1469_v23, %v1465_v48  ;;  %v1396_v52 = vsel %vm1395_vm14, %v5679_v45, %v1392_v14  ;;  %vm1675_vm11 = vcmask 523264  }
 0xecb   :  { %v1401_v54 = vsel %vm1398_vm15, %v1400_v53, %v1396_v52  ;;  %v1473_v56 = vmul.f32 %v1470_v10, %v7057_v63 }
 0xecc   :  { %v1404_v60 = vmul.f32 %v1401_v54, %v7061_v3 }
 0xf21   :  { %v1476_v50 = vpop.permute.xlu0 %1475 }
 0xf22   :  { %v1478_v13 = vmul.f32 %v1476_v50, %v1470_v10 }
 0xf24   :  { %1480 = vrot.lane.b32.xlu2 %v1478_v13, %s6583_s23 }
 0xf29   :  { %v1407_v55 = vpop.permute.xlu1 %1406 }
 0xf2a   :  { %v1409_v29 = vmul.f32 %v1407_v55, %v1401_v54 }
 0xf2c   :  { %1411 = vrot.lane.b32.xlu0 %v1409_v29, %s6583_s23 }
 0xf7e   :  { %v1481_v57 = vpop.permute.xlu2 %1480 }
 0xf7f   :  { %v7081_v58 = vadd.f32 %v1481_v57, %v1473_v56 }
 0xf81   :  { %5680 = vtanh.f32 %v7081_v58 }
 0xf87   :  { %v5681_v59 = vpop.eup %5680 }
 0xf88   :  { %1486 = vrot.lane.b32.xlu1 %v5681_v59, %s6582_s4 }
 0xf9e   :  { %v1412_v61 = vpop.permute.xlu0 %1411 }
 0xf9f   :  { %v7086_v62 = vadd.f32 %v1412_v61, %v1404_v60 }
 0xfa1   :  { %5682 = vtanh.f32 %v7086_v62 }
 0xfa7   :  { %v5683_v0 = vpop.eup %5682 }
 0xfa8   :  { %1417 = vrot.lane.b32.xlu2 %v5683_v0, %s6582_s4 }
 0xffa   :  { %v1487_v1 = vpop.permute.xlu1 %1486 }
 0xffb   :  { %v7090_v63 = vmul.f32 %v1487_v1, %v1470_v10 }
 0xffd   :  { %1563 = vrot.lane.b32.xlu0 %v7090_v63, %s6583_s23 }
0x1002   :  { %v1418_v2 = vpop.permute.xlu2 %1417 }
0x1003   :  { %v1420_v4 = vmul.f32 %v1418_v2, %v1401_v54 }
0x1005   :  { %1422 = vrot.lane.b32.xlu1 %v1420_v4, %s6583_s23 }
0x106f   :  { %v1564_v5 = vpop.permute.xlu0 %1563 }
0x1070   :  { %5419 = vmatmul.msk.f32.vlgmr.msra.gmra.mxu3 %vm406_vm0, %v1564_v5 }
0x1077   :  { %v7096_v3 = vpop.permute.xlu1 %1422 }
0x1078   :  { %5417 = vmatmul.msk.f32.vlgmr.msra.gmra.mxu2 %vm406_vm0, %v7096_v3 }
0x10f3   :  { %v1584_v8 = vpop.f32.mrf.mxu3 }
0x10f4   :  { %v1587_v9 = vadd.f32 %v1584_v8, %v1562_v7  ;;  %v1645_v8 = vld [vmem:[#allocation14 + $0x38] sm:$0xff] }
0x10f5   :  { %1688 = vmatpush.msra.mxu0 %v1645_v8 }
0x10f6   :  { %5684 = vtanh.f32 %v1587_v9  ;;  %v5420_v27 = vmul.f32 -1.442695, %v1587_v9  ;;  %v1644_v9 = vld [vmem:[#allocation14 + $0x30] sm:$0xff] }
0x10f7   :  { %1689 = vmatpush.msra.mxu0 %v1644_v9 }
0x10fb   :  { %v1516_v16 = vpop.f32.mrf.mxu2 }
0x10fc   :  { %v5685_v18 = vpop.eup %5684  ;;  %v1519_v19 = vadd.f32 %v1516_v16, %v1496_v12  ;;  %v1642_v12 = vld [vmem:[#allocation14 + $0x20] sm:$0xff]  ;;  %v1641_v16 = vld [vmem:[#allocation14 + $0x18] sm:$0xff] }
0x10fd   :  { %1610 = vrot.lane.b32.xlu2 %v5685_v18, %s6582_s4  ;;  %v1710_v18 = vld [vmem:[#allocation19 + $0x38] sm:$0xff] }
0x10fe   :  { %5686 = vtanh.f32 %v1519_v19  ;;  %v5418_v40 = vmul.f32 -1.442695, %v1519_v19  ;;  %1744 = vmatpush.msra.mxu1 %v1710_v18  ;;  %v1709_v19 = vld [vmem:[#allocation19 + $0x30] sm:$0xff] }
0x10ff   :  { %5688 = vpow2.f32 %v5420_v27  ;;  %v1708_v27 = vld [vmem:[#allocation19 + $0x28] sm:$0xff] }
0x1100   :  { %1745 = vmatpush.msra.mxu1 %v1709_v19 }
0x1102   :  { %1746 = vmatpush.msra.mxu1 %v1708_v27 }
0x1104   :  { %v5687_v25 = vpop.eup %5686 }
0x1105   :  { %1542 = vrot.lane.b32.xlu0 %v5687_v25, %s6582_s4  ;;  %v5689_v28 = vpop.eup %5688  ;;  %v1639_v25 = vld [vmem:[#allocation14 + $0x8] sm:$0xff] }
0x1106   :  { %v1591_v31 = vadd.f32 1.0, %v5689_v28  ;;  %v7149_v28 = vld [vmem:[#allocation16 + $0x18] sm:$0xff] }
0x1107   :  { %1824 = vmatpush.msrb.mxu2 %v7149_v28 }
0x1108   :  { %5690 = vrcp.f32 %v1591_v31  ;;  %v1603_v42 = vand.u32 2147483648, %v1591_v31  ;;  %vm1597_vm2 = vweird.f32 %v1591_v31  ;;  %v1601_v43 = vand.u32 2147483647, %v1591_v31 }
0x1109   :  { %5692 = vpow2.f32 %v5418_v40  ;;  %v7155_v40 = vld [vmem:[#allocation16 + $0x8] sm:$0xff] }
0x110a   :  { %v1604_v35 = vor.u32 1.1754944e-38, %v1603_v42  ;;  %vm1602_vm4 = vcmp.eq.f32.partialorder %v1601_v43, 8.507059e+37  ;;  %v1704_v42 = vld [vmem:[#allocation19 + $0x8] sm:$0xff]  ;;  %v1703_v43 = vld [vmem:[#allocation19] sm:$0xff] }
0x110e   :  { %v5691_v34 = vpop.eup %5690 }
0x110f   :  { %v1593_v37 = vmul.f32 %v5691_v34, %v1591_v31  ;;  %vm1598_vm1 = vweird.f32 %v5691_v34  ;;  %v5693_v44 = vpop.eup %5692  ;;  %v1638_v31 = vld [vmem:[#allocation14] sm:$0xff] }
0x1110   :  { %vm1599_vm3 = vmor %vm1597_vm2, %vm1598_vm1  ;;  %v1523_v46 = vadd.f32 1.0, %v5693_v44 }
0x1111   :  { %v1594_v38 = vsub.f32 1.0, %v1593_v37  ;;  %v7152_v37 = vld [vmem:[#allocation16 + $0x10] sm:$0xff] }
0x1112   :  { %5694 = vrcp.f32 %v1523_v46  ;;  %v1535_v10 = vand.u32 2147483648, %v1523_v46  ;;  %vm1529_vm6 = vweird.f32 %v1523_v46  ;;  %v1533_v13 = vand.u32 2147483647, %v1523_v46  ;;  %1825 = vmatpush.msrb.mxu2 %v7152_v37 }
0x1113   :  { %v1595_v41 = vmul.f32 %v5691_v34, %v1594_v38  ;;  %v1706_v38 = vld [vmem:[#allocation19 + $0x18] sm:$0xff] }
0x1114   :  { %v1536_v20 = vor.u32 1.1754944e-38, %v1535_v10  ;;  %vm1534_vm8 = vcmp.eq.f32.partialorder %v1533_v13, 8.507059e+37  ;;  %1826 = vmatpush.msrb.mxu2 %v7155_v40  ;;  %v5566_v13 = vld [vmem:[#allocation17] ss:$0 sm:$0xff] }
0x1115   :  { %v1596_v36 = vadd.f32 %v5691_v34, %v1595_v41  ;;  %v1705_v41 = vld [vmem:[#allocation19 + $0x10] sm:$0xff] }
0x1117   :  { %v1600_v45 = vsel %vm1599_vm3, %v5691_v34, %v1596_v36  ;;  %v1707_v34 = vld [vmem:[#allocation19 + $0x20] sm:$0xff] }
0x1118   :  { %v1605_v47 = vsel %vm1602_vm4, %v1604_v35, %v1600_v45  ;;  %v5695_v22 = vpop.eup %5694  ;;  %1747 = vmatpush.msra.mxu1 %v1707_v34  ;;  %v7158_v36 = vld [vmem:[#allocation16] sm:$0xff] }
0x1119   :  { %v1525_v48 = vmul.f32 %v5695_v22, %v1523_v46  ;;  %vm1530_vm5 = vweird.f32 %v5695_v22  ;;  %v1608_v54 = vmul.f32 %v1605_v47, %v7081_v58  ;;  %1827 = vmatpush.msrb.mxu2 %v7158_v36 }
0x111a   :  { %vm1531_vm7 = vmor %vm1529_vm6, %vm1530_vm5  ;;  %1748 = vmatpush.msra.mxu1 %v1706_v38  ;;  %1828 = vmatmul.f32.vlgmr.msrb.gmra.mxu2 %v6581_v24 }
0x111b   :  { %v1526_v49 = vsub.f32 1.0, %v1525_v48  ;;  %1955 = vmatpush.msra.mxu2 %v7149_v28  ;;  %v7197_v48 = vld [vmem:[#allocation20] sm:$0xff] }
0x111c   :  { %1749 = vmatpush.msra.mxu1 %v1705_v41 }
0x111d   :  { %v1527_v23 = vmul.f32 %v5695_v22, %v1526_v49  ;;  %1956 = vmatpush.msra.mxu2 %v7152_v37 }
0x111e   :  { %1750 = vmatpush.msra.mxu1 %v1704_v42 }
0x111f   :  { %v1528_v50 = vadd.f32 %v5695_v22, %v1527_v23  ;;  %1957 = vmatpush.msra.mxu2 %v7155_v40 }
0x1120   :  { %1751 = vmatpush.msra.mxu1 %v1703_v43 }
0x1121   :  { %v1532_v14 = vsel %vm1531_vm7, %v5695_v22, %v1528_v50  ;;  %1958 = vmatpush.msra.mxu2 %v7158_v36  ;;  %v7193_v22 = vld [vmem:[#allocation20 + $0x8] sm:$0xff] }
0x1122   :  { %v1537_v52 = vsel %vm1534_vm8, %v1536_v20, %v1532_v14 }
0x1123   :  { %v1540_v56 = vmul.f32 %v1537_v52, %v7086_v62  ;;  %2091 = vmatpush.msrb.mxu2 %v7149_v28 }
0x1125   :  { %2092 = vmatpush.msrb.mxu2 %v7152_v37 }
0x1127   :  { %2093 = vmatpush.msrb.mxu2 %v7155_v40 }
0x1129   :  { %2094 = vmatpush.msrb.mxu2 %v7158_v36 }
0x1157   :  { %v1611_v15 = vpop.permute.xlu2 %1610 }
0x1158   :  { %v1613_v21 = vmul.f32 %v1611_v15, %v1605_v47 }
0x115a   :  { %1615 = vrot.lane.b32.xlu1 %v1613_v21, %s6583_s23  ;;  %v7191_v21 = vld [vmem:[#allocation20 + $0x10] sm:$0xff] }
0x1177   :  { %v1543_v51 = vpop.permute.xlu0 %1542 }
0x1178   :  { %v1545_v53 = vmul.f32 %v1543_v51, %v1537_v52 }
0x117a   :  { %1547 = vrot.lane.b32.xlu2 %v1545_v53, %s6583_s23 }
0x1182   :  { %1219 = vrot.lane.b32.xlu2 %v7042_v17, %s6582_s4 }
0x11cc   :  { %v1616_v55 = vpop.permute.xlu1 %1615 }
0x11cd   :  { %v1618_v29 = vadd.f32 %v1616_v55, %v1608_v54  ;;  %v5567_v54 = vld [vmem:[#allocation22] ss:$0 sm:$0xff]  ;;  %v1829_v55 = vpop.f32.mrf.mxu2 }
0x11cf   :  { %5696 = vtanh.f32 %v1618_v29 }
0x11d4   :  { %v1548_v57 = vpop.permute.xlu2 %1547 }
0x11d5   :  { %v5697_v59 = vpop.eup %5696  ;;  %v1550_v60 = vadd.f32 %v1548_v57, %v1540_v56 }
0x11d6   :  { %1621 = vrot.lane.b32.xlu0 %v5697_v59, %s6582_s4 }
0x11d7   :  { %5698 = vtanh.f32 %v1550_v60 }
0x11dc   :  { %v1220_v61 = vpop.permute.xlu2 %1219 }
0x11dd   :  { %v5699_v0 = vpop.eup %5698  ;;  %1222 = vst.msk [vmem:[#allocation2 + $0x6] sm:$0x3] %vm671_vm10, %v1220_v61 }
0x11de   :  { %1553 = vrot.lane.b32.xlu1 %v5699_v0, %s6582_s4  ;;  %1355 = vrot.lane.b32.xlu0 %v7066_v6, %s6582_s4 }
0x11e4   :  { %v7113_v17 = vld [vmem:[#allocation2 + $0x6] sm:$0x3] }
0x11e5   :  { %1664 = vst [vmem:[#allocation1 + $0x3] ss:$4 sm:$0xff] %v7113_v17 }
0x11e6   :  { %1491 = vrot.lane.b32.xlu1 %v7090_v63, %s6582_s4  ;;  %667 = vrot.lane.b32.xlu0 %v6929_v39, %s6582_s4 }
0x11ee   :  { %806 = vrot.lane.b32.xlu1 %v6959_v32, %s6582_s4  ;;  %1082 = vrot.lane.b32.xlu0 %v7020_v33, %s6582_s4 }
0x1248   :  { %v1622_v58 = vpop.permute.xlu0 %1621 }
0x1249   :  { %v1624_v62 = vmul.f32 %v1622_v58, %v1605_v47  ;;  %v7183_v47 = vld [vmem:[#allocation20 + $0x18] sm:$0xff] }
0x124a   :  { %1888 = vmatpush.msrb.mxu3 %v7183_v47  ;;  %2296 = vmatpush.msrb.mxu1 %v7183_v47 }
0x124b   :  { %1626 = vrot.lane.b32.xlu2 %v1624_v62, %s6582_s4 }
0x124c   :  { %1889 = vmatpush.msrb.mxu3 %v7191_v21  ;;  %2297 = vmatpush.msrb.mxu1 %v7191_v21 }
0x124e   :  { %1890 = vmatpush.msrb.mxu3 %v7193_v22  ;;  %2298 = vmatpush.msrb.mxu1 %v7193_v22 }
0x1250   :  { %v1356_v6 = vpop.permute.xlu0 %1355  ;;  %v1554_v1 = vpop.permute.xlu1 %1553  ;;  %1891 = vmatpush.msrb.mxu3 %v7197_v48  ;;  %2299 = vmatpush.msrb.mxu1 %v7197_v48 }
0x1251   :  { %1358 = vst.msk [vmem:[#allocation2 + $0x4] sm:$0x3] %vm671_vm10, %v1356_v6  ;;  %v1556_v2 = vmul.f32 %v1554_v1, %v1537_v52  ;;  %1892 = vmatmul.f32.vlgmr.msrb.gmra.mxu3 %v6581_v24 }
0x1252   :  { %2024 = vmatpush.msra.mxu3 %v7183_v47 }
0x1253   :  { %944 = vrot.lane.b32.xlu2 %v6990_v30, %s6582_s4  ;;  %1558 = vrot.lane.b32.xlu1 %v1556_v2, %s6583_s23 }
0x1254   :  { %2025 = vmatpush.msra.mxu3 %v7191_v21 }
0x1256   :  { %2026 = vmatpush.msra.mxu3 %v7193_v22 }
0x1258   :  { %v7129_v39 = vld [vmem:[#allocation2 + $0x4] sm:$0x3]  ;;  %v668_v32 = vpop.permute.xlu0 %667  ;;  %v1492_v63 = vpop.permute.xlu1 %1491  ;;  %2027 = vmatpush.msra.mxu3 %v7197_v48 }
0x1259   :  { %1662 = vst [vmem:[#allocation1 + $0x2] ss:$4 sm:$0xff] %v7129_v39 }
0x125a   :  { %672 = vst.msk [vmem:[#allocation2 + $0xe] sm:$0x3] %vm671_vm10, %v668_v32  ;;  %2160 = vmatpush.msrb.mxu3 %v7183_v47 }
0x125b   :  { %1494 = vst.msk [vmem:[#allocation2 + $0x2] sm:$0x3] %vm671_vm10, %v1492_v63 }
0x125c   :  { %2161 = vmatpush.msrb.mxu3 %v7191_v21 }
0x125e   :  { %2162 = vmatpush.msrb.mxu3 %v7193_v22 }
0x1260   :  { %v1083_v33 = vpop.permute.xlu0 %1082  ;;  %v807_v4 = vpop.permute.xlu1 %806  ;;  %2163 = vmatpush.msrb.mxu3 %v7197_v48 }
0x1261   :  { %1086 = vst.msk [vmem:[#allocation2 + $0x8] sm:$0x3] %vm671_vm10, %v1083_v33 }
0x1262   :  { %v7135_v5 = vld [vmem:[#allocation2 + $0x2] sm:$0x3]  ;;  %1153 = vst.msk [vmem:[#allocation2 + $0x8] sm:$0x3] %vm604_vm9, %v7048_v26  ;;  %v1643_v26 = vld [vmem:[#allocation14 + $0x28] sm:$0xff] }
0x1263   :  { %1660 = vst [vmem:[#allocation1 + $0x1] ss:$4 sm:$0xff] %v7135_v5  ;;  %1690 = vmatpush.msra.mxu0 %v1643_v26 }
0x1264   :  { %810 = vst.msk [vmem:[#allocation2 + $0xc] sm:$0x3] %vm671_vm10, %v807_v4 }
0x1265   :  { %1425 = vst.msk [vmem:[#allocation2 + $0xc] sm:$0x3] %vm604_vm9, %v7096_v3  ;;  %1691 = vmatpush.msra.mxu0 %v1642_v12  ;;  %v1640_v3 = vld [vmem:[#allocation14 + $0x10] sm:$0xff] }
0x1267   :  { %1692 = vmatpush.msra.mxu0 %v1641_v16 }
0x1269   :  { %v7143_v30 = vld [vmem:[#allocation2 + $0x8] sm:$0x3]  ;;  %1693 = vmatpush.msra.mxu0 %v1640_v3 }
0x126a   :  { %1666 = vst [vmem:[#allocation1 + $0x20] ss:$4 sm:$0xff] %v7143_v30 }
0x126b   :  { %1694 = vmatpush.msra.mxu0 %v1639_v25 }
0x126c   :  { %v7146_v7 = vld [vmem:[#allocation2 + $0xc] sm:$0x3] }
0x126d   :  { %1670 = vst [vmem:[#allocation1 + $0x22] ss:$4 sm:$0xff] %v7146_v7  ;;  %1695 = vmatpush.msra.mxu0 %v1638_v31 }
0x126f   :  { %2227 = vmatpush.msrb.mxu0 %v7149_v28 }
0x1271   :  { %2228 = vmatpush.msrb.mxu0 %v7152_v37 }
0x1273   :  { %2229 = vmatpush.msrb.mxu0 %v7155_v40 }
0x1275   :  { %2230 = vmatpush.msrb.mxu0 %v7158_v36 }
0x12a5   :  { %v1627_v44 = vpop.permute.xlu2 %1626 }
0x12a6   :  { %1629 = vst.msk [vmem:[#allocation2] sm:$0x3] %vm671_vm10, %v1627_v44 }
0x12ad   :  { %v1630_v45 = vld [vmem:[#allocation2] sm:$0x3]  ;;  %v945_v35 = vpop.permute.xlu2 %944 }
0x12ae   :  { %1658 = vst [vmem:[#allocation1] ss:$4 sm:$0xff] %v1630_v45 }
0x12af   :  { %948 = vst.msk [vmem:[#allocation2 + $0xa] sm:$0x3] %vm671_vm10, %v945_v35 }
0x12b0   :  { %1289 = vst.msk [vmem:[#allocation2 + $0xa] sm:$0x3] %vm604_vm9, %v7072_v11 }
0x12b5   :  { %v1673_v46 = vld.sshfl [vmem:[#allocation1] sm:$0xff pattern:$0x73625140] }
0x12b6   :  { %1715 = vst [vmem:[#allocation1] ss:$4 sm:$0xff] %v1630_v45  ;;  %5421 = vmatmul.msk.f32.vlgmr.msra.gmra.mxu0 %vm1675_vm11, %v1673_v46 }
0x12b7   :  { %1717 = vst [vmem:[#allocation1 + $0x1] ss:$4 sm:$0xff] %v7135_v5  ;;  %v1635_v15 = vld [vmem:[#allocation2 + $0xa] sm:$0x3]  ;;  %2497 = vmatpush.msra.mxu0 %v7149_v28 }
0x12b8   :  { %1719 = vst [vmem:[#allocation1 + $0x2] ss:$4 sm:$0xff] %v7129_v39 }
0x12b9   :  { %1721 = vst [vmem:[#allocation1 + $0x3] ss:$4 sm:$0xff] %v7113_v17  ;;  %2498 = vmatpush.msra.mxu0 %v7152_v37 }
0x12ba   :  { %1668 = vst [vmem:[#allocation1 + $0x21] ss:$4 sm:$0xff] %v1635_v15 }
0x12bb   :  { %2499 = vmatpush.msra.mxu0 %v7155_v40 }
0x12bd   :  { %2500 = vmatpush.msra.mxu0 %v7158_v36 }
0x12c0   :  { %v1730_v11 = vld.sshfl [vmem:[#allocation1] sm:$0xff pattern:$0x73625140] }
0x12c1   :  { %5423 = vmatmul.msk.f32.vlgmr.msra.gmra.mxu1 %vm1675_vm11, %v1730_v11 }
0x12c2   :  { %2565 = vmatpush.msra.mxu1 %v7183_v47 }
0x12c4   :  { %2566 = vmatpush.msra.mxu1 %v7191_v21 }
0x12c5   :  { %v1559_v49 = vpop.permute.xlu1 %1558 }
0x12c6   :  { %1561 = vst.msk [vmem:[#allocation2 + $0xe] sm:$0x3] %vm604_vm9, %v1559_v49  ;;  %2567 = vmatpush.msra.mxu1 %v7193_v22 }
0x12c8   :  { %2568 = vmatpush.msra.mxu1 %v7197_v48 }
0x12cd   :  { %v1637_v23 = vld [vmem:[#allocation2 + $0xe] sm:$0x3] }
0x12ce   :  { %1672 = vst [vmem:[#allocation1 + $0x23] ss:$4 sm:$0xff] %v1637_v23 }
0x12d4   :  { %v1893_v5 = vpop.f32.mrf.mxu3 }
0x12d5   :  { %v1674_v50 = vld.sshfl [vmem:[#allocation1 + $0x20] sm:$0xff pattern:$0x73625140] }
0x12d6   :  { %1729 = vst [vmem:[#allocation1 + $0x23] ss:$4 sm:$0xff] %v1637_v23  ;;  %5422 = vmatmul.msk.f32.gmra.mxu0 %vm1675_vm11, %v1674_v50 }
0x12d7   :  { %1723 = vst [vmem:[#allocation1 + $0x20] ss:$4 sm:$0xff] %v7143_v30 }
0x12d8   :  { %1725 = vst [vmem:[#allocation1 + $0x21] ss:$4 sm:$0xff] %v1635_v15 }
0x12d9   :  { %1727 = vst [vmem:[#allocation1 + $0x22] ss:$4 sm:$0xff] %v7146_v7 }
0x12e0   :  { %v1731_v10 = vld.sshfl [vmem:[#allocation1 + $0x20] sm:$0xff pattern:$0x73625140] }
0x12e1   :  { %5424 = vmatmul.msk.f32.gmra.mxu1 %vm1675_vm11, %v1731_v10 }
0x1333   :  { %v1697_v14 = vpop.f32.mrf.mxu0 }
0x1334   :  { %v1698_v20 = vadd.f32 %v5566_v13, %v1697_v14 }
0x1336   :  { %v1761_v51 = vrot.slane %v1698_v20, 2  ;;  %v1762_v52 = vrot.slane %v1698_v20, 4  ;;  %v1763_v53 = vrot.slane %v1698_v20, 6  ;;  %1773 = vst [vmem:[#allocation4] sm:$0x3] %v1698_v20 }
0x1338   :  { %1774 = vst [vmem:[#allocation4 + $0x2] sm:$0x3] %v1761_v51 }
0x1339   :  { %1775 = vst [vmem:[#allocation4 + $0x4] sm:$0x3] %v1762_v52 }
0x133a   :  { %1776 = vst [vmem:[#allocation4 + $0x6] sm:$0x3] %v1763_v53 }
0x133d   :  { %v1811_v29 = vld [vmem:[#allocation4] sm:$0x3] }
0x133e   :  { %v1753_v56 = vpop.f32.mrf.mxu1  ;;  %v1832_v57 = vadd.f32 %v1829_v55, %v1811_v29 }
0x133f   :  { %v1754_v59 = vadd.f32 %v5567_v54, %v1753_v56 }
0x1340   :  { %5700 = vtanh.f32 %v1832_v57  ;;  %v5425_v9 = vmul.f32 -1.442695, %v1832_v57 }
0x1341   :  { %v1783_v60 = vrot.slane %v1754_v59, 2  ;;  %v1784_v61 = vrot.slane %v1754_v59, 4  ;;  %v1785_v0 = vrot.slane %v1754_v59, 6  ;;  %1795 = vst [vmem:[#allocation5] sm:$0x3] %v1754_v59 }
0x1343   :  { %1796 = vst [vmem:[#allocation5 + $0x2] sm:$0x3] %v1783_v60 }
0x1344   :  { %1797 = vst [vmem:[#allocation5 + $0x4] sm:$0x3] %v1784_v61 }
0x1345   :  { %1798 = vst [vmem:[#allocation5 + $0x6] sm:$0x3] %v1785_v0 }
0x1346   :  { %v5701_v17 = vpop.eup %5700 }
0x1347   :  { %1855 = vrot.lane.b32.xlu0 %v5701_v17, %s6582_s4 }
0x1353   :  { %v1700_v58 = vpop.f32.mrf.mxu0 }
0x1354   :  { %v1701_v62 = vadd.f32 %v5566_v13, %v1700_v58 }
0x1356   :  { %v1764_v6 = vrot.slane %v1701_v62, 2  ;;  %v1765_v1 = vrot.slane %v1701_v62, 4  ;;  %v1766_v2 = vrot.slane %v1701_v62, 6  ;;  %1777 = vst [vmem:[#allocation4 + $0x8] sm:$0x3] %v1701_v62 }
0x1358   :  { %1778 = vst [vmem:[#allocation4 + $0xa] sm:$0x3] %v1764_v6 }
0x1359   :  { %1779 = vst [vmem:[#allocation4 + $0xc] sm:$0x3] %v1765_v1  ;;  %v1940_v1 = vld [vmem:[#allocation4 + $0x2] sm:$0x3] }
0x135a   :  { %1780 = vst [vmem:[#allocation4 + $0xe] sm:$0x3] %v1766_v2 }
0x135e   :  { %v1756_v39 = vpop.f32.mrf.mxu1 }
0x135f   :  { %v1757_v32 = vadd.f32 %v5567_v54, %v1756_v39 }
0x1361   :  { %v1786_v63 = vrot.slane %v1757_v32, 2  ;;  %v1787_v33 = vrot.slane %v1757_v32, 4  ;;  %v1788_v4 = vrot.slane %v1757_v32, 6  ;;  %1799 = vst [vmem:[#allocation5 + $0x8] sm:$0x3] %v1757_v32 }
0x1363   :  { %1800 = vst [vmem:[#allocation5 + $0xa] sm:$0x3] %v1786_v63 }
0x1364   :  { %1801 = vst [vmem:[#allocation5 + $0xc] sm:$0x3] %v1787_v33 }
0x1365   :  { %1802 = vst [vmem:[#allocation5 + $0xe] sm:$0x3] %v1788_v4 }
0x136b   :  { %v2007_v63 = vld [vmem:[#allocation5 + $0xc] sm:$0x3] }
0x136c   :  { %v1875_v30 = vld [vmem:[#allocation5 + $0xe] sm:$0x3] }
0x136d   :  { %v1896_v7 = vadd.f32 %v1893_v5, %v1875_v30 }
0x136f   :  { %5702 = vtanh.f32 %v1896_v7  ;;  %v5426_v18 = vmul.f32 -1.442695, %v1896_v7 }
0x1370   :  { %5704 = vpow2.f32 %v5425_v9 }
0x1375   :  { %v5703_v8 = vpop.eup %5702 }
0x1376   :  { %1919 = vrot.lane.b32.xlu2 %v5703_v8, %s6582_s4  ;;  %v5705_v26 = vpop.eup %5704 }
0x1377   :  { %v1836_v12 = vadd.f32 1.0, %v5705_v26 }
0x1379   :  { %5706 = vrcp.f32 %v1836_v12  ;;  %v1848_v38 = vand.u32 2147483648, %v1836_v12  ;;  %vm1842_vm13 = vweird.f32 %v1836_v12  ;;  %v1846_v41 = vand.u32 2147483647, %v1836_v12 }
0x137a   :  { %5708 = vpow2.f32 %v5426_v18 }
0x137b   :  { %v1849_v43 = vor.u32 1.1754944e-38, %v1848_v38  ;;  %vm1847_vm15 = vcmp.eq.f32.partialorder %v1846_v41, 8.507059e+37 }
0x137f   :  { %v5707_v16 = vpop.eup %5706 }
0x1380   :  { %v1838_v3 = vmul.f32 %v5707_v16, %v1836_v12  ;;  %v5709_v25 = vpop.eup %5708  ;;  %vm1843_vm12 = vweird.f32 %v5707_v16 }
0x1381   :  { %v1900_v31 = vadd.f32 1.0, %v5709_v25  ;;  %vm1844_vm14 = vmor %vm1842_vm13, %vm1843_vm12 }
0x1382   :  { %v1839_v19 = vsub.f32 1.0, %v1838_v3 }
0x1383   :  { %5710 = vrcp.f32 %v1900_v31  ;;  %v1912_v50 = vand.u32 2147483648, %v1900_v31  ;;  %vm1906_vm2 = vweird.f32 %v1900_v31  ;;  %v1910_v10 = vand.u32 2147483647, %v1900_v31 }
0x1384   :  { %v1840_v27 = vmul.f32 %v5707_v16, %v1839_v19 }
0x1385   :  { %v1913_v14 = vor.u32 1.1754944e-38, %v1912_v50  ;;  %vm1911_vm4 = vcmp.eq.f32.partialorder %v1910_v10, 8.507059e+37 }
0x1386   :  { %v1841_v34 = vadd.f32 %v5707_v16, %v1840_v27 }
0x1388   :  { %v1845_v42 = vsel %vm1844_vm14, %v5707_v16, %v1841_v34 }
0x1389   :  { %v1850_v45 = vsel %vm1847_vm15, %v1849_v43, %v1845_v42  ;;  %v5711_v35 = vpop.eup %5710 }
0x138a   :  { %v1902_v15 = vmul.f32 %v5711_v35, %v1900_v31  ;;  %vm1907_vm1 = vweird.f32 %v5711_v35  ;;  %v1853_v53 = vmul.f32 0.0, %v1850_v45 }
0x138b   :  { %vm1908_vm3 = vmor %vm1906_vm2, %vm1907_vm1 }
0x138c   :  { %v1903_v11 = vsub.f32 1.0, %v1902_v15 }
0x138e   :  { %v1904_v49 = vmul.f32 %v5711_v35, %v1903_v11 }
0x1390   :  { %v1905_v23 = vadd.f32 %v5711_v35, %v1904_v49 }
0x1392   :  { %v1909_v13 = vsel %vm1908_vm3, %v5711_v35, %v1905_v23 }
0x1393   :  { %v1914_v51 = vsel %vm1911_vm4, %v1913_v14, %v1909_v13 }
0x1394   :  { %v1917_v56 = vmul.f32 0.0, %v1914_v51 }
0x13b9   :  { %v1856_v44 = vpop.permute.xlu0 %1855 }
0x13ba   :  { %v1858_v46 = vmul.f32 %v1856_v44, %v1850_v45 }
0x13bc   :  { %1860 = vrot.lane.b32.xlu2 %v1858_v46, %s6583_s23 }
0x13d0   :  { %v1920_v20 = vpop.permute.xlu2 %1919 }
0x13d1   :  { %v1922_v52 = vmul.f32 %v1920_v20, %v1914_v51 }
0x13d3   :  { %1924 = vrot.lane.b32.xlu1 %v1922_v52, %s6583_s23 }
0x1416   :  { %v1861_v54 = vpop.permute.xlu2 %1860 }
0x1417   :  { %v7225_v55 = vadd.f32 %v1861_v54, %v1853_v53 }
0x1419   :  { %5712 = vtanh.f32 %v7225_v55 }
0x141f   :  { %v5713_v29 = vpop.eup %5712 }
0x1420   :  { %1866 = vrot.lane.b32.xlu1 %v5713_v29, %s6582_s4 }
0x1445   :  { %v1925_v57 = vpop.permute.xlu1 %1924 }
0x1446   :  { %v7229_v59 = vadd.f32 %v1925_v57, %v1917_v56 }
0x1448   :  { %5714 = vtanh.f32 %v7229_v59 }
0x144e   :  { %v5715_v60 = vpop.eup %5714 }
0x144f   :  { %1930 = vrot.lane.b32.xlu0 %v5715_v60, %s6582_s4 }
0x1492   :  { %v1867_v61 = vpop.permute.xlu1 %1866 }
0x1493   :  { %v1869_v0 = vmul.f32 %v1867_v61, %v1850_v45 }
0x1495   :  { %1871 = vrot.lane.b32.xlu0 %v1869_v0, %s6583_s23 }
0x14c1   :  { %v1931_v17 = vpop.permute.xlu0 %1930 }
0x14c2   :  { %v7234_v58 = vmul.f32 %v1931_v17, %v1914_v51 }
0x14c4   :  { %2008 = vrot.lane.b32.xlu2 %v7234_v58, %s6583_s23 }
0x1507   :  { %v1872_v62 = vpop.permute.xlu0 %1871 }
0x1508   :  { %1874 = vst.msk [vmem:[#allocation3] sm:$0x3] %vm604_vm9, %v1872_v62  ;;  %5427 = vmatmul.msk.f32.vlgmr.msra.gmra.mxu2 %vm406_vm0, %v1872_v62  ;;  %v2076_v62 = vld [vmem:[#allocation4 + $0x4] sm:$0x3] }
0x1509   :  { %2363 = vmatpush.msra.mxu2 %v7149_v28 }
0x150b   :  { %2364 = vmatpush.msra.mxu2 %v7152_v37 }
0x150d   :  { %2365 = vmatpush.msra.mxu2 %v7155_v40 }
0x150f   :  { %2366 = vmatpush.msra.mxu2 %v7158_v36 }
0x151e   :  { %v2009_v6 = vpop.permute.xlu2 %2008 }
0x151f   :  { %5429 = vmatmul.msk.f32.vlgmr.msra.gmra.mxu3 %vm406_vm0, %v2009_v6 }
0x1520   :  { %2431 = vmatpush.msra.mxu3 %v7183_v47 }
0x1522   :  { %2432 = vmatpush.msra.mxu3 %v7191_v21 }
0x1524   :  { %2433 = vmatpush.msra.mxu3 %v7193_v22 }
0x1526   :  { %2434 = vmatpush.msra.mxu3 %v7197_v48 }
0x158b   :  { %v1960_v2 = vpop.f32.mrf.mxu2 }
0x158c   :  { %v1963_v39 = vadd.f32 %v1960_v2, %v1940_v1 }
0x158e   :  { %5716 = vtanh.f32 %v1963_v39  ;;  %v5428_v30 = vmul.f32 -1.442695, %v1963_v39  ;;  %v2143_v39 = vld [vmem:[#allocation5 + $0xa] sm:$0x3] }
0x1594   :  { %v5717_v32 = vpop.eup %5716 }
0x1595   :  { %1986 = vrot.lane.b32.xlu2 %v5717_v32, %s6582_s4 }
0x15a2   :  { %v2029_v33 = vpop.f32.mrf.mxu3 }
0x15a3   :  { %v2032_v4 = vadd.f32 %v2029_v33, %v2007_v63 }
0x15a5   :  { %5718 = vtanh.f32 %v2032_v4  ;;  %v5430_v41 = vmul.f32 -1.442695, %v2032_v4 }
0x15a6   :  { %5720 = vpow2.f32 %v5428_v30 }
0x15ab   :  { %v5719_v5 = vpop.eup %5718 }
0x15ac   :  { %2055 = vrot.lane.b32.xlu1 %v5719_v5, %s6582_s4  ;;  %v5721_v7 = vpop.eup %5720 }
0x15ad   :  { %v1967_v8 = vadd.f32 1.0, %v5721_v7 }
0x15af   :  { %5722 = vrcp.f32 %v1967_v8  ;;  %v1979_v3 = vand.u32 2147483648, %v1967_v8  ;;  %vm1973_vm6 = vweird.f32 %v1967_v8  ;;  %v1977_v19 = vand.u32 2147483647, %v1967_v8 }
0x15b0   :  { %5724 = vpow2.f32 %v5430_v41 }
0x15b1   :  { %v1980_v27 = vor.u32 1.1754944e-38, %v1979_v3  ;;  %vm1978_vm8 = vcmp.eq.f32.partialorder %v1977_v19, 8.507059e+37 }
0x15b5   :  { %v5723_v9 = vpop.eup %5722 }
0x15b6   :  { %v1969_v26 = vmul.f32 %v5723_v9, %v1967_v8  ;;  %vm1974_vm5 = vweird.f32 %v5723_v9  ;;  %v5725_v42 = vpop.eup %5724 }
0x15b7   :  { %vm1975_vm7 = vmor %vm1973_vm6, %vm1974_vm5  ;;  %v2036_v43 = vadd.f32 1.0, %v5725_v42 }
0x15b8   :  { %v1970_v12 = vsub.f32 1.0, %v1969_v26 }
0x15b9   :  { %5726 = vrcp.f32 %v2036_v43  ;;  %v2048_v11 = vand.u32 2147483648, %v2036_v43  ;;  %vm2042_vm13 = vweird.f32 %v2036_v43  ;;  %v2046_v49 = vand.u32 2147483647, %v2036_v43 }
0x15ba   :  { %v1971_v16 = vmul.f32 %v5723_v9, %v1970_v12 }
0x15bb   :  { %v2049_v50 = vor.u32 1.1754944e-38, %v2048_v11  ;;  %vm2047_vm15 = vcmp.eq.f32.partialorder %v2046_v49, 8.507059e+37 }
0x15bc   :  { %v1972_v18 = vadd.f32 %v5723_v9, %v1971_v16 }
0x15be   :  { %v1976_v25 = vsel %vm1975_vm7, %v5723_v9, %v1972_v18 }
0x15bf   :  { %v1981_v34 = vsel %vm1978_vm8, %v1980_v27, %v1976_v25  ;;  %v5727_v44 = vpop.eup %5726 }
0x15c0   :  { %v2038_v45 = vmul.f32 %v5727_v44, %v2036_v43  ;;  %vm2043_vm12 = vweird.f32 %v5727_v44  ;;  %v1984_v20 = vmul.f32 %v1981_v34, %v7225_v55 }
0x15c1   :  { %vm2044_vm14 = vmor %vm2042_vm13, %vm2043_vm12 }
0x15c2   :  { %v2039_v35 = vsub.f32 1.0, %v2038_v45 }
0x15c4   :  { %v2040_v46 = vmul.f32 %v5727_v44, %v2039_v35 }
0x15c6   :  { %v2041_v15 = vadd.f32 %v5727_v44, %v2040_v46 }
0x15c8   :  { %v2045_v23 = vsel %vm2044_vm14, %v5727_v44, %v2041_v15 }
0x15c9   :  { %v2050_v13 = vsel %vm2047_vm15, %v2049_v50, %v2045_v23 }
0x15ca   :  { %v2053_v54 = vmul.f32 %v2050_v13, %v7229_v59 }
0x15ef   :  { %v1987_v31 = vpop.permute.xlu2 %1986 }
0x15f0   :  { %v1989_v38 = vmul.f32 %v1987_v31, %v1981_v34 }
0x15f2   :  { %1991 = vrot.lane.b32.xlu1 %v1989_v38, %s6583_s23 }
0x161e   :  { %v2056_v10 = vpop.permute.xlu1 %2055 }
0x161f   :  { %v2058_v14 = vmul.f32 %v2056_v10, %v2050_v13 }
0x1621   :  { %2060 = vrot.lane.b32.xlu0 %v2058_v14, %s6583_s23 }
0x1664   :  { %v1992_v51 = vpop.permute.xlu1 %1991 }
0x1665   :  { %v7254_v52 = vadd.f32 %v1992_v51, %v1984_v20 }
0x1667   :  { %5728 = vtanh.f32 %v7254_v52 }
0x166d   :  { %v5729_v53 = vpop.eup %5728 }
0x166e   :  { %1997 = vrot.lane.b32.xlu0 %v5729_v53, %s6582_s4 }
0x1693   :  { %v2061_v29 = vpop.permute.xlu0 %2060 }
0x1694   :  { %v7259_v56 = vadd.f32 %v2061_v29, %v2053_v54 }
0x1696   :  { %5730 = vtanh.f32 %v7259_v56 }
0x169c   :  { %v5731_v57 = vpop.eup %5730 }
0x169d   :  { %2066 = vrot.lane.b32.xlu2 %v5731_v57, %s6582_s4 }
0x16e0   :  { %v1998_v60 = vpop.permute.xlu0 %1997 }
0x16e1   :  { %v2000_v55 = vmul.f32 %v1998_v60, %v1981_v34 }
0x16e3   :  { %2002 = vrot.lane.b32.xlu2 %v2000_v55, %s6583_s23 }
0x16f7   :  { %v2067_v61 = vpop.permute.xlu2 %2066 }
0x16f8   :  { %v7264_v0 = vmul.f32 %v2067_v61, %v2050_v13 }
0x16fa   :  { %2144 = vrot.lane.b32.xlu1 %v7264_v0, %s6583_s23 }
0x173d   :  { %v2003_v17 = vpop.permute.xlu2 %2002 }
0x173e   :  { %2006 = vst.msk [vmem:[#allocation3 + $0x2] sm:$0x3] %vm604_vm9, %v2003_v17  ;;  %5431 = vmatmul.msk.f32.vlgmr.msrb.gmra.mxu2 %vm406_vm0, %v2003_v17 }
0x173f   :  { %2631 = vmatpush.msrb.mxu2 %v7149_v28 }
0x1741   :  { %2632 = vmatpush.msrb.mxu2 %v7152_v37 }
0x1743   :  { %2633 = vmatpush.msrb.mxu2 %v7155_v40 }
0x1745   :  { %2634 = vmatpush.msrb.mxu2 %v7158_v36 }
0x176c   :  { %v2145_v59 = vpop.permute.xlu1 %2144 }
0x176d   :  { %5433 = vmatmul.msk.f32.vlgmr.msrb.gmra.mxu3 %vm406_vm0, %v2145_v59  ;;  %v2212_v59 = vld [vmem:[#allocation4 + $0x6] sm:$0x3] }
0x176e   :  { %2699 = vmatpush.msrb.mxu3 %v7183_v47 }
0x1770   :  { %2700 = vmatpush.msrb.mxu3 %v7191_v21 }
0x1772   :  { %2701 = vmatpush.msrb.mxu3 %v7193_v22 }
0x1774   :  { %2702 = vmatpush.msrb.mxu3 %v7197_v48 }
0x17c1   :  { %v2096_v6 = vpop.f32.mrf.mxu2 }
0x17c2   :  { %v2099_v1 = vadd.f32 %v2096_v6, %v2076_v62 }
0x17c4   :  { %5732 = vtanh.f32 %v2099_v1  ;;  %v5432_v4 = vmul.f32 -1.442695, %v2099_v1 }
0x17ca   :  { %v5733_v2 = vpop.eup %5732 }
0x17cb   :  { %2122 = vrot.lane.b32.xlu1 %v5733_v2, %s6582_s4 }
0x17f0   :  { %v2165_v32 = vpop.f32.mrf.mxu3 }
0x17f1   :  { %v2168_v63 = vadd.f32 %v2165_v32, %v2143_v39 }
0x17f3   :  { %5734 = vtanh.f32 %v2168_v63  ;;  %v5434_v34 = vmul.f32 -1.442695, %v2168_v63 }
0x17f4   :  { %5736 = vpow2.f32 %v5432_v4 }
0x17f9   :  { %v5735_v33 = vpop.eup %5734 }
0x17fa   :  { %2191 = vrot.lane.b32.xlu0 %v5735_v33, %s6582_s4  ;;  %v5737_v5 = vpop.eup %5736 }
0x17fb   :  { %v2103_v30 = vadd.f32 1.0, %v5737_v5 }
0x17fd   :  { %5738 = vrcp.f32 %v2103_v30  ;;  %v2115_v16 = vand.u32 2147483648, %v2103_v30  ;;  %vm2109_vm2 = vweird.f32 %v2103_v30  ;;  %v2113_v18 = vand.u32 2147483647, %v2103_v30 }
0x17fe   :  { %5740 = vpow2.f32 %v5434_v34 }
0x17ff   :  { %v2116_v19 = vor.u32 1.1754944e-38, %v2115_v16  ;;  %vm2114_vm4 = vcmp.eq.f32.partialorder %v2113_v18, 8.507059e+37 }
0x1803   :  { %v5739_v7 = vpop.eup %5738 }
0x1804   :  { %v2105_v8 = vmul.f32 %v5739_v7, %v2103_v30  ;;  %vm2110_vm1 = vweird.f32 %v5739_v7  ;;  %v5741_v38 = vpop.eup %5740 }
0x1805   :  { %vm2111_vm3 = vmor %vm2109_vm2, %vm2110_vm1  ;;  %v2172_v41 = vadd.f32 1.0, %v5741_v38 }
0x1806   :  { %v2106_v9 = vsub.f32 1.0, %v2105_v8 }
0x1807   :  { %5742 = vrcp.f32 %v2172_v41  ;;  %v2184_v46 = vand.u32 2147483648, %v2172_v41  ;;  %vm2178_vm6 = vweird.f32 %v2172_v41  ;;  %v2182_v15 = vand.u32 2147483647, %v2172_v41 }
0x1808   :  { %v2107_v26 = vmul.f32 %v5739_v7, %v2106_v9 }
0x1809   :  { %v2185_v49 = vor.u32 1.1754944e-38, %v2184_v46  ;;  %vm2183_vm8 = vcmp.eq.f32.partialorder %v2182_v15, 8.507059e+37 }
0x180a   :  { %v2108_v12 = vadd.f32 %v5739_v7, %v2107_v26 }
0x180c   :  { %v2112_v3 = vsel %vm2111_vm3, %v5739_v7, %v2108_v12 }
0x180d   :  { %v2117_v27 = vsel %vm2114_vm4, %v2116_v19, %v2112_v3  ;;  %v5743_v42 = vpop.eup %5742 }
0x180e   :  { %v2174_v43 = vmul.f32 %v5743_v42, %v2172_v41  ;;  %vm2179_vm5 = vweird.f32 %v5743_v42  ;;  %v2120_v13 = vmul.f32 %v2117_v27, %v7254_v52 }
0x180f   :  { %vm2180_vm7 = vmor %vm2178_vm6, %vm2179_vm5 }
0x1810   :  { %v2175_v44 = vsub.f32 1.0, %v2174_v43 }
0x1812   :  { %v2176_v45 = vmul.f32 %v5743_v42, %v2175_v44 }
0x1814   :  { %v2177_v35 = vadd.f32 %v5743_v42, %v2176_v45 }
0x1816   :  { %v2181_v11 = vsel %vm2180_vm7, %v5743_v42, %v2177_v35 }
0x1817   :  { %v2186_v50 = vsel %vm2183_vm8, %v2185_v49, %v2181_v11 }
0x1818   :  { %v2189_v53 = vmul.f32 %v2186_v50, %v7259_v56 }
0x183d   :  { %v2123_v25 = vpop.permute.xlu1 %2122 }
0x183e   :  { %v2125_v31 = vmul.f32 %v2123_v25, %v2117_v27 }
0x1840   :  { %2127 = vrot.lane.b32.xlu0 %v2125_v31, %s6583_s23 }
0x186c   :  { %v2192_v23 = vpop.permute.xlu0 %2191 }
0x186d   :  { %v2194_v10 = vmul.f32 %v2192_v23, %v2186_v50 }
0x186f   :  { %2196 = vrot.lane.b32.xlu2 %v2194_v10, %s6583_s23 }
0x18b2   :  { %v2128_v14 = vpop.permute.xlu0 %2127 }
0x18b3   :  { %v7284_v20 = vadd.f32 %v2128_v14, %v2120_v13 }
0x18b5   :  { %5744 = vtanh.f32 %v7284_v20 }
0x18bb   :  { %v5745_v51 = vpop.eup %5744 }
0x18bc   :  { %2133 = vrot.lane.b32.xlu2 %v5745_v51, %s6582_s4 }
0x18c9   :  { %v2197_v54 = vpop.permute.xlu2 %2196 }
0x18ca   :  { %v7289_v29 = vadd.f32 %v2197_v54, %v2189_v53  ;;  %v2348_v54 = vld [vmem:[#allocation4 + $0x8] sm:$0x3] }
0x18cc   :  { %5746 = vtanh.f32 %v7289_v29 }
0x18d2   :  { %v5747_v57 = vpop.eup %5746 }
0x18d3   :  { %2202 = vrot.lane.b32.xlu1 %v5747_v57, %s6582_s4 }
0x1916   :  { %v2134_v60 = vpop.permute.xlu2 %2133 }
0x1917   :  { %v2136_v52 = vmul.f32 %v2134_v60, %v2117_v27 }
0x1919   :  { %2138 = vrot.lane.b32.xlu1 %v2136_v52, %s6583_s23  ;;  %v2414_v52 = vld [vmem:[#allocation5 + $0x6] sm:$0x3] }
0x1945   :  { %v2203_v55 = vpop.permute.xlu1 %2202 }
0x1946   :  { %v7294_v61 = vmul.f32 %v2203_v55, %v2186_v50 }
0x1948   :  { %2280 = vrot.lane.b32.xlu0 %v7294_v61, %s6583_s23 }
0x198b   :  { %v2139_v17 = vpop.permute.xlu1 %2138 }
0x198c   :  { %2142 = vst.msk [vmem:[#allocation3 + $0x4] sm:$0x3] %vm604_vm9, %v2139_v17  ;;  %5435 = vmatmul.msk.f32.vlgmr.msrb.gmra.mxu0 %vm406_vm0, %v2139_v17 }
0x198d   :  { %2765 = vmatpush.msrb.mxu0 %v7149_v28 }
0x198f   :  { %2766 = vmatpush.msrb.mxu0 %v7152_v37 }
0x1991   :  { %2767 = vmatpush.msrb.mxu0 %v7155_v40  ;;  %v2279_v40 = vld [vmem:[#allocation5 + $0x8] sm:$0x3] }
0x1993   :  { %2768 = vmatpush.msrb.mxu0 %v7158_v36 }
0x19ba   :  { %v2281_v56 = vpop.permute.xlu0 %2280 }
0x19bb   :  { %5437 = vmatmul.msk.f32.vlgmr.msrb.gmra.mxu1 %vm406_vm0, %v2281_v56 }
0x19bc   :  { %2833 = vmatpush.msrb.mxu1 %v7183_v47 }
0x19be   :  { %2834 = vmatpush.msrb.mxu1 %v7191_v21 }
0x19c0   :  { %2835 = vmatpush.msrb.mxu1 %v7193_v22 }
0x19c2   :  { %2836 = vmatpush.msrb.mxu1 %v7197_v48 }
0x1a09   :  { %v2232_v62 = vpop.f32.mrf.mxu0 }
0x1a0a   :  { %v2235_v28 = vadd.f32 %v2232_v62, %v2212_v59 }
0x1a0c   :  { %5748 = vtanh.f32 %v2235_v28  ;;  %v5436_v47 = vmul.f32 -1.442695, %v2235_v28 }
0x1a12   :  { %v5749_v37 = vpop.eup %5748 }
0x1a13   :  { %2258 = vrot.lane.b32.xlu0 %v5749_v37, %s6582_s4 }
0x1a38   :  { %v2301_v36 = vpop.f32.mrf.mxu1 }
0x1a39   :  { %v2304_v6 = vadd.f32 %v2301_v36, %v2279_v40 }
0x1a3b   :  { %5750 = vtanh.f32 %v2304_v6  ;;  %v5438_v2 = vmul.f32 -1.442695, %v2304_v6 }
0x1a3c   :  { %5752 = vpow2.f32 %v5436_v47 }
0x1a41   :  { %v5751_v1 = vpop.eup %5750 }
0x1a42   :  { %2327 = vrot.lane.b32.xlu2 %v5751_v1, %s6582_s4  ;;  %v5753_v21 = vpop.eup %5752 }
0x1a43   :  { %v2239_v22 = vadd.f32 1.0, %v5753_v21 }
0x1a45   :  { %5754 = vrcp.f32 %v2239_v22  ;;  %v2251_v30 = vand.u32 2147483648, %v2239_v22  ;;  %vm2245_vm13 = vweird.f32 %v2239_v22  ;;  %v2249_v7 = vand.u32 2147483647, %v2239_v22 }
0x1a46   :  { %5756 = vpow2.f32 %v5438_v2 }
0x1a47   :  { %v2252_v9 = vor.u32 1.1754944e-38, %v2251_v30  ;;  %vm2250_vm15 = vcmp.eq.f32.partialorder %v2249_v7, 8.507059e+37 }
0x1a4b   :  { %v5755_v48 = vpop.eup %5754 }
0x1a4c   :  { %v2241_v39 = vmul.f32 %v5755_v48, %v2239_v22  ;;  %v5757_v63 = vpop.eup %5756  ;;  %vm2246_vm12 = vweird.f32 %v5755_v48 }
0x1a4d   :  { %v2308_v4 = vadd.f32 1.0, %v5757_v63  ;;  %vm2247_vm14 = vmor %vm2245_vm13, %vm2246_vm12 }
0x1a4e   :  { %v2242_v32 = vsub.f32 1.0, %v2241_v39 }
0x1a4f   :  { %5758 = vrcp.f32 %v2308_v4  ;;  %v2320_v31 = vand.u32 2147483648, %v2308_v4  ;;  %vm2314_vm2 = vweird.f32 %v2308_v4  ;;  %v2318_v34 = vand.u32 2147483647, %v2308_v4 }
0x1a50   :  { %v2243_v33 = vmul.f32 %v5755_v48, %v2242_v32 }
0x1a51   :  { %v2321_v41 = vor.u32 1.1754944e-38, %v2320_v31  ;;  %vm2319_vm4 = vcmp.eq.f32.partialorder %v2318_v34, 8.507059e+37 }
0x1a52   :  { %v2244_v5 = vadd.f32 %v5755_v48, %v2243_v33 }
0x1a54   :  { %v2248_v8 = vsel %vm2247_vm14, %v5755_v48, %v2244_v5 }
0x1a55   :  { %v2253_v12 = vsel %vm2250_vm15, %v2252_v9, %v2248_v8  ;;  %v5759_v16 = vpop.eup %5758 }
0x1a56   :  { %v2310_v3 = vmul.f32 %v5759_v16, %v2308_v4  ;;  %vm2315_vm1 = vweird.f32 %v5759_v16  ;;  %v2256_v45 = vmul.f32 %v2253_v12, %v7284_v20 }
0x1a57   :  { %vm2316_vm3 = vmor %vm2314_vm2, %vm2315_vm1 }
0x1a58   :  { %v2311_v19 = vsub.f32 1.0, %v2310_v3 }
0x1a5a   :  { %v2312_v25 = vmul.f32 %v5759_v16, %v2311_v19 }
0x1a5c   :  { %v2313_v27 = vadd.f32 %v5759_v16, %v2312_v25 }
0x1a5e   :  { %v2317_v38 = vsel %vm2316_vm3, %v5759_v16, %v2313_v27 }
0x1a5f   :  { %v2322_v43 = vsel %vm2319_vm4, %v2321_v41, %v2317_v38 }
0x1a60   :  { %v2325_v11 = vmul.f32 %v2322_v43, %v7289_v29 }
0x1a85   :  { %v2259_v26 = vpop.permute.xlu0 %2258 }
0x1a86   :  { %v2261_v18 = vmul.f32 %v2259_v26, %v2253_v12 }
0x1a88   :  { %2263 = vrot.lane.b32.xlu2 %v2261_v18, %s6583_s23 }
0x1a9c   :  { %v2328_v42 = vpop.permute.xlu2 %2327 }
0x1a9d   :  { %v2330_v44 = vmul.f32 %v2328_v42, %v2322_v43 }
0x1a9f   :  { %2332 = vrot.lane.b32.xlu1 %v2330_v44, %s6583_s23 }
0x1ae2   :  { %v2264_v35 = vpop.permute.xlu2 %2263 }
0x1ae3   :  { %v7314_v46 = vadd.f32 %v2264_v35, %v2256_v45 }
0x1ae5   :  { %5760 = vtanh.f32 %v7314_v46 }
0x1aeb   :  { %v5761_v15 = vpop.eup %5760 }
0x1aec   :  { %2269 = vrot.lane.b32.xlu1 %v5761_v15, %s6582_s4 }
0x1b11   :  { %v2333_v49 = vpop.permute.xlu1 %2332 }
0x1b12   :  { %v7319_v23 = vadd.f32 %v2333_v49, %v2325_v11 }
0x1b14   :  { %5762 = vtanh.f32 %v7319_v23 }
0x1b1a   :  { %v5763_v50 = vpop.eup %5762 }
0x1b1b   :  { %2338 = vrot.lane.b32.xlu0 %v5763_v50, %s6582_s4 }
0x1b5e   :  { %v2270_v10 = vpop.permute.xlu1 %2269 }
0x1b5f   :  { %v2272_v13 = vmul.f32 %v2270_v10, %v2253_v12 }
0x1b61   :  { %2274 = vrot.lane.b32.xlu0 %v2272_v13, %s6583_s23 }
0x1b8d   :  { %v2339_v14 = vpop.permute.xlu0 %2338 }
0x1b8e   :  { %v7324_v20 = vmul.f32 %v2339_v14, %v2322_v43  ;;  %v2548_v14 = vld [vmem:[#allocation5 + $0x4] sm:$0x3] }
0x1b90   :  { %2415 = vrot.lane.b32.xlu2 %v7324_v20, %s6583_s23 }
0x1bd3   :  { %v2275_v51 = vpop.permute.xlu0 %2274 }
0x1bd4   :  { %2278 = vst.msk [vmem:[#allocation3 + $0x6] sm:$0x3] %vm604_vm9, %v2275_v51  ;;  %5439 = vmatmul.msk.f32.vlgmr.msra.gmra.mxu2 %vm406_vm0, %v2275_v51 }
0x1bea   :  { %v2416_v53 = vpop.permute.xlu2 %2415 }
0x1beb   :  { %5441 = vmatmul.msk.f32.vlgmr.msra.gmra.mxu3 %vm406_vm0, %v2416_v53 }
0x1c57   :  { %v2368_v29 = vpop.f32.mrf.mxu2 }
0x1c58   :  { %v2371_v57 = vadd.f32 %v2368_v29, %v2348_v54 }
0x1c5a   :  { %5764 = vtanh.f32 %v2371_v57  ;;  %v5440_v59 = vmul.f32 -1.442695, %v2371_v57 }
0x1c60   :  { %v5765_v60 = vpop.eup %5764 }
0x1c61   :  { %2394 = vrot.lane.b32.xlu2 %v5765_v60, %s6582_s4 }
0x1c6e   :  { %v2436_v55 = vpop.f32.mrf.mxu3 }
0x1c6f   :  { %v2439_v17 = vadd.f32 %v2436_v55, %v2414_v52 }
0x1c71   :  { %5766 = vtanh.f32 %v2439_v17  ;;  %v5442_v63 = vmul.f32 -1.442695, %v2439_v17 }
0x1c72   :  { %5768 = vpow2.f32 %v5440_v59 }
0x1c77   :  { %v5767_v56 = vpop.eup %5766 }
0x1c78   :  { %2462 = vrot.lane.b32.xlu1 %v5767_v56, %s6582_s4  ;;  %v5769_v62 = vpop.eup %5768 }
0x1c79   :  { %v2375_v28 = vadd.f32 1.0, %v5769_v62 }
0x1c7b   :  { %5770 = vrcp.f32 %v2375_v28  ;;  %v2387_v47 = vand.u32 2147483648, %v2375_v28  ;;  %vm2381_vm6 = vweird.f32 %v2375_v28  ;;  %v2385_v21 = vand.u32 2147483647, %v2375_v28 }
0x1c7c   :  { %5772 = vpow2.f32 %v5442_v63 }
0x1c7d   :  { %v2388_v48 = vor.u32 1.1754944e-38, %v2387_v47  ;;  %vm2386_vm8 = vcmp.eq.f32.partialorder %v2385_v21, 8.507059e+37 }
0x1c81   :  { %v5771_v37 = vpop.eup %5770 }
0x1c82   :  { %v2377_v40 = vmul.f32 %v5771_v37, %v2375_v28  ;;  %vm2382_vm5 = vweird.f32 %v5771_v37  ;;  %v5773_v33 = vpop.eup %5772 }
0x1c83   :  { %vm2383_vm7 = vmor %vm2381_vm6, %vm2382_vm5  ;;  %v2443_v4 = vadd.f32 1.0, %v5773_v33 }
0x1c84   :  { %v2378_v36 = vsub.f32 1.0, %v2377_v40 }
0x1c85   :  { %5774 = vrcp.f32 %v2443_v4  ;;  %v2455_v26 = vand.u32 2147483648, %v2443_v4  ;;  %vm2449_vm13 = vweird.f32 %v2443_v4  ;;  %v2453_v12 = vand.u32 2147483647, %v2443_v4 }
0x1c86   :  { %v2379_v6 = vmul.f32 %v5771_v37, %v2378_v36 }
0x1c87   :  { %v2456_v18 = vor.u32 1.1754944e-38, %v2455_v26  ;;  %vm2454_vm15 = vcmp.eq.f32.partialorder %v2453_v12, 8.507059e+37 }
0x1c88   :  { %v2380_v1 = vadd.f32 %v5771_v37, %v2379_v6 }
0x1c8a   :  { %v2384_v22 = vsel %vm2383_vm7, %v5771_v37, %v2380_v1 }
0x1c8b   :  { %v2389_v39 = vsel %vm2386_vm8, %v2388_v48, %v2384_v22  ;;  %v5775_v5 = vpop.eup %5774 }
0x1c8c   :  { %v2445_v30 = vmul.f32 %v5775_v5, %v2443_v4  ;;  %vm2450_vm12 = vweird.f32 %v5775_v5  ;;  %v2392_v27 = vmul.f32 %v2389_v39, %v7314_v46 }
0x1c8d   :  { %vm2451_vm14 = vmor %vm2449_vm13, %vm2450_vm12 }
0x1c8e   :  { %v2446_v7 = vsub.f32 1.0, %v2445_v30 }
0x1c90   :  { %v2447_v8 = vmul.f32 %v5775_v5, %v2446_v7 }
0x1c92   :  { %v2448_v9 = vadd.f32 %v5775_v5, %v2447_v8 }
0x1c94   :  { %v2452_v16 = vsel %vm2451_vm14, %v5775_v5, %v2448_v9 }
0x1c95   :  { %v2457_v3 = vsel %vm2454_vm15, %v2456_v18, %v2452_v16 }
0x1c96   :  { %v2460_v41 = vmul.f32 %v2457_v3, %v7319_v23  ;;  %v2482_v23 = vld [vmem:[#allocation4 + $0xa] sm:$0x3] }
0x1cbb   :  { %v2395_v2 = vpop.permute.xlu2 %2394 }
0x1cbc   :  { %v2397_v32 = vmul.f32 %v2395_v2, %v2389_v39 }
0x1cbe   :  { %2399 = vrot.lane.b32.xlu1 %v2397_v32, %s6583_s23 }
0x1cea   :  { %v2463_v19 = vpop.permute.xlu1 %2462 }
0x1ceb   :  { %v2465_v25 = vmul.f32 %v2463_v19, %v2457_v3 }
0x1ced   :  { %2467 = vrot.lane.b32.xlu0 %v2465_v25, %s6583_s23 }
0x1d30   :  { %v2400_v31 = vpop.permute.xlu1 %2399 }
0x1d31   :  { %v7336_v34 = vadd.f32 %v2400_v31, %v2392_v27 }
0x1d33   :  { %5776 = vtanh.f32 %v7336_v34 }
0x1d39   :  { %v5777_v38 = vpop.eup %5776 }
0x1d3a   :  { %2405 = vrot.lane.b32.xlu0 %v5777_v38, %s6582_s4 }
0x1d5f   :  { %v2468_v42 = vpop.permute.xlu0 %2467 }
0x1d60   :  { %v7341_v43 = vadd.f32 %v2468_v42, %v2460_v41 }
0x1d62   :  { %5778 = vtanh.f32 %v7341_v43 }
0x1d68   :  { %v5779_v44 = vpop.eup %5778 }
0x1d69   :  { %2473 = vrot.lane.b32.xlu2 %v5779_v44, %s6582_s4  ;;  %v2616_v44 = vld [vmem:[#allocation4 + $0xc] sm:$0x3] }
0x1dac   :  { %v2406_v45 = vpop.permute.xlu0 %2405 }
0x1dad   :  { %v2408_v35 = vmul.f32 %v2406_v45, %v2389_v39 }
0x1daf   :  { %2410 = vrot.lane.b32.xlu2 %v2408_v35, %s6583_s23 }
0x1dc3   :  { %v2474_v46 = vpop.permute.xlu2 %2473 }
0x1dc4   :  { %v7346_v15 = vmul.f32 %v2474_v46, %v2457_v3 }
0x1dc6   :  { %2549 = vrot.lane.b32.xlu1 %v7346_v15, %s6583_s23 }
0x1e09   :  { %v7350_v11 = vpop.permute.xlu2 %2410 }
0x1e0a   :  { %5443 = vmatmul.msk.f32.vlgmr.msra.gmra.mxu0 %vm406_vm0, %v7350_v11 }
0x1e38   :  { %v2550_v49 = vpop.permute.xlu1 %2549 }
0x1e39   :  { %5445 = vmatmul.msk.f32.vlgmr.msra.gmra.mxu1 %vm406_vm0, %v2550_v49  ;;  %v2682_v49 = vld [vmem:[#allocation5 + $0x2] sm:$0x3] }
0x1e87   :  { %v2502_v50 = vpop.f32.mrf.mxu0 }
0x1e88   :  { %v2505_v10 = vadd.f32 %v2502_v50, %v2482_v23 }
0x1e8a   :  { %5780 = vtanh.f32 %v2505_v10  ;;  %v5444_v29 = vmul.f32 -1.442695, %v2505_v10 }
0x1e90   :  { %v5781_v13 = vpop.eup %5780 }
0x1e91   :  { %2528 = vrot.lane.b32.xlu1 %v5781_v13, %s6582_s4 }
0x1eb6   :  { %v2570_v51 = vpop.f32.mrf.mxu1 }
0x1eb7   :  { %v2573_v53 = vadd.f32 %v2570_v51, %v2548_v14 }
0x1eb9   :  { %5782 = vtanh.f32 %v2573_v53  ;;  %v5446_v47 = vmul.f32 -1.442695, %v2573_v53 }
0x1eba   :  { %5784 = vpow2.f32 %v5444_v29 }
0x1ebf   :  { %v5783_v54 = vpop.eup %5782 }
0x1ec0   :  { %2596 = vrot.lane.b32.xlu0 %v5783_v54, %s6582_s4  ;;  %v5785_v57 = vpop.eup %5784 }
0x1ec1   :  { %v2509_v60 = vadd.f32 1.0, %v5785_v57 }
0x1ec3   :  { %5786 = vrcp.f32 %v2509_v60  ;;  %v2521_v62 = vand.u32 2147483648, %v2509_v60  ;;  %vm2515_vm2 = vweird.f32 %v2509_v60  ;;  %v2519_v28 = vand.u32 2147483647, %v2509_v60 }
0x1ec4   :  { %5788 = vpow2.f32 %v5446_v47 }
0x1ec5   :  { %v2522_v40 = vor.u32 1.1754944e-38, %v2521_v62  ;;  %vm2520_vm4 = vcmp.eq.f32.partialorder %v2519_v28, 8.507059e+37 }
0x1ec9   :  { %v5787_v52 = vpop.eup %5786 }
0x1eca   :  { %v2511_v55 = vmul.f32 %v5787_v52, %v2509_v60  ;;  %vm2516_vm1 = vweird.f32 %v5787_v52  ;;  %v5789_v21 = vpop.eup %5788 }
0x1ecb   :  { %vm2517_vm3 = vmor %vm2515_vm2, %vm2516_vm1  ;;  %v2577_v22 = vadd.f32 1.0, %v5789_v21 }
0x1ecc   :  { %v2512_v17 = vsub.f32 1.0, %v2511_v55 }
0x1ecd   :  { %5790 = vrcp.f32 %v2577_v22  ;;  %v2589_v33 = vand.u32 2147483648, %v2577_v22  ;;  %vm2583_vm6 = vweird.f32 %v2577_v22  ;;  %v2587_v4 = vand.u32 2147483647, %v2577_v22 }
0x1ece   :  { %v2513_v56 = vmul.f32 %v5787_v52, %v2512_v17 }
0x1ecf   :  { %v2590_v30 = vor.u32 1.1754944e-38, %v2589_v33  ;;  %vm2588_vm8 = vcmp.eq.f32.partialorder %v2587_v4, 8.507059e+37 }
0x1ed0   :  { %v2514_v59 = vadd.f32 %v5787_v52, %v2513_v56 }
0x1ed2   :  { %v2518_v37 = vsel %vm2517_vm3, %v5787_v52, %v2514_v59 }
0x1ed3   :  { %v2523_v6 = vsel %vm2520_vm4, %v2522_v40, %v2518_v37  ;;  %v5791_v48 = vpop.eup %5790 }
0x1ed4   :  { %v2579_v2 = vmul.f32 %v5791_v48, %v2577_v22  ;;  %vm2584_vm5 = vweird.f32 %v5791_v48  ;;  %v2526_v26 = vmul.f32 %v2523_v6, %v7336_v34 }
0x1ed5   :  { %vm2585_vm7 = vmor %vm2583_vm6, %vm2584_vm5 }
0x1ed6   :  { %v2580_v39 = vsub.f32 1.0, %v2579_v2 }
0x1ed8   :  { %v2581_v32 = vmul.f32 %v5791_v48, %v2580_v39 }
0x1eda   :  { %v2582_v63 = vadd.f32 %v5791_v48, %v2581_v32 }
0x1edc   :  { %v2586_v5 = vsel %vm2585_vm7, %v5791_v48, %v2582_v63 }
0x1edd   :  { %v2591_v7 = vsel %vm2588_vm8, %v2590_v30, %v2586_v5 }
0x1ede   :  { %v2594_v3 = vmul.f32 %v2591_v7, %v7341_v43 }
0x1f03   :  { %v2529_v36 = vpop.permute.xlu1 %2528 }
0x1f04   :  { %v2531_v1 = vmul.f32 %v2529_v36, %v2523_v6 }
0x1f06   :  { %2533 = vrot.lane.b32.xlu0 %v2531_v1, %s6583_s23 }
0x1f32   :  { %v2597_v8 = vpop.permute.xlu0 %2596 }
0x1f33   :  { %v2599_v9 = vmul.f32 %v2597_v8, %v2591_v7 }
0x1f35   :  { %2601 = vrot.lane.b32.xlu2 %v2599_v9, %s6583_s23 }
0x1f78   :  { %v2534_v12 = vpop.permute.xlu0 %2533 }
0x1f79   :  { %v7360_v16 = vadd.f32 %v2534_v12, %v2526_v26 }
0x1f7b   :  { %5792 = vtanh.f32 %v7360_v16 }
0x1f81   :  { %v5793_v18 = vpop.eup %5792 }
0x1f82   :  { %2539 = vrot.lane.b32.xlu2 %v5793_v18, %s6582_s4 }
0x1f8f   :  { %v2602_v19 = vpop.permute.xlu2 %2601 }
0x1f90   :  { %v7365_v25 = vadd.f32 %v2602_v19, %v2594_v3 }
0x1f92   :  { %5794 = vtanh.f32 %v7365_v25 }
0x1f98   :  { %v5795_v27 = vpop.eup %5794 }
0x1f99   :  { %2607 = vrot.lane.b32.xlu1 %v5795_v27, %s6582_s4 }
0x1fdc   :  { %v2540_v31 = vpop.permute.xlu2 %2539 }
0x1fdd   :  { %v2542_v34 = vmul.f32 %v2540_v31, %v2523_v6 }
0x1fdf   :  { %2544 = vrot.lane.b32.xlu1 %v2542_v34, %s6583_s23  ;;  %v2750_v34 = vld [vmem:[#allocation4 + $0xe] sm:$0x3] }
0x200b   :  { %v2608_v38 = vpop.permute.xlu1 %2607 }
0x200c   :  { %v7370_v41 = vmul.f32 %v2608_v38, %v2591_v7 }
0x200e   :  { %2683 = vrot.lane.b32.xlu0 %v7370_v41, %s6583_s23 }
0x2051   :  { %v7374_v42 = vpop.permute.xlu1 %2544 }
0x2052   :  { %5447 = vmatmul.msk.f32.vlgmr.msrb.gmra.mxu2 %vm406_vm0, %v7374_v42 }
0x2080   :  { %v2684_v43 = vpop.permute.xlu0 %2683 }
0x2081   :  { %5449 = vmatmul.msk.f32.vlgmr.msrb.gmra.mxu3 %vm406_vm0, %v2684_v43 }
0x20d5   :  { %v2636_v45 = vpop.f32.mrf.mxu2 }
0x20d6   :  { %v2639_v35 = vadd.f32 %v2636_v45, %v2616_v44  ;;  %v2816_v45 = vld [vmem:[#allocation5] sm:$0x3] }
0x20d8   :  { %5796 = vtanh.f32 %v2639_v35  ;;  %v5448_v13 = vmul.f32 -1.442695, %v2639_v35 }
0x20de   :  { %v5797_v46 = vpop.eup %5796 }
0x20df   :  { %2662 = vrot.lane.b32.xlu0 %v5797_v46, %s6582_s4 }
0x2104   :  { %v2704_v23 = vpop.f32.mrf.mxu3 }
0x2105   :  { %v2707_v50 = vadd.f32 %v2704_v23, %v2682_v49 }
0x2107   :  { %5798 = vtanh.f32 %v2707_v50  ;;  %v5450_v54 = vmul.f32 -1.442695, %v2707_v50 }
0x2108   :  { %5800 = vpow2.f32 %v5448_v13 }
0x210d   :  { %v5799_v10 = vpop.eup %5798 }
0x210e   :  { %2730 = vrot.lane.b32.xlu2 %v5799_v10, %s6582_s4  ;;  %v5801_v14 = vpop.eup %5800 }
0x210f   :  { %v2643_v51 = vadd.f32 1.0, %v5801_v14 }
0x2111   :  { %5802 = vrcp.f32 %v2643_v51  ;;  %v2655_v56 = vand.u32 2147483648, %v2643_v51  ;;  %vm2649_vm13 = vweird.f32 %v2643_v51  ;;  %v2653_v59 = vand.u32 2147483647, %v2643_v51 }
0x2112   :  { %5804 = vpow2.f32 %v5450_v54 }
0x2113   :  { %v2656_v28 = vor.u32 1.1754944e-38, %v2655_v56  ;;  %vm2654_vm15 = vcmp.eq.f32.partialorder %v2653_v59, 8.507059e+37 }
0x2117   :  { %v5803_v53 = vpop.eup %5802 }
0x2118   :  { %v2645_v29 = vmul.f32 %v5803_v53, %v2643_v51  ;;  %v5805_v60 = vpop.eup %5804  ;;  %vm2650_vm12 = vweird.f32 %v5803_v53 }
0x2119   :  { %v2711_v55 = vadd.f32 1.0, %v5805_v60  ;;  %vm2651_vm14 = vmor %vm2649_vm13, %vm2650_vm12 }
0x211a   :  { %v2646_v57 = vsub.f32 1.0, %v2645_v29 }
0x211b   :  { %5806 = vrcp.f32 %v2711_v55  ;;  %v2723_v48 = vand.u32 2147483648, %v2711_v55  ;;  %vm2717_vm2 = vweird.f32 %v2711_v55  ;;  %v2721_v2 = vand.u32 2147483647, %v2711_v55 }
0x211c   :  { %v2647_v52 = vmul.f32 %v5803_v53, %v2646_v57 }
0x211d   :  { %v2724_v32 = vor.u32 1.1754944e-38, %v2723_v48  ;;  %vm2722_vm4 = vcmp.eq.f32.partialorder %v2721_v2, 8.507059e+37 }
0x211e   :  { %v2648_v17 = vadd.f32 %v5803_v53, %v2647_v52 }
0x2120   :  { %v2652_v62 = vsel %vm2651_vm14, %v5803_v53, %v2648_v17 }
0x2121   :  { %v2657_v40 = vsel %vm2654_vm15, %v2656_v28, %v2652_v62  ;;  %v5807_v36 = vpop.eup %5806 }
0x2122   :  { %v2713_v1 = vmul.f32 %v5807_v36, %v2711_v55  ;;  %vm2718_vm1 = vweird.f32 %v5807_v36  ;;  %v2660_v5 = vmul.f32 %v2657_v40, %v7360_v16 }
0x2123   :  { %vm2719_vm3 = vmor %vm2717_vm2, %vm2718_vm1 }
0x2124   :  { %v2714_v47 = vsub.f32 1.0, %v2713_v1 }
0x2126   :  { %v2715_v21 = vmul.f32 %v5807_v36, %v2714_v47 }
0x2128   :  { %v2716_v22 = vadd.f32 %v5807_v36, %v2715_v21 }
0x212a   :  { %v2720_v39 = vsel %vm2719_vm3, %v5807_v36, %v2716_v22 }
0x212b   :  { %v2725_v63 = vsel %vm2722_vm4, %v2724_v32, %v2720_v39 }
0x212c   :  { %v2728_v9 = vmul.f32 %v2725_v63, %v7365_v25 }
0x2151   :  { %v2663_v37 = vpop.permute.xlu0 %2662 }
0x2152   :  { %v2665_v6 = vmul.f32 %v2663_v37, %v2657_v40 }
0x2154   :  { %2667 = vrot.lane.b32.xlu2 %v2665_v6, %s6583_s23 }
0x2168   :  { %v2731_v33 = vpop.permute.xlu2 %2730 }
0x2169   :  { %v2733_v4 = vmul.f32 %v2731_v33, %v2725_v63 }
0x216b   :  { %2735 = vrot.lane.b32.xlu1 %v2733_v4, %s6583_s23 }
0x21ae   :  { %v2668_v30 = vpop.permute.xlu2 %2667 }
0x21af   :  { %v7384_v7 = vadd.f32 %v2668_v30, %v2660_v5 }
0x21b1   :  { %5808 = vtanh.f32 %v7384_v7 }
0x21b7   :  { %v5809_v8 = vpop.eup %5808 }
0x21b8   :  { %2673 = vrot.lane.b32.xlu1 %v5809_v8, %s6582_s4 }
0x21dd   :  { %v2736_v26 = vpop.permute.xlu1 %2735 }
0x21de   :  { %v7389_v12 = vadd.f32 %v2736_v26, %v2728_v9 }
0x21e0   :  { %5810 = vtanh.f32 %v7389_v12 }
0x21e6   :  { %v5811_v18 = vpop.eup %5810 }
0x21e7   :  { %2741 = vrot.lane.b32.xlu0 %v5811_v18, %s6582_s4 }
0x222a   :  { %v2674_v3 = vpop.permute.xlu1 %2673 }
0x222b   :  { %v2676_v16 = vmul.f32 %v2674_v3, %v2657_v40 }
0x222d   :  { %2678 = vrot.lane.b32.xlu0 %v2676_v16, %s6583_s23 }
0x2259   :  { %v2742_v19 = vpop.permute.xlu0 %2741 }
0x225a   :  { %v7394_v27 = vmul.f32 %v2742_v19, %v2725_v63 }
0x225c   :  { %2817 = vrot.lane.b32.xlu2 %v7394_v27, %s6583_s23 }
0x229f   :  { %v7398_v31 = vpop.permute.xlu0 %2678 }
0x22a0   :  { %5451 = vmatmul.msk.f32.vlgmr.msrb.gmra.mxu0 %vm406_vm0, %v7398_v31 }
0x22b6   :  { %v2818_v25 = vpop.permute.xlu2 %2817 }
0x22b7   :  { %5453 = vmatmul.msk.f32.vlgmr.msrb.gmra.mxu1 %vm406_vm0, %v2818_v25 }
0x231d   :  { %v2770_v38 = vpop.f32.mrf.mxu0 }
0x231e   :  { %v2773_v43 = vadd.f32 %v2770_v38, %v2750_v34  ;;  %v2899_v38 = vld [vmem:[#allocation23 + $0x38] sm:$0xff] }
0x231f   :  { %2941 = vmatpush.msra.mxu2 %v2899_v38 }
0x2320   :  { %5812 = vtanh.f32 %v2773_v43  ;;  %v5452_v23 = vmul.f32 -1.442695, %v2773_v43  ;;  %v2897_v43 = vld [vmem:[#allocation23 + $0x28] sm:$0xff] }
0x2326   :  { %v5813_v44 = vpop.eup %5812 }
0x2327   :  { %2796 = vrot.lane.b32.xlu2 %v5813_v44, %s6582_s4  ;;  %v2896_v44 = vld [vmem:[#allocation23 + $0x20] sm:$0xff] }
0x2334   :  { %v2838_v35 = vpop.f32.mrf.mxu1 }
0x2335   :  { %v2841_v46 = vadd.f32 %v2838_v35, %v2816_v45  ;;  %v2895_v35 = vld [vmem:[#allocation23 + $0x18] sm:$0xff] }
0x2337   :  { %5814 = vtanh.f32 %v2841_v46  ;;  %v5454_v59 = vmul.f32 -1.442695, %v2841_v46  ;;  %v2963_v46 = vld [vmem:[#allocation28 + $0x38] sm:$0xff] }
0x2338   :  { %5816 = vpow2.f32 %v5452_v23  ;;  %2997 = vmatpush.msra.mxu3 %v2963_v46  ;;  %v2893_v23 = vld [vmem:[#allocation23 + $0x8] sm:$0xff] }
0x233d   :  { %v5815_v49 = vpop.eup %5814 }
0x233e   :  { %2864 = vrot.lane.b32.xlu1 %v5815_v49, %s6582_s4  ;;  %v5817_v50 = vpop.eup %5816  ;;  %v2962_v49 = vld [vmem:[#allocation28 + $0x30] sm:$0xff] }
0x233f   :  { %v2777_v10 = vadd.f32 1.0, %v5817_v50  ;;  %2998 = vmatpush.msra.mxu3 %v2962_v49  ;;  %v2961_v50 = vld [vmem:[#allocation28 + $0x28] sm:$0xff] }
0x2341   :  { %5818 = vrcp.f32 %v2777_v10  ;;  %v2789_v29 = vand.u32 2147483648, %v2777_v10  ;;  %vm2783_vm6 = vweird.f32 %v2777_v10  ;;  %v2787_v57 = vand.u32 2147483647, %v2777_v10  ;;  %2999 = vmatpush.msra.mxu3 %v2961_v50 }
0x2342   :  { %5820 = vpow2.f32 %v5454_v59 }
0x2343   :  { %v2790_v52 = vor.u32 1.1754944e-38, %v2789_v29  ;;  %vm2788_vm8 = vcmp.eq.f32.partialorder %v2787_v57, 8.507059e+37  ;;  %v2956_v29 = vld [vmem:[#allocation28] sm:$0xff]  ;;  %v7453_v57 = vld [vmem:[#allocation25 + $0x8] sm:$0xff] }
0x2344   :  { %3079 = vmatpush.msra.mxu0 %v7453_v57 }
0x2347   :  { %v5819_v13 = vpop.eup %5818 }
0x2348   :  { %v2779_v14 = vmul.f32 %v5819_v13, %v2777_v10  ;;  %vm2784_vm5 = vweird.f32 %v5819_v13  ;;  %v5821_v62 = vpop.eup %5820  ;;  %v2892_v10 = vld [vmem:[#allocation23] sm:$0xff] }
0x2349   :  { %vm2785_vm7 = vmor %vm2783_vm6, %vm2784_vm5  ;;  %v2845_v28 = vadd.f32 1.0, %v5821_v62 }
0x234a   :  { %v2780_v51 = vsub.f32 1.0, %v2779_v14 }
0x234b   :  { %5822 = vrcp.f32 %v2845_v28  ;;  %v2857_v47 = vand.u32 2147483648, %v2845_v28  ;;  %vm2851_vm13 = vweird.f32 %v2845_v28  ;;  %v2855_v21 = vand.u32 2147483647, %v2845_v28 }
0x234c   :  { %v2781_v53 = vmul.f32 %v5819_v13, %v2780_v51  ;;  %v2959_v51 = vld [vmem:[#allocation28 + $0x18] sm:$0xff] }
0x234d   :  { %v2858_v48 = vor.u32 1.1754944e-38, %v2857_v47  ;;  %vm2856_vm15 = vcmp.eq.f32.partialorder %v2855_v21, 8.507059e+37 }
0x234e   :  { %v2782_v54 = vadd.f32 %v5819_v13, %v2781_v53  ;;  %v2958_v53 = vld [vmem:[#allocation28 + $0x10] sm:$0xff] }
0x2350   :  { %v2786_v60 = vsel %vm2785_vm7, %v5819_v13, %v2782_v54  ;;  %v2960_v13 = vld [vmem:[#allocation28 + $0x20] sm:$0xff]  ;;  %v2957_v54 = vld [vmem:[#allocation28 + $0x8] sm:$0xff]  ;;  %vm3127_vm7 = vcmask 123904  }
0x2351   :  { %v2791_v55 = vsel %vm2788_vm8, %v2790_v52, %v2786_v60  ;;  %v5823_v37 = vpop.eup %5822  ;;  %3000 = vmatpush.msra.mxu3 %v2960_v13  ;;  %v7455_v60 = vld [vmem:[#allocation25] sm:$0xff]  ;;  %vm3062_vm8 = vcmask 130048  }
0x2352   :  { %v2847_v40 = vmul.f32 %v5823_v37, %v2845_v28  ;;  %vm2852_vm12 = vweird.f32 %v5823_v37  ;;  %3080 = vmatpush.msra.mxu0 %v7455_v60 }
0x2353   :  { %vm2853_vm14 = vmor %vm2851_vm13, %vm2852_vm12  ;;  %3001 = vmatpush.msra.mxu3 %v2959_v51  ;;  %3081 = vmatmul.f32.vlgmr.msra.gmra.mxu0 %v6581_v24 }
0x2354   :  { %v2848_v36 = vsub.f32 1.0, %v2847_v40  ;;  %3211 = vmatpush.msrb.mxu0 %v7453_v57 }
0x2355   :  { %3002 = vmatpush.msra.mxu3 %v2958_v53 }
0x2356   :  { %v2849_v6 = vmul.f32 %v5823_v37, %v2848_v36  ;;  %3212 = vmatpush.msrb.mxu0 %v7455_v60  ;;  %v5568_v36 = vld [vmem:[#allocation26] ss:$0 sm:$0xff] }
0x2357   :  { %3003 = vmatpush.msra.mxu3 %v2957_v54 }
0x2358   :  { %v2850_v1 = vadd.f32 %v5823_v37, %v2849_v6  ;;  %3345 = vmatpush.msra.mxu0 %v7453_v57 }
0x2359   :  { %3004 = vmatpush.msra.mxu3 %v2956_v29 }
0x235a   :  { %v2854_v22 = vsel %vm2853_vm14, %v5823_v37, %v2850_v1  ;;  %3346 = vmatpush.msra.mxu0 %v7455_v60 }
0x235b   :  { %v2859_v39 = vsel %vm2856_vm15, %v2858_v48, %v2854_v22 }
0x2381   :  { %v2797_v17 = vpop.permute.xlu2 %2796 }
0x2382   :  { %v2799_v56 = vmul.f32 %v2797_v17, %v2791_v55  ;;  %v7473_v17 = vld [vmem:[%s8084_s17] sm:$0xff] }
0x2384   :  { %2801 = vrot.lane.b32.xlu1 %v2799_v56, %s6583_s23 }
0x238c   :  { %2478 = vrot.lane.b32.xlu1 %v7346_v15, %s6582_s4  ;;  %v2794_v15 = vmul.f32 %v2791_v55, %v7384_v7  ;;  %v2862_v7 = vmul.f32 %v2859_v39, %v7389_v12 }
0x23b0   :  { %v2865_v2 = vpop.permute.xlu1 %2864 }
0x23b1   :  { %v2867_v32 = vmul.f32 %v2865_v2, %v2859_v39  ;;  %v5569_v2 = vld [vmem:[%s8085_s18] ss:$0 sm:$0xff]  ;;  %s6584_s18 = smov 96  }
0x23b3   :  { %2869 = vrot.lane.b32.xlu0 %v2867_v32, %s6583_s23 }
0x23d0   :  { %v3082_v48 = vpop.f32.mrf.mxu0 }
0x23f6   :  { %v2802_v63 = vpop.permute.xlu1 %2801 }
0x23f7   :  { %v2804_v33 = vadd.f32 %v2802_v63, %v2794_v15 }
0x23f9   :  { %5824 = vtanh.f32 %v2804_v33 }
0x23fe   :  { %v2479_v4 = vpop.permute.xlu1 %2478 }
0x23ff   :  { %v5825_v5 = vpop.eup %5824  ;;  %2481 = vst.msk [vmem:[#allocation3 + $0x6] sm:$0x3] %vm671_vm10, %v2479_v4 }
0x2400   :  { %2807 = vrot.lane.b32.xlu0 %v5825_v5, %s6582_s4 }
0x2406   :  { %v7412_v30 = vld [vmem:[#allocation3 + $0x6] sm:$0x3] }
0x2407   :  { %2918 = vst [vmem:[#allocation1 + $0x3] ss:$4 sm:$0xff] %v7412_v30 }
0x2408   :  { %2746 = vrot.lane.b32.xlu0 %v7394_v27, %s6582_s4 }
0x2410   :  { %2071 = vrot.lane.b32.xlu0 %v7264_v0, %s6582_s4 }
0x2425   :  { %v2870_v8 = vpop.permute.xlu0 %2869 }
0x2426   :  { %v2872_v9 = vadd.f32 %v2870_v8, %v2862_v7 }
0x2428   :  { %5826 = vtanh.f32 %v2872_v9 }
0x242e   :  { %v5827_v26 = vpop.eup %5826 }
0x242f   :  { %2875 = vrot.lane.b32.xlu2 %v5827_v26, %s6582_s4 }
0x2437   :  { %2612 = vrot.lane.b32.xlu2 %v7370_v41, %s6582_s4 }
0x243f   :  { %1935 = vrot.lane.b32.xlu2 %v7234_v58, %s6582_s4 }
0x2447   :  { %2343 = vrot.lane.b32.xlu2 %v7324_v20, %s6582_s4 }
0x2472   :  { %v2808_v18 = vpop.permute.xlu0 %2807 }
0x2473   :  { %v2810_v3 = vmul.f32 %v2808_v18, %v2791_v55  ;;  %v7468_v55 = vld [vmem:[%s8084_s17 + $0x8] sm:$0xff] }
0x2474   :  { %3144 = vmatpush.msra.mxu1 %v7468_v55  ;;  %3547 = vmatpush.msrb.mxu3 %v7468_v55 }
0x2475   :  { %2812 = vrot.lane.b32.xlu0 %v2810_v3, %s6583_s23 }
0x2476   :  { %3145 = vmatpush.msra.mxu1 %v7473_v17  ;;  %3548 = vmatpush.msrb.mxu3 %v7473_v17 }
0x2477   :  { %3146 = vmatmul.f32.vlgmr.msra.gmra.mxu1 %v6581_v24 }
0x2478   :  { %3279 = vmatpush.msrb.mxu1 %v7468_v55 }
0x247a   :  { %v2747_v0 = vpop.permute.xlu0 %2746  ;;  %3280 = vmatpush.msrb.mxu1 %v7473_v17 }
0x247b   :  { %2749 = vst.msk [vmem:[#allocation3 + $0x2] sm:$0x3] %vm671_vm10, %v2747_v0 }
0x247c   :  { %3413 = vmatpush.msra.mxu1 %v7468_v55 }
0x247e   :  { %3414 = vmatpush.msra.mxu1 %v7473_v17 }
0x2482   :  { %v7429_v12 = vld [vmem:[#allocation3 + $0x2] sm:$0x3]  ;;  %v2072_v16 = vpop.permute.xlu0 %2071 }
0x2483   :  { %2914 = vst [vmem:[#allocation1 + $0x1] ss:$4 sm:$0xff] %v7429_v12 }
0x2484   :  { %2075 = vst.msk [vmem:[#allocation3 + $0xc] sm:$0x3] %vm671_vm10, %v2072_v16 }
0x2485   :  { %2681 = vst.msk [vmem:[#allocation3 + $0xc] sm:$0x3] %vm604_vm9, %v7398_v31 }
0x2489   :  { %v2876_v58 = vpop.permute.xlu2 %2875 }
0x248a   :  { %v2878_v41 = vmul.f32 %v2876_v58, %v2859_v39 }
0x248c   :  { %v7435_v20 = vld [vmem:[#allocation3 + $0xc] sm:$0x3]  ;;  %2880 = vrot.lane.b32.xlu1 %v2878_v41, %s6582_s4 }
0x248d   :  { %2924 = vst [vmem:[#allocation1 + $0x22] ss:$4 sm:$0xff] %v7435_v20 }
0x2491   :  { %v2613_v19 = vpop.permute.xlu2 %2612 }
0x2492   :  { %2615 = vst.msk [vmem:[#allocation3 + $0x4] sm:$0x3] %vm671_vm10, %v2613_v19 }
0x2494   :  { %2207 = vrot.lane.b32.xlu1 %v7294_v61, %s6582_s4  ;;  %v2898_v61 = vld [vmem:[#allocation23 + $0x30] sm:$0xff] }
0x2495   :  { %2942 = vmatpush.msra.mxu2 %v2898_v61 }
0x2497   :  { %2943 = vmatpush.msra.mxu2 %v2897_v43 }
0x2499   :  { %v7442_v27 = vld [vmem:[#allocation3 + $0x4] sm:$0x3]  ;;  %v1936_v25 = vpop.permute.xlu2 %1935  ;;  %2944 = vmatpush.msra.mxu2 %v2896_v44 }
0x249a   :  { %2916 = vst [vmem:[#allocation1 + $0x2] ss:$4 sm:$0xff] %v7442_v27 }
0x249b   :  { %1939 = vst.msk [vmem:[#allocation3 + $0xe] sm:$0x3] %vm671_vm10, %v1936_v25  ;;  %2945 = vmatpush.msra.mxu2 %v2895_v35 }
0x24a1   :  { %v2344_v31 = vpop.permute.xlu2 %2343 }
0x24a2   :  { %2347 = vst.msk [vmem:[#allocation3 + $0x8] sm:$0x3] %vm671_vm10, %v2344_v31 }
0x24a3   :  { %2413 = vst.msk [vmem:[#allocation3 + $0x8] sm:$0x3] %vm604_vm9, %v7350_v11  ;;  %v2894_v11 = vld [vmem:[#allocation23 + $0x10] sm:$0xff] }
0x24a4   :  { %2946 = vmatpush.msra.mxu2 %v2894_v11 }
0x24a6   :  { %2947 = vmatpush.msra.mxu2 %v2893_v23 }
0x24a8   :  { %2948 = vmatpush.msra.mxu2 %v2892_v10 }
0x24aa   :  { %v7449_v34 = vld [vmem:[#allocation3 + $0x8] sm:$0x3]  ;;  %3479 = vmatpush.msrb.mxu2 %v7453_v57 }
0x24ab   :  { %2920 = vst [vmem:[#allocation1 + $0x20] ss:$4 sm:$0xff] %v7449_v34 }
0x24ac   :  { %3480 = vmatpush.msrb.mxu2 %v7455_v60 }
0x24e7   :  { %v2813_v45 = vpop.permute.xlu0 %2812 }
0x24e8   :  { %2815 = vst.msk [vmem:[#allocation3 + $0xe] sm:$0x3] %vm604_vm9, %v2813_v45 }
0x24ef   :  { %v2891_v14 = vld [vmem:[#allocation3 + $0xe] sm:$0x3] }
0x24f0   :  { %2926 = vst [vmem:[#allocation1 + $0x23] ss:$4 sm:$0xff] %v2891_v14 }
0x24f4   :  { %v3147_v41 = vpop.f32.mrf.mxu1 }
0x24fe   :  { %v2881_v52 = vpop.permute.xlu1 %2880 }
0x24ff   :  { %2883 = vst.msk [vmem:[#allocation3] sm:$0x3] %vm671_vm10, %v2881_v52 }
0x2506   :  { %v2884_v56 = vld [vmem:[#allocation3] sm:$0x3]  ;;  %v2208_v59 = vpop.permute.xlu1 %2207 }
0x2507   :  { %2912 = vst [vmem:[#allocation1] ss:$4 sm:$0xff] %v2884_v56 }
0x2508   :  { %2211 = vst.msk [vmem:[#allocation3 + $0xa] sm:$0x3] %vm671_vm10, %v2208_v59 }
0x2509   :  { %2547 = vst.msk [vmem:[#allocation3 + $0xa] sm:$0x3] %vm604_vm9, %v7374_v42  ;;  %vm3026_vm9 = vcmask 517120  }
0x250e   :  { %v2927_v62 = vld.sshfl [vmem:[#allocation1] sm:$0xff pattern:$0x73625140] }
0x250f   :  { %5455 = vmatmul.msk.f32.vlgmr.msra.gmra.mxu2 %vm1675_vm11, %v2927_v62  ;;  %2968 = vst [vmem:[#allocation1] ss:$4 sm:$0xff] %v2884_v56 }
0x2510   :  { %v2889_v28 = vld [vmem:[#allocation3 + $0xa] sm:$0x3]  ;;  %2970 = vst [vmem:[#allocation1 + $0x1] ss:$4 sm:$0xff] %v7429_v12  ;;  %3747 = vmatpush.msra.mxu2 %v7453_v57 }
0x2511   :  { %2922 = vst [vmem:[#allocation1 + $0x21] ss:$4 sm:$0xff] %v2889_v28 }
0x2512   :  { %2972 = vst [vmem:[#allocation1 + $0x2] ss:$4 sm:$0xff] %v7442_v27  ;;  %3748 = vmatpush.msra.mxu2 %v7455_v60 }
0x2513   :  { %2974 = vst [vmem:[#allocation1 + $0x3] ss:$4 sm:$0xff] %v7412_v30 }
0x2518   :  { %v2928_v42 = vld.sshfl [vmem:[#allocation1 + $0x20] sm:$0xff pattern:$0x73625140] }
0x2519   :  { %5456 = vmatmul.msk.f32.gmra.mxu2 %vm1675_vm11, %v2928_v42  ;;  %2976 = vst [vmem:[#allocation1 + $0x20] ss:$4 sm:$0xff] %v7449_v34 }
0x251a   :  { %v2983_v37 = vld.sshfl [vmem:[#allocation1] sm:$0xff pattern:$0x73625140]  ;;  %2978 = vst [vmem:[#allocation1 + $0x21] ss:$4 sm:$0xff] %v2889_v28 }
0x251b   :  { %5457 = vmatmul.msk.f32.vlgmr.msra.gmra.mxu3 %vm1675_vm11, %v2983_v37  ;;  %2980 = vst [vmem:[#allocation1 + $0x22] ss:$4 sm:$0xff] %v7435_v20 }
0x251c   :  { %2982 = vst [vmem:[#allocation1 + $0x23] ss:$4 sm:$0xff] %v2891_v14  ;;  %3815 = vmatpush.msra.mxu3 %v7468_v55 }
0x251e   :  { %3816 = vmatpush.msra.mxu3 %v7473_v17 }
0x2523   :  { %v2984_v40 = vld.sshfl [vmem:[#allocation1 + $0x20] sm:$0xff pattern:$0x73625140] }
0x2524   :  { %5458 = vmatmul.msk.f32.gmra.mxu3 %vm1675_vm11, %v2984_v40 }
0x2592   :  { %v2950_v6 = vpop.f32.mrf.mxu2 }
0x2593   :  { %v2951_v1 = vadd.f32 %v5568_v36, %v2950_v6 }
0x2595   :  { %v3014_v47 = vrot.slane %v2951_v1, 2  ;;  %v3015_v21 = vrot.slane %v2951_v1, 4  ;;  %v3016_v22 = vrot.slane %v2951_v1, 6  ;;  %3027 = vst.msk [vmem:[#allocation4] sm:$0x3] %vm3026_vm9, %v2951_v1 }
0x2597   :  { %3028 = vst.msk [vmem:[#allocation4 + $0x2] sm:$0x3] %vm3026_vm9, %v3014_v47 }
0x2598   :  { %3029 = vst.msk [vmem:[#allocation4 + $0x4] sm:$0x3] %vm3026_vm9, %v3015_v21 }
0x2599   :  { %3030 = vst.msk [vmem:[#allocation4 + $0x6] sm:$0x3] %vm3026_vm9, %v3016_v22 }
0x259c   :  { %v2953_v39 = vpop.f32.mrf.mxu2  ;;  %v3061_v32 = vld [vmem:[#allocation4] sm:$0x3] }
0x259d   :  { %v2954_v15 = vadd.f32 %v5568_v36, %v2953_v39  ;;  %v3085_v63 = vadd.f32 %v3082_v48, %v3061_v32 }
0x259e   :  { %v3006_v33 = vpop.f32.mrf.mxu3 }
0x259f   :  { %v3007_v4 = vadd.f32 %v5569_v2, %v3006_v33  ;;  %v3017_v5 = vrot.slane %v2954_v15, 2  ;;  %3031 = vst.msk [vmem:[#allocation4 + $0x8] sm:$0x3] %vm3026_vm9, %v2954_v15  ;;  %5828 = vtanh.f32 %v3085_v63  ;;  %v3018_v9 = vrot.slane %v2954_v15, 4 }
0x25a0   :  { %v3019_v26 = vrot.slane %v2954_v15, 6  ;;  %v5459_v25 = vmul.f32 -1.442695, %v3085_v63 }
0x25a1   :  { %v3037_v30 = vrot.slane %v3007_v4, 2  ;;  %v3038_v7 = vrot.slane %v3007_v4, 4  ;;  %v3039_v8 = vrot.slane %v3007_v4, 6  ;;  %3049 = vst.msk [vmem:[#allocation5] sm:$0x3] %vm3026_vm9, %v3007_v4 }
0x25a2   :  { %3032 = vst.msk [vmem:[#allocation4 + $0xa] sm:$0x3] %vm3026_vm9, %v3017_v5 }
0x25a3   :  { %3050 = vst.msk [vmem:[#allocation5 + $0x2] sm:$0x3] %vm3026_vm9, %v3037_v30  ;;  %v3194_v30 = vld [vmem:[#allocation4 + $0x2] sm:$0x3] }
0x25a4   :  { %3051 = vst.msk [vmem:[#allocation5 + $0x4] sm:$0x3] %vm3026_vm9, %v3038_v7 }
0x25a5   :  { %3052 = vst.msk [vmem:[#allocation5 + $0x6] sm:$0x3] %vm3026_vm9, %v3039_v8  ;;  %v5829_v18 = vpop.eup %5828 }
0x25a6   :  { %3033 = vst.msk [vmem:[#allocation4 + $0xc] sm:$0x3] %vm3026_vm9, %v3018_v9  ;;  %3108 = vrot.lane.b32.xlu2 %v5829_v18, %s6584_s18 }
0x25a7   :  { %3034 = vst.msk [vmem:[#allocation4 + $0xe] sm:$0x3] %vm3026_vm9, %v3019_v26  ;;  %v3009_v3 = vpop.f32.mrf.mxu3 }
0x25a8   :  { %v3010_v0 = vadd.f32 %v5569_v2, %v3009_v3 }
0x25aa   :  { %v3040_v12 = vrot.slane %v3010_v0, 2  ;;  %v3041_v16 = vrot.slane %v3010_v0, 4  ;;  %v3042_v58 = vrot.slane %v3010_v0, 6  ;;  %3053 = vst.msk [vmem:[#allocation5 + $0x8] sm:$0x3] %vm3026_vm9, %v3010_v0 }
0x25ac   :  { %3054 = vst.msk [vmem:[#allocation5 + $0xa] sm:$0x3] %vm3026_vm9, %v3040_v12 }
0x25ad   :  { %3055 = vst.msk [vmem:[#allocation5 + $0xc] sm:$0x3] %vm3026_vm9, %v3041_v16 }
0x25ae   :  { %3056 = vst.msk [vmem:[#allocation5 + $0xe] sm:$0x3] %vm3026_vm9, %v3042_v58 }
0x25b4   :  { %v3260_v26 = vld [vmem:[#allocation5 + $0xc] sm:$0x3] }
0x25b5   :  { %v3129_v20 = vld [vmem:[#allocation5 + $0xe] sm:$0x3] }
0x25b6   :  { %v3150_v19 = vadd.f32 %v3147_v41, %v3129_v20 }
0x25b8   :  { %5830 = vtanh.f32 %v3150_v19  ;;  %v5460_v13 = vmul.f32 -1.442695, %v3150_v19 }
0x25b9   :  { %5832 = vpow2.f32 %v5459_v25 }
0x25be   :  { %v5831_v27 = vpop.eup %5830 }
0x25bf   :  { %3173 = vrot.lane.b32.xlu1 %v5831_v27, %s6584_s18  ;;  %v5833_v31 = vpop.eup %5832 }
0x25c0   :  { %v3089_v34 = vadd.f32 1.0, %v5833_v31 }
0x25c2   :  { %5834 = vrcp.f32 %v3089_v34  ;;  %v3101_v35 = vand.u32 2147483648, %v3089_v34  ;;  %vm3095_vm11 = vweird.f32 %v3089_v34  ;;  %v3099_v46 = vand.u32 2147483647, %v3089_v34 }
0x25c3   :  { %5836 = vpow2.f32 %v5460_v13 }
0x25c4   :  { %v3102_v49 = vor.u32 1.1754944e-38, %v3101_v35  ;;  %vm3100_vm2 = vcmp.eq.f32.partialorder %v3099_v46, 8.507059e+37 }
0x25c8   :  { %v5835_v38 = vpop.eup %5834 }
0x25c9   :  { %v3091_v61 = vmul.f32 %v5835_v38, %v3089_v34  ;;  %vm3096_vm10 = vweird.f32 %v5835_v38  ;;  %v5837_v14 = vpop.eup %5836 }
0x25ca   :  { %vm3097_vm1 = vmor %vm3095_vm11, %vm3096_vm10  ;;  %v3154_v51 = vadd.f32 1.0, %v5837_v14 }
0x25cb   :  { %v3092_v43 = vsub.f32 1.0, %v3091_v61 }
0x25cc   :  { %5838 = vrcp.f32 %v3154_v51  ;;  %v3166_v59 = vand.u32 2147483648, %v3154_v51  ;;  %vm3160_vm4 = vweird.f32 %v3154_v51  ;;  %v3164_v62 = vand.u32 2147483647, %v3154_v51 }
0x25cd   :  { %v3093_v44 = vmul.f32 %v5835_v38, %v3092_v43 }
0x25ce   :  { %v3167_v42 = vor.u32 1.1754944e-38, %v3166_v59  ;;  %vm3165_vm6 = vcmp.eq.f32.partialorder %v3164_v62, 8.507059e+37 }
0x25cf   :  { %v3094_v45 = vadd.f32 %v5835_v38, %v3093_v44 }
0x25d1   :  { %v3098_v11 = vsel %vm3097_vm1, %v5835_v38, %v3094_v45 }
0x25d2   :  { %v3103_v23 = vsel %vm3100_vm2, %v3102_v49, %v3098_v11  ;;  %v5839_v53 = vpop.eup %5838 }
0x25d3   :  { %v3156_v54 = vmul.f32 %v5839_v53, %v3154_v51  ;;  %vm3161_vm3 = vweird.f32 %v5839_v53  ;;  %v3106_v6 = vmul.f32 0.0, %v3103_v23 }
0x25d4   :  { %vm3162_vm5 = vmor %vm3160_vm4, %vm3161_vm3 }
0x25d5   :  { %v3157_v29 = vsub.f32 1.0, %v3156_v54 }
0x25d7   :  { %v3158_v52 = vmul.f32 %v5839_v53, %v3157_v29 }
0x25d9   :  { %v3159_v56 = vadd.f32 %v5839_v53, %v3158_v52 }
0x25db   :  { %v3163_v28 = vsel %vm3162_vm5, %v5839_v53, %v3159_v56 }
0x25dc   :  { %v3168_v40 = vsel %vm3165_vm6, %v3167_v42, %v3163_v28 }
0x25dd   :  { %v3171_v22 = vmul.f32 0.0, %v3168_v40 }
0x2600   :  { %v3109_v50 = vpop.permute.xlu2 %3108 }
0x2601   :  { %v3111_v10 = vmul.f32 %v3109_v50, %v3103_v23 }
0x2603   :  { %3113 = vrot.lane.b32.xlu1 %v3111_v10, %s6585_s27 }
0x2631   :  { %v3174_v37 = vpop.permute.xlu1 %3173 }
0x2632   :  { %v3176_v36 = vmul.f32 %v3174_v37, %v3168_v40 }
0x2634   :  { %3178 = vrot.lane.b32.xlu0 %v3176_v36, %s6585_s27 }
0x2675   :  { %v3114_v1 = vpop.permute.xlu1 %3113 }
0x2676   :  { %v7525_v47 = vadd.f32 %v3114_v1, %v3106_v6 }
0x2678   :  { %5840 = vtanh.f32 %v7525_v47 }
0x267e   :  { %v5841_v21 = vpop.eup %5840 }
0x267f   :  { %3119 = vrot.lane.b32.xlu0 %v5841_v21, %s6583_s23 }
0x26a6   :  { %v3179_v48 = vpop.permute.xlu0 %3178 }
0x26a7   :  { %v7529_v2 = vadd.f32 %v3179_v48, %v3171_v22 }
0x26a9   :  { %5842 = vtanh.f32 %v7529_v2 }
0x26af   :  { %v5843_v39 = vpop.eup %5842 }
0x26b0   :  { %3184 = vrot.lane.b32.xlu2 %v5843_v39, %s6583_s23  ;;  %v3328_v39 = vld [vmem:[#allocation4 + $0x4] sm:$0x3] }
0x26f1   :  { %v3120_v32 = vpop.permute.xlu0 %3119 }
0x26f2   :  { %v3122_v15 = vmul.f32 %v3120_v32, %v3103_v23 }
0x26f4   :  { %3124 = vrot.lane.b32.xlu2 %v3122_v15, %s6586_s28 }
0x270a   :  { %v3185_v63 = vpop.permute.xlu2 %3184 }
0x270b   :  { %v7534_v33 = vmul.f32 %v3185_v63, %v3168_v40 }
0x270d   :  { %3261 = vrot.lane.b32.xlu1 %v7534_v33, %s6586_s28 }
0x274e   :  { %v3125_v4 = vpop.permute.xlu2 %3124 }
0x274f   :  { %3128 = vst.msk [vmem:[#allocation2] sm:$0x3] %vm3127_vm7, %v3125_v4  ;;  %5461 = vmatmul.msk.f32.vlgmr.msrb.gmra.mxu0 %vm3062_vm8, %v3125_v4  ;;  %v3394_v4 = vld [vmem:[#allocation5 + $0xa] sm:$0x3] }
0x2750   :  { %3613 = vmatpush.msrb.mxu0 %v7453_v57 }
0x2752   :  { %3614 = vmatpush.msrb.mxu0 %v7455_v60 }
0x277f   :  { %v3262_v5 = vpop.permute.xlu1 %3261 }
0x2780   :  { %5463 = vmatmul.msk.f32.vlgmr.msrb.gmra.mxu1 %vm3062_vm8, %v3262_v5 }
0x2781   :  { %3681 = vmatpush.msrb.mxu1 %v7468_v55 }
0x2783   :  { %3682 = vmatpush.msrb.mxu1 %v7473_v17 }
0x27cc   :  { %v3214_v7 = vpop.f32.mrf.mxu0 }
0x27cd   :  { %v3217_v8 = vadd.f32 %v3214_v7, %v3194_v30 }
0x27cf   :  { %5844 = vtanh.f32 %v3217_v8  ;;  %v5462_v12 = vmul.f32 -1.442695, %v3217_v8 }
0x27d5   :  { %v5845_v9 = vpop.eup %5844 }
0x27d6   :  { %3240 = vrot.lane.b32.xlu1 %v5845_v9, %s6584_s18 }
0x27fd   :  { %v3282_v18 = vpop.f32.mrf.mxu1 }
0x27fe   :  { %v3285_v3 = vadd.f32 %v3282_v18, %v3260_v26 }
0x2800   :  { %5846 = vtanh.f32 %v3285_v3  ;;  %v5464_v35 = vmul.f32 -1.442695, %v3285_v3 }
0x2801   :  { %5848 = vpow2.f32 %v5462_v12 }
0x2806   :  { %v5847_v0 = vpop.eup %5846 }
0x2807   :  { %3308 = vrot.lane.b32.xlu0 %v5847_v0, %s6584_s18  ;;  %v5849_v16 = vpop.eup %5848 }
0x2808   :  { %v3221_v58 = vadd.f32 1.0, %v5849_v16 }
0x280a   :  { %5850 = vrcp.f32 %v3221_v58  ;;  %v3233_v31 = vand.u32 2147483648, %v3221_v58  ;;  %vm3227_vm13 = vweird.f32 %v3221_v58  ;;  %v3231_v34 = vand.u32 2147483647, %v3221_v58 }
0x280b   :  { %5852 = vpow2.f32 %v5464_v35 }
0x280c   :  { %v3234_v61 = vor.u32 1.1754944e-38, %v3233_v31  ;;  %vm3232_vm15 = vcmp.eq.f32.partialorder %v3231_v34, 8.507059e+37 }
0x2810   :  { %v5851_v41 = vpop.eup %5850 }
0x2811   :  { %v3223_v20 = vmul.f32 %v5851_v41, %v3221_v58  ;;  %vm3228_vm12 = vweird.f32 %v5851_v41  ;;  %v5853_v46 = vpop.eup %5852 }
0x2812   :  { %vm3229_vm14 = vmor %vm3227_vm13, %vm3228_vm12  ;;  %v3289_v11 = vadd.f32 1.0, %v5853_v46 }
0x2813   :  { %v3224_v19 = vsub.f32 1.0, %v3223_v20 }
0x2814   :  { %5854 = vrcp.f32 %v3289_v11  ;;  %v3301_v14 = vand.u32 2147483648, %v3289_v11  ;;  %vm3295_vm11 = vweird.f32 %v3289_v11  ;;  %v3299_v51 = vand.u32 2147483647, %v3289_v11 }
0x2815   :  { %v3225_v27 = vmul.f32 %v5851_v41, %v3224_v19 }
0x2816   :  { %v3302_v54 = vor.u32 1.1754944e-38, %v3301_v14  ;;  %vm3300_vm2 = vcmp.eq.f32.partialorder %v3299_v51, 8.507059e+37 }
0x2817   :  { %v3226_v25 = vadd.f32 %v5851_v41, %v3225_v27 }
0x2819   :  { %v3230_v38 = vsel %vm3229_vm14, %v5851_v41, %v3226_v25 }
0x281a   :  { %v3235_v44 = vsel %vm3232_vm15, %v3234_v61, %v3230_v38  ;;  %v5855_v49 = vpop.eup %5854 }
0x281b   :  { %v3291_v23 = vmul.f32 %v5855_v49, %v3289_v11  ;;  %vm3296_vm10 = vweird.f32 %v5855_v49  ;;  %v3238_v59 = vmul.f32 %v3235_v44, %v7525_v47 }
0x281c   :  { %vm3297_vm1 = vmor %vm3295_vm11, %vm3296_vm10 }
0x281d   :  { %v3292_v50 = vsub.f32 1.0, %v3291_v23 }
0x281f   :  { %v3293_v10 = vmul.f32 %v5855_v49, %v3292_v50 }
0x2821   :  { %v3294_v13 = vadd.f32 %v5855_v49, %v3293_v10 }
0x2823   :  { %v3298_v53 = vsel %vm3297_vm1, %v5855_v49, %v3294_v13 }
0x2824   :  { %v3303_v52 = vsel %vm3300_vm2, %v3302_v54, %v3298_v53 }
0x2825   :  { %v3306_v37 = vmul.f32 %v3303_v52, %v7529_v2 }
0x2848   :  { %v3241_v43 = vpop.permute.xlu1 %3240 }
0x2849   :  { %v3243_v45 = vmul.f32 %v3241_v43, %v3235_v44 }
0x284b   :  { %3245 = vrot.lane.b32.xlu0 %v3243_v45, %s6585_s27 }
0x2879   :  { %v3309_v29 = vpop.permute.xlu0 %3308 }
0x287a   :  { %v3311_v56 = vmul.f32 %v3309_v29, %v3303_v52 }
0x287c   :  { %3313 = vrot.lane.b32.xlu2 %v3311_v56, %s6585_s27 }
0x28bd   :  { %v3246_v62 = vpop.permute.xlu0 %3245 }
0x28be   :  { %v7550_v28 = vadd.f32 %v3246_v62, %v3238_v59 }
0x28c0   :  { %5856 = vtanh.f32 %v7550_v28 }
0x28c6   :  { %v5857_v42 = vpop.eup %5856 }
0x28c7   :  { %3251 = vrot.lane.b32.xlu2 %v5857_v42, %s6583_s23 }
0x28d6   :  { %v3314_v40 = vpop.permute.xlu2 %3313 }
0x28d7   :  { %v7555_v36 = vadd.f32 %v3314_v40, %v3306_v37 }
0x28d9   :  { %5858 = vtanh.f32 %v7555_v36 }
0x28df   :  { %v5859_v6 = vpop.eup %5858 }
0x28e0   :  { %3319 = vrot.lane.b32.xlu1 %v5859_v6, %s6583_s23 }
0x2921   :  { %v3252_v1 = vpop.permute.xlu2 %3251 }
0x2922   :  { %v3254_v47 = vmul.f32 %v3252_v1, %v3235_v44  ;;  %v3462_v1 = vld [vmem:[#allocation4 + $0x6] sm:$0x3] }
0x2924   :  { %3256 = vrot.lane.b32.xlu1 %v3254_v47, %s6586_s28 }
0x2952   :  { %v3320_v21 = vpop.permute.xlu1 %3319 }
0x2953   :  { %v7560_v22 = vmul.f32 %v3320_v21, %v3303_v52 }
0x2955   :  { %3395 = vrot.lane.b32.xlu0 %v7560_v22, %s6586_s28 }
0x2996   :  { %v3257_v48 = vpop.permute.xlu1 %3256 }
0x2997   :  { %3259 = vst.msk [vmem:[#allocation2 + $0x2] sm:$0x3] %vm3127_vm7, %v3257_v48  ;;  %5465 = vmatmul.msk.f32.vlgmr.msra.gmra.mxu0 %vm3062_vm8, %v3257_v48 }
0x2998   :  { %3881 = vmatpush.msra.mxu0 %v7453_v57 }
0x299a   :  { %3882 = vmatpush.msra.mxu0 %v7455_v60 }
0x29c7   :  { %v3396_v2 = vpop.permute.xlu0 %3395 }
0x29c8   :  { %5467 = vmatmul.msk.f32.vlgmr.msra.gmra.mxu1 %vm3062_vm8, %v3396_v2  ;;  %v3528_v2 = vld [vmem:[#allocation5 + $0x8] sm:$0x3] }
0x29c9   :  { %3949 = vmatpush.msra.mxu1 %v7468_v55 }
0x29cb   :  { %3950 = vmatpush.msra.mxu1 %v7473_v17 }
0x2a14   :  { %v3348_v32 = vpop.f32.mrf.mxu0 }
0x2a15   :  { %v3351_v15 = vadd.f32 %v3348_v32, %v3328_v39 }
0x2a17   :  { %5860 = vtanh.f32 %v3351_v15  ;;  %v5466_v8 = vmul.f32 -1.442695, %v3351_v15 }
0x2a1d   :  { %v5861_v63 = vpop.eup %5860 }
0x2a1e   :  { %3374 = vrot.lane.b32.xlu0 %v5861_v63, %s6584_s18 }
0x2a45   :  { %v3416_v5 = vpop.f32.mrf.mxu1 }
0x2a46   :  { %v3419_v30 = vadd.f32 %v3416_v5, %v3394_v4 }
0x2a48   :  { %5862 = vtanh.f32 %v3419_v30  ;;  %v5468_v3 = vmul.f32 -1.442695, %v3419_v30 }
0x2a49   :  { %5864 = vpow2.f32 %v5466_v8 }
0x2a4e   :  { %v5863_v7 = vpop.eup %5862 }
0x2a4f   :  { %3442 = vrot.lane.b32.xlu2 %v5863_v7, %s6584_s18  ;;  %v5865_v9 = vpop.eup %5864 }
0x2a50   :  { %v3355_v26 = vadd.f32 1.0, %v5865_v9 }
0x2a52   :  { %5866 = vrcp.f32 %v3355_v26  ;;  %v3367_v19 = vand.u32 2147483648, %v3355_v26  ;;  %vm3361_vm4 = vweird.f32 %v3355_v26  ;;  %v3365_v27 = vand.u32 2147483647, %v3355_v26 }
0x2a53   :  { %5868 = vpow2.f32 %v5468_v3 }
0x2a54   :  { %v3368_v31 = vor.u32 1.1754944e-38, %v3367_v19  ;;  %vm3366_vm6 = vcmp.eq.f32.partialorder %v3365_v27, 8.507059e+37 }
0x2a58   :  { %v5867_v18 = vpop.eup %5866 }
0x2a59   :  { %v3357_v0 = vmul.f32 %v5867_v18, %v3355_v26  ;;  %v5869_v16 = vpop.eup %5868  ;;  %vm3362_vm3 = vweird.f32 %v5867_v18 }
0x2a5a   :  { %v3423_v41 = vadd.f32 1.0, %v5869_v16  ;;  %vm3363_vm5 = vmor %vm3361_vm4, %vm3362_vm3 }
0x2a5b   :  { %v3358_v12 = vsub.f32 1.0, %v3357_v0 }
0x2a5c   :  { %5870 = vrcp.f32 %v3423_v41  ;;  %v3435_v11 = vand.u32 2147483648, %v3423_v41  ;;  %vm3429_vm13 = vweird.f32 %v3423_v41  ;;  %v3433_v49 = vand.u32 2147483647, %v3423_v41 }
0x2a5d   :  { %v3359_v58 = vmul.f32 %v5867_v18, %v3358_v12 }
0x2a5e   :  { %v3436_v50 = vor.u32 1.1754944e-38, %v3435_v11  ;;  %vm3434_vm15 = vcmp.eq.f32.partialorder %v3433_v49, 8.507059e+37 }
0x2a5f   :  { %v3360_v20 = vadd.f32 %v5867_v18, %v3359_v58 }
0x2a61   :  { %v3364_v25 = vsel %vm3363_vm5, %v5867_v18, %v3360_v20 }
0x2a62   :  { %v3369_v38 = vsel %vm3366_vm6, %v3368_v31, %v3364_v25  ;;  %v5871_v43 = vpop.eup %5870 }
0x2a63   :  { %v3425_v44 = vmul.f32 %v5871_v43, %v3423_v41  ;;  %vm3430_vm12 = vweird.f32 %v5871_v43  ;;  %v3372_v51 = vmul.f32 %v3369_v38, %v7550_v28 }
0x2a64   :  { %vm3431_vm14 = vmor %vm3429_vm13, %vm3430_vm12 }
0x2a65   :  { %v3426_v45 = vsub.f32 1.0, %v3425_v44 }
0x2a67   :  { %v3427_v35 = vmul.f32 %v5871_v43, %v3426_v45 }
0x2a69   :  { %v3428_v46 = vadd.f32 %v5871_v43, %v3427_v35 }
0x2a6b   :  { %v3432_v23 = vsel %vm3431_vm14, %v5871_v43, %v3428_v46 }
0x2a6c   :  { %v3437_v10 = vsel %vm3434_vm15, %v3436_v50, %v3432_v23 }
0x2a6d   :  { %v3440_v52 = vmul.f32 %v3437_v10, %v7555_v36 }
0x2a90   :  { %v3375_v34 = vpop.permute.xlu0 %3374 }
0x2a91   :  { %v3377_v61 = vmul.f32 %v3375_v34, %v3369_v38 }
0x2a93   :  { %3379 = vrot.lane.b32.xlu2 %v3377_v61, %s6585_s27 }
0x2aa9   :  { %v3443_v13 = vpop.permute.xlu2 %3442 }
0x2aaa   :  { %v3445_v14 = vmul.f32 %v3443_v13, %v3437_v10 }
0x2aac   :  { %3447 = vrot.lane.b32.xlu1 %v3445_v14, %s6585_s27 }
0x2aed   :  { %v3380_v53 = vpop.permute.xlu2 %3379 }
0x2aee   :  { %v7576_v54 = vadd.f32 %v3380_v53, %v3372_v51 }
0x2af0   :  { %5872 = vtanh.f32 %v7576_v54 }
0x2af6   :  { %v5873_v29 = vpop.eup %5872 }
0x2af7   :  { %3385 = vrot.lane.b32.xlu1 %v5873_v29, %s6583_s23 }
0x2b1e   :  { %v3448_v56 = vpop.permute.xlu1 %3447 }
0x2b1f   :  { %v7581_v59 = vadd.f32 %v3448_v56, %v3440_v52  ;;  %v3596_v56 = vld [vmem:[#allocation4 + $0x8] sm:$0x3] }
0x2b21   :  { %5874 = vtanh.f32 %v7581_v59 }
0x2b27   :  { %v5875_v62 = vpop.eup %5874 }
0x2b28   :  { %3453 = vrot.lane.b32.xlu0 %v5875_v62, %s6583_s23 }
0x2b69   :  { %v3386_v42 = vpop.permute.xlu1 %3385 }
0x2b6a   :  { %v3388_v28 = vmul.f32 %v3386_v42, %v3369_v38 }
0x2b6c   :  { %3390 = vrot.lane.b32.xlu0 %v3388_v28, %s6586_s28  ;;  %v3662_v28 = vld [vmem:[#allocation5 + $0x6] sm:$0x3] }
0x2b9a   :  { %v3454_v37 = vpop.permute.xlu0 %3453 }
0x2b9b   :  { %v7586_v40 = vmul.f32 %v3454_v37, %v3437_v10 }
0x2b9d   :  { %3529 = vrot.lane.b32.xlu2 %v7586_v40, %s6586_s28 }
0x2bde   :  { %v3391_v6 = vpop.permute.xlu0 %3390 }
0x2bdf   :  { %3393 = vst.msk [vmem:[#allocation2 + $0x4] sm:$0x3] %vm3127_vm7, %v3391_v6  ;;  %5469 = vmatmul.msk.f32.vlgmr.msrb.gmra.mxu2 %vm3062_vm8, %v3391_v6 }
0x2be0   :  { %4015 = vmatpush.msrb.mxu2 %v7453_v57 }
0x2be2   :  { %4016 = vmatpush.msrb.mxu2 %v7455_v60 }
0x2bf7   :  { %v3530_v36 = vpop.permute.xlu2 %3529 }
0x2bf8   :  { %5471 = vmatmul.msk.f32.vlgmr.msrb.gmra.mxu3 %vm3062_vm8, %v3530_v36 }
0x2bf9   :  { %4083 = vmatpush.msrb.mxu3 %v7468_v55 }
0x2bfb   :  { %4084 = vmatpush.msrb.mxu3 %v7473_v17 }
0x2c62   :  { %v3482_v47 = vpop.f32.mrf.mxu2 }
0x2c63   :  { %v3485_v21 = vadd.f32 %v3482_v47, %v3462_v1 }
0x2c65   :  { %5876 = vtanh.f32 %v3485_v21  ;;  %v5470_v60 = vmul.f32 -1.442695, %v3485_v21 }
0x2c6b   :  { %v5877_v48 = vpop.eup %5876 }
0x2c6c   :  { %3508 = vrot.lane.b32.xlu2 %v5877_v48, %s6584_s18 }
0x2c7b   :  { %v3550_v39 = vpop.f32.mrf.mxu3 }
0x2c7c   :  { %v3553_v32 = vadd.f32 %v3550_v39, %v3528_v2 }
0x2c7e   :  { %5878 = vtanh.f32 %v3553_v32  ;;  %v5472_v12 = vmul.f32 -1.442695, %v3553_v32 }
0x2c7f   :  { %5880 = vpow2.f32 %v5470_v60 }
0x2c84   :  { %v5879_v57 = vpop.eup %5878 }
0x2c85   :  { %3576 = vrot.lane.b32.xlu1 %v5879_v57, %s6584_s18  ;;  %v5881_v15 = vpop.eup %5880 }
0x2c86   :  { %v3489_v55 = vadd.f32 1.0, %v5881_v15 }
0x2c88   :  { %5882 = vrcp.f32 %v3489_v55  ;;  %v3501_v7 = vand.u32 2147483648, %v3489_v55  ;;  %vm3495_vm11 = vweird.f32 %v3489_v55  ;;  %v3499_v8 = vand.u32 2147483647, %v3489_v55 }
0x2c89   :  { %5884 = vpow2.f32 %v5472_v12 }
0x2c8a   :  { %v3502_v26 = vor.u32 1.1754944e-38, %v3501_v7  ;;  %vm3500_vm2 = vcmp.eq.f32.partialorder %v3499_v8, 8.507059e+37 }
0x2c8e   :  { %v5883_v17 = vpop.eup %5882 }
0x2c8f   :  { %v3491_v63 = vmul.f32 %v5883_v17, %v3489_v55  ;;  %vm3496_vm10 = vweird.f32 %v5883_v17  ;;  %v5885_v16 = vpop.eup %5884 }
0x2c90   :  { %vm3497_vm1 = vmor %vm3495_vm11, %vm3496_vm10  ;;  %v3557_v58 = vadd.f32 1.0, %v5885_v16 }
0x2c91   :  { %v3492_v4 = vsub.f32 1.0, %v3491_v63 }
0x2c92   :  { %5886 = vrcp.f32 %v3557_v58  ;;  %v3569_v31 = vand.u32 2147483648, %v3557_v58  ;;  %vm3563_vm4 = vweird.f32 %v3557_v58  ;;  %v3567_v34 = vand.u32 2147483647, %v3557_v58 }
0x2c93   :  { %v3493_v5 = vmul.f32 %v5883_v17, %v3492_v4 }
0x2c94   :  { %v3570_v61 = vor.u32 1.1754944e-38, %v3569_v31  ;;  %vm3568_vm6 = vcmp.eq.f32.partialorder %v3567_v34, 8.507059e+37 }
0x2c95   :  { %v3494_v30 = vadd.f32 %v5883_v17, %v3493_v5 }
0x2c97   :  { %v3498_v9 = vsel %vm3497_vm1, %v5883_v17, %v3494_v30 }
0x2c98   :  { %v3503_v18 = vsel %vm3500_vm2, %v3502_v26, %v3498_v9  ;;  %v5887_v41 = vpop.eup %5886 }
0x2c99   :  { %v3559_v20 = vmul.f32 %v5887_v41, %v3557_v58  ;;  %vm3564_vm3 = vweird.f32 %v5887_v41  ;;  %v3506_v35 = vmul.f32 %v3503_v18, %v7576_v54 }
0x2c9a   :  { %vm3565_vm5 = vmor %vm3563_vm4, %vm3564_vm3 }
0x2c9b   :  { %v3560_v19 = vsub.f32 1.0, %v3559_v20 }
0x2c9d   :  { %v3561_v27 = vmul.f32 %v5887_v41, %v3560_v19 }
0x2c9f   :  { %v3562_v25 = vadd.f32 %v5887_v41, %v3561_v27 }
0x2ca1   :  { %v3566_v38 = vsel %vm3565_vm5, %v5887_v41, %v3562_v25 }
0x2ca2   :  { %v3571_v44 = vsel %vm3568_vm6, %v3570_v61, %v3566_v38 }
0x2ca3   :  { %v3574_v23 = vmul.f32 %v3571_v44, %v7581_v59 }
0x2cc6   :  { %v3509_v3 = vpop.permute.xlu2 %3508 }
0x2cc7   :  { %v3511_v0 = vmul.f32 %v3509_v3, %v3503_v18 }
0x2cc9   :  { %3513 = vrot.lane.b32.xlu1 %v3511_v0, %s6585_s27 }
0x2cf7   :  { %v3577_v43 = vpop.permute.xlu1 %3576 }
0x2cf8   :  { %v3579_v45 = vmul.f32 %v3577_v43, %v3571_v44 }
0x2cfa   :  { %3581 = vrot.lane.b32.xlu0 %v3579_v45, %s6585_s27 }
0x2d3b   :  { %v3514_v46 = vpop.permute.xlu1 %3513 }
0x2d3c   :  { %v7602_v11 = vadd.f32 %v3514_v46, %v3506_v35 }
0x2d3e   :  { %5888 = vtanh.f32 %v7602_v11 }
0x2d44   :  { %v5889_v49 = vpop.eup %5888 }
0x2d45   :  { %3519 = vrot.lane.b32.xlu0 %v5889_v49, %s6583_s23 }
0x2d6c   :  { %v3582_v50 = vpop.permute.xlu0 %3581 }
0x2d6d   :  { %v7607_v10 = vadd.f32 %v3582_v50, %v3574_v23 }
0x2d6f   :  { %5890 = vtanh.f32 %v7607_v10 }
0x2d75   :  { %v5891_v13 = vpop.eup %5890 }
0x2d76   :  { %3587 = vrot.lane.b32.xlu2 %v5891_v13, %s6583_s23 }
0x2db7   :  { %v3520_v14 = vpop.permute.xlu0 %3519 }
0x2db8   :  { %v3522_v51 = vmul.f32 %v3520_v14, %v3503_v18 }
0x2dba   :  { %3524 = vrot.lane.b32.xlu2 %v3522_v51, %s6586_s28 }
0x2dd0   :  { %v3588_v53 = vpop.permute.xlu2 %3587 }
0x2dd1   :  { %v7612_v54 = vmul.f32 %v3588_v53, %v3571_v44  ;;  %v3796_v53 = vld [vmem:[#allocation5 + $0x4] sm:$0x3] }
0x2dd3   :  { %3663 = vrot.lane.b32.xlu1 %v7612_v54, %s6586_s28 }
0x2e14   :  { %v3525_v29 = vpop.permute.xlu2 %3524 }
0x2e15   :  { %3527 = vst.msk [vmem:[#allocation2 + $0x6] sm:$0x3] %vm3127_vm7, %v3525_v29  ;;  %5473 = vmatmul.msk.f32.vlgmr.msrb.gmra.mxu0 %vm3062_vm8, %v3525_v29 }
0x2e45   :  { %v3664_v52 = vpop.permute.xlu1 %3663 }
0x2e46   :  { %5475 = vmatmul.msk.f32.vlgmr.msrb.gmra.mxu1 %vm3062_vm8, %v3664_v52 }
0x2e92   :  { %v3616_v59 = vpop.f32.mrf.mxu0 }
0x2e93   :  { %v3619_v62 = vadd.f32 %v3616_v59, %v3596_v56 }
0x2e95   :  { %5892 = vtanh.f32 %v3619_v62  ;;  %v5474_v1 = vmul.f32 -1.442695, %v3619_v62 }
0x2e9b   :  { %v5893_v42 = vpop.eup %5892 }
0x2e9c   :  { %3642 = vrot.lane.b32.xlu1 %v5893_v42, %s6584_s18 }
0x2ec3   :  { %v3684_v37 = vpop.f32.mrf.mxu1 }
0x2ec4   :  { %v3687_v6 = vadd.f32 %v3684_v37, %v3662_v28 }
0x2ec6   :  { %5894 = vtanh.f32 %v3687_v6  ;;  %v5476_v30 = vmul.f32 -1.442695, %v3687_v6 }
0x2ec7   :  { %5896 = vpow2.f32 %v5474_v1 }
0x2ecc   :  { %v5895_v36 = vpop.eup %5894 }
0x2ecd   :  { %3710 = vrot.lane.b32.xlu0 %v5895_v36, %s6584_s18  ;;  %v5897_v47 = vpop.eup %5896 }
0x2ece   :  { %v3623_v21 = vadd.f32 1.0, %v5897_v47 }
0x2ed0   :  { %5898 = vrcp.f32 %v3623_v21  ;;  %v3635_v60 = vand.u32 2147483648, %v3623_v21  ;;  %vm3629_vm13 = vweird.f32 %v3623_v21  ;;  %v3633_v15 = vand.u32 2147483647, %v3623_v21 }
0x2ed1   :  { %5900 = vpow2.f32 %v5476_v30 }
0x2ed2   :  { %v3636_v17 = vor.u32 1.1754944e-38, %v3635_v60  ;;  %vm3634_vm15 = vcmp.eq.f32.partialorder %v3633_v15, 8.507059e+37 }
0x2ed6   :  { %v5899_v48 = vpop.eup %5898 }
0x2ed7   :  { %v3625_v2 = vmul.f32 %v5899_v48, %v3623_v21  ;;  %vm3630_vm12 = vweird.f32 %v5899_v48  ;;  %v5901_v7 = vpop.eup %5900 }
0x2ed8   :  { %vm3631_vm14 = vmor %vm3629_vm13, %vm3630_vm12  ;;  %v3691_v8 = vadd.f32 1.0, %v5901_v7 }
0x2ed9   :  { %v3626_v39 = vsub.f32 1.0, %v3625_v2 }
0x2eda   :  { %5902 = vrcp.f32 %v3691_v8  ;;  %v3703_v12 = vand.u32 2147483648, %v3691_v8  ;;  %vm3697_vm11 = vweird.f32 %v3691_v8  ;;  %v3701_v16 = vand.u32 2147483647, %v3691_v8 }
0x2edb   :  { %v3627_v32 = vmul.f32 %v5899_v48, %v3626_v39 }
0x2edc   :  { %v3704_v41 = vor.u32 1.1754944e-38, %v3703_v12  ;;  %vm3702_vm2 = vcmp.eq.f32.partialorder %v3701_v16, 8.507059e+37 }
0x2edd   :  { %v3628_v57 = vadd.f32 %v5899_v48, %v3627_v32 }
0x2edf   :  { %v3632_v55 = vsel %vm3631_vm14, %v5899_v48, %v3628_v57 }
0x2ee0   :  { %v3637_v4 = vsel %vm3634_vm15, %v3636_v17, %v3632_v55  ;;  %v5903_v9 = vpop.eup %5902 }
0x2ee1   :  { %v3693_v26 = vmul.f32 %v5903_v9, %v3691_v8  ;;  %vm3698_vm10 = vweird.f32 %v5903_v9  ;;  %v3640_v25 = vmul.f32 %v3637_v4, %v7602_v11 }
0x2ee2   :  { %vm3699_vm1 = vmor %vm3697_vm11, %vm3698_vm10 }
0x2ee3   :  { %v3694_v18 = vsub.f32 1.0, %v3693_v26 }
0x2ee5   :  { %v3695_v3 = vmul.f32 %v5903_v9, %v3694_v18 }
0x2ee7   :  { %v3696_v0 = vadd.f32 %v5903_v9, %v3695_v3 }
0x2ee9   :  { %v3700_v58 = vsel %vm3699_vm1, %v5903_v9, %v3696_v0 }
0x2eea   :  { %v3705_v19 = vsel %vm3702_vm2, %v3704_v41, %v3700_v58 }
0x2eeb   :  { %v3708_v61 = vmul.f32 %v3705_v19, %v7607_v10  ;;  %v3730_v10 = vld [vmem:[#allocation4 + $0xa] sm:$0x3] }
0x2f0e   :  { %v3643_v63 = vpop.permute.xlu1 %3642 }
0x2f0f   :  { %v3645_v5 = vmul.f32 %v3643_v63, %v3637_v4 }
0x2f11   :  { %3647 = vrot.lane.b32.xlu0 %v3645_v5, %s6585_s27 }
0x2f3f   :  { %v3711_v20 = vpop.permute.xlu0 %3710 }
0x2f40   :  { %v3713_v27 = vmul.f32 %v3711_v20, %v3705_v19 }
0x2f42   :  { %3715 = vrot.lane.b32.xlu2 %v3713_v27, %s6585_s27 }
0x2f83   :  { %v3648_v31 = vpop.permute.xlu0 %3647 }
0x2f84   :  { %v7624_v34 = vadd.f32 %v3648_v31, %v3640_v25 }
0x2f86   :  { %5904 = vtanh.f32 %v7624_v34 }
0x2f8c   :  { %v5905_v38 = vpop.eup %5904 }
0x2f8d   :  { %3653 = vrot.lane.b32.xlu2 %v5905_v38, %s6583_s23 }
0x2f9c   :  { %v3716_v43 = vpop.permute.xlu2 %3715 }
0x2f9d   :  { %v7629_v44 = vadd.f32 %v3716_v43, %v3708_v61 }
0x2f9f   :  { %5906 = vtanh.f32 %v7629_v44 }
0x2fa5   :  { %v5907_v45 = vpop.eup %5906 }
0x2fa6   :  { %3721 = vrot.lane.b32.xlu1 %v5907_v45, %s6583_s23  ;;  %v3864_v45 = vld [vmem:[#allocation4 + $0xc] sm:$0x3] }
0x2fe7   :  { %v3654_v35 = vpop.permute.xlu2 %3653 }
0x2fe8   :  { %v3656_v46 = vmul.f32 %v3654_v35, %v3637_v4 }
0x2fea   :  { %3658 = vrot.lane.b32.xlu1 %v3656_v46, %s6586_s28 }
0x3018   :  { %v3722_v11 = vpop.permute.xlu1 %3721 }
0x3019   :  { %v7634_v49 = vmul.f32 %v3722_v11, %v3705_v19 }
0x301b   :  { %3797 = vrot.lane.b32.xlu0 %v7634_v49, %s6586_s28 }
0x305c   :  { %v7638_v23 = vpop.permute.xlu1 %3658 }
0x305d   :  { %5477 = vmatmul.msk.f32.vlgmr.msra.gmra.mxu2 %vm3062_vm8, %v7638_v23 }
0x308d   :  { %v3798_v50 = vpop.permute.xlu0 %3797 }
0x308e   :  { %5479 = vmatmul.msk.f32.vlgmr.msra.gmra.mxu3 %vm3062_vm8, %v3798_v50  ;;  %v3930_v50 = vld [vmem:[#allocation5 + $0x2] sm:$0x3] }
0x30e0   :  { %v3750_v13 = vpop.f32.mrf.mxu2 }
0x30e1   :  { %v3753_v14 = vadd.f32 %v3750_v13, %v3730_v10 }
0x30e3   :  { %5908 = vtanh.f32 %v3753_v14  ;;  %v5478_v59 = vmul.f32 -1.442695, %v3753_v14 }
0x30e9   :  { %v5909_v51 = vpop.eup %5908 }
0x30ea   :  { %3776 = vrot.lane.b32.xlu0 %v5909_v51, %s6584_s18 }
0x3111   :  { %v3818_v29 = vpop.f32.mrf.mxu3 }
0x3112   :  { %v3821_v52 = vadd.f32 %v3818_v29, %v3796_v53 }
0x3114   :  { %5910 = vtanh.f32 %v3821_v52  ;;  %v5480_v37 = vmul.f32 -1.442695, %v3821_v52 }
0x3115   :  { %5912 = vpow2.f32 %v5478_v59 }
0x311a   :  { %v5911_v56 = vpop.eup %5910 }
0x311b   :  { %3844 = vrot.lane.b32.xlu2 %v5911_v56, %s6584_s18  ;;  %v5913_v62 = vpop.eup %5912 }
0x311c   :  { %v3757_v42 = vadd.f32 1.0, %v5913_v62 }
0x311e   :  { %5914 = vrcp.f32 %v3757_v42  ;;  %v3769_v2 = vand.u32 2147483648, %v3757_v42  ;;  %vm3763_vm4 = vweird.f32 %v3757_v42  ;;  %v3767_v39 = vand.u32 2147483647, %v3757_v42 }
0x311f   :  { %5916 = vpow2.f32 %v5480_v37 }
0x3120   :  { %v3770_v57 = vor.u32 1.1754944e-38, %v3769_v2  ;;  %vm3768_vm6 = vcmp.eq.f32.partialorder %v3767_v39, 8.507059e+37 }
0x3124   :  { %v5915_v28 = vpop.eup %5914 }
0x3125   :  { %v3759_v6 = vmul.f32 %v5915_v28, %v3757_v42  ;;  %v5917_v1 = vpop.eup %5916  ;;  %vm3764_vm3 = vweird.f32 %v5915_v28 }
0x3126   :  { %v3825_v21 = vadd.f32 1.0, %v5917_v1  ;;  %vm3765_vm5 = vmor %vm3763_vm4, %vm3764_vm3 }
0x3127   :  { %v3760_v36 = vsub.f32 1.0, %v3759_v6 }
0x3128   :  { %5918 = vrcp.f32 %v3825_v21  ;;  %v3837_v7 = vand.u32 2147483648, %v3825_v21  ;;  %vm3831_vm13 = vweird.f32 %v3825_v21  ;;  %v3835_v8 = vand.u32 2147483647, %v3825_v21 }
0x3129   :  { %v3761_v47 = vmul.f32 %v5915_v28, %v3760_v36 }
0x312a   :  { %v3838_v26 = vor.u32 1.1754944e-38, %v3837_v7  ;;  %vm3836_vm15 = vcmp.eq.f32.partialorder %v3835_v8, 8.507059e+37 }
0x312b   :  { %v3762_v48 = vadd.f32 %v5915_v28, %v3761_v47 }
0x312d   :  { %v3766_v32 = vsel %vm3765_vm5, %v5915_v28, %v3762_v48 }
0x312e   :  { %v3771_v15 = vsel %vm3768_vm6, %v3770_v57, %v3766_v32  ;;  %v5919_v17 = vpop.eup %5918 }
0x312f   :  { %v3827_v63 = vmul.f32 %v5919_v17, %v3825_v21  ;;  %vm3832_vm12 = vweird.f32 %v5919_v17  ;;  %v3774_v12 = vmul.f32 %v3771_v15, %v7624_v34 }
0x3130   :  { %vm3833_vm14 = vmor %vm3831_vm13, %vm3832_vm12 }
0x3131   :  { %v3828_v4 = vsub.f32 1.0, %v3827_v63 }
0x3133   :  { %v3829_v5 = vmul.f32 %v5919_v17, %v3828_v4 }
0x3135   :  { %v3830_v30 = vadd.f32 %v5919_v17, %v3829_v5 }
0x3137   :  { %v3834_v9 = vsel %vm3833_vm14, %v5919_v17, %v3830_v30 }
0x3138   :  { %v3839_v18 = vsel %vm3836_vm15, %v3838_v26, %v3834_v9 }
0x3139   :  { %v3842_v20 = vmul.f32 %v3839_v18, %v7629_v44 }
0x315c   :  { %v3777_v60 = vpop.permute.xlu0 %3776 }
0x315d   :  { %v3779_v55 = vmul.f32 %v3777_v60, %v3771_v15 }
0x315f   :  { %3781 = vrot.lane.b32.xlu2 %v3779_v55, %s6585_s27 }
0x3175   :  { %v3845_v3 = vpop.permute.xlu2 %3844 }
0x3176   :  { %v3847_v0 = vmul.f32 %v3845_v3, %v3839_v18 }
0x3178   :  { %3849 = vrot.lane.b32.xlu1 %v3847_v0, %s6585_s27 }
0x31b9   :  { %v3782_v16 = vpop.permute.xlu2 %3781 }
0x31ba   :  { %v7648_v58 = vadd.f32 %v3782_v16, %v3774_v12 }
0x31bc   :  { %5920 = vtanh.f32 %v7648_v58 }
0x31c2   :  { %v5921_v41 = vpop.eup %5920 }
0x31c3   :  { %3787 = vrot.lane.b32.xlu1 %v5921_v41, %s6583_s23 }
0x31ea   :  { %v3850_v19 = vpop.permute.xlu1 %3849 }
0x31eb   :  { %v7653_v27 = vadd.f32 %v3850_v19, %v3842_v20 }
0x31ed   :  { %5922 = vtanh.f32 %v7653_v27 }
0x31f3   :  { %v5923_v25 = vpop.eup %5922 }
0x31f4   :  { %3855 = vrot.lane.b32.xlu0 %v5923_v25, %s6583_s23 }
0x3235   :  { %v3788_v31 = vpop.permute.xlu1 %3787 }
0x3236   :  { %v3790_v34 = vmul.f32 %v3788_v31, %v3771_v15 }
0x3238   :  { %3792 = vrot.lane.b32.xlu0 %v3790_v34, %s6586_s28  ;;  %v3998_v34 = vld [vmem:[#allocation4 + $0xe] sm:$0x3] }
0x3266   :  { %v3856_v38 = vpop.permute.xlu0 %3855 }
0x3267   :  { %v7658_v61 = vmul.f32 %v3856_v38, %v3839_v18 }
0x3269   :  { %3931 = vrot.lane.b32.xlu2 %v7658_v61, %s6586_s28 }
0x32aa   :  { %v7662_v43 = vpop.permute.xlu0 %3792 }
0x32ab   :  { %5481 = vmatmul.msk.f32.vlgmr.msra.gmra.mxu0 %vm3062_vm8, %v7662_v43 }
0x32c3   :  { %v3932_v44 = vpop.permute.xlu2 %3931 }
0x32c4   :  { %5483 = vmatmul.msk.f32.vlgmr.msra.gmra.mxu1 %vm3062_vm8, %v3932_v44 }
0x3328   :  { %v3884_v35 = vpop.f32.mrf.mxu0 }
0x3329   :  { %v3887_v46 = vadd.f32 %v3884_v35, %v3864_v45  ;;  %v4064_v35 = vld [vmem:[#allocation5] sm:$0x3] }
0x332b   :  { %5924 = vtanh.f32 %v3887_v46  ;;  %v5482_v51 = vmul.f32 -1.442695, %v3887_v46 }
0x3331   :  { %v5925_v11 = vpop.eup %5924 }
0x3332   :  { %3910 = vrot.lane.b32.xlu2 %v5925_v11, %s6584_s18 }
0x3341   :  { %v3952_v10 = vpop.f32.mrf.mxu1 }
0x3342   :  { %v3955_v13 = vadd.f32 %v3952_v10, %v3930_v50 }
0x3344   :  { %5926 = vtanh.f32 %v3955_v13  ;;  %v5484_v48 = vmul.f32 -1.442695, %v3955_v13 }
0x3345   :  { %5928 = vpow2.f32 %v5482_v51 }
0x334a   :  { %v5927_v14 = vpop.eup %5926 }
0x334b   :  { %3978 = vrot.lane.b32.xlu1 %v5927_v14, %s6584_s18  ;;  %v5929_v53 = vpop.eup %5928 }
0x334c   :  { %v3891_v29 = vadd.f32 1.0, %v5929_v53 }
0x334e   :  { %5930 = vrcp.f32 %v3891_v29  ;;  %v3903_v28 = vand.u32 2147483648, %v3891_v29  ;;  %vm3897_vm11 = vweird.f32 %v3891_v29  ;;  %v3901_v37 = vand.u32 2147483647, %v3891_v29 }
0x334f   :  { %5932 = vpow2.f32 %v5484_v48 }
0x3350   :  { %v3904_v36 = vor.u32 1.1754944e-38, %v3903_v28  ;;  %vm3902_vm2 = vcmp.eq.f32.partialorder %v3901_v37, 8.507059e+37 }
0x3354   :  { %v5931_v52 = vpop.eup %5930 }
0x3355   :  { %v3893_v56 = vmul.f32 %v5931_v52, %v3891_v29  ;;  %vm3898_vm10 = vweird.f32 %v5931_v52  ;;  %v5933_v2 = vpop.eup %5932 }
0x3356   :  { %vm3899_vm1 = vmor %vm3897_vm11, %vm3898_vm10  ;;  %v3959_v39 = vadd.f32 1.0, %v5933_v2 }
0x3357   :  { %v3894_v59 = vsub.f32 1.0, %v3893_v56 }
0x3358   :  { %5934 = vrcp.f32 %v3959_v39  ;;  %v3971_v17 = vand.u32 2147483648, %v3959_v39  ;;  %vm3965_vm4 = vweird.f32 %v3959_v39  ;;  %v3969_v63 = vand.u32 2147483647, %v3959_v39 }
0x3359   :  { %v3895_v62 = vmul.f32 %v5931_v52, %v3894_v59 }
0x335a   :  { %v3972_v5 = vor.u32 1.1754944e-38, %v3971_v17  ;;  %vm3970_vm6 = vcmp.eq.f32.partialorder %v3969_v63, 8.507059e+37 }
0x335b   :  { %v3896_v42 = vadd.f32 %v5931_v52, %v3895_v62 }
0x335d   :  { %v3900_v6 = vsel %vm3899_vm1, %v5931_v52, %v3896_v42 }
0x335e   :  { %v3905_v1 = vsel %vm3902_vm2, %v3904_v36, %v3900_v6  ;;  %v5935_v32 = vpop.eup %5934 }
0x335f   :  { %v3961_v57 = vmul.f32 %v5935_v32, %v3959_v39  ;;  %vm3966_vm3 = vweird.f32 %v5935_v32  ;;  %v3908_v9 = vmul.f32 %v3905_v1, %v7648_v58 }
0x3360   :  { %vm3967_vm5 = vmor %vm3965_vm4, %vm3966_vm3  ;;  %vm3192_vm3 = vcmask 255104  }
0x3361   :  { %v3962_v60 = vsub.f32 1.0, %v3961_v57 }
0x3363   :  { %v3963_v15 = vmul.f32 %v5935_v32, %v3962_v60 }
0x3365   :  { %v3964_v55 = vadd.f32 %v5935_v32, %v3963_v15 }
0x3367   :  { %v3968_v4 = vsel %vm3967_vm5, %v5935_v32, %v3964_v55 }
0x3368   :  { %v3973_v7 = vsel %vm3970_vm6, %v3972_v5, %v3968_v4 }
0x3369   :  { %v3976_v0 = vmul.f32 %v3973_v7, %v7653_v27 }
0x338c   :  { %v3911_v47 = vpop.permute.xlu2 %3910 }
0x338d   :  { %v3913_v21 = vmul.f32 %v3911_v47, %v3905_v1 }
0x338f   :  { %3915 = vrot.lane.b32.xlu1 %v3913_v21, %s6585_s27 }
0x33bd   :  { %v3979_v30 = vpop.permute.xlu1 %3978 }
0x33be   :  { %v3981_v8 = vmul.f32 %v3979_v30, %v3973_v7 }
0x33c0   :  { %3983 = vrot.lane.b32.xlu0 %v3981_v8, %s6585_s27 }
0x3401   :  { %v3916_v26 = vpop.permute.xlu1 %3915 }
0x3402   :  { %v7672_v18 = vadd.f32 %v3916_v26, %v3908_v9 }
0x3404   :  { %5936 = vtanh.f32 %v7672_v18 }
0x340a   :  { %v5937_v3 = vpop.eup %5936 }
0x340b   :  { %3921 = vrot.lane.b32.xlu0 %v5937_v3, %s6583_s23 }
0x3432   :  { %v3984_v12 = vpop.permute.xlu0 %3983 }
0x3433   :  { %v7677_v16 = vadd.f32 %v3984_v12, %v3976_v0 }
0x3435   :  { %5938 = vtanh.f32 %v7677_v16 }
0x343b   :  { %v5939_v41 = vpop.eup %5938 }
0x343c   :  { %3989 = vrot.lane.b32.xlu2 %v5939_v41, %s6583_s23 }
0x347d   :  { %v3922_v20 = vpop.permute.xlu0 %3921 }
0x347e   :  { %v3924_v58 = vmul.f32 %v3922_v20, %v3905_v1 }
0x3480   :  { %3926 = vrot.lane.b32.xlu2 %v3924_v58, %s6586_s28 }
0x3496   :  { %v3990_v19 = vpop.permute.xlu2 %3989 }
0x3497   :  { %v7682_v25 = vmul.f32 %v3990_v19, %v3973_v7 }
0x3499   :  { %4065 = vrot.lane.b32.xlu1 %v7682_v25, %s6586_s28 }
0x34da   :  { %v7686_v31 = vpop.permute.xlu2 %3926 }
0x34db   :  { %5485 = vmatmul.msk.f32.vlgmr.msrb.gmra.mxu2 %vm3062_vm8, %v7686_v31 }
0x350b   :  { %v4066_v27 = vpop.permute.xlu1 %4065 }
0x350c   :  { %5487 = vmatmul.msk.f32.vlgmr.msrb.gmra.mxu3 %vm3062_vm8, %v4066_v27 }
0x355e   :  { %v4018_v38 = vpop.f32.mrf.mxu2 }
0x355f   :  { %v4021_v44 = vadd.f32 %v4018_v38, %v3998_v34 }
0x3561   :  { %5940 = vtanh.f32 %v4021_v44  ;;  %v5486_v10 = vmul.f32 -1.442695, %v4021_v44  ;;  %v4143_v44 = vld [vmem:[#allocation29 + $0x18] sm:$0xff] }
0x3562   :  { %4189 = vmatpush.msrb.mxu0 %v4143_v44 }
0x3567   :  { %v5941_v45 = vpop.eup %5940 }
0x3568   :  { %4044 = vrot.lane.b32.xlu1 %v5941_v45, %s6584_s18  ;;  %v4142_v45 = vld [vmem:[#allocation29 + $0x10] sm:$0xff] }
0x3569   :  { %4190 = vmatpush.msrb.mxu0 %v4142_v45 }
0x358f   :  { %v4086_v46 = vpop.f32.mrf.mxu3 }
0x3590   :  { %v4089_v11 = vadd.f32 %v4086_v46, %v4064_v35  ;;  %v4141_v35 = vld [vmem:[#allocation29 + $0x8] sm:$0xff]  ;;  %v4140_v46 = vld [vmem:[#allocation29] sm:$0xff] }
0x3591   :  { %4191 = vmatpush.msrb.mxu0 %v4141_v35 }
0x3592   :  { %5942 = vtanh.f32 %v4089_v11  ;;  %v5488_v1 = vmul.f32 -1.442695, %v4089_v11  ;;  %v7744_v11 = vld [vmem:[#allocation31 + $0x8] sm:$0xff] }
0x3593   :  { %5944 = vpow2.f32 %v5486_v10  ;;  %4192 = vmatpush.msrb.mxu0 %v4140_v46  ;;  %4315 = vmatpush.msra.mxu2 %v7744_v11  ;;  %v7747_v10 = vld [vmem:[#allocation31] sm:$0xff] }
0x3595   :  { %4582 = vmatpush.msra.mxu0 %v7744_v11  ;;  %4316 = vmatpush.msra.mxu2 %v7747_v10 }
0x3596   :  { %4317 = vmatmul.f32.vlgmr.msra.gmra.mxu2 %v6581_v24 }
0x3597   :  { %4583 = vmatpush.msra.mxu0 %v7747_v10  ;;  %4446 = vmatpush.msrb.mxu2 %v7744_v11 }
0x3598   :  { %v5943_v50 = vpop.eup %5942 }
0x3599   :  { %4112 = vrot.lane.b32.xlu0 %v5943_v50, %s6584_s18  ;;  %v5945_v13 = vpop.eup %5944  ;;  %v4202_v50 = vld [vmem:[#allocation32 + $0x10] sm:$0xff]  ;;  %4447 = vmatpush.msrb.mxu2 %v7747_v10 }
0x359a   :  { %v4025_v14 = vadd.f32 1.0, %v5945_v13  ;;  %v4201_v13 = vld [vmem:[#allocation32 + $0x8] sm:$0xff] }
0x359b   :  { %4718 = vmatpush.msra.mxu2 %v7744_v11 }
0x359c   :  { %5946 = vrcp.f32 %v4025_v14  ;;  %v4037_v59 = vand.u32 2147483648, %v4025_v14  ;;  %vm4031_vm13 = vweird.f32 %v4025_v14  ;;  %v4035_v62 = vand.u32 2147483647, %v4025_v14 }
0x359d   :  { %5948 = vpow2.f32 %v5488_v1  ;;  %4719 = vmatpush.msra.mxu2 %v7747_v10 }
0x359e   :  { %v4038_v28 = vor.u32 1.1754944e-38, %v4037_v59  ;;  %vm4036_vm15 = vcmp.eq.f32.partialorder %v4035_v62, 8.507059e+37 }
0x35a2   :  { %v5947_v51 = vpop.eup %5946 }
0x35a3   :  { %v4027_v53 = vmul.f32 %v5947_v51, %v4025_v14  ;;  %vm4032_vm12 = vweird.f32 %v5947_v51  ;;  %v5949_v47 = vpop.eup %5948  ;;  %v4200_v14 = vld [vmem:[#allocation32] sm:$0xff] }
0x35a4   :  { %vm4033_vm14 = vmor %vm4031_vm13, %vm4032_vm12  ;;  %v4093_v21 = vadd.f32 1.0, %v5949_v47 }
0x35a5   :  { %v4028_v29 = vsub.f32 1.0, %v4027_v53 }
0x35a6   :  { %5950 = vrcp.f32 %v4093_v21  ;;  %v4105_v60 = vand.u32 2147483648, %v4093_v21  ;;  %vm4099_vm11 = vweird.f32 %v4093_v21  ;;  %v4103_v15 = vand.u32 2147483647, %v4093_v21 }
0x35a7   :  { %v4029_v52 = vmul.f32 %v5947_v51, %v4028_v29  ;;  %v7762_v29 = vld [vmem:[#allocation34] sm:$0xff] }
0x35a8   :  { %v4106_v17 = vor.u32 1.1754944e-38, %v4105_v60  ;;  %vm4104_vm2 = vcmp.eq.f32.partialorder %v4103_v15, 8.507059e+37 }
0x35a9   :  { %v4030_v56 = vadd.f32 %v5947_v51, %v4029_v52 }
0x35ab   :  { %v4034_v42 = vsel %vm4033_vm14, %v5947_v51, %v4030_v56  ;;  %v7756_v51 = vld [vmem:[#allocation34 + $0x8] sm:$0xff] }
0x35ac   :  { %v4039_v6 = vsel %vm4036_vm15, %v4038_v28, %v4034_v42  ;;  %v5951_v48 = vpop.eup %5950  ;;  %4379 = vmatpush.msra.mxu3 %v7756_v51  ;;  %v5570_v28 = vld [vmem:[%s8088_s21] ss:$0 sm:$0xff] }
0x35ad   :  { %v4095_v2 = vmul.f32 %v5951_v48, %v4093_v21  ;;  %vm4100_vm10 = vweird.f32 %v5951_v48 }
0x35ae   :  { %vm4101_vm1 = vmor %vm4099_vm11, %vm4100_vm10  ;;  %4380 = vmatpush.msra.mxu3 %v7762_v29 }
0x35af   :  { %v4096_v39 = vsub.f32 1.0, %v4095_v2  ;;  %4381 = vmatmul.f32.vlgmr.msra.gmra.mxu3 %v6581_v24 }
0x35b0   :  { %4515 = vmatpush.msrb.mxu3 %v7756_v51 }
0x35b1   :  { %v4097_v32 = vmul.f32 %v5951_v48, %v4096_v39 }
0x35b2   :  { %4516 = vmatpush.msrb.mxu3 %v7762_v29 }
0x35b3   :  { %v4098_v57 = vadd.f32 %v5951_v48, %v4097_v32 }
0x35b4   :  { %4787 = vmatpush.msra.mxu3 %v7756_v51 }
0x35b5   :  { %v4102_v55 = vsel %vm4101_vm1, %v5951_v48, %v4098_v57  ;;  %v5571_v48 = vld [vmem:[%s8091_s24] ss:$0 sm:$0xff] }
0x35b6   :  { %v4107_v4 = vsel %vm4104_vm2, %v4106_v17, %v4102_v55  ;;  %4788 = vmatpush.msra.mxu3 %v7762_v29 }
0x35b7   :  { %v4110_v3 = vmul.f32 %v4107_v4, %v7677_v16 }
0x35da   :  { %v4045_v37 = vpop.permute.xlu1 %4044 }
0x35db   :  { %v4047_v36 = vmul.f32 %v4045_v37, %v4039_v6 }
0x35dd   :  { %4049 = vrot.lane.b32.xlu0 %v4047_v36, %s6585_s27 }
0x35e5   :  { %3726 = vrot.lane.b32.xlu0 %v7634_v49, %s6584_s18  ;;  %v4042_v49 = vmul.f32 %v4039_v6, %v7672_v18 }
0x360b   :  { %v4113_v63 = vpop.permute.xlu0 %4112 }
0x360c   :  { %v4115_v5 = vmul.f32 %v4113_v63, %v4107_v4 }
0x360e   :  { %4117 = vrot.lane.b32.xlu2 %v4115_v5, %s6585_s27 }
0x3619   :  { %v4318_v21 = vpop.f32.mrf.mxu2 }
0x364f   :  { %v4050_v30 = vpop.permute.xlu0 %4049 }
0x3650   :  { %v4052_v7 = vadd.f32 %v4050_v30, %v4042_v49 }
0x3652   :  { %5952 = vtanh.f32 %v4052_v7 }
0x3657   :  { %v3727_v8 = vpop.permute.xlu0 %3726 }
0x3658   :  { %v5953_v9 = vpop.eup %5952  ;;  %3729 = vst.msk [vmem:[#allocation2 + $0x6] sm:$0x3] %vm3192_vm3, %v3727_v8 }
0x3659   :  { %4055 = vrot.lane.b32.xlu2 %v5953_v9, %s6583_s23 }
0x365f   :  { %v7700_v26 = vld [vmem:[#allocation2 + $0x6] sm:$0x3] }
0x3660   :  { %4162 = vst [vmem:[#allocation1 + $0x3] ss:$4 sm:$0xff] %v7700_v26 }
0x3661   :  { %3994 = vrot.lane.b32.xlu2 %v7682_v25, %s6584_s18 }
0x3668   :  { %v4118_v18 = vpop.permute.xlu2 %4117 }
0x3669   :  { %v4120_v0 = vadd.f32 %v4118_v18, %v4110_v3  ;;  %3324 = vrot.lane.b32.xlu2 %v7560_v22, %s6584_s18  ;;  %v4382_v18 = vpop.f32.mrf.mxu3 }
0x366b   :  { %5954 = vtanh.f32 %v4120_v0 }
0x3671   :  { %v5955_v12 = vpop.eup %5954 }
0x3672   :  { %4123 = vrot.lane.b32.xlu1 %v5955_v12, %s6583_s23 }
0x367a   :  { %3860 = vrot.lane.b32.xlu1 %v7658_v61, %s6584_s18 }
0x3682   :  { %3189 = vrot.lane.b32.xlu1 %v7534_v33, %s6584_s18 }
0x368a   :  { %3592 = vrot.lane.b32.xlu1 %v7612_v54, %s6584_s18 }
0x36b3   :  { %v4056_v41 = vpop.permute.xlu2 %4055 }
0x36b4   :  { %v4058_v16 = vmul.f32 %v4056_v41, %v4039_v6 }
0x36b6   :  { %4060 = vrot.lane.b32.xlu2 %v4058_v16, %s6586_s28 }
0x36bb   :  { %v3995_v20 = vpop.permute.xlu2 %3994 }
0x36bc   :  { %3997 = vst.msk [vmem:[#allocation2 + $0x2] sm:$0x3] %vm3192_vm3, %v3995_v20 }
0x36c3   :  { %v7717_v22 = vld [vmem:[#allocation2 + $0x2] sm:$0x3]  ;;  %v3325_v58 = vpop.permute.xlu2 %3324 }
0x36c4   :  { %4158 = vst [vmem:[#allocation1 + $0x1] ss:$4 sm:$0xff] %v7717_v22 }
0x36c5   :  { %3327 = vst.msk [vmem:[#allocation2 + $0xc] sm:$0x3] %vm3192_vm3, %v3325_v58 }
0x36c6   :  { %3929 = vst.msk [vmem:[#allocation2 + $0xc] sm:$0x3] %vm3127_vm7, %v7686_v31 }
0x36cd   :  { %v7723_v33 = vld [vmem:[#allocation2 + $0xc] sm:$0x3] }
0x36ce   :  { %4168 = vst [vmem:[#allocation1 + $0x22] ss:$4 sm:$0xff] %v7723_v33 }
0x36e4   :  { %v4124_v54 = vpop.permute.xlu1 %4123 }
0x36e5   :  { %v4126_v61 = vmul.f32 %v4124_v54, %v4107_v4 }
0x36e7   :  { %4128 = vrot.lane.b32.xlu0 %v4126_v61, %s6584_s18 }
0x36ec   :  { %v3861_v19 = vpop.permute.xlu1 %3860 }
0x36ed   :  { %3863 = vst.msk [vmem:[#allocation2 + $0x4] sm:$0x3] %vm3192_vm3, %v3861_v19 }
0x36ef   :  { %3458 = vrot.lane.b32.xlu0 %v7586_v40, %s6584_s18 }
0x36f4   :  { %v7730_v25 = vld [vmem:[#allocation2 + $0x4] sm:$0x3]  ;;  %v3190_v27 = vpop.permute.xlu1 %3189 }
0x36f5   :  { %4160 = vst [vmem:[#allocation1 + $0x2] ss:$4 sm:$0xff] %v7730_v25 }
0x36f6   :  { %3193 = vst.msk [vmem:[#allocation2 + $0xe] sm:$0x3] %vm3192_vm3, %v3190_v27 }
0x36fc   :  { %v3593_v31 = vpop.permute.xlu1 %3592 }
0x36fd   :  { %3595 = vst.msk [vmem:[#allocation2 + $0x8] sm:$0x3] %vm3192_vm3, %v3593_v31 }
0x36fe   :  { %3661 = vst.msk [vmem:[#allocation2 + $0x8] sm:$0x3] %vm3127_vm7, %v7638_v23  ;;  %v4203_v23 = vld [vmem:[#allocation32 + $0x18] sm:$0xff] }
0x36ff   :  { %4241 = vmatpush.msrb.mxu1 %v4203_v23 }
0x3701   :  { %4242 = vmatpush.msrb.mxu1 %v4202_v50 }
0x3703   :  { %4243 = vmatpush.msrb.mxu1 %v4201_v13 }
0x3705   :  { %v7737_v34 = vld [vmem:[#allocation2 + $0x8] sm:$0x3]  ;;  %4244 = vmatpush.msrb.mxu1 %v4200_v14 }
0x3706   :  { %4164 = vst [vmem:[#allocation1 + $0x20] ss:$4 sm:$0xff] %v7737_v34 }
0x3707   :  { %4651 = vmatpush.msra.mxu1 %v7756_v51 }
0x3709   :  { %4652 = vmatpush.msra.mxu1 %v7762_v29 }
0x3710   :  { %v4061_v38 = vpop.permute.xlu2 %4060 }
0x3711   :  { %4063 = vst.msk [vmem:[#allocation2 + $0xe] sm:$0x3] %vm3127_vm7, %v4061_v38 }
0x3718   :  { %v7741_v40 = vld [vmem:[#allocation2 + $0xe] sm:$0x3] }
0x3719   :  { %4170 = vst [vmem:[#allocation1 + $0x23] ss:$4 sm:$0xff] %v7741_v40 }
0x3759   :  { %v4129_v53 = vpop.permute.xlu0 %4128 }
0x375a   :  { %4131 = vst.msk [vmem:[#allocation2] sm:$0x3] %vm3192_vm3, %v4129_v53 }
0x3761   :  { %v4132_v52 = vld [vmem:[#allocation2] sm:$0x3]  ;;  %v3459_v56 = vpop.permute.xlu0 %3458 }
0x3762   :  { %4156 = vst [vmem:[#allocation1] ss:$4 sm:$0xff] %v4132_v52 }
0x3763   :  { %3461 = vst.msk [vmem:[#allocation2 + $0xa] sm:$0x3] %vm3192_vm3, %v3459_v56 }
0x3764   :  { %3795 = vst.msk [vmem:[#allocation2 + $0xa] sm:$0x3] %vm3127_vm7, %v7662_v43 }
0x3769   :  { %v4171_v59 = vld.sshfl [vmem:[#allocation1] sm:$0xff pattern:$0x73625140] }
0x376a   :  { %5489 = vmatmul.msk.f32.vlgmr.msrb.gmra.mxu0 %vm406_vm0, %v4171_v59  ;;  %4208 = vst [vmem:[#allocation1] ss:$4 sm:$0xff] %v4132_v52 }
0x376b   :  { %v4137_v62 = vld [vmem:[#allocation2 + $0xa] sm:$0x3]  ;;  %4210 = vst [vmem:[#allocation1 + $0x1] ss:$4 sm:$0xff] %v7717_v22  ;;  %4854 = vmatpush.msrb.mxu0 %v7744_v11 }
0x376c   :  { %4166 = vst [vmem:[#allocation1 + $0x21] ss:$4 sm:$0xff] %v4137_v62 }
0x376d   :  { %4212 = vst [vmem:[#allocation1 + $0x2] ss:$4 sm:$0xff] %v7730_v25  ;;  %4855 = vmatpush.msrb.mxu0 %v7747_v10 }
0x376e   :  { %4214 = vst [vmem:[#allocation1 + $0x3] ss:$4 sm:$0xff] %v7700_v26 }
0x3773   :  { %v4172_v24 = vld.sshfl [vmem:[#allocation1 + $0x20] sm:$0xff pattern:$0x73625140] }
0x3774   :  { %5490 = vmatmul.msk.f32.gmra.mxu0 %vm406_vm0, %v4172_v24  ;;  %4216 = vst [vmem:[#allocation1 + $0x20] ss:$4 sm:$0xff] %v7737_v34 }
0x3775   :  { %v4223_v43 = vld.sshfl [vmem:[#allocation1] sm:$0xff pattern:$0x73625140]  ;;  %4218 = vst [vmem:[#allocation1 + $0x21] ss:$4 sm:$0xff] %v4137_v62 }
0x3776   :  { %5491 = vmatmul.msk.f32.vlgmr.msrb.gmra.mxu1 %vm406_vm0, %v4223_v43  ;;  %4220 = vst [vmem:[#allocation1 + $0x22] ss:$4 sm:$0xff] %v7723_v33 }
0x3777   :  { %4222 = vst [vmem:[#allocation1 + $0x23] ss:$4 sm:$0xff] %v7741_v40  ;;  %4922 = vmatpush.msrb.mxu1 %v7756_v51 }
0x3779   :  { %4923 = vmatpush.msrb.mxu1 %v7762_v29 }
0x377e   :  { %v4224_v42 = vld.sshfl [vmem:[#allocation1 + $0x20] sm:$0xff pattern:$0x73625140] }
0x377f   :  { %5492 = vmatmul.msk.f32.gmra.mxu1 %vm406_vm0, %v4224_v42 }
0x37e7   :  { %v4194_v37 = vpop.f32.mrf.mxu0 }
0x37e8   :  { %v4195_v6 = vadd.f32 %v5570_v28, %v4194_v37 }
0x37ea   :  { %v4254_v36 = vrot.slane %v4195_v6, 2  ;;  %v4255_v1 = vrot.slane %v4195_v6, 4  ;;  %v4256_v47 = vrot.slane %v4195_v6, 6  ;;  %4266 = vst.msk [vmem:[#allocation4] sm:$0x3] %vm3026_vm9, %v4195_v6 }
0x37ec   :  { %4267 = vst.msk [vmem:[#allocation4 + $0x2] sm:$0x3] %vm3026_vm9, %v4254_v36 }
0x37ed   :  { %4268 = vst.msk [vmem:[#allocation4 + $0x4] sm:$0x3] %vm3026_vm9, %v4255_v1 }
0x37ee   :  { %4269 = vst.msk [vmem:[#allocation4 + $0x6] sm:$0x3] %vm3026_vm9, %v4256_v47 }
0x37f1   :  { %v4197_v2 = vpop.f32.mrf.mxu0  ;;  %v4300_v39 = vld [vmem:[#allocation4] sm:$0x3] }
0x37f2   :  { %v4198_v32 = vadd.f32 %v5570_v28, %v4197_v2  ;;  %v4321_v57 = vadd.f32 %v4318_v21, %v4300_v39 }
0x37f3   :  { %v4246_v60 = vpop.f32.mrf.mxu1 }
0x37f4   :  { %v4247_v15 = vadd.f32 %v5571_v48, %v4246_v60  ;;  %v4257_v55 = vrot.slane %v4198_v32, 2  ;;  %4270 = vst.msk [vmem:[#allocation4 + $0x8] sm:$0x3] %vm3026_vm9, %v4198_v32  ;;  %5956 = vtanh.f32 %v4321_v57  ;;  %v4258_v5 = vrot.slane %v4198_v32, 4 }
0x37f5   :  { %v4259_v49 = vrot.slane %v4198_v32, 6  ;;  %v5493_v16 = vmul.f32 -1.442695, %v4321_v57 }
0x37f6   :  { %v4276_v17 = vrot.slane %v4247_v15, 2  ;;  %v4277_v63 = vrot.slane %v4247_v15, 4  ;;  %v4278_v4 = vrot.slane %v4247_v15, 6  ;;  %4288 = vst.msk [vmem:[#allocation5] sm:$0x3] %vm3026_vm9, %v4247_v15 }
0x37f7   :  { %4271 = vst.msk [vmem:[#allocation4 + $0xa] sm:$0x3] %vm3026_vm9, %v4257_v55  ;;  %v4429_v55 = vld [vmem:[#allocation4 + $0x2] sm:$0x3] }
0x37f8   :  { %4289 = vst.msk [vmem:[#allocation5 + $0x2] sm:$0x3] %vm3026_vm9, %v4276_v17 }
0x37f9   :  { %4290 = vst.msk [vmem:[#allocation5 + $0x4] sm:$0x3] %vm3026_vm9, %v4277_v63 }
0x37fa   :  { %4291 = vst.msk [vmem:[#allocation5 + $0x6] sm:$0x3] %vm3026_vm9, %v4278_v4  ;;  %v5957_v30 = vpop.eup %5956 }
0x37fb   :  { %4272 = vst.msk [vmem:[#allocation4 + $0xc] sm:$0x3] %vm3026_vm9, %v4258_v5  ;;  %4344 = vrot.lane.b32.xlu0 %v5957_v30, %s6584_s18 }
0x37fc   :  { %4273 = vst.msk [vmem:[#allocation4 + $0xe] sm:$0x3] %vm3026_vm9, %v4259_v49  ;;  %v4249_v7 = vpop.f32.mrf.mxu1 }
0x37fd   :  { %v4250_v8 = vadd.f32 %v5571_v48, %v4249_v7 }
0x37ff   :  { %v4279_v9 = vrot.slane %v4250_v8, 2  ;;  %v4280_v26 = vrot.slane %v4250_v8, 4  ;;  %v4281_v3 = vrot.slane %v4250_v8, 6  ;;  %4292 = vst.msk [vmem:[#allocation5 + $0x8] sm:$0x3] %vm3026_vm9, %v4250_v8 }
0x3801   :  { %4293 = vst.msk [vmem:[#allocation5 + $0xa] sm:$0x3] %vm3026_vm9, %v4279_v9 }
0x3802   :  { %4294 = vst.msk [vmem:[#allocation5 + $0xc] sm:$0x3] %vm3026_vm9, %v4280_v26 }
0x3803   :  { %4295 = vst.msk [vmem:[#allocation5 + $0xe] sm:$0x3] %vm3026_vm9, %v4281_v3 }
0x3809   :  { %v4496_v5 = vld [vmem:[#allocation5 + $0xc] sm:$0x3] }
0x380a   :  { %v4364_v0 = vld [vmem:[#allocation5 + $0xe] sm:$0x3] }
0x380b   :  { %v4385_v12 = vadd.f32 %v4382_v18, %v4364_v0 }
0x380d   :  { %5958 = vtanh.f32 %v4385_v12  ;;  %v5494_v33 = vmul.f32 -1.442695, %v4385_v12 }
0x380e   :  { %5960 = vpow2.f32 %v5493_v16 }
0x3813   :  { %v5959_v41 = vpop.eup %5958 }
0x3814   :  { %4408 = vrot.lane.b32.xlu1 %v5959_v41, %s6584_s18  ;;  %v5961_v20 = vpop.eup %5960 }
0x3815   :  { %v4325_v22 = vadd.f32 1.0, %v5961_v20 }
0x3817   :  { %5962 = vrcp.f32 %v4325_v22  ;;  %v4337_v34 = vand.u32 2147483648, %v4325_v22  ;;  %vm4331_vm9 = vweird.f32 %v4325_v22  ;;  %v4335_v38 = vand.u32 2147483647, %v4325_v22 }
0x3818   :  { %5964 = vpow2.f32 %v5494_v33 }
0x3819   :  { %v4338_v44 = vor.u32 1.1754944e-38, %v4337_v34  ;;  %vm4336_vm5 = vcmp.eq.f32.partialorder %v4335_v38, 8.507059e+37 }
0x381d   :  { %v5963_v58 = vpop.eup %5962 }
0x381e   :  { %v4327_v54 = vmul.f32 %v5963_v58, %v4325_v22  ;;  %v5965_v19 = vpop.eup %5964  ;;  %vm4332_vm0 = vweird.f32 %v5963_v58 }
0x381f   :  { %v4389_v27 = vadd.f32 1.0, %v5965_v19  ;;  %vm4333_vm4 = vmor %vm4331_vm9, %vm4332_vm0 }
0x3820   :  { %v4328_v61 = vsub.f32 1.0, %v4327_v54 }
0x3821   :  { %5966 = vrcp.f32 %v4389_v27  ;;  %v4401_v52 = vand.u32 2147483648, %v4389_v27  ;;  %vm4395_vm12 = vweird.f32 %v4389_v27  ;;  %v4399_v56 = vand.u32 2147483647, %v4389_v27 }
0x3822   :  { %v4329_v25 = vmul.f32 %v5963_v58, %v4328_v61 }
0x3823   :  { %v4402_v62 = vor.u32 1.1754944e-38, %v4401_v52  ;;  %vm4400_vm14 = vcmp.eq.f32.partialorder %v4399_v56, 8.507059e+37 }
0x3824   :  { %v4330_v31 = vadd.f32 %v5963_v58, %v4329_v25 }
0x3826   :  { %v4334_v40 = vsel %vm4333_vm4, %v5963_v58, %v4330_v31 }
0x3827   :  { %v4339_v35 = vsel %vm4336_vm5, %v4338_v44, %v4334_v40  ;;  %v5967_v23 = vpop.eup %5966 }
0x3828   :  { %v4391_v50 = vmul.f32 %v5967_v23, %v4389_v27  ;;  %vm4396_vm6 = vweird.f32 %v5967_v23  ;;  %v4342_v28 = vmul.f32 0.0, %v4339_v35 }
0x3829   :  { %vm4397_vm13 = vmor %vm4395_vm12, %vm4396_vm6 }
0x382a   :  { %v4392_v13 = vsub.f32 1.0, %v4391_v50 }
0x382c   :  { %v4393_v14 = vmul.f32 %v5967_v23, %v4392_v13 }
0x382e   :  { %v4394_v53 = vadd.f32 %v5967_v23, %v4393_v14 }
0x3830   :  { %v4398_v59 = vsel %vm4397_vm13, %v5967_v23, %v4394_v53 }
0x3831   :  { %v4403_v43 = vsel %vm4400_vm14, %v4402_v62, %v4398_v59 }
0x3832   :  { %v4406_v1 = vmul.f32 0.0, %v4403_v43 }
0x386d   :  { %v4345_v45 = vpop.permute.xlu0 %4344 }
0x386e   :  { %v4347_v46 = vmul.f32 %v4345_v45, %v4339_v35 }
0x3870   :  { %4349 = vrot.lane.b32.xlu2 %v4347_v46, %s6585_s27 }
0x3886   :  { %v4409_v24 = vpop.permute.xlu1 %4408 }
0x3887   :  { %v4411_v42 = vmul.f32 %v4409_v24, %v4403_v43 }
0x3889   :  { %4413 = vrot.lane.b32.xlu0 %v4411_v42, %s6585_s27 }
0x38ca   :  { %v4350_v37 = vpop.permute.xlu2 %4349 }
0x38cb   :  { %v7814_v6 = vadd.f32 %v4350_v37, %v4342_v28 }
0x38cd   :  { %5968 = vtanh.f32 %v7814_v6 }
0x38d3   :  { %v5969_v36 = vpop.eup %5968 }
0x38d4   :  { %4355 = vrot.lane.b32.xlu1 %v5969_v36, %s6583_s23 }
0x38fb   :  { %v4414_v47 = vpop.permute.xlu0 %4413 }
0x38fc   :  { %v7818_v21 = vadd.f32 %v4414_v47, %v4406_v1 }
0x38fe   :  { %5970 = vtanh.f32 %v7818_v21 }
0x3904   :  { %v5971_v48 = vpop.eup %5970 }
0x3905   :  { %4419 = vrot.lane.b32.xlu2 %v5971_v48, %s6583_s23 }
0x3946   :  { %v4356_v2 = vpop.permute.xlu1 %4355 }
0x3947   :  { %v4358_v39 = vmul.f32 %v4356_v2, %v4339_v35 }
0x3949   :  { %4360 = vrot.lane.b32.xlu0 %v4358_v39, %s6586_s28 }
0x395f   :  { %v4420_v32 = vpop.permute.xlu2 %4419 }
0x3960   :  { %v7823_v57 = vmul.f32 %v4420_v32, %v4403_v43  ;;  %v4632_v32 = vld [vmem:[#allocation5 + $0xa] sm:$0x3] }
0x3962   :  { %4497 = vrot.lane.b32.xlu1 %v7823_v57, %s6586_s28 }
0x39bb   :  { %v4361_v60 = vpop.permute.xlu0 %4360 }
0x39bc   :  { %4363 = vst.msk [vmem:[%s8117_s19] sm:$0x3] %vm3127_vm7, %v4361_v60  ;;  %5496 = vmatmul.msk.f32.vlgmr.msrb.gmra.mxu2 %vm3062_vm8, %v4361_v60 }
0x39bd   :  { %4988 = vmatpush.msrb.mxu2 %v7744_v11 }
0x39bf   :  { %4989 = vmatpush.msrb.mxu2 %v7747_v10 }
0x39d4   :  { %v4498_v15 = vpop.permute.xlu1 %4497 }
0x39d5   :  { %5499 = vmatmul.msk.f32.vlgmr.msrb.gmra.mxu3 %vm3062_vm8, %v4498_v15 }
0x39d6   :  { %5056 = vmatpush.msrb.mxu3 %v7756_v51 }
0x39d8   :  { %5057 = vmatpush.msrb.mxu3 %v7762_v29 }
0x3a3f   :  { %v4449_v17 = vpop.f32.mrf.mxu2 }
0x3a40   :  { %v4452_v63 = vadd.f32 %v4449_v17, %v4429_v55 }
0x3a42   :  { %5972 = vtanh.f32 %v4452_v63  ;;  %v5497_v8 = vmul.f32 -1.442695, %v4452_v63 }
0x3a48   :  { %v5973_v4 = vpop.eup %5972 }
0x3a49   :  { %4475 = vrot.lane.b32.xlu2 %v5973_v4, %s6584_s18 }
0x3a58   :  { %v4518_v49 = vpop.f32.mrf.mxu3 }
0x3a59   :  { %v4521_v30 = vadd.f32 %v4518_v49, %v4496_v5 }
0x3a5b   :  { %5974 = vtanh.f32 %v4521_v30  ;;  %v5500_v19 = vmul.f32 -1.442695, %v4521_v30 }
0x3a5c   :  { %5976 = vpow2.f32 %v5497_v8 }
0x3a61   :  { %v5975_v7 = vpop.eup %5974 }
0x3a62   :  { %4544 = vrot.lane.b32.xlu0 %v5975_v7, %s6584_s18  ;;  %v5977_v9 = vpop.eup %5976 }
0x3a63   :  { %v4456_v26 = vadd.f32 1.0, %v5977_v9 }
0x3a65   :  { %5978 = vrcp.f32 %v4456_v26  ;;  %v4468_v16 = vand.u32 2147483648, %v4456_v26  ;;  %vm4462_vm10 = vweird.f32 %v4456_v26  ;;  %v4466_v20 = vand.u32 2147483647, %v4456_v26 }
0x3a66   :  { %5980 = vpow2.f32 %v5500_v19 }
0x3a67   :  { %v4469_v58 = vor.u32 1.1754944e-38, %v4468_v16  ;;  %vm4467_vm1 = vcmp.eq.f32.partialorder %v4466_v20, 8.507059e+37 }
0x3a6b   :  { %v5979_v3 = vpop.eup %5978 }
0x3a6c   :  { %v4458_v18 = vmul.f32 %v5979_v3, %v4456_v26  ;;  %vm4463_vm15 = vweird.f32 %v5979_v3  ;;  %v5981_v25 = vpop.eup %5980 }
0x3a6d   :  { %vm4464_vm11 = vmor %vm4462_vm10, %vm4463_vm15  ;;  %v4525_v27 = vadd.f32 1.0, %v5981_v25 }
0x3a6e   :  { %v4459_v0 = vsub.f32 1.0, %v4458_v18 }
0x3a6f   :  { %5982 = vrcp.f32 %v4525_v27  ;;  %v4537_v45 = vand.u32 2147483648, %v4525_v27  ;;  %vm4531_vm0 = vweird.f32 %v4525_v27  ;;  %v4535_v35 = vand.u32 2147483647, %v4525_v27 }
0x3a70   :  { %v4460_v12 = vmul.f32 %v5979_v3, %v4459_v0 }
0x3a71   :  { %v4538_v23 = vor.u32 1.1754944e-38, %v4537_v45  ;;  %vm4536_vm4 = vcmp.eq.f32.partialorder %v4535_v35, 8.507059e+37 }
0x3a72   :  { %v4461_v41 = vadd.f32 %v5979_v3, %v4460_v12 }
0x3a74   :  { %v4465_v22 = vsel %vm4464_vm11, %v5979_v3, %v4461_v41 }
0x3a75   :  { %v4470_v33 = vsel %vm4467_vm1, %v4469_v58, %v4465_v22  ;;  %v5983_v31 = vpop.eup %5982 }
0x3a76   :  { %v4527_v34 = vmul.f32 %v5983_v31, %v4525_v27  ;;  %vm4532_vm2 = vweird.f32 %v5983_v31  ;;  %v4473_v53 = vmul.f32 %v4470_v33, %v7814_v6 }
0x3a77   :  { %vm4533_vm9 = vmor %vm4531_vm0, %vm4532_vm2 }
0x3a78   :  { %v4528_v38 = vsub.f32 1.0, %v4527_v34 }
0x3a7a   :  { %v4529_v40 = vmul.f32 %v5983_v31, %v4528_v38 }
0x3a7c   :  { %v4530_v44 = vadd.f32 %v5983_v31, %v4529_v40 }
0x3a7e   :  { %v4534_v46 = vsel %vm4533_vm9, %v5983_v31, %v4530_v44 }
0x3a7f   :  { %v4539_v13 = vsel %vm4536_vm4, %v4538_v23, %v4534_v46 }
0x3a80   :  { %v4542_v62 = vmul.f32 %v4539_v13, %v7818_v21  ;;  %v4565_v21 = vld [vmem:[#allocation4 + $0x4] sm:$0x3] }
0x3aa3   :  { %v4476_v54 = vpop.permute.xlu2 %4475 }
0x3aa4   :  { %v4478_v61 = vmul.f32 %v4476_v54, %v4470_v33 }
0x3aa6   :  { %4480 = vrot.lane.b32.xlu1 %v4478_v61, %s6585_s27 }
0x3ad4   :  { %v4545_v50 = vpop.permute.xlu0 %4544 }
0x3ad5   :  { %v4547_v14 = vmul.f32 %v4545_v50, %v4539_v13 }
0x3ad7   :  { %4549 = vrot.lane.b32.xlu2 %v4547_v14, %s6585_s27 }
0x3b18   :  { %v4481_v52 = vpop.permute.xlu1 %4480 }
0x3b19   :  { %v7842_v56 = vadd.f32 %v4481_v52, %v4473_v53 }
0x3b1b   :  { %5984 = vtanh.f32 %v7842_v56 }
0x3b21   :  { %v5985_v59 = vpop.eup %5984 }
0x3b22   :  { %4486 = vrot.lane.b32.xlu0 %v5985_v59, %s6583_s23 }
0x3b31   :  { %v4550_v24 = vpop.permute.xlu2 %4549 }
0x3b32   :  { %v7847_v43 = vadd.f32 %v4550_v24, %v4542_v62 }
0x3b34   :  { %5986 = vtanh.f32 %v7847_v43 }
0x3b3a   :  { %v5987_v42 = vpop.eup %5986 }
0x3b3b   :  { %4555 = vrot.lane.b32.xlu1 %v5987_v42, %s6583_s23  ;;  %v4701_v42 = vld [vmem:[#allocation4 + $0x6] sm:$0x3] }
0x3b94   :  { %v4487_v28 = vpop.permute.xlu0 %4486 }
0x3b95   :  { %v4489_v37 = vmul.f32 %v4487_v28, %v4470_v33 }
0x3b97   :  { %4491 = vrot.lane.b32.xlu2 %v4489_v37, %s6586_s28 }
0x3bad   :  { %v4556_v6 = vpop.permute.xlu1 %4555 }
0x3bae   :  { %v7852_v36 = vmul.f32 %v4556_v6, %v4539_v13 }
0x3bb0   :  { %4633 = vrot.lane.b32.xlu0 %v7852_v36, %s6586_s28 }
0x3bf1   :  { %v4492_v1 = vpop.permute.xlu2 %4491 }
0x3bf2   :  { %5498 = vst.msk [vmem:[%s8117_s19 + $0x2] sm:$0x3] %vm3127_vm7, %v4492_v1  ;;  %5502 = vmatmul.msk.f32.vlgmr.msra.gmra.mxu0 %vm3062_vm8, %v4492_v1  ;;  %v4768_v1 = vld [vmem:[#allocation5 + $0x8] sm:$0x3] }
0x3bf3   :  { %5122 = vmatpush.msra.mxu0 %v7744_v11 }
0x3bf5   :  { %5123 = vmatpush.msra.mxu0 %v7747_v10 }
0x3c22   :  { %v4634_v47 = vpop.permute.xlu0 %4633 }
0x3c23   :  { %5505 = vmatmul.msk.f32.vlgmr.msra.gmra.mxu1 %vm3062_vm8, %v4634_v47 }
0x3c24   :  { %5190 = vmatpush.msra.mxu1 %v7756_v51 }
0x3c26   :  { %5191 = vmatpush.msra.mxu1 %v7762_v29 }
0x3c6f   :  { %v4585_v48 = vpop.f32.mrf.mxu0 }
0x3c70   :  { %v4588_v2 = vadd.f32 %v4585_v48, %v4565_v21 }
0x3c72   :  { %5988 = vtanh.f32 %v4588_v2  ;;  %v5503_v17 = vmul.f32 -1.442695, %v4588_v2 }
0x3c78   :  { %v5989_v39 = vpop.eup %5988 }
0x3c79   :  { %4611 = vrot.lane.b32.xlu1 %v5989_v39, %s6584_s18 }
0x3ca0   :  { %v4654_v60 = vpop.f32.mrf.mxu1 }
0x3ca1   :  { %v4657_v15 = vadd.f32 %v4654_v60, %v4632_v32 }
0x3ca3   :  { %5990 = vtanh.f32 %v4657_v15  ;;  %v5506_v49 = vmul.f32 -1.442695, %v4657_v15 }
0x3ca4   :  { %5992 = vpow2.f32 %v5503_v17 }
0x3ca9   :  { %v5991_v55 = vpop.eup %5990 }
0x3caa   :  { %4680 = vrot.lane.b32.xlu2 %v5991_v55, %s6584_s18  ;;  %v5993_v63 = vpop.eup %5992 }
0x3cab   :  { %v4592_v4 = vadd.f32 1.0, %v5993_v63 }
0x3cad   :  { %5994 = vrcp.f32 %v4592_v4  ;;  %v4604_v18 = vand.u32 2147483648, %v4592_v4  ;;  %vm4598_vm6 = vweird.f32 %v4592_v4  ;;  %v4602_v0 = vand.u32 2147483647, %v4592_v4 }
0x3cae   :  { %5996 = vpow2.f32 %v5506_v49 }
0x3caf   :  { %v4605_v41 = vor.u32 1.1754944e-38, %v4604_v18  ;;  %vm4603_vm13 = vcmp.eq.f32.partialorder %v4602_v0, 8.507059e+37 }
0x3cb3   :  { %v5995_v5 = vpop.eup %5994 }
0x3cb4   :  { %v4594_v30 = vmul.f32 %v5995_v5, %v4592_v4  ;;  %v5997_v8 = vpop.eup %5996  ;;  %vm4599_vm5 = vweird.f32 %v5995_v5 }
0x3cb5   :  { %v4661_v26 = vadd.f32 1.0, %v5997_v8  ;;  %vm4600_vm12 = vmor %vm4598_vm6, %vm4599_vm5 }
0x3cb6   :  { %v4595_v7 = vsub.f32 1.0, %v4594_v30 }
0x3cb7   :  { %5998 = vrcp.f32 %v4661_v26  ;;  %v4673_v25 = vand.u32 2147483648, %v4661_v26  ;;  %vm4667_vm15 = vweird.f32 %v4661_v26  ;;  %v4671_v27 = vand.u32 2147483647, %v4661_v26 }
0x3cb8   :  { %v4596_v9 = vmul.f32 %v5995_v5, %v4595_v7 }
0x3cb9   :  { %v4674_v34 = vor.u32 1.1754944e-38, %v4673_v25  ;;  %vm4672_vm11 = vcmp.eq.f32.partialorder %v4671_v27, 8.507059e+37 }
0x3cba   :  { %v4597_v3 = vadd.f32 %v5995_v5, %v4596_v9 }
0x3cbc   :  { %v4601_v12 = vsel %vm4600_vm12, %v5995_v5, %v4597_v3 }
0x3cbd   :  { %v4606_v20 = vsel %vm4603_vm13, %v4605_v41, %v4601_v12  ;;  %v5999_v58 = vpop.eup %5998 }
0x3cbe   :  { %v4663_v33 = vmul.f32 %v5999_v58, %v4661_v26  ;;  %vm4668_vm14 = vweird.f32 %v5999_v58  ;;  %v4609_v45 = vmul.f32 %v4606_v20, %v7842_v56 }
0x3cbf   :  { %vm4669_vm10 = vmor %vm4667_vm15, %vm4668_vm14 }
0x3cc0   :  { %v4664_v54 = vsub.f32 1.0, %v4663_v33 }
0x3cc2   :  { %v4665_v61 = vmul.f32 %v5999_v58, %v4664_v54 }
0x3cc4   :  { %v4666_v19 = vadd.f32 %v5999_v58, %v4665_v61 }
0x3cc6   :  { %v4670_v31 = vsel %vm4669_vm10, %v5999_v58, %v4666_v19 }
0x3cc7   :  { %v4675_v38 = vsel %vm4672_vm11, %v4674_v34, %v4670_v31 }
0x3cc8   :  { %v4678_v50 = vmul.f32 %v4675_v38, %v7847_v43 }
0x3ceb   :  { %v4612_v16 = vpop.permute.xlu1 %4611 }
0x3cec   :  { %v4614_v22 = vmul.f32 %v4612_v16, %v4606_v20 }
0x3cee   :  { %4616 = vrot.lane.b32.xlu0 %v4614_v22, %s6585_s27 }
0x3d04   :  { %v4681_v40 = vpop.permute.xlu2 %4680 }
0x3d05   :  { %v4683_v44 = vmul.f32 %v4681_v40, %v4675_v38 }
0x3d07   :  { %4685 = vrot.lane.b32.xlu1 %v4683_v44, %s6585_s27 }
0x3d60   :  { %v4617_v35 = vpop.permute.xlu0 %4616 }
0x3d61   :  { %v7871_v46 = vadd.f32 %v4617_v35, %v4609_v45 }
0x3d63   :  { %6000 = vtanh.f32 %v7871_v46 }
0x3d69   :  { %v6001_v23 = vpop.eup %6000 }
0x3d6a   :  { %4622 = vrot.lane.b32.xlu2 %v6001_v23, %s6583_s23 }
0x3d79   :  { %v4686_v13 = vpop.permute.xlu1 %4685 }
0x3d7a   :  { %v7876_v14 = vadd.f32 %v4686_v13, %v4678_v50  ;;  %v4837_v50 = vld [vmem:[#allocation4 + $0x8] sm:$0x3] }
0x3d7c   :  { %6002 = vtanh.f32 %v7876_v14 }
0x3d82   :  { %v6003_v53 = vpop.eup %6002 }
0x3d83   :  { %4691 = vrot.lane.b32.xlu0 %v6003_v53, %s6583_s23 }
0x3dc4   :  { %v4623_v52 = vpop.permute.xlu2 %4622 }
0x3dc5   :  { %v4625_v56 = vmul.f32 %v4623_v52, %v4606_v20  ;;  %v4903_v52 = vld [vmem:[#allocation5 + $0x6] sm:$0x3] }
0x3dc7   :  { %4627 = vrot.lane.b32.xlu1 %v4625_v56, %s6586_s28 }
0x3df5   :  { %v4692_v59 = vpop.permute.xlu0 %4691 }
0x3df6   :  { %v7881_v62 = vmul.f32 %v4692_v59, %v4675_v38 }
0x3df8   :  { %4769 = vrot.lane.b32.xlu2 %v7881_v62, %s6586_s28 }
0x3e39   :  { %v4628_v24 = vpop.permute.xlu1 %4627 }
0x3e3a   :  { %5504 = vst.msk [vmem:[%s8117_s19 + $0x4] sm:$0x3] %vm3127_vm7, %v4628_v24  ;;  %5508 = vmatmul.msk.f32.vlgmr.msra.gmra.mxu2 %vm3062_vm8, %v4628_v24 }
0x3e3b   :  { %5256 = vmatpush.msra.mxu2 %v7744_v11 }
0x3e3d   :  { %5257 = vmatpush.msra.mxu2 %v7747_v10 }
0x3e52   :  { %v4770_v43 = vpop.permute.xlu2 %4769 }
0x3e53   :  { %5511 = vmatmul.msk.f32.vlgmr.msra.gmra.mxu3 %vm3062_vm8, %v4770_v43 }
0x3e54   :  { %5324 = vmatpush.msra.mxu3 %v7756_v51 }
0x3e56   :  { %5325 = vmatpush.msra.mxu3 %v7762_v29 }
0x3ebd   :  { %v4721_v28 = vpop.f32.mrf.mxu2 }
0x3ebe   :  { %v4724_v37 = vadd.f32 %v4721_v28, %v4701_v42 }
0x3ec0   :  { %6004 = vtanh.f32 %v4724_v37  ;;  %v5509_v10 = vmul.f32 -1.442695, %v4724_v37 }
0x3ec6   :  { %v6005_v6 = vpop.eup %6004 }
0x3ec7   :  { %4747 = vrot.lane.b32.xlu0 %v6005_v6, %s6584_s18 }
0x3ed6   :  { %v4790_v47 = vpop.f32.mrf.mxu3 }
0x3ed7   :  { %v4793_v21 = vadd.f32 %v4790_v47, %v4768_v1 }
0x3ed9   :  { %6006 = vtanh.f32 %v4793_v21  ;;  %v5512_v2 = vmul.f32 -1.442695, %v4793_v21 }
0x3eda   :  { %6008 = vpow2.f32 %v5509_v10 }
0x3edf   :  { %v6007_v11 = vpop.eup %6006 }
0x3ee0   :  { %4816 = vrot.lane.b32.xlu1 %v6007_v11, %s6584_s18  ;;  %v6009_v48 = vpop.eup %6008 }
0x3ee1   :  { %v4728_v51 = vadd.f32 1.0, %v6009_v48 }
0x3ee3   :  { %6010 = vrcp.f32 %v4728_v51  ;;  %v4740_v63 = vand.u32 2147483648, %v4728_v51  ;;  %vm4734_vm2 = vweird.f32 %v4728_v51  ;;  %v4738_v4 = vand.u32 2147483647, %v4728_v51 }
0x3ee4   :  { %6012 = vpow2.f32 %v5512_v2 }
0x3ee5   :  { %v4741_v49 = vor.u32 1.1754944e-38, %v4740_v63  ;;  %vm4739_vm9 = vcmp.eq.f32.partialorder %v4738_v4, 8.507059e+37 }
0x3ee9   :  { %v6011_v29 = vpop.eup %6010 }
0x3eea   :  { %v4730_v39 = vmul.f32 %v6011_v29, %v4728_v51  ;;  %v6013_v60 = vpop.eup %6012  ;;  %vm4735_vm1 = vweird.f32 %v6011_v29 }
0x3eeb   :  { %v4797_v55 = vadd.f32 1.0, %v6013_v60  ;;  %vm4736_vm0 = vmor %vm4734_vm2, %vm4735_vm1 }
0x3eec   :  { %v4731_v32 = vsub.f32 1.0, %v4730_v39 }
0x3eed   :  { %6014 = vrcp.f32 %v4797_v55  ;;  %v4809_v12 = vand.u32 2147483648, %v4797_v55  ;;  %vm4803_vm5 = vweird.f32 %v4797_v55  ;;  %v4807_v41 = vand.u32 2147483647, %v4797_v55 }
0x3eee   :  { %v4732_v15 = vmul.f32 %v6011_v29, %v4731_v32 }
0x3eef   :  { %v4810_v20 = vor.u32 1.1754944e-38, %v4809_v12  ;;  %vm4808_vm12 = vcmp.eq.f32.partialorder %v4807_v41, 8.507059e+37 }
0x3ef0   :  { %v4733_v17 = vadd.f32 %v6011_v29, %v4732_v15 }
0x3ef2   :  { %v4737_v5 = vsel %vm4736_vm0, %v6011_v29, %v4733_v17 }
0x3ef3   :  { %v4742_v7 = vsel %vm4739_vm9, %v4741_v49, %v4737_v5  ;;  %v6015_v9 = vpop.eup %6014 }
0x3ef4   :  { %v4799_v26 = vmul.f32 %v6015_v9, %v4797_v55  ;;  %vm4804_vm4 = vweird.f32 %v6015_v9  ;;  %v4745_v54 = vmul.f32 %v4742_v7, %v7871_v46 }
0x3ef5   :  { %vm4805_vm6 = vmor %vm4803_vm5, %vm4804_vm4 }
0x3ef6   :  { %v4800_v3 = vsub.f32 1.0, %v4799_v26 }
0x3ef8   :  { %v4801_v18 = vmul.f32 %v6015_v9, %v4800_v3 }
0x3efa   :  { %v4802_v0 = vadd.f32 %v6015_v9, %v4801_v18 }
0x3efc   :  { %v4806_v16 = vsel %vm4805_vm6, %v6015_v9, %v4802_v0 }
0x3efd   :  { %v4811_v58 = vsel %vm4808_vm12, %v4810_v20, %v4806_v16 }
0x3efe   :  { %v4814_v27 = vmul.f32 %v4811_v58, %v7876_v14 }
0x3f39   :  { %v4748_v30 = vpop.permute.xlu0 %4747 }
0x3f3a   :  { %v4750_v8 = vmul.f32 %v4748_v30, %v4742_v7 }
0x3f3c   :  { %4752 = vrot.lane.b32.xlu2 %v4750_v8, %s6585_s27 }
0x3f52   :  { %v4817_v22 = vpop.permute.xlu1 %4816 }
0x3f53   :  { %v4819_v33 = vmul.f32 %v4817_v22, %v4811_v58 }
0x3f55   :  { %4821 = vrot.lane.b32.xlu0 %v4819_v33, %s6585_s27 }
0x3f96   :  { %v4753_v61 = vpop.permute.xlu2 %4752 }
0x3f97   :  { %v7900_v19 = vadd.f32 %v4753_v61, %v4745_v54 }
0x3f99   :  { %6016 = vtanh.f32 %v7900_v19 }
0x3f9f   :  { %v6017_v25 = vpop.eup %6016 }
0x3fa0   :  { %4758 = vrot.lane.b32.xlu1 %v6017_v25, %s6583_s23 }
0x3fc7   :  { %v4822_v31 = vpop.permute.xlu0 %4821 }
0x3fc8   :  { %v7905_v34 = vadd.f32 %v4822_v31, %v4814_v27  ;;  %v4971_v31 = vld [vmem:[#allocation4 + $0xa] sm:$0x3] }
0x3fca   :  { %6018 = vtanh.f32 %v7905_v34 }
0x3fd0   :  { %v6019_v38 = vpop.eup %6018 }
0x3fd1   :  { %4827 = vrot.lane.b32.xlu2 %v6019_v38, %s6583_s23 }
0x4012   :  { %v4759_v40 = vpop.permute.xlu1 %4758 }
0x4013   :  { %v4761_v44 = vmul.f32 %v4759_v40, %v4742_v7 }
0x4015   :  { %4763 = vrot.lane.b32.xlu0 %v4761_v44, %s6586_s28  ;;  %v5037_v44 = vld [vmem:[#allocation5 + $0x4] sm:$0x3] }
0x402b   :  { %v4828_v45 = vpop.permute.xlu2 %4827 }
0x402c   :  { %v7910_v35 = vmul.f32 %v4828_v45, %v4811_v58 }
0x402e   :  { %4904 = vrot.lane.b32.xlu1 %v7910_v35, %s6586_s28 }
0x4087   :  { %v4764_v46 = vpop.permute.xlu0 %4763 }
0x4088   :  { %5510 = vst.msk [vmem:[%s8117_s19 + $0x6] sm:$0x3] %vm3127_vm7, %v4764_v46  ;;  %5514 = vmatmul.msk.f32.vlgmr.msrb.gmra.mxu0 %vm3062_vm8, %v4764_v46 }
0x40a0   :  { %v4905_v23 = vpop.permute.xlu1 %4904 }
0x40a1   :  { %5517 = vmatmul.msk.f32.vlgmr.msrb.gmra.mxu1 %vm3062_vm8, %v4905_v23 }
0x4105   :  { %v4857_v13 = vpop.f32.mrf.mxu0 }
0x4106   :  { %v4860_v14 = vadd.f32 %v4857_v13, %v4837_v50 }
0x4108   :  { %6020 = vtanh.f32 %v4860_v14  ;;  %v5515_v43 = vmul.f32 -1.442695, %v4860_v14 }
0x410e   :  { %v6021_v53 = vpop.eup %6020 }
0x410f   :  { %4883 = vrot.lane.b32.xlu2 %v6021_v53, %s6584_s18 }
0x411e   :  { %v4925_v56 = vpop.f32.mrf.mxu1 }
0x411f   :  { %v4928_v59 = vadd.f32 %v4925_v56, %v4903_v52 }
0x4121   :  { %6022 = vtanh.f32 %v4928_v59  ;;  %v5518_v32 = vmul.f32 -1.442695, %v4928_v59 }
0x4122   :  { %6024 = vpow2.f32 %v5515_v43 }
0x4127   :  { %v6023_v24 = vpop.eup %6022 }
0x4128   :  { %4951 = vrot.lane.b32.xlu0 %v6023_v24, %s6584_s18  ;;  %v6025_v42 = vpop.eup %6024 }
0x4129   :  { %v4864_v28 = vadd.f32 1.0, %v6025_v42 }
0x412b   :  { %6026 = vrcp.f32 %v4864_v28  ;;  %v4876_v11 = vand.u32 2147483648, %v4864_v28  ;;  %vm4870_vm14 = vweird.f32 %v4864_v28  ;;  %v4874_v10 = vand.u32 2147483647, %v4864_v28 }
0x412c   :  { %6028 = vpow2.f32 %v5518_v32 }
0x412d   :  { %v4877_v51 = vor.u32 1.1754944e-38, %v4876_v11  ;;  %vm4875_vm10 = vcmp.eq.f32.partialorder %v4874_v10, 8.507059e+37 }
0x4131   :  { %v6027_v37 = vpop.eup %6026 }
0x4132   :  { %v4866_v6 = vmul.f32 %v6027_v37, %v4864_v28  ;;  %vm4871_vm13 = vweird.f32 %v6027_v37  ;;  %v6029_v60 = vpop.eup %6028 }
0x4133   :  { %vm4872_vm15 = vmor %vm4870_vm14, %vm4871_vm13  ;;  %v4932_v15 = vadd.f32 1.0, %v6029_v60 }
0x4134   :  { %v4867_v1 = vsub.f32 1.0, %v4866_v6 }
0x4135   :  { %6030 = vrcp.f32 %v4932_v15  ;;  %v4944_v49 = vand.u32 2147483648, %v4932_v15  ;;  %vm4938_vm1 = vweird.f32 %v4932_v15  ;;  %v4942_v30 = vand.u32 2147483647, %v4932_v15 }
0x4136   :  { %v4868_v47 = vmul.f32 %v6027_v37, %v4867_v1 }
0x4137   :  { %v4945_v8 = vor.u32 1.1754944e-38, %v4944_v49  ;;  %vm4943_vm0 = vcmp.eq.f32.partialorder %v4942_v30, 8.507059e+37 }
0x4138   :  { %v4869_v21 = vadd.f32 %v6027_v37, %v4868_v47 }
0x413a   :  { %v4873_v48 = vsel %vm4872_vm15, %v6027_v37, %v4869_v21 }
0x413b   :  { %v4878_v29 = vsel %vm4875_vm10, %v4877_v51, %v4873_v48  ;;  %v6031_v55 = vpop.eup %6030 }
0x413c   :  { %v4934_v17 = vmul.f32 %v6031_v55, %v4932_v15  ;;  %vm4939_vm11 = vweird.f32 %v6031_v55  ;;  %v4881_v18 = vmul.f32 %v4878_v29, %v7900_v19 }
0x413d   :  { %vm4940_vm2 = vmor %vm4938_vm1, %vm4939_vm11 }
0x413e   :  { %v4935_v63 = vsub.f32 1.0, %v4934_v17 }
0x4140   :  { %v4936_v4 = vmul.f32 %v6031_v55, %v4935_v63 }
0x4142   :  { %v4937_v5 = vadd.f32 %v6031_v55, %v4936_v4 }
0x4144   :  { %v4941_v7 = vsel %vm4940_vm2, %v6031_v55, %v4937_v5 }
0x4145   :  { %v4946_v26 = vsel %vm4943_vm0, %v4945_v8, %v4941_v7 }
0x4146   :  { %v4949_v16 = vmul.f32 %v4946_v26, %v7905_v34 }
0x4169   :  { %v4884_v2 = vpop.permute.xlu2 %4883 }
0x416a   :  { %v4886_v39 = vmul.f32 %v4884_v2, %v4878_v29 }
0x416c   :  { %4888 = vrot.lane.b32.xlu1 %v4886_v39, %s6585_s27 }
0x419a   :  { %v4952_v9 = vpop.permute.xlu0 %4951 }
0x419b   :  { %v4954_v3 = vmul.f32 %v4952_v9, %v4946_v26 }
0x419d   :  { %4956 = vrot.lane.b32.xlu2 %v4954_v3, %s6585_s27 }
0x41de   :  { %v4889_v0 = vpop.permute.xlu1 %4888 }
0x41df   :  { %v7925_v12 = vadd.f32 %v4889_v0, %v4881_v18 }
0x41e1   :  { %6032 = vtanh.f32 %v7925_v12 }
0x41e7   :  { %v6033_v41 = vpop.eup %6032 }
0x41e8   :  { %4894 = vrot.lane.b32.xlu0 %v6033_v41, %s6583_s23 }
0x41f7   :  { %v4957_v20 = vpop.permute.xlu2 %4956 }
0x41f8   :  { %v7930_v22 = vadd.f32 %v4957_v20, %v4949_v16 }
0x41fa   :  { %6034 = vtanh.f32 %v7930_v22 }
0x4200   :  { %v6035_v58 = vpop.eup %6034 }
0x4201   :  { %4962 = vrot.lane.b32.xlu1 %v6035_v58, %s6583_s23 }
0x425a   :  { %v4895_v33 = vpop.permute.xlu0 %4894 }
0x425b   :  { %v4897_v54 = vmul.f32 %v4895_v33, %v4878_v29 }
0x425d   :  { %4899 = vrot.lane.b32.xlu2 %v4897_v54, %s6586_s28 }
0x4273   :  { %v4963_v61 = vpop.permute.xlu1 %4962 }
0x4274   :  { %v7935_v19 = vmul.f32 %v4963_v61, %v4946_v26  ;;  %v5171_v61 = vld [vmem:[#allocation5 + $0x2] sm:$0x3] }
0x4276   :  { %5038 = vrot.lane.b32.xlu0 %v7935_v19, %s6586_s28 }
0x42b7   :  { %v7939_v25 = vpop.permute.xlu2 %4899 }
0x42b8   :  { %5520 = vmatmul.msk.f32.vlgmr.msrb.gmra.mxu2 %vm3062_vm8, %v7939_v25 }
0x42e8   :  { %v5039_v27 = vpop.permute.xlu0 %5038 }
0x42e9   :  { %5523 = vmatmul.msk.f32.vlgmr.msrb.gmra.mxu3 %vm3062_vm8, %v5039_v27 }
0x433b   :  { %v4991_v34 = vpop.f32.mrf.mxu2 }
0x433c   :  { %v4994_v38 = vadd.f32 %v4991_v34, %v4971_v31 }
0x433e   :  { %6036 = vtanh.f32 %v4994_v38  ;;  %v5521_v50 = vmul.f32 -1.442695, %v4994_v38 }
0x4344   :  { %v6037_v40 = vpop.eup %6036 }
0x4345   :  { %5017 = vrot.lane.b32.xlu1 %v6037_v40, %s6584_s18 }
0x436c   :  { %v5059_v45 = vpop.f32.mrf.mxu3 }
0x436d   :  { %v5062_v46 = vadd.f32 %v5059_v45, %v5037_v44 }
0x436f   :  { %6038 = vtanh.f32 %v5062_v46  ;;  %v5524_v52 = vmul.f32 -1.442695, %v5062_v46 }
0x4370   :  { %6040 = vpow2.f32 %v5521_v50 }
0x4375   :  { %v6039_v23 = vpop.eup %6038 }
0x4376   :  { %5085 = vrot.lane.b32.xlu2 %v6039_v23, %s6584_s18  ;;  %v6041_v13 = vpop.eup %6040 }
0x4377   :  { %v4998_v14 = vadd.f32 1.0, %v6041_v13 }
0x4379   :  { %6042 = vrcp.f32 %v4998_v14  ;;  %v5010_v37 = vand.u32 2147483648, %v4998_v14  ;;  %vm5004_vm4 = vweird.f32 %v4998_v14  ;;  %v5008_v6 = vand.u32 2147483647, %v4998_v14 }
0x437a   :  { %6044 = vpow2.f32 %v5524_v52 }
0x437b   :  { %v5011_v47 = vor.u32 1.1754944e-38, %v5010_v37  ;;  %vm5009_vm6 = vcmp.eq.f32.partialorder %v5008_v6, 8.507059e+37 }
0x437f   :  { %v6043_v53 = vpop.eup %6042 }
0x4380   :  { %v5000_v56 = vmul.f32 %v6043_v53, %v4998_v14  ;;  %v6045_v24 = vpop.eup %6044  ;;  %vm5005_vm9 = vweird.f32 %v6043_v53 }
0x4381   :  { %v5066_v42 = vadd.f32 1.0, %v6045_v24  ;;  %vm5006_vm5 = vmor %vm5004_vm4, %vm5005_vm9 }
0x4382   :  { %v5001_v59 = vsub.f32 1.0, %v5000_v56 }
0x4383   :  { %6046 = vrcp.f32 %v5066_v42  ;;  %v5078_v32 = vand.u32 2147483648, %v5066_v42  ;;  %vm5072_vm13 = vweird.f32 %v5066_v42  ;;  %v5076_v60 = vand.u32 2147483647, %v5066_v42 }
0x4384   :  { %v5002_v43 = vmul.f32 %v6043_v53, %v5001_v59 }
0x4385   :  { %v5079_v55 = vor.u32 1.1754944e-38, %v5078_v32  ;;  %vm5077_vm15 = vcmp.eq.f32.partialorder %v5076_v60, 8.507059e+37 }
0x4386   :  { %v5003_v28 = vadd.f32 %v6043_v53, %v5002_v43 }
0x4388   :  { %v5007_v1 = vsel %vm5006_vm5, %v6043_v53, %v5003_v28 }
0x4389   :  { %v5012_v11 = vsel %vm5009_vm6, %v5011_v47, %v5007_v1  ;;  %v6047_v48 = vpop.eup %6046 }
0x438a   :  { %v5068_v51 = vmul.f32 %v6047_v48, %v5066_v42  ;;  %vm5073_vm12 = vweird.f32 %v6047_v48  ;;  %v5015_v5 = vmul.f32 %v5012_v11, %v7925_v12 }
0x438b   :  { %vm5074_vm14 = vmor %vm5072_vm13, %vm5073_vm12 }
0x438c   :  { %v5069_v29 = vsub.f32 1.0, %v5068_v51 }
0x438e   :  { %v5070_v2 = vmul.f32 %v6047_v48, %v5069_v29 }
0x4390   :  { %v5071_v39 = vadd.f32 %v6047_v48, %v5070_v2 }
0x4392   :  { %v5075_v15 = vsel %vm5074_vm14, %v6047_v48, %v5071_v39 }
0x4393   :  { %v5080_v17 = vsel %vm5077_vm15, %v5079_v55, %v5075_v15 }
0x4394   :  { %v5083_v8 = vmul.f32 %v5080_v17, %v7930_v22  ;;  %v5105_v22 = vld [vmem:[#allocation4 + $0xc] sm:$0x3] }
0x43b7   :  { %v5018_v21 = vpop.permute.xlu1 %5017 }
0x43b8   :  { %v5020_v10 = vmul.f32 %v5018_v21, %v5012_v11 }
0x43ba   :  { %5022 = vrot.lane.b32.xlu0 %v5020_v10, %s6585_s27 }
0x43d0   :  { %v5086_v63 = vpop.permute.xlu2 %5085 }
0x43d1   :  { %v5088_v4 = vmul.f32 %v5086_v63, %v5080_v17 }
0x43d3   :  { %5090 = vrot.lane.b32.xlu1 %v5088_v4, %s6585_s27 }
0x442c   :  { %v5023_v49 = vpop.permute.xlu0 %5022 }
0x442d   :  { %v7949_v30 = vadd.f32 %v5023_v49, %v5015_v5 }
0x442f   :  { %6048 = vtanh.f32 %v7949_v30 }
0x4435   :  { %v6049_v7 = vpop.eup %6048 }
0x4436   :  { %5028 = vrot.lane.b32.xlu2 %v6049_v7, %s6583_s23 }
0x4445   :  { %v5091_v9 = vpop.permute.xlu1 %5090 }
0x4446   :  { %v7954_v26 = vadd.f32 %v5091_v9, %v5083_v8 }
0x4448   :  { %6050 = vtanh.f32 %v7954_v26 }
0x444e   :  { %v6051_v3 = vpop.eup %6050 }
0x444f   :  { %5096 = vrot.lane.b32.xlu0 %v6051_v3, %s6583_s23 }
0x4490   :  { %v5029_v18 = vpop.permute.xlu2 %5028 }
0x4491   :  { %v5031_v0 = vmul.f32 %v5029_v18, %v5012_v11  ;;  %v5239_v18 = vld [vmem:[#allocation4 + $0xe] sm:$0x3] }
0x4493   :  { %5033 = vrot.lane.b32.xlu1 %v5031_v0, %s6586_s28 }
0x44c1   :  { %v5097_v12 = vpop.permute.xlu0 %5096 }
0x44c2   :  { %v7959_v41 = vmul.f32 %v5097_v12, %v5080_v17 }
0x44c4   :  { %5172 = vrot.lane.b32.xlu2 %v7959_v41, %s6586_s28 }
0x4505   :  { %v7963_v16 = vpop.permute.xlu1 %5033 }
0x4506   :  { %5526 = vmatmul.msk.f32.vlgmr.msra.gmra.mxu0 %vm3062_vm8, %v7963_v16 }
0x451e   :  { %v5173_v20 = vpop.permute.xlu2 %5172 }
0x451f   :  { %5529 = vmatmul.msk.f32.vlgmr.msra.gmra.mxu1 %vm3062_vm8, %v5173_v20 }
0x4583   :  { %v5125_v58 = vpop.f32.mrf.mxu0 }
0x4584   :  { %v5128_v33 = vadd.f32 %v5125_v58, %v5105_v22  ;;  %v5305_v22 = vld [vmem:[#allocation5] sm:$0x3] }
0x4586   :  { %6052 = vtanh.f32 %v5128_v33  ;;  %v5527_v38 = vmul.f32 -1.442695, %v5128_v33 }
0x458c   :  { %v6053_v54 = vpop.eup %6052 }
0x458d   :  { %5151 = vrot.lane.b32.xlu0 %v6053_v54, %s6584_s18 }
0x459c   :  { %v5193_v27 = vpop.f32.mrf.mxu1 }
0x459d   :  { %v5196_v31 = vadd.f32 %v5193_v27, %v5171_v61 }
0x459f   :  { %6054 = vtanh.f32 %v5196_v31  ;;  %v5530_v46 = vmul.f32 -1.442695, %v5196_v31 }
0x45a0   :  { %6056 = vpow2.f32 %v5527_v38 }
0x45a5   :  { %v6055_v34 = vpop.eup %6054 }
0x45a6   :  { %5219 = vrot.lane.b32.xlu1 %v6055_v34, %s6584_s18  ;;  %v6057_v40 = vpop.eup %6056 }
0x45a7   :  { %v5132_v44 = vadd.f32 1.0, %v6057_v40 }
0x45a9   :  { %6058 = vrcp.f32 %v5132_v44  ;;  %v5144_v56 = vand.u32 2147483648, %v5132_v44  ;;  %vm5138_vm11 = vweird.f32 %v5132_v44  ;;  %v5142_v59 = vand.u32 2147483647, %v5132_v44 }
0x45aa   :  { %6060 = vpow2.f32 %v5530_v46 }
0x45ab   :  { %v5145_v43 = vor.u32 1.1754944e-38, %v5144_v56  ;;  %vm5143_vm2 = vcmp.eq.f32.partialorder %v5142_v59, 8.507059e+37 }
0x45af   :  { %v6059_v45 = vpop.eup %6058 }
0x45b0   :  { %v5134_v23 = vmul.f32 %v6059_v45, %v5132_v44  ;;  %v6061_v13 = vpop.eup %6060  ;;  %vm5139_vm10 = vweird.f32 %v6059_v45 }
0x45b1   :  { %v5200_v53 = vadd.f32 1.0, %v6061_v13  ;;  %vm5140_vm1 = vmor %vm5138_vm11, %vm5139_vm10 }
0x45b2   :  { %v5135_v50 = vsub.f32 1.0, %v5134_v23 }
0x45b3   :  { %6062 = vrcp.f32 %v5200_v53  ;;  %v5212_v10 = vand.u32 2147483648, %v5200_v53  ;;  %vm5206_vm9 = vweird.f32 %v5200_v53  ;;  %v5210_v48 = vand.u32 2147483647, %v5200_v53 }
0x45b4   :  { %v5136_v14 = vmul.f32 %v6059_v45, %v5135_v50 }
0x45b5   :  { %v5213_v29 = vor.u32 1.1754944e-38, %v5212_v10  ;;  %vm5211_vm5 = vcmp.eq.f32.partialorder %v5210_v48, 8.507059e+37 }
0x45b6   :  { %v5137_v52 = vadd.f32 %v6059_v45, %v5136_v14 }
0x45b8   :  { %v5141_v24 = vsel %vm5140_vm1, %v6059_v45, %v5137_v52 }
0x45b9   :  { %v5146_v28 = vsel %vm5143_vm2, %v5145_v43, %v5141_v24  ;;  %v6063_v6 = vpop.eup %6062 }
0x45ba   :  { %v5202_v1 = vmul.f32 %v6063_v6, %v5200_v53  ;;  %vm5207_vm0 = vweird.f32 %v6063_v6  ;;  %v5149_v60 = vmul.f32 %v5146_v28, %v7949_v30 }
0x45bb   :  { %vm5208_vm4 = vmor %vm5206_vm9, %vm5207_vm0 }
0x45bc   :  { %v5203_v47 = vsub.f32 1.0, %v5202_v1 }
0x45be   :  { %v5204_v21 = vmul.f32 %v6063_v6, %v5203_v47 }
0x45c0   :  { %v5205_v11 = vadd.f32 %v6063_v6, %v5204_v21 }
0x45c2   :  { %v5209_v51 = vsel %vm5208_vm4, %v6063_v6, %v5205_v11 }
0x45c3   :  { %v5214_v39 = vsel %vm5211_vm5, %v5213_v29, %v5209_v51 }
0x45c4   :  { %v5217_v63 = vmul.f32 %v5214_v39, %v7954_v26 }
0x45ff   :  { %v5152_v42 = vpop.permute.xlu0 %5151 }
0x4600   :  { %v5154_v37 = vmul.f32 %v5152_v42, %v5146_v28 }
0x4602   :  { %5156 = vrot.lane.b32.xlu2 %v5154_v37, %s6585_s27 }
0x4618   :  { %v5220_v2 = vpop.permute.xlu1 %5219 }
0x4619   :  { %v5222_v32 = vmul.f32 %v5220_v2, %v5214_v39 }
0x461b   :  { %5224 = vrot.lane.b32.xlu0 %v5222_v32, %s6585_s27 }
0x465c   :  { %v5157_v15 = vpop.permute.xlu2 %5156 }
0x465d   :  { %v7973_v55 = vadd.f32 %v5157_v15, %v5149_v60 }
0x465f   :  { %6064 = vtanh.f32 %v7973_v55 }
0x4665   :  { %v6065_v17 = vpop.eup %6064 }
0x4666   :  { %5162 = vrot.lane.b32.xlu1 %v6065_v17, %s6583_s23 }
0x468d   :  { %v5225_v4 = vpop.permute.xlu0 %5224 }
0x468e   :  { %v7978_v5 = vadd.f32 %v5225_v4, %v5217_v63 }
0x4690   :  { %6066 = vtanh.f32 %v7978_v5 }
0x4696   :  { %v6067_v49 = vpop.eup %6066 }
0x4697   :  { %5230 = vrot.lane.b32.xlu2 %v6067_v49, %s6583_s23 }
0x46d8   :  { %v5163_v7 = vpop.permute.xlu1 %5162 }
0x46d9   :  { %v5165_v30 = vmul.f32 %v5163_v7, %v5146_v28 }
0x46db   :  { %5167 = vrot.lane.b32.xlu0 %v5165_v30, %s6586_s28 }
0x46f1   :  { %v5231_v8 = vpop.permute.xlu2 %5230 }
0x46f2   :  { %v7983_v9 = vmul.f32 %v5231_v8, %v5214_v39 }
0x46f4   :  { %5306 = vrot.lane.b32.xlu1 %v7983_v9, %s6586_s28 }
0x474d   :  { %v7987_v3 = vpop.permute.xlu0 %5167 }
0x474e   :  { %5532 = vmatmul.msk.f32.vlgmr.msra.gmra.mxu2 %vm3062_vm8, %v7987_v3 }
0x4766   :  { %v5307_v26 = vpop.permute.xlu1 %5306 }
0x4767   :  { %5535 = vmatmul.msk.f32.vlgmr.msra.gmra.mxu3 %vm3062_vm8, %v5307_v26 }
0x47d1   :  { %v5259_v0 = vpop.f32.mrf.mxu2 }
0x47d2   :  { %v5262_v12 = vadd.f32 %v5259_v0, %v5239_v18 }
0x47d4   :  { %6068 = vtanh.f32 %v5262_v12  ;;  %v5533_v61 = vmul.f32 -1.442695, %v5262_v12 }
0x47da   :  { %v6069_v20 = vpop.eup %6068 }
0x47db   :  { %5285 = vrot.lane.b32.xlu2 %v6069_v20, %s6584_s18 }
0x47ea   :  { %v5327_v58 = vpop.f32.mrf.mxu3 }
0x47eb   :  { %v5330_v33 = vadd.f32 %v5327_v58, %v5305_v22 }
0x47ed   :  { %6070 = vtanh.f32 %v5330_v33  ;;  %v5536_v56 = vmul.f32 -1.442695, %v5330_v33 }
0x47ee   :  { %6072 = vpow2.f32 %v5533_v61 }
0x47f3   :  { %v6071_v54 = vpop.eup %6070 }
0x47f4   :  { %5353 = vrot.lane.b32.xlu0 %v6071_v54, %s6584_s18  ;;  %v6073_v27 = vpop.eup %6072 }
0x47f5   :  { %v5266_v31 = vadd.f32 1.0, %v6073_v27 }
0x47f7   :  { %6074 = vrcp.f32 %v5266_v31  ;;  %v5278_v46 = vand.u32 2147483648, %v5266_v31  ;;  %vm5272_vm6 = vweird.f32 %v5266_v31  ;;  %v5276_v23 = vand.u32 2147483647, %v5266_v31 }
0x47f8   :  { %6076 = vpow2.f32 %v5536_v56 }
0x47f9   :  { %v5279_v13 = vor.u32 1.1754944e-38, %v5278_v46  ;;  %vm5277_vm13 = vcmp.eq.f32.partialorder %v5276_v23, 8.507059e+37 }
0x47fd   :  { %v6075_v34 = vpop.eup %6074 }
0x47fe   :  { %v5268_v38 = vmul.f32 %v6075_v34, %v5266_v31  ;;  %vm5273_vm8 = vweird.f32 %v6075_v34  ;;  %v6077_v59 = vpop.eup %6076 }
0x47ff   :  { %vm5274_vm12 = vmor %vm5272_vm6, %vm5273_vm8  ;;  %v5334_v24 = vadd.f32 1.0, %v6077_v59 }
0x4800   :  { %v5269_v40 = vsub.f32 1.0, %v5268_v38 }
0x4801   :  { %6078 = vrcp.f32 %v5334_v24  ;;  %v5346_v1 = vand.u32 2147483648, %v5334_v24  ;;  %vm5340_vm15 = vweird.f32 %v5334_v24  ;;  %v5344_v47 = vand.u32 2147483647, %v5334_v24 }
0x4802   :  { %v5270_v44 = vmul.f32 %v6075_v34, %v5269_v40 }
0x4803   :  { %v5347_v11 = vor.u32 1.1754944e-38, %v5346_v1  ;;  %vm5345_vm11 = vcmp.eq.f32.partialorder %v5344_v47, 8.507059e+37 }
0x4804   :  { %v5271_v45 = vadd.f32 %v6075_v34, %v5270_v44 }
0x4806   :  { %v5275_v50 = vsel %vm5274_vm12, %v6075_v34, %v5271_v45 }
0x4807   :  { %v5280_v14 = vsel %vm5277_vm13, %v5279_v13, %v5275_v50  ;;  %v6079_v43 = vpop.eup %6078 }
0x4808   :  { %v5336_v42 = vmul.f32 %v6079_v43, %v5334_v24  ;;  %vm5341_vm14 = vweird.f32 %v6079_v43  ;;  %v5283_v29 = vmul.f32 %v5280_v14, %v7973_v55 }
0x4809   :  { %vm5342_vm10 = vmor %vm5340_vm15, %vm5341_vm14 }
0x480a   :  { %v5337_v28 = vsub.f32 1.0, %v5336_v42 }
0x480c   :  { %v5338_v37 = vmul.f32 %v6079_v43, %v5337_v28 }
0x480e   :  { %v5339_v6 = vadd.f32 %v6079_v43, %v5338_v37 }
0x4810   :  { %v5343_v21 = vsel %vm5342_vm10, %v6079_v43, %v5339_v6 }
0x4811   :  { %v5348_v48 = vsel %vm5345_vm11, %v5347_v11, %v5343_v21 }
0x4812   :  { %v5351_v60 = vmul.f32 %v5348_v48, %v7978_v5 }
0x4835   :  { %v5286_v53 = vpop.permute.xlu2 %5285 }
0x4836   :  { %v5288_v52 = vmul.f32 %v5286_v53, %v5280_v14 }
0x4838   :  { %5290 = vrot.lane.b32.xlu1 %v5288_v52, %s6585_s27 }
0x4866   :  { %v5354_v10 = vpop.permute.xlu0 %5353 }
0x4867   :  { %v5356_v51 = vmul.f32 %v5354_v10, %v5348_v48 }
0x4869   :  { %5358 = vrot.lane.b32.xlu2 %v5356_v51, %s6585_s27 }
0x4871   :  { %4424 = vrot.lane.b32.xlu2 %v7823_v57, %s6584_s18 }
0x4879   :  { %4832 = vrot.lane.b32.xlu2 %v7910_v35, %s6584_s18 }
0x4881   :  { %5235 = vrot.lane.b32.xlu2 %v7983_v9, %s6584_s18 }
0x48aa   :  { %v5291_v2 = vpop.permute.xlu1 %5290 }
0x48ab   :  { %v5293_v39 = vadd.f32 %v5291_v2, %v5283_v29 }
0x48ad   :  { %6080 = vtanh.f32 %v5293_v39 }
0x48b3   :  { %v6081_v32 = vpop.eup %6080 }
0x48b4   :  { %5296 = vrot.lane.b32.xlu0 %v6081_v32, %s6583_s23 }
0x48bc   :  { %4560 = vrot.lane.b32.xlu0 %v7852_v36, %s6584_s18 }
0x48c3   :  { %v5359_v57 = vpop.permute.xlu2 %5358 }
0x48c4   :  { %v5361_v15 = vadd.f32 %v5359_v57, %v5351_v60  ;;  %4967 = vrot.lane.b32.xlu0 %v7935_v19, %s6584_s18 }
0x48c6   :  { %6082 = vtanh.f32 %v5361_v15 }
0x48cb   :  { %v4425_v35 = vpop.permute.xlu2 %4424 }
0x48cc   :  { %v6083_v17 = vpop.eup %6082  ;;  %5495 = vst.msk [vmem:[%s8117_s19 + $0xe] sm:$0x3] %vm3192_vm3, %v4425_v35 }
0x48cd   :  { %5364 = vrot.lane.b32.xlu1 %v6083_v17, %s6583_s23 }
0x48d3   :  { %v4833_v55 = vpop.permute.xlu2 %4832 }
0x48d4   :  { %5513 = vst.msk [vmem:[%s8117_s19 + $0x8] sm:$0x3] %vm3192_vm3, %v4833_v55 }
0x48d5   :  { %5516 = vst.msk [vmem:[%s8117_s19 + $0x8] sm:$0x3] %vm3127_vm7, %v7939_v25  ;;  %4696 = vrot.lane.b32.xlu1 %v7881_v62, %s6584_s18 }
0x48db   :  { %v5236_v36 = vpop.permute.xlu2 %5235 }
0x48dc   :  { %5531 = vst.msk [vmem:[%s8117_s19 + $0x2] sm:$0x3] %vm3192_vm3, %v5236_v36 }
0x48dd   :  { %5101 = vrot.lane.b32.xlu1 %v7959_v41, %s6584_s18 }
0x4926   :  { %v5297_v19 = vpop.permute.xlu0 %5296 }
0x4927   :  { %v5299_v63 = vmul.f32 %v5297_v19, %v5280_v14 }
0x4929   :  { %5301 = vrot.lane.b32.xlu0 %v5299_v63, %s6586_s28 }
0x492e   :  { %v4561_v4 = vpop.permute.xlu0 %4560 }
0x492f   :  { %5501 = vst.msk [vmem:[%s8117_s19 + $0xc] sm:$0x3] %vm3192_vm3, %v4561_v4 }
0x4930   :  { %5528 = vst.msk [vmem:[%s8117_s19 + $0xc] sm:$0x3] %vm3127_vm7, %v7987_v3 }
0x4936   :  { %v4968_v62 = vpop.permute.xlu0 %4967 }
0x4937   :  { %5519 = vst.msk [vmem:[%s8117_s19 + $0x6] sm:$0x3] %vm3192_vm3, %v4968_v62 }
0x493f   :  { %v5365_v25 = vpop.permute.xlu1 %5364 }
0x4940   :  { %v5367_v41 = vmul.f32 %v5365_v25, %v5348_v48 }
0x4942   :  { %5369 = vrot.lane.b32.xlu1 %v5367_v41, %s6584_s18 }
0x4947   :  { %v4697_v5 = vpop.permute.xlu1 %4696 }
0x4948   :  { %5507 = vst.msk [vmem:[%s8117_s19 + $0xa] sm:$0x3] %vm3192_vm3, %v4697_v5 }
0x4949   :  { %5522 = vst.msk [vmem:[%s8117_s19 + $0xa] sm:$0x3] %vm3127_vm7, %v7963_v16 }
0x494f   :  { %v5102_v49 = vpop.permute.xlu1 %5101 }
0x4950   :  { %5525 = vst.msk [vmem:[%s8117_s19 + $0x4] sm:$0x3] %vm3192_vm3, %v5102_v49 }
0x499b   :  { %v5302_v7 = vpop.permute.xlu0 %5301 }
0x499c   :  { %5534 = vst.msk [vmem:[%s8117_s19 + $0xe] sm:$0x3] %vm3127_vm7, %v5302_v7 }
0x49b4   :  { %v5370_v30 = vpop.permute.xlu1 %5369 }
0x49b5   :  { %5372 = vst.msk [vmem:[%s8117_s19] sm:$0x3] %vm3192_vm3, %v5370_v30 }
0x49b6   :  { %5377 = vsyncpa [#allocation7], 1 }
0x49b7   :  { %5378 = vsyncpa [#allocation9], 1 }
0x49b8   :  { %5379 = vsyncpa [#allocation12], 1 }
0x49b9   :  { %5380 = vsyncpa [#allocation15], 1 }
0x49ba   :  { %5381 = vsyncpa [#allocation18], 1 }
0x49bb   :  { %5382 = vsyncpa [#allocation21], 1 }
0x49bc   :  { %5383 = vsyncpa [#allocation24], 1 }
0x49bd   :  { %5384 = vsyncpa [#allocation27], 1 }
0x49be   :  { %5385 = vsyncpa [#allocation30], 1 }
0x49bf   :  { %5386 = vsyncpa [#allocation33], 1 }

</bundles_post_ra>
